<compile_context>
chip_gen: v6e
topology: v6e:2x2x1
jax: 0.10.0
libtpu: 0.0.40
codegen_flags: <defaults>
</compile_context>

<pallas_src>
import numpy as np
import jax
import jax.numpy as jnp
from jax.experimental import pallas as pl
from jax.experimental.pallas import tpu as pltpu

LATENT_DIM = 32
BN_EPS = 1e-5
TB = 8                       # samples per grid step (block row count = TB*9)


# ----------------------------- weight packing ------------------------------ #
# ConvT1 (64->32, k4 s2 p1): parity-packed 3x3-neighbourhood form.
#   W1p[(ny*3+nx)*64 + ci, (py*2+px)*32 + co]
def _pack_conv1_weight(w_t):
    w = np.asarray(w_t, np.float32)                      # (Cin=64, Cout=32, 4, 4)
    out = np.zeros((9 * 64, 4 * 32), np.float32)         # (576, 128)
    for ny in range(3):
        for nx in range(3):
            for py in range(2):
                for px in range(2):
                    if ny in (py, py + 1) and nx in (px, px + 1):
                        ky, kx = 3 + py - 2 * ny, 3 + px - 2 * nx
                        r0 = (ny * 3 + nx) * 64
                        c0 = (py * 2 + px) * 32
                        out[r0:r0 + 64, c0:c0 + 32] = w[:, :, ky, kx]
    return out


# ConvT2 (32->1, k4 s2 p1) applied to the parity-packed half grid:
#   W2p[(dy*3+dx)*128 + (py*2+px)*32 + ci, ay*4+ax]   (output pixel img[4u+ay, 4v+ax])
def _pack_conv2_weight(w_t):
    w = np.asarray(w_t, np.float32)                      # (Cin=32, Cout=1, 4, 4)
    out = np.zeros((9 * 128, 16), np.float32)            # (1152, 16)
    for dy in range(3):
        for dx in range(3):
            for py in range(2):
                for px in range(2):
                    for ay in range(4):
                        for ax in range(4):
                            ky = ay + 5 - 4 * dy - 2 * py
                            kx = ax + 5 - 4 * dx - 2 * px
                            if 0 <= ky < 4 and 0 <= kx < 4:
                                r0 = (dy * 3 + dx) * 128 + (py * 2 + px) * 32
                                out[r0:r0 + 32, ay * 4 + ax] = w[:, 0, ky, kx]
    return out


def _band_expand(wp, cin, cblk):
    """Expand the packed weight into 3 (per-dy) banded matrices.

    out[dy, xp*cin + ci, v*cblk + n] = wp[(dy*3 + (xp-v))*cin + ci, n]  if 0<=xp-v<=2
    so that a single matmul of a padded x-row (lanes = (x_pad, cin)) against out[dy]
    yields all 7 output columns at once (lanes = (v, n)).
    """
    out = np.zeros((3, 9 * cin, 7 * cblk), np.float32)
    for dy in range(3):
        for v in range(7):
            for dx in range(3):
                xp = v + dx
                src = wp[(dy * 3 + dx) * cin:(dy * 3 + dx + 1) * cin, :]
                out[dy, xp * cin:(xp + 1) * cin, v * cblk:(v + 1) * cblk] = src
    return out


def prepare_params(params):
    w1p = _pack_conv1_weight(params["ct1_w"])                       # (576, 128)
    w2p = _pack_conv2_weight(params["ct2_w"])                       # (1152, 16)
    w1r = _band_expand(w1p, 64, 128)                                # (3, 576, 896)
    w2r = _band_expand(w2p, 128, 16)                                # (3, 1152, 112)
    w2r = np.pad(w2r, ((0, 0), (0, 0), (0, 16)))                    # lane-dense N=128
    b1r = np.tile(np.asarray(params["ct1_b"], np.float32), 4 * 7).reshape(1, 896)
    b2r = np.zeros((1, 128), np.float32)
    b2r[0, :112] = float(np.asarray(params["ct2_b"])[0])
    return {
        "lin_w": params["lin_w"].astype(jnp.float32),               # (32, 3136)
        "lin_b": params["lin_b"].astype(jnp.float32),               # (3136,)
        "w1r": jnp.asarray(w1r, jnp.bfloat16),
        "b1r": jnp.asarray(b1r, jnp.float32),
        "w2r": jnp.asarray(w2r, jnp.bfloat16),
        "b2r": jnp.asarray(b2r, jnp.float32),
        "bn_g": params["bn_g"].astype(jnp.float32),
        "bn_b": params["bn_b"].astype(jnp.float32),
    }


# ------------------------------ Pallas kernels ------------------------------ #

def _front_kernel(rows_ref, mask_ref, w_ref, b_ref, y_ref, st_ref):
    # rows_ref: (TB*9, 576) f32  -- zero-padded NHWC rows (b, y_pad) x (x_pad, cin)
    # per block: ConvT1 (3 banded matmuls) + bias + ReLU + masked BN partial stats
    tb9 = rows_ref.shape[0]
    m = tb9 - 2                                                     # valid-ish output rows
    acc = jnp.dot(rows_ref[0:m, :].astype(jnp.bfloat16), w_ref[0],
                  preferred_element_type=jnp.float32)
    acc += jnp.dot(rows_ref[1:m + 1, :].astype(jnp.bfloat16), w_ref[1],
                   preferred_element_type=jnp.float32)
    acc += jnp.dot(rows_ref[2:m + 2, :].astype(jnp.bfloat16), w_ref[2],
                   preferred_element_type=jnp.float32)
    y = jnp.maximum(acc + b_ref[...], 0.0)                          # (m, 896) f32
    y_ref[0:m, :] = y.astype(y_ref.dtype)
    y_ref[m:tb9, :] = jnp.zeros((tb9 - m, y_ref.shape[1]), y_ref.dtype)

    ym = y * mask_ref[0:m, :]                # zero rows from pad-y / pad-samples (f32 stats)
    st_ref[0, 0:1, :] = jnp.sum(ym, axis=0, keepdims=True)
    st_ref[0, 1:2, :] = jnp.sum(ym * ym, axis=0, keepdims=True)


def _back_kernel(rows_ref, w_ref, b_ref, o_ref):
    # rows_ref: (TB*9, 1152) f32 -- BN-applied, zero-padded half-grid rows
    # per block: ConvT2 (3 banded matmuls) + bias + tanh, one lane-dense store
    tb9 = rows_ref.shape[0]
    m = tb9 - 2
    acc = jnp.dot(rows_ref[0:m, :].astype(jnp.bfloat16), w_ref[0],
                  preferred_element_type=jnp.float32)
    acc += jnp.dot(rows_ref[1:m + 1, :].astype(jnp.bfloat16), w_ref[1],
                   preferred_element_type=jnp.float32)
    acc += jnp.dot(rows_ref[2:m + 2, :].astype(jnp.bfloat16), w_ref[2],
                   preferred_element_type=jnp.float32)
    o_ref[0:m, :] = jnp.tanh(acc + b_ref[...])
    o_ref[m:tb9, :] = jnp.zeros((tb9 - m, o_ref.shape[1]), o_ref.dtype)


# --------------------------- pallas_call wrappers --------------------------- #

def _front_call(rows, mask, w1r, b1r):
    nrows = rows.shape[0]
    nb = nrows // (TB * 9)
    return pl.pallas_call(
        _front_kernel,
        out_shape=(jax.ShapeDtypeStruct((nrows, 896), jnp.float32),   # pre-BN, parity-packed
                   jax.ShapeDtypeStruct((nb, 2, 896), jnp.float32)),  # per-block sum / sumsq
        grid=(nb,),
        in_specs=[pl.BlockSpec((TB * 9, 576), lambda i: (i, 0)),
                  pl.BlockSpec((TB * 9, 1), lambda i: (i, 0)),
                  pl.BlockSpec((3, 576, 896), lambda i: (0, 0, 0)),
                  pl.BlockSpec((1, 896), lambda i: (0, 0))],
        out_specs=(pl.BlockSpec((TB * 9, 896), lambda i: (i, 0)),
                   pl.BlockSpec((1, 2, 896), lambda i: (i, 0, 0))),
        compiler_params=pltpu.CompilerParams(dimension_semantics=("parallel",)),
    )(rows, mask, w1r, b1r)


def _back_call(rows2, w2r, b2r):
    nrows = rows2.shape[0]
    nb = nrows // (TB * 9)
    return pl.pallas_call(
        _back_kernel,
        out_shape=jax.ShapeDtypeStruct((nrows, 128), jnp.float32),
        grid=(nb,),
        in_specs=[pl.BlockSpec((TB * 9, 1152), lambda i: (i, 0)),
                  pl.BlockSpec((3, 1152, 128), lambda i: (0, 0, 0)),
                  pl.BlockSpec((1, 128), lambda i: (0, 0))],
        out_specs=pl.BlockSpec((TB * 9, 128), lambda i: (i, 0)),
        compiler_params=pltpu.CompilerParams(dimension_semantics=("parallel",)),
    )(rows2, w2r, b2r)


# ------------------------------- forward pass ------------------------------- #

@jax.jit
def generator_forward(prep, z):
    B = z.shape[0]
    nb = -(-B // TB)
    b_pad = nb * TB

    # Linear + ReLU over the full batch as one XLA matmul (hoisted per review),
    # laid out as zero-padded rows (b, y_pad) x (x_pad, cin) for the front kernel.
    h = jnp.maximum(z @ prep["lin_w"] + prep["lin_b"], 0.0)          # (B, 3136)
    h = h.reshape(B, 7, 7, 64)                                       # NHWC
    hpad = jnp.pad(h, ((0, b_pad - B), (1, 1), (1, 1), (0, 0)))      # (b_pad, 9, 9, 64)
    rows1 = hpad.reshape(b_pad * 9, 9 * 64)                          # (b_pad*9, 576)

    # validity mask for BN statistics: interior output row AND real (non-padded) sample
    ridx = jnp.arange(b_pad * 9)
    mask = ((ridx % 9 < 7) & (ridx // 9 < B)).astype(jnp.float32).reshape(-1, 1)

    y1, stats = _front_call(rows1, mask, prep["w1r"], prep["b1r"])

    # BatchNorm batch statistics over (N, H, W): tiny XLA reduction of the partials.
    s = stats[:, 0, :].sum(axis=0).reshape(7, 4, 32).sum(axis=(0, 1))
    ss = stats[:, 1, :].sum(axis=0).reshape(7, 4, 32).sum(axis=(0, 1))
    n = jnp.float32(B * 14 * 14)
    mean = s / n
    var = jnp.maximum(ss / n - mean * mean, 0.0)                     # biased (train-mode)
    scale_c = prep["bn_g"] * jax.lax.rsqrt(var + BN_EPS)
    shift_c = prep["bn_b"] - mean * scale_c

    # Tiny XLA glue: BN apply + zero-pad the half grid for ConvT2's 3x3 neighbourhood.
    y1v = y1.reshape(b_pad, 9, 7, 128)[:, :7]                        # (b_pad, 7, 7, 128)
    y1bn = y1v * jnp.tile(scale_c, 4) + jnp.tile(shift_c, 4)
    rows2 = jnp.pad(y1bn, ((0, 0), (1, 1), (1, 1), (0, 0))).reshape(b_pad * 9, 9 * 128)

    out_raw = _back_call(rows2, prep["w2r"], prep["b2r"])            # (b_pad*9, 128)

    # out_raw[b*9+u, v*16 + ay*4+ax] == img[b, 4u+ay, 4v+ax]; final interleave in XLA.
    outv = out_raw.reshape(b_pad, 9, 128)[:B, :7, :112]              # (B, 7, 112)
    return (outv.reshape(B, 7, 7, 4, 4)
                .transpose(0, 1, 3, 2, 4)
                .reshape(B, 1, 28, 28))


# ---------------------------- reference / params ---------------------------- #

def init_params(key, latent_dim):
    ks = jax.random.split(key, 8)
    return {
        "lin_w": 0.05 * jax.random.normal(ks[0], (latent_dim, 7 * 7 * 64), jnp.float32),
        "lin_b": 0.05 * jax.random.normal(ks[1], (7 * 7 * 64,), jnp.float32),
        # PyTorch ConvTranspose2d weight layout: (in_channels, out_channels, kH, kW)
        "ct1_w": 0.05 * jax.random.normal(ks[2], (64, 32, 4, 4), jnp.float32),
        "ct1_b": 0.05 * jax.random.normal(ks[3], (32,), jnp.float32),
        "bn_g": 1.0 + 0.1 * jax.random.normal(ks[4], (32,), jnp.float32),
        "bn_b": 0.1 * jax.random.normal(ks[5], (32,), jnp.float32),
        "ct2_w": 0.05 * jax.random.normal(ks[6], (32, 1, 4, 4), jnp.float32),
        "ct2_b": 0.05 * jax.random.normal(ks[7], (1,), jnp.float32),
    }


def _reference(params, z):
    """Pure-JAX/XLA reference matching the PyTorch module (f32)."""
    B = z.shape[0]
    h = jnp.maximum(z @ params["lin_w"] + params["lin_b"], 0.0)
    x = h.reshape(B, 7, 7, 64).transpose(0, 3, 1, 2)                 # 'b (h w c) -> b c h w'

    def convt(x_nchw, w_t, b):
        rhs = jnp.flip(w_t, (2, 3)).transpose(1, 0, 2, 3)            # (Cout, Cin, 4, 4)
        y = jax.lax.conv_general_dilated(
            x_nchw, rhs, window_strides=(1, 1), padding=[(2, 2), (2, 2)],
            lhs_dilation=(2, 2), rhs_dilation=(1, 1),
            dimension_numbers=("NCHW", "OIHW", "NCHW"))
        return y + b.reshape(1, -1, 1, 1)

    y1 = jnp.maximum(convt(x, params["ct1_w"], params["ct1_b"]), 0.0)
    mean = y1.mean(axis=(0, 2, 3), keepdims=True)
    var = ((y1 - mean) ** 2).mean(axis=(0, 2, 3), keepdims=True)
    y1 = (params["bn_g"].reshape(1, -1, 1, 1) * (y1 - mean) * jax.lax.rsqrt(var + BN_EPS)
          + params["bn_b"].reshape(1, -1, 1, 1))
    return jnp.tanh(convt(y1, params["ct2_w"], params["ct2_b"]))


if __name__ == "__main__":
    key = jax.random.PRNGKey(0)
    pkey, zkey = jax.random.split(key)
    params = init_params(pkey, LATENT_DIM)
    z = jax.random.normal(zkey, (2, LATENT_DIM), jnp.float32)

    prep = prepare_params(params)
    out = generator_forward(prep, z)
    out = jax.block_until_ready(out)

    assert out.shape == (2, 1, 28, 28), out.shape
    assert bool(jnp.all(jnp.isfinite(out)))
    assert bool(jnp.all(jnp.abs(out) <= 1.0 + 1e-6))                 # Tanh range

    ref = _reference(params, z)
    max_err = float(jnp.max(jnp.abs(out - ref)))
    assert max_err < 0.1, max_err                                    # bf16-matmul tolerance

    print("KERNEL_OK")
</pallas_src>

<mosaic_0001>
module attributes {stable_mosaic.version = 11 : i64} {
  func.func @_back_kernel(%arg0: i32, %arg1: memref<72x1152xf32, #tpu.memory_space<vmem>>, %arg2: memref<3x1152x128xbf16, #tpu.memory_space<vmem>>, %arg3: memref<1x128xf32, #tpu.memory_space<vmem>>, %arg4: memref<72x128xf32, #tpu.memory_space<vmem>>) attributes {dimension_semantics = [#tpu.dimension_semantics<parallel>], iteration_bounds = array<i64: 1>, scalar_prefetch = 0 : i64, scratch_operands = 0 : i64, tpu.core_type = #tpu.core_type<tc>, window_params = [{transform_indices = @transform_0, window_bounds = array<i64: 72, 1152>}, {pipeline_mode = #tpu.pipeline_mode<synchronous>, transform_indices = @transform_1, window_bounds = array<i64: 3, 1152, 128>}, {pipeline_mode = #tpu.pipeline_mode<synchronous>, transform_indices = @transform_2, window_bounds = array<i64: 1, 128>}, {transform_indices = @transform_3, window_bounds = array<i64: 72, 128>}]} {
    %c0 = arith.constant 0 : index
    %c0_0 = arith.constant 0 : index
    %0 = vector.load %arg1[%c0, %c0_0] : memref<72x1152xf32, #tpu.memory_space<vmem>>, vector<70x1152xf32>
    %1 = arith.truncf %0 : vector<70x1152xf32> to vector<70x1152xbf16>
    %c0_1 = arith.constant 0 : index
    %c0_2 = arith.constant 0 : index
    %c0_3 = arith.constant 0 : index
    %2 = vector.load %arg2[%c0_1, %c0_2, %c0_3] : memref<3x1152x128xbf16, #tpu.memory_space<vmem>>, vector<1x1152x128xbf16>
    %3 = vector.shape_cast %2 : vector<1x1152x128xbf16> to vector<1152x128xbf16>
    %cst = arith.constant dense<0.000000e+00> : vector<70x128xf32>
    %4 = tpu.matmul %1, %3, %cst {dimension_numbers = #tpu.dot_dimension_numbers<[1], [0], [0], [1], [0, 0, 1, 1], [], []>} : vector<70x1152xbf16>, vector<1152x128xbf16>, vector<70x128xf32> -> vector<70x128xf32>
    %c1 = arith.constant 1 : index
    %c0_4 = arith.constant 0 : index
    %5 = vector.load %arg1[%c1, %c0_4] : memref<72x1152xf32, #tpu.memory_space<vmem>>, vector<70x1152xf32>
    %6 = arith.truncf %5 : vector<70x1152xf32> to vector<70x1152xbf16>
    %c1_5 = arith.constant 1 : index
    %c0_6 = arith.constant 0 : index
    %c0_7 = arith.constant 0 : index
    %7 = vector.load %arg2[%c1_5, %c0_6, %c0_7] : memref<3x1152x128xbf16, #tpu.memory_space<vmem>>, vector<1x1152x128xbf16>
    %8 = vector.shape_cast %7 : vector<1x1152x128xbf16> to vector<1152x128xbf16>
    %cst_8 = arith.constant dense<0.000000e+00> : vector<70x128xf32>
    %9 = tpu.matmul %6, %8, %cst_8 {dimension_numbers = #tpu.dot_dimension_numbers<[1], [0], [0], [1], [0, 0, 1, 1], [], []>} : vector<70x1152xbf16>, vector<1152x128xbf16>, vector<70x128xf32> -> vector<70x128xf32>
    %10 = arith.addf %4, %9 : vector<70x128xf32>
    %c2 = arith.constant 2 : index
    %c0_9 = arith.constant 0 : index
    %11 = vector.load %arg1[%c2, %c0_9] : memref<72x1152xf32, #tpu.memory_space<vmem>>, vector<70x1152xf32>
    %12 = arith.truncf %11 : vector<70x1152xf32> to vector<70x1152xbf16>
    %c2_10 = arith.constant 2 : index
    %c0_11 = arith.constant 0 : index
    %c0_12 = arith.constant 0 : index
    %13 = vector.load %arg2[%c2_10, %c0_11, %c0_12] : memref<3x1152x128xbf16, #tpu.memory_space<vmem>>, vector<1x1152x128xbf16>
    %14 = vector.shape_cast %13 : vector<1x1152x128xbf16> to vector<1152x128xbf16>
    %cst_13 = arith.constant dense<0.000000e+00> : vector<70x128xf32>
    %15 = tpu.matmul %12, %14, %cst_13 {dimension_numbers = #tpu.dot_dimension_numbers<[1], [0], [0], [1], [0, 0, 1, 1], [], []>} : vector<70x1152xbf16>, vector<1152x128xbf16>, vector<70x128xf32> -> vector<70x128xf32>
    %16 = arith.addf %10, %15 : vector<70x128xf32>
    %c0_14 = arith.constant 0 : index
    %c0_15 = arith.constant 0 : index
    %17 = vector.load %arg3[%c0_14, %c0_15] : memref<1x128xf32, #tpu.memory_space<vmem>>, vector<1x128xf32>
    %18 = vector.broadcast %17 : vector<1x128xf32> to vector<70x128xf32>
    %19 = arith.addf %16, %18 : vector<70x128xf32>
    %20 = math.tanh %19 : vector<70x128xf32>
    %c0_16 = arith.constant 0 : index
    %c0_17 = arith.constant 0 : index
    %21 = vector.load %arg4[%c0_16, %c0_17] : memref<72x128xf32, #tpu.memory_space<vmem>>, vector<70x128xf32>
    tpu.vector_store %arg4[%c0_16, %c0_17], %20 {strides = array<i32>} : memref<72x128xf32, #tpu.memory_space<vmem>>, vector<70x128xf32>,
    %cst_18 = arith.constant 0.000000e+00 : f32
    %22 = vector.broadcast %cst_18 : f32 to vector<2x128xf32>
    %c70 = arith.constant 70 : index
    %c0_19 = arith.constant 0 : index
    %23 = vector.load %arg4[%c70, %c0_19] : memref<72x128xf32, #tpu.memory_space<vmem>>, vector<2x128xf32>
    tpu.vector_store %arg4[%c70, %c0_19], %22 {strides = array<i32>} : memref<72x128xf32, #tpu.memory_space<vmem>>, vector<2x128xf32>,
    return
  }
  func.func @transform_0(%arg0: i32) -> (i32, i32) {
    %c0_i32 = arith.constant 0 : i32
    %c0_i32_0 = arith.constant 0 : i32
    return %arg0, %c0_i32 : i32, i32
  }
  func.func @transform_1(%arg0: i32) -> (i32, i32, i32) {
    %c0_i32 = arith.constant 0 : i32
    %c0_i32_0 = arith.constant 0 : i32
    %c0_i32_1 = arith.constant 0 : i32
    %c0_i32_2 = arith.constant 0 : i32
    return %c0_i32, %c0_i32_0, %c0_i32_1 : i32, i32, i32
  }
  func.func @transform_2(%arg0: i32) -> (i32, i32) {
    %c0_i32 = arith.constant 0 : i32
    %c0_i32_0 = arith.constant 0 : i32
    %c0_i32_1 = arith.constant 0 : i32
    return %c0_i32, %c0_i32_0 : i32, i32
  }
  func.func @transform_3(%arg0: i32) -> (i32, i32) {
    %c0_i32 = arith.constant 0 : i32
    %c0_i32_0 = arith.constant 0 : i32
    return %arg0, %c0_i32 : i32, i32
  }
}

module attributes {stable_mosaic.version = 11 : i64} {
  func.func @_front_kernel(%arg0: i32, %arg1: memref<72x576xf32, #tpu.memory_space<vmem>>, %arg2: memref<72x1xf32, #tpu.memory_space<vmem>>, %arg3: memref<3x576x896xbf16, #tpu.memory_space<vmem>>, %arg4: memref<1x896xf32, #tpu.memory_space<vmem>>, %arg5: memref<72x896xf32, #tpu.memory_space<vmem>>, %arg6: memref<1x2x896xf32, #tpu.memory_space<vmem>>) attributes {dimension_semantics = [#tpu.dimension_semantics<parallel>], iteration_bounds = array<i64: 1>, scalar_prefetch = 0 : i64, scratch_operands = 0 : i64, tpu.core_type = #tpu.core_type<tc>, window_params = [{transform_indices = @transform_0, window_bounds = array<i64: 72, 576>}, {transform_indices = @transform_1, window_bounds = array<i64: 72, 1>}, {pipeline_mode = #tpu.pipeline_mode<synchronous>, transform_indices = @transform_2, window_bounds = array<i64: 3, 576, 896>}, {pipeline_mode = #tpu.pipeline_mode<synchronous>, transform_indices = @transform_3, window_bounds = array<i64: 1, 896>}, {transform_indices = @transform_4, window_bounds = array<i64: 72, 896>}, {transform_indices = @transform_5, window_bounds = array<i64: 1, 2, 896>}]} {
    %c0 = arith.constant 0 : index
    %c0_0 = arith.constant 0 : index
    %0 = vector.load %arg1[%c0, %c0_0] : memref<72x576xf32, #tpu.memory_space<vmem>>, vector<70x576xf32>
    %1 = arith.truncf %0 : vector<70x576xf32> to vector<70x576xbf16>
    %c0_1 = arith.constant 0 : index
    %c0_2 = arith.constant 0 : index
    %c0_3 = arith.constant 0 : index
    %2 = vector.load %arg3[%c0_1, %c0_2, %c0_3] : memref<3x576x896xbf16, #tpu.memory_space<vmem>>, vector<1x576x896xbf16>
    %3 = vector.shape_cast %2 : vector<1x576x896xbf16> to vector<576x896xbf16>
    %cst = arith.constant dense<0.000000e+00> : vector<70x896xf32>
    %4 = tpu.matmul %1, %3, %cst {dimension_numbers = #tpu.dot_dimension_numbers<[1], [0], [0], [1], [0, 0, 1, 1], [], []>} : vector<70x576xbf16>, vector<576x896xbf16>, vector<70x896xf32> -> vector<70x896xf32>
    %c1 = arith.constant 1 : index
    %c0_4 = arith.constant 0 : index
    %5 = vector.load %arg1[%c1, %c0_4] : memref<72x576xf32, #tpu.memory_space<vmem>>, vector<70x576xf32>
    %6 = arith.truncf %5 : vector<70x576xf32> to vector<70x576xbf16>
    %c1_5 = arith.constant 1 : index
    %c0_6 = arith.constant 0 : index
    %c0_7 = arith.constant 0 : index
    %7 = vector.load %arg3[%c1_5, %c0_6, %c0_7] : memref<3x576x896xbf16, #tpu.memory_space<vmem>>, vector<1x576x896xbf16>
    %8 = vector.shape_cast %7 : vector<1x576x896xbf16> to vector<576x896xbf16>
    %cst_8 = arith.constant dense<0.000000e+00> : vector<70x896xf32>
    %9 = tpu.matmul %6, %8, %cst_8 {dimension_numbers = #tpu.dot_dimension_numbers<[1], [0], [0], [1], [0, 0, 1, 1], [], []>} : vector<70x576xbf16>, vector<576x896xbf16>, vector<70x896xf32> -> vector<70x896xf32>
    %10 = arith.addf %4, %9 : vector<70x896xf32>
    %c2 = arith.constant 2 : index
    %c0_9 = arith.constant 0 : index
    %11 = vector.load %arg1[%c2, %c0_9] : memref<72x576xf32, #tpu.memory_space<vmem>>, vector<70x576xf32>
    %12 = arith.truncf %11 : vector<70x576xf32> to vector<70x576xbf16>
    %c2_10 = arith.constant 2 : index
    %c0_11 = arith.constant 0 : index
    %c0_12 = arith.constant 0 : index
    %13 = vector.load %arg3[%c2_10, %c0_11, %c0_12] : memref<3x576x896xbf16, #tpu.memory_space<vmem>>, vector<1x576x896xbf16>
    %14 = vector.shape_cast %13 : vector<1x576x896xbf16> to vector<576x896xbf16>
    %cst_13 = arith.constant dense<0.000000e+00> : vector<70x896xf32>
    %15 = tpu.matmul %12, %14, %cst_13 {dimension_numbers = #tpu.dot_dimension_numbers<[1], [0], [0], [1], [0, 0, 1, 1], [], []>} : vector<70x576xbf16>, vector<576x896xbf16>, vector<70x896xf32> -> vector<70x896xf32>
    %16 = arith.addf %10, %15 : vector<70x896xf32>
    %c0_14 = arith.constant 0 : index
    %c0_15 = arith.constant 0 : index
    %17 = vector.load %arg4[%c0_14, %c0_15] : memref<1x896xf32, #tpu.memory_space<vmem>>, vector<1x896xf32>
    %18 = vector.broadcast %17 : vector<1x896xf32> to vector<70x896xf32>
    %19 = arith.addf %16, %18 : vector<70x896xf32>
    %cst_16 = arith.constant 0.000000e+00 : f32
    %20 = vector.broadcast %cst_16 : f32 to vector<70x896xf32>
    %21 = arith.maximumf %19, %20 : vector<70x896xf32>
    %c0_17 = arith.constant 0 : index
    %c0_18 = arith.constant 0 : index
    %22 = vector.load %arg5[%c0_17, %c0_18] : memref<72x896xf32, #tpu.memory_space<vmem>>, vector<70x896xf32>
    tpu.vector_store %arg5[%c0_17, %c0_18], %21 {strides = array<i32>} : memref<72x896xf32, #tpu.memory_space<vmem>>, vector<70x896xf32>,
    %cst_19 = arith.constant 0.000000e+00 : f32
    %23 = vector.broadcast %cst_19 : f32 to vector<2x896xf32>
    %c70 = arith.constant 70 : index
    %c0_20 = arith.constant 0 : index
    %24 = vector.load %arg5[%c70, %c0_20] : memref<72x896xf32, #tpu.memory_space<vmem>>, vector<2x896xf32>
    tpu.vector_store %arg5[%c70, %c0_20], %23 {strides = array<i32>} : memref<72x896xf32, #tpu.memory_space<vmem>>, vector<2x896xf32>,
    %c0_21 = arith.constant 0 : index
    %c0_22 = arith.constant 0 : index
    %25 = vector.load %arg2[%c0_21, %c0_22] : memref<72x1xf32, #tpu.memory_space<vmem>>, vector<70x1xf32>
    %26 = vector.broadcast %25 : vector<70x1xf32> to vector<70x896xf32>
    %27 = arith.mulf %21, %26 : vector<70x896xf32>
    %cst_23 = arith.constant dense<0.000000e+00> : vector<896xf32>
    %28 = vector.multi_reduction <add>, %27, %cst_23 [0] : vector<70x896xf32> to vector<896xf32>
    %29 = vector.shape_cast %28 : vector<896xf32> to vector<1x896xf32>
    %c0_24 = arith.constant 0 : index
    %c0_25 = arith.constant 0 : index
    %c0_26 = arith.constant 0 : index
    %30 = vector.load %arg6[%c0_24, %c0_25, %c0_26] : memref<1x2x896xf32, #tpu.memory_space<vmem>>, vector<1x1x896xf32>
    %31 = vector.shape_cast %30 : vector<1x1x896xf32> to vector<1x896xf32>
    %32 = vector.shape_cast %29 : vector<1x896xf32> to vector<1x1x896xf32>
    tpu.vector_store %arg6[%c0_24, %c0_25, %c0_26], %32 {strides = array<i32>} : memref<1x2x896xf32, #tpu.memory_space<vmem>>, vector<1x1x896xf32>,
    %33 = arith.mulf %27, %27 : vector<70x896xf32>
    %cst_27 = arith.constant dense<0.000000e+00> : vector<896xf32>
    %34 = vector.multi_reduction <add>, %33, %cst_27 [0] : vector<70x896xf32> to vector<896xf32>
    %35 = vector.shape_cast %34 : vector<896xf32> to vector<1x896xf32>
    %c0_28 = arith.constant 0 : index
    %c1_29 = arith.constant 1 : index
    %c0_30 = arith.constant 0 : index
    %36 = vector.load %arg6[%c0_28, %c1_29, %c0_30] : memref<1x2x896xf32, #tpu.memory_space<vmem>>, vector<1x1x896xf32>
    %37 = vector.shape_cast %36 : vector<1x1x896xf32> to vector<1x896xf32>
    %38 = vector.shape_cast %35 : vector<1x896xf32> to vector<1x1x896xf32>
    tpu.vector_store %arg6[%c0_28, %c1_29, %c0_30], %38 {strides = array<i32>} : memref<1x2x896xf32, #tpu.memory_space<vmem>>, vector<1x1x896xf32>,
    return
  }
  func.func @transform_0(%arg0: i32) -> (i32, i32) {
    %c0_i32 = arith.constant 0 : i32
    %c0_i32_0 = arith.constant 0 : i32
    return %arg0, %c0_i32 : i32, i32
  }
  func.func @transform_1(%arg0: i32) -> (i32, i32) {
    %c0_i32 = arith.constant 0 : i32
    %c0_i32_0 = arith.constant 0 : i32
    return %arg0, %c0_i32 : i32, i32
  }
  func.func @transform_2(%arg0: i32) -> (i32, i32, i32) {
    %c0_i32 = arith.constant 0 : i32
    %c0_i32_0 = arith.constant 0 : i32
    %c0_i32_1 = arith.constant 0 : i32
    %c0_i32_2 = arith.constant 0 : i32
    return %c0_i32, %c0_i32_0, %c0_i32_1 : i32, i32, i32
  }
  func.func @transform_3(%arg0: i32) -> (i32, i32) {
    %c0_i32 = arith.constant 0 : i32
    %c0_i32_0 = arith.constant 0 : i32
    %c0_i32_1 = arith.constant 0 : i32
    return %c0_i32, %c0_i32_0 : i32, i32
  }
  func.func @transform_4(%arg0: i32) -> (i32, i32) {
    %c0_i32 = arith.constant 0 : i32
    %c0_i32_0 = arith.constant 0 : i32
    return %arg0, %c0_i32 : i32, i32
  }
  func.func @transform_5(%arg0: i32) -> (i32, i32, i32) {
    %c0_i32 = arith.constant 0 : i32
    %c0_i32_0 = arith.constant 0 : i32
    %c0_i32_1 = arith.constant 0 : i32
    return %arg0, %c0_i32, %c0_i32_0 : i32, i32, i32
  }
}

</mosaic_0001>

<bundles_post_ra>
// kernel: tile.18
= control target key start
LH: loop header
LB: loop body
LE: loop exit
PB: predicated region body
PF: predicated region fallthrough
CT: control target
= control target key end

     0   :  { %s22_s0 = inlined_call_operand.vmem [shape: f32[32], index: 0, kind: input, shape index: {}]   ;;  %s23_s1 = inlined_call_operand.vmem [shape: f32[4,32], index: 1, kind: output, shape index: {}]  }
   0x1   :  { %v4_v0 = vld [vmem:[%s22_s0] ss:$0 sm:$0xff] }
   0x2   :  { %5 = vst [vmem:[%s23_s1] sm:$0xf] %v4_v0 }

// kernel: generator_forward.3
= control target key start
LH: loop header
LB: loop body
LE: loop exit
PB: predicated region body
PF: predicated region fallthrough
CT: control target
= control target key end

     0   :  { %vm466_vm0 = vsmask.f32 7424  ;;  %vm5106_vm1 = vmmov 0   ;;  %vm2673_vm2 = vcmask 1046528   ;;  %s6770_s1 = inlined_call_operand.vmem [shape: bf16[3,1152,128], index: 1, kind: input, shape index: {}]   ;;  %s6771_s0 = inlined_call_operand.vmem [shape: f32[72,1152], index: 0, kind: input, shape index: {}]   ;;  %s6772_s3 = inlined_call_operand.vmem [shape: f32[72,128], index: 3, kind: output, shape index: {}]   ;;  %s6773_s2 = inlined_call_operand.vmem [shape: f32[1,128], index: 2, kind: input, shape index: {}]  }
   0x1   :  { %v4862_v0 = vld [vmem:[%s6770_s1 + $0x2b8] sm:$0xff]   ;;  %v4866_v4 = vld [vmem:[%s6770_s1 + $0x2b0] sm:$0xff]   ;;  %v4870_v8 = vld [vmem:[%s6770_s1 + $0x2a8] sm:$0xff]  }
   0x2   :  { %v4863_v1 = vld [vmem:[%s6770_s1 + $0x338] sm:$0xff]   ;;  %4145 = vmatprep.subr.bf16.mxu0 %v4862_v0  ;;  %v4867_v5 = vld [vmem:[%s6770_s1 + $0x330] sm:$0xff]   ;;  %v4871_v9 = vld [vmem:[%s6770_s1 + $0x328] sm:$0xff]  }
   0x3   :  { %v4864_v2 = vld [vmem:[%s6770_s1 + $0x278] sm:$0xff]   ;;  %4191 = vmatprep.subr.bf16.mxu1 %v4863_v1  ;;  %v4868_v6 = vld [vmem:[%s6770_s1 + $0x270] sm:$0xff]   ;;  %v4872_v10 = vld [vmem:[%s6770_s1 + $0x268] sm:$0xff]  }
   0x4   :  { %v4865_v3 = vld [vmem:[%s6770_s1 + $0x2f8] sm:$0xff]   ;;  %4146 = vmatpush3.bf16.msra.mxu0 %v4864_v2  ;;  %v4869_v7 = vld [vmem:[%s6770_s1 + $0x2f0] sm:$0xff]   ;;  %v4873_v11 = vld [vmem:[%s6770_s1 + $0x2e8] sm:$0xff]  }
   0x5   :  { %4192 = vmatpush3.bf16.msra.mxu1 %v4865_v3  ;;  %4147 = vmatprep.subr.bf16.mxu0 %v4866_v4  ;;  %v4874_v12 = vld [vmem:[%s6770_s1 + $0x2a0] sm:$0xff]   ;;  %v4878_v16 = vld [vmem:[%s6770_s1 + $0x298] sm:$0xff]   ;;  %v4882_v20 = vld [vmem:[%s6770_s1 + $0x290] sm:$0xff]  }
   0x6   :  { %4193 = vmatprep.subr.bf16.mxu1 %v4867_v5  ;;  %v4875_v13 = vld [vmem:[%s6770_s1 + $0x320] sm:$0xff]   ;;  %v4879_v17 = vld [vmem:[%s6770_s1 + $0x318] sm:$0xff]   ;;  %v4883_v21 = vld [vmem:[%s6770_s1 + $0x310] sm:$0xff]  }
   0x7   :  { %v4876_v14 = vld [vmem:[%s6770_s1 + $0x260] sm:$0xff]   ;;  %v4880_v18 = vld [vmem:[%s6770_s1 + $0x258] sm:$0xff]   ;;  %v4884_v22 = vld [vmem:[%s6770_s1 + $0x250] sm:$0xff]  }
   0x8   :  { %4148 = vmatpush3.bf16.msra.mxu0 %v4868_v6  ;;  %v4877_v15 = vld [vmem:[%s6770_s1 + $0x2e0] sm:$0xff]   ;;  %v4881_v19 = vld [vmem:[%s6770_s1 + $0x2d8] sm:$0xff]   ;;  %v4885_v23 = vld [vmem:[%s6770_s1 + $0x2d0] sm:$0xff]  }
   0x9   :  { %4194 = vmatpush3.bf16.msra.mxu1 %v4869_v7  ;;  %4149 = vmatprep.subr.bf16.mxu0 %v4870_v8  ;;  %v4886_v24 = vld [vmem:[%s6770_s1 + $0x288] sm:$0xff]   ;;  %v4890_v28 = vld [vmem:[%s6770_s1 + $0x280] sm:$0xff]   ;;  %v25_v32 = vld [vmem:[%s6771_s0 + $0x50] sm:$0xff] }
   0xa   :  { %4195 = vmatprep.subr.bf16.mxu1 %v4871_v9  ;;  %v4887_v25 = vld [vmem:[%s6770_s1 + $0x308] sm:$0xff]   ;;  %v4891_v29 = vld [vmem:[%s6770_s1 + $0x300] sm:$0xff]   ;;  %v34_v33 = vld [vmem:[%s6771_s0 + $0x98] sm:$0xff] }
   0xb   :  { %v4888_v26 = vld [vmem:[%s6770_s1 + $0x248] sm:$0xff]   ;;  %v4892_v30 = vld [vmem:[%s6770_s1 + $0x240] sm:$0xff]   ;;  %v45_v40 = vld [vmem:[%s6771_s0 + $0xf0] sm:$0xff] }
   0xc   :  { %4150 = vmatpush3.bf16.msra.mxu0 %v4872_v10  ;;  %v4889_v27 = vld [vmem:[%s6770_s1 + $0x2c8] sm:$0xff]   ;;  %v4893_v31 = vld [vmem:[%s6770_s1 + $0x2c0] sm:$0xff]   ;;  %v288_v41 = vld [vmem:[%s6771_s0 + $0x18] sm:$0xfe] }
   0xd   :  { %4196 = vmatpush3.bf16.msra.mxu1 %v4873_v11  ;;  %4151 = vmatprep.subr.bf16.mxu0 %v4874_v12  ;;  %v43_v34 = vld [vmem:[%s6771_s0 + $0xe0] sm:$0xff]  ;;  %v286_v36 = vld [vmem:[%s6771_s0 + $0x8] sm:$0xfe]  ;;  %v33_v46 = vld [vmem:[%s6771_s0 + $0x90] sm:$0xff] }
   0xe   :  { %4197 = vmatprep.subr.bf16.mxu1 %v4875_v13  ;;  %v5232_v35 = vpack.c.bf16 %v43_v34, %v34_v33  ;;  %v27_v37 = vld [vmem:[%s6771_s0 + $0x60] sm:$0xff]  ;;  %v36_v38 = vld [vmem:[%s6771_s0 + $0xa8] sm:$0xff]  ;;  %v304_v39 = vpack.c.bf16 %v25_v32, %v286_v36  ;;  %v42_v47 = vld [vmem:[%s6771_s0 + $0xd8] sm:$0xff] }
   0xf   :  { %v24_v42 = vld [vmem:[%s6771_s0 + $0x48] sm:$0xff]  ;;  %v5253_v44 = vpack.c.bf16 %v45_v40, %v36_v38  ;;  %v306_v45 = vpack.c.bf16 %v27_v37, %v288_v41  ;;  %v285_v48 = vld [vmem:[%s6771_s0] sm:$0xfe]  ;;  %v5265_v52 = vpack.c.bf16 %v42_v47, %v33_v46  ;;  %v26_v54 = vld [vmem:[%s6771_s0 + $0x58] sm:$0xff] }
  0x10   :  { %4152 = vmatpush3.bf16.msra.mxu0 %v4876_v14  ;;  %v487_v43 = vshll.u32 %v5232_v35, 16  ;;  %v583_v49 = vshrl.u32 %v5232_v35, 16  ;;  %v480_v50 = vshrl.u32 %v304_v39, 16  ;;  %v482_v51 = vshll.u32 %v304_v39, 16  ;;  %v35_v55 = vld [vmem:[%s6771_s0 + $0xa0] sm:$0xff]  ;;  %v44_v56 = vld [vmem:[%s6771_s0 + $0xe8] sm:$0xff] }
  0x11   :  { %4198 = vmatpush3.bf16.msra.mxu1 %v4877_v15  ;;  %4153 = vmatprep.subr.bf16.mxu0 %v4878_v16  ;;  %v303_v53 = vpack.c.bf16 %v24_v42, %v285_v48  ;;  %v504_v58 = vshrl.u32 %v306_v45, 16  ;;  %v506_v59 = vshll.u32 %v306_v45, 16  ;;  %v511_v60 = vshll.u32 %v5253_v44, 16  ;;  %v287_v61 = vld [vmem:[%s6771_s0 + $0x10] sm:$0xfe]  ;;  %v4894_v6 = vld [vmem:[%s6770_s1 + $0x3b8] sm:$0xff]  }
  0x12   :  { %4199 = vmatprep.subr.bf16.mxu1 %v4879_v17  ;;  %v489_v57 = vrot.slane %v487_v43, 1  ;;  %v484_v62 = vrot.slane %v482_v51, 1  ;;  %v475_v1 = vshll.u32 %v5265_v52, 16  ;;  %v5281_v4 = vpack.c.bf16 %v44_v56, %v35_v55  ;;  %v4895_v14 = vld [vmem:[%s6770_s1 + $0x378] sm:$0xff]   ;;  %v60_v33 = vld [vmem:[%s6771_s0 + $0x168] sm:$0xff]  ;;  %v53_v34 = vld [vmem:[%s6771_s0 + $0x130] sm:$0xff] }
  0x13   :  { %v468_v63 = vshrl.u32 %v303_v53, 16  ;;  %v470_v0 = vshll.u32 %v303_v53, 16  ;;  %v508_v2 = vrot.slane %v506_v59, 1  ;;  %v513_v3 = vrot.slane %v511_v60, 1  ;;  %v62_v36 = vld [vmem:[%s6771_s0 + $0x178] sm:$0xff]  ;;  %v4900_v53 = vld [vmem:[%s6770_s1 + $0x3a8] sm:$0xff]  }
  0x14   :  { %4154 = vmatpush3.bf16.msra.mxu0 %v4880_v18  ;;  %v305_v5 = vpack.c.bf16 %v26_v54, %v287_v61  ;;  %v485_v7 = vor.u32 %v484_v62, %v480_v50  ;;  %v477_v9 = vrot.slane %v475_v1, 1  ;;  %v499_v13 = vshll.u32 %v5281_v4, 16  ;;  %v4898_v42 = vld [vmem:[%s6770_s1 + $0x438] sm:$0xff]   ;;  %v4901_v56 = vld [vmem:[%s6770_s1 + $0x368] sm:$0xff]   ;;  %v4902_v61 = vld [vmem:[%s6770_s1 + $0x430] sm:$0xff]  }
  0x15   :  { %4200 = vmatpush3.bf16.msra.mxu1 %v4881_v19  ;;  %4155 = vmatprep.subr.bf16.mxu0 %v4882_v20  ;;  %v472_v8 = vrot.slane %v470_v0, 1  ;;  %v509_v10 = vor.u32 %v508_v2, %v504_v58  ;;  %v4896_v20 = vld [vmem:[%s6770_s1 + $0x3b0] sm:$0xff]   ;;  %v591_v37 = vshrl.u32 %v5281_v4, 16  ;;  %v585_v38 = vor.u32 %v583_v49, %v489_v57  ;;  %v4899_v47 = vld [vmem:[%s6770_s1 + $0x3f8] sm:$0xff]  }
  0x16   :  { %4201 = vmatprep.subr.bf16.mxu1 %v4883_v21  ;;  %v492_v11 = vshrl.u32 %v305_v5, 16  ;;  %v494_v12 = vshll.u32 %v305_v5, 16  ;;  %v490_v15 = vsel %vm466_vm0, %v485_v7, %v489_v57  ;;  %v501_v19 = vrot.slane %v499_v13, 1  ;;  %v52_v21 = vld [vmem:[%s6771_s0 + $0x128] sm:$0xff]  ;;  %v4903_v0 = vld [vmem:[%s6770_s1 + $0x3f0] sm:$0xff]   ;;  %v70_v1 = vld [vmem:[%s6771_s0 + $0x1b8] sm:$0xff] }
  0x17   :  { %v473_v16 = vor.u32 %v472_v8, %v468_v63  ;;  %1327 = vmatprep.mubr.bf16.mxu0 %v490_v15  ;;  %v514_v17 = vsel %vm466_vm0, %v509_v10, %v513_v3  ;;  %v5333_v41 = vpack.c.bf16 %v62_v36, %v53_v34  ;;  %v79_v5 = vld [vmem:[%s6771_s0 + $0x200] sm:$0xff]  ;;  %v81_v7 = vld [vmem:[%s6771_s0 + $0x210] sm:$0xff] }
  0x18   :  { %4156 = vmatpush3.bf16.msra.mxu0 %v4884_v22  ;;  %v496_v18 = vrot.slane %v494_v12, 1  ;;  %v61_v22 = vld [vmem:[%s6771_s0 + $0x170] sm:$0xff]  ;;  %1399 = vmatprep.mubr.bf16.mxu1 %v514_v17  ;;  %v593_v55 = vor.u32 %v591_v37, %v501_v19  ;;  %v5375_v8 = vpack.c.bf16 %v79_v5, %v70_v1  ;;  %v4904_v10 = vld [vmem:[%s6770_s1 + $0x3a0] sm:$0xff]  }
  0x19   :  { %4202 = vmatpush3.bf16.msra.mxu1 %v4885_v23  ;;  %4157 = vmatprep.subr.bf16.mxu0 %v4886_v24  ;;  %v599_v23 = vshrl.u32 %v5253_v44, 16  ;;  %v478_v24 = vsel %vm466_vm0, %v473_v16, %v477_v9  ;;  %v595_v51 = vshll.u32 %v5333_v41, 16  ;;  %v69_v13 = vld [vmem:[%s6771_s0 + $0x1b0] sm:$0xff]  ;;  %v71_v15 = vld [vmem:[%s6771_s0 + $0x1c0] sm:$0xff]  ;;  %v663_v16 = vshrl.u32 %v5333_v41, 16 }
  0x1a   :  { %4203 = vmatprep.subr.bf16.mxu1 %v4887_v25  ;;  %v4897_v25 = vld [vmem:[%s6770_s1 + $0x370] sm:$0xff]   ;;  %v659_v17 = vshll.u32 %v5375_v8, 16 }
  0x1b   :  { %v601_v45 = vor.u32 %v599_v23, %v513_v3  ;;  %v597_v59 = vrot.slane %v595_v51, 1  ;;  %v4913_v5 = vld [vmem:[%s6770_s1 + $0x390] sm:$0xff]  }
  0x1c   :  { %4158 = vmatpush3.bf16.msra.mxu0 %v4888_v26  ;;  %v5306_v26 = vpack.c.bf16 %v61_v22, %v52_v21  ;;  %v80_v21 = vld [vmem:[%s6771_s0 + $0x208] sm:$0xff]  ;;  %v4905_v22 = vld [vmem:[%s6770_s1 + $0x360] sm:$0xff]  }
  0x1d   :  { %4204 = vmatpush3.bf16.msra.mxu1 %v4889_v27  ;;  %4159 = vmatprep.subr.bf16.mxu0 %v4890_v28  ;;  %v54_v27 = vld [vmem:[%s6771_s0 + $0x138] sm:$0xff]  ;;  %v63_v28 = vld [vmem:[%s6771_s0 + $0x180] sm:$0xff]  ;;  %v598_v3 = vsel %vm466_vm0, %v593_v55, %v597_v59  ;;  %v5403_v23 = vpack.c.bf16 %v80_v21, %v71_v15  ;;  %v4916_v15 = vld [vmem:[%s6770_s1 + $0x410] sm:$0xff]  }
  0x1e   :  { %4205 = vmatprep.subr.bf16.mxu1 %v4891_v29  ;;  %v51_v29 = vld [vmem:[%s6771_s0 + $0x120] sm:$0xff]  ;;  %v5318_v32 = vpack.c.bf16 %v63_v28, %v54_v27  ;;  %v587_v39 = vshll.u32 %v5306_v26, 16  ;;  %v655_v62 = vshrl.u32 %v5306_v26, 16 }
  0x1f   :  { %v5331_v40 = vpack.c.bf16 %v60_v33, %v51_v29  ;;  %v4906_v29 = vld [vmem:[%s6770_s1 + $0x428] sm:$0xff]  }
  0x20   :  { %4160 = vmatpush3.bf16.msra.mxu0 %v4892_v30  ;;  %v575_v30 = vshrl.u32 %v5265_v52, 16  ;;  %v603_v46 = vshll.u32 %v5318_v32, 16  ;;  %v589_v48 = vrot.slane %v587_v39, 1  ;;  %v671_v2 = vshrl.u32 %v5318_v32, 16  ;;  %v4907_v33 = vld [vmem:[%s6770_s1 + $0x3e8] sm:$0xff]  }
  0x21   :  { %4206 = vmatpush3.bf16.msra.mxu1 %v4893_v31  ;;  %4237 = vmatprep.subr.bf16.mxu0 %v4894_v6  ;;  %v497_v31 = vor.u32 %v496_v18, %v492_v11  ;;  %v579_v50 = vshll.u32 %v5331_v40, 16  ;;  %v72_v6 = vld [vmem:[%s6771_s0 + $0x1c8] sm:$0xff]  ;;  %v647_v11 = vshrl.u32 %v5331_v40, 16 }
  0x22   :  { %v577_v49 = vor.u32 %v575_v30, %v477_v9  ;;  %4283 = vmatprep.subr.bf16.mxu1 %v4898_v42  ;;  %v605_v54 = vrot.slane %v603_v46, 1  ;;  %v590_v57 = vsel %vm466_vm0, %v585_v38, %v589_v48  ;;  %v5377_v9 = vpack.c.bf16 %v81_v7, %v72_v6  ;;  %v4908_v38 = vld [vmem:[%s6770_s1 + $0x398] sm:$0xff]   ;;  %v4909_v42 = vld [vmem:[%s6770_s1 + $0x420] sm:$0xff]  }
  0x23   :  { %1328 = vmatmul.mubr.bf16.vlgmr.msra.gmra.mxu0 %v478_v24  ;;  %v502_v43 = vsel %vm466_vm0, %v497_v31, %v501_v19  ;;  %v581_v58 = vrot.slane %v579_v50, 1  ;;  %v657_v12 = vor.u32 %v655_v62, %v589_v48  ;;  %v661_v24 = vrot.slane %v659_v17, 1  ;;  %v4911_v48 = vld [vmem:[%s6770_s1 + $0x3e0] sm:$0xff]   ;;  %v4914_v6 = vld [vmem:[%s6770_s1 + $0x3d8] sm:$0xff]  }
  0x24   :  { %4238 = vmatpush3.bf16.msra.mxu0 %v4895_v14  ;;  %1400 = vmatmul.mubr.bf16.vlgmr.msra.gmra.mxu1 %v502_v43  ;;  %v606_v60 = vsel %vm466_vm0, %v601_v45, %v605_v54  ;;  %v78_v14 = vld [vmem:[%s6771_s0 + $0x1f8] sm:$0xff]  ;;  %v673_v18 = vor.u32 %v671_v2, %v605_v54  ;;  %v675_v19 = vshll.u32 %v5377_v9, 16  ;;  %v665_v30 = vor.u32 %v663_v16, %v597_v59  ;;  %v294_v54 = vld [vmem:[%s6771_s0 + $0x240] sm:$0x7f]  ;;  %v296_v59 = vld [vmem:[%s6771_s0 + $0x250] sm:$0x7f] }
  0x25   :  { %4239 = vmatprep.subr.bf16.mxu0 %v4896_v20  ;;  %4284 = vmatpush3.bf16.msra.mxu1 %v4899_v47  ;;  %v582_v63 = vsel %vm466_vm0, %v577_v49, %v581_v58  ;;  %v5395_v20 = vpack.c.bf16 %v78_v14, %v69_v13  ;;  %v649_v27 = vor.u32 %v647_v11, %v581_v58  ;;  %v667_v31 = vshll.u32 %v5403_v23, 16  ;;  %v4910_v45 = vld [vmem:[%s6770_s1 + $0x358] sm:$0xff]   ;;  %v295_v49 = vld [vmem:[%s6771_s0 + $0x248] sm:$0x7f]  ;;  %v4915_v14 = vld [vmem:[%s6770_s1 + $0x350] sm:$0xff]  }
  0x26   :  { %1335 = vmatprep.mubr.bf16.mxu0 %v590_v57  ;;  %1407 = vmatprep.mubr.bf16.mxu1 %v606_v60  ;;  %v662_v34 = vsel %vm466_vm0, %v657_v12, %v661_v24  ;;  %v727_v46 = vshrl.u32 %v5375_v8, 16  ;;  %v743_v50 = vshrl.u32 %v5377_v9, 16  ;;  %v313_v51 = vpack.c.bf16 %v295_v49, %v295_v49 }
  0x27   :  { %4285 = vmatprep.subr.bf16.mxu1 %v4902_v61  ;;  %v651_v28 = vshll.u32 %v5395_v20, 16  ;;  %v669_v39 = vrot.slane %v667_v31, 1  ;;  %v719_v55 = vshrl.u32 %v5395_v20, 16  ;;  %v312_v58 = vpack.c.bf16 %v294_v54, %v294_v54 }
  0x28   :  { %4240 = vmatpush3.bf16.msra.mxu0 %v4897_v25  ;;  %v677_v25 = vrot.slane %v675_v19, 1  ;;  %v729_v60 = vor.u32 %v727_v46, %v661_v24  ;;  %v731_v61 = vshll.u32 %v313_v51, 16  ;;  %v314_v62 = vpack.c.bf16 %v296_v59, %v296_v59  ;;  %v4918_v24 = vld [vmem:[%s6770_s1 + $0x388] sm:$0xff]   ;;  %v5494_v46 = vld [vmem:[%s6771_s0 + $0x70] sm:$0xff] }
  0x29   :  { %4241 = vmatprep.subr.bf16.mxu0 %v4900_v53  ;;  %4286 = vmatpush3.bf16.msra.mxu1 %v4903_v0  ;;  %v653_v37 = vrot.slane %v651_v28, 1  ;;  %v670_v47 = vsel %vm466_vm0, %v665_v30, %v669_v39  ;;  %v297_v53 = vld [vmem:[%s6771_s0 + $0x258] sm:$0x7f]  ;;  %v4919_v28 = vld [vmem:[%s6770_s1 + $0x348] sm:$0xff]   ;;  %v5105_v54 = vmov 0.0  }
  0x2a   :  { %v678_v36 = vsel %vm466_vm0, %v673_v18, %v677_v25  ;;  %4287 = vmatprep.subr.bf16.mxu1 %v4906_v29  ;;  %v315_v57 = vpack.c.bf16 %v297_v53, %v297_v53  ;;  %v745_v0 = vor.u32 %v743_v50, %v677_v25  ;;  %v733_v7 = vrot.slane %v731_v61, 1  ;;  %v4917_v18 = vld [vmem:[%s6770_s1 + $0x3d0] sm:$0xff]   ;;  %v290_v50 = vld [vmem:[%s6771_s0 + $0x28] sm:$0xfe]  ;;  %3635 = vst [vmem:[%s6772_s3 + $0x46] sm:$0x3] %v5105_v54 }
  0x2b   :  { %1336 = vmatmul.mubr.bf16.gmra.mxu0 %v582_v63  ;;  %v654_v43 = vsel %vm466_vm0, %v649_v27, %v653_v37  ;;  %v4912_v63 = vld [vmem:[%s6770_s1 + $0x418] sm:$0xff]   ;;  %v721_v2 = vor.u32 %v719_v55, %v653_v37  ;;  %v739_v11 = vshll.u32 %v314_v62, 16  ;;  %v794_v25 = vshrl.u32 %v313_v51, 16  ;;  %v31_v51 = vld [vmem:[%s6771_s0 + $0x80] sm:$0xff]  ;;  %v40_v53 = vld [vmem:[%s6771_s0 + $0xc8] sm:$0xff] }
  0x2c   :  { %4242 = vmatpush3.bf16.msra.mxu0 %v4901_v56  ;;  %1408 = vmatmul.mubr.bf16.gmra.mxu1 %v598_v3  ;;  %v735_v56 = vshrl.u32 %v5403_v23, 16  ;;  %v747_v1 = vshll.u32 %v315_v57, 16  ;;  %v723_v3 = vshll.u32 %v312_v58, 16  ;;  %v734_v16 = vsel %vm466_vm0, %v729_v60, %v733_v7 }
  0x2d   :  { %4243 = vmatprep.subr.bf16.mxu0 %v4904_v10  ;;  %1343 = vmatprep.mubr.bf16.mxu0 %v662_v34  ;;  %v741_v17 = vrot.slane %v739_v11, 1  ;;  %v800_v27 = vshrl.u32 %v315_v57, 16  ;;  %v791_v29 = vshrl.u32 %v312_v58, 16  ;;  %v797_v30 = vshrl.u32 %v314_v62, 16  ;;  %v4920_v34 = vld [vmem:[%s6770_s1 + $0x408] sm:$0xff]   ;;  %v37_v62 = vld [vmem:[%s6771_s0 + $0xb0] sm:$0xff] }
  0x2e   :  { %1415 = vmatprep.mubr.bf16.mxu1 %v678_v36  ;;  %4288 = vmatpush3.bf16.msra.mxu1 %v4907_v33  ;;  %v737_v10 = vor.u32 %v735_v56, %v669_v39  ;;  %v749_v12 = vrot.slane %v747_v1, 1  ;;  %v725_v13 = vrot.slane %v723_v3, 1  ;;  %v796_v31 = vor.u32 %v794_v25, %v733_v7  ;;  %v4921_v36 = vld [vmem:[%s6770_s1 + $0x3c8] sm:$0xff]   ;;  %v49_v56 = vld [vmem:[%s6771_s0 + $0x110] sm:$0xff]  ;;  %v292_v57 = vld [vmem:[%s6771_s0 + $0x38] sm:$0xfe] }
  0x2f   :  { %4289 = vmatprep.subr.bf16.mxu1 %v4909_v42  ;;  %v799_v39 = vor.u32 %v797_v30, %v741_v17  ;;  %v4923_v42 = vld [vmem:[%s6770_s1 + $0x340] sm:$0xff]   ;;  %v308_v55 = vpack.c.bf16 %v5494_v46, %v290_v50  ;;  %v5524_v58 = vld [vmem:[%s6771_s0 + $0x68] sm:$0xff]  ;;  %v5527_v60 = vpack.c.bf16 %v49_v56, %v40_v53  ;;  %v310_v61 = vpack.c.bf16 %v31_v51, %v292_v57  ;;  %v30_v7 = vld [vmem:[%s6771_s0 + $0x78] sm:$0xff] }
  0x30   :  { %4244 = vmatpush3.bf16.msra.mxu0 %v4905_v22  ;;  %v750_v19 = vsel %vm466_vm0, %v745_v0, %v749_v12  ;;  %v726_v21 = vsel %vm466_vm0, %v721_v2, %v725_v13  ;;  %v742_v22 = vsel %vm466_vm0, %v737_v10, %v741_v17  ;;  %v802_v33 = vor.u32 %v800_v27, %v749_v12  ;;  %v289_v0 = vld [vmem:[%s6771_s0 + $0x20] sm:$0xfe]  ;;  %v48_v11 = vld [vmem:[%s6771_s0 + $0x108] sm:$0xff] }
  0x31   :  { %4245 = vmatprep.subr.bf16.mxu0 %v4908_v38  ;;  %v793_v37 = vor.u32 %v791_v29, %v725_v13  ;;  %v4922_v38 = vld [vmem:[%s6770_s1 + $0x380] sm:$0xff]   ;;  %v528_v2 = vshrl.u32 %v308_v55, 16  ;;  %v530_v3 = vshll.u32 %v308_v55, 16  ;;  %v552_v13 = vshrl.u32 %v310_v61, 16  ;;  %v64_v55 = vld [vmem:[%s6771_s0 + $0x188] sm:$0xff] }
  0x32   :  { %4290 = vmatpush3.bf16.msra.mxu1 %v4911_v48  ;;  %v47_v48 = vld [vmem:[%s6771_s0 + $0x100] sm:$0xff]  ;;  %v631_v51 = vshrl.u32 %v5527_v60, 16 }
  0x33   :  { %1344 = vmatmul.mubr.bf16.gmra.mxu0 %v654_v43  ;;  %4291 = vmatprep.subr.bf16.mxu1 %v4912_v63  ;;  %v4924_v43 = vld [vmem:[%s6770_s1 + $0x400] sm:$0xff]   ;;  %v46_v63 = vld [vmem:[%s6771_s0 + $0xf8] sm:$0xff]  ;;  %v532_v17 = vrot.slane %v530_v3, 1 }
  0x34   :  { %1416 = vmatmul.mubr.bf16.gmra.mxu1 %v670_v47  ;;  %4246 = vmatpush3.bf16.msra.mxu0 %v4910_v45  ;;  %v4925_v45 = vld [vmem:[%s6770_s1 + $0x3c0] sm:$0xff]   ;;  %v38_v47 = vld [vmem:[%s6771_s0 + $0xb8] sm:$0xff] }
  0x35   :  { %4247 = vmatprep.subr.bf16.mxu0 %v4913_v5  ;;  %1351 = vmatprep.mubr.bf16.mxu0 %v734_v16  ;;  %v5502_v49 = vpack.c.bf16 %v47_v48, %v38_v47  ;;  %v5539_v5 = vpack.c.bf16 %v46_v63, %v37_v62  ;;  %v39_v10 = vld [vmem:[%s6771_s0 + $0xc0] sm:$0xff]  ;;  %v291_v16 = vld [vmem:[%s6771_s0 + $0x30] sm:$0xfe]  ;;  %v66_v63 = vld [vmem:[%s6771_s0 + $0x198] sm:$0xff] }
  0x36   :  { %4292 = vmatpush3.bf16.msra.mxu1 %v4914_v6  ;;  %1423 = vmatprep.mubr.bf16.mxu1 %v750_v19  ;;  %v307_v6 = vpack.c.bf16 %v5524_v58, %v289_v0  ;;  %v5556_v25 = vpack.c.bf16 %v48_v11, %v39_v10  ;;  %v309_v27 = vpack.c.bf16 %v30_v7, %v291_v16  ;;  %v67_v50 = vld [vmem:[%s6771_s0 + $0x1a0] sm:$0xff]  ;;  %v57_v62 = vld [vmem:[%s6771_s0 + $0x150] sm:$0xff] }
  0x37   :  { %4293 = vmatprep.subr.bf16.mxu1 %v4916_v15  ;;  %v535_v59 = vshll.u32 %v5502_v49, 16  ;;  %v615_v1 = vshrl.u32 %v5502_v49, 16  ;;  %v559_v15 = vshll.u32 %v5527_v60, 16  ;;  %v55_v53 = vld [vmem:[%s6771_s0 + $0x140] sm:$0xff]  ;;  %v4927_v10 = vld [vmem:[%s6770_s1 + $0x470] sm:$0xff]  }
  0x38   :  { %4248 = vmatpush3.bf16.msra.mxu0 %v4915_v14  ;;  %v554_v14 = vshll.u32 %v310_v61, 16  ;;  %v518_v19 = vshll.u32 %v307_v6, 16  ;;  %v5595_v3 = vpack.c.bf16 %v64_v55, %v55_v53  ;;  %v82_v55 = vld [vmem:[%s6771_s0 + $0x218] sm:$0xff] }
  0x39   :  { %4249 = vmatprep.subr.bf16.mxu0 %v4918_v24  ;;  %v537_v12 = vrot.slane %v535_v59, 1  ;;  %v561_v24 = vrot.slane %v559_v15, 1 }
  0x3a   :  { %4294 = vmatpush3.bf16.msra.mxu1 %v4917_v18  ;;  %v516_v18 = vshrl.u32 %v307_v6, 16  ;;  %v520_v29 = vrot.slane %v518_v19, 1  ;;  %v4928_v6 = vld [vmem:[%s6770_s1 + $0x78] sm:$0xff]   ;;  %v611_v16 = vshll.u32 %v5595_v3, 16 }
  0x3b   :  { %1352 = vmatmul.mubr.bf16.gmra.mxu0 %v726_v21  ;;  %4295 = vmatprep.subr.bf16.mxu1 %v4920_v34  ;;  %v523_v21 = vshll.u32 %v5539_v5, 16 }
  0x3c   :  { %1424 = vmatmul.mubr.bf16.gmra.mxu1 %v742_v22  ;;  %4250 = vmatpush3.bf16.msra.mxu0 %v4919_v28  ;;  %v556_v22 = vrot.slane %v554_v14, 1  ;;  %v533_v28 = vor.u32 %v532_v17, %v528_v2  ;;  %v521_v47 = vor.u32 %v520_v29, %v516_v18  ;;  %v633_v2 = vor.u32 %v631_v51, %v561_v24  ;;  %v4929_v14 = vld [vmem:[%s6770_s1 + $0x38] sm:$0xff]   ;;  %v4931_v18 = vld [vmem:[%s6770_s1 + $0x70] sm:$0xff]   ;;  %v4930_v29 = vld [vmem:[%s6770_s1 + $0x468] sm:$0xff]  }
  0x3d   :  { %1359 = vmatprep.mubr.bf16.mxu0 %v796_v31  ;;  %1431 = vmatprep.mubr.bf16.mxu1 %v802_v33  ;;  %v525_v30 = vrot.slane %v523_v21, 1  ;;  %v4926_v31 = vld [vmem:[%s6770_s1 + $0x478] sm:$0xff]   ;;  %v617_v33 = vor.u32 %v615_v1, %v537_v12  ;;  %v623_v17 = vshrl.u32 %v5556_v25, 16  ;;  %v679_v51 = vshrl.u32 %v5595_v3, 16 }
  0x3e   :  { %4296 = vmatpush3.bf16.msra.mxu1 %v4921_v36  ;;  %4251 = vmatprep.subr.bf16.mxu0 %v4922_v38  ;;  %v557_v34 = vor.u32 %v556_v22, %v552_v13  ;;  %v540_v36 = vshrl.u32 %v309_v27, 16  ;;  %v547_v38 = vshll.u32 %v5556_v25, 16  ;;  %v5605_v13 = vpack.c.bf16 %v66_v63, %v57_v62 }
  0x3f   :  { %4297 = vmatprep.subr.bf16.mxu1 %v4924_v43  ;;  %v58_v43 = vld [vmem:[%s6771_s0 + $0x158] sm:$0xff]  ;;  %v526_v0 = vsel %vm466_vm0, %v521_v47, %v525_v30 }
  0x40   :  { %4252 = vmatpush3.bf16.msra.mxu0 %v4923_v42  ;;  %v65_v42 = vld [vmem:[%s6771_s0 + $0x190] sm:$0xff]  ;;  %v562_v56 = vsel %vm466_vm0, %v557_v34, %v561_v24  ;;  %v549_v59 = vrot.slane %v547_v38, 1  ;;  %v5585_v61 = vpack.c.bf16 %v67_v50, %v58_v43  ;;  %v627_v24 = vshll.u32 %v5605_v13, 16  ;;  %v76_v43 = vld [vmem:[%s6771_s0 + $0x1e8] sm:$0xff] }
  0x41   :  { %4736 = vmatprep.subr.bf16.mxu0 %v5105_v54  ;;  %v73_v50 = vld [vmem:[%s6771_s0 + $0x1d0] sm:$0xff] }
  0x42   :  { %4298 = vmatpush3.bf16.msra.mxu1 %v4925_v45  ;;  %v538_v45 = vsel %vm466_vm0, %v533_v28, %v537_v12  ;;  %v635_v11 = vshll.u32 %v5585_v61, 16  ;;  %v607_v12 = vshrl.u32 %v5539_v5, 16  ;;  %v613_v28 = vrot.slane %v611_v16, 1 }
  0x43   :  { %1360 = vmatmul.mubr.bf16.gmra.mxu0 %v793_v37  ;;  %v542_v37 = vshll.u32 %v309_v27, 16  ;;  %4342 = vmatprep.subr.bf16.mxu1 %v4928_v6  ;;  %v703_v47 = vshrl.u32 %v5585_v61, 16 }
  0x44   :  { %1432 = vmatmul.mubr.bf16.gmra.mxu1 %v799_v39  ;;  %v56_v39 = vld [vmem:[%s6771_s0 + $0x148] sm:$0xff]  ;;  %1471 = vmatprep.mubr.bf16.mxu0 %v538_v45  ;;  %v637_v21 = vrot.slane %v635_v11, 1  ;;  %v609_v22 = vor.u32 %v607_v12, %v525_v30  ;;  %v74_v30 = vld [vmem:[%s6771_s0 + $0x1d8] sm:$0xff]  ;;  %v85_v45 = vld [vmem:[%s6771_s0 + $0x230] sm:$0xff] }
  0x45   :  { %v5572_v48 = vpack.c.bf16 %v65_v42, %v56_v39  ;;  %v544_v57 = vrot.slane %v542_v37, 1  ;;  %1543 = vmatprep.mubr.bf16.mxu1 %v562_v56  ;;  %v629_v37 = vrot.slane %v627_v24, 1  ;;  %v5648_v53 = vpack.c.bf16 %v85_v45, %v76_v43  ;;  %v75_v56 = vld [vmem:[%s6771_s0 + $0x1e0] sm:$0xff]  ;;  %v4934_v11 = vld [vmem:[%s6770_s1 + $0x68] sm:$0xff]   ;;  %v4937_v24 = vld [vmem:[%s6770_s1 + $0x458] sm:$0xff]  }
  0x46   :  { %v638_v34 = vsel %vm466_vm0, %v633_v2, %v637_v21  ;;  %v614_v39 = vsel %vm466_vm0, %v609_v22, %v613_v28  ;;  %v705_v6 = vor.u32 %v703_v47, %v637_v21 }
  0x47   :  { %v619_v1 = vshll.u32 %v5572_v48, 16  ;;  %v545_v7 = vor.u32 %v544_v57, %v540_v36  ;;  %v625_v36 = vor.u32 %v623_v17, %v549_v59  ;;  %v687_v38 = vshrl.u32 %v5572_v48, 16  ;;  %v84_v57 = vld [vmem:[%s6771_s0 + $0x228] sm:$0xff] }
  0x49   :  { %v621_v15 = vrot.slane %v619_v1, 1  ;;  %v550_v19 = vsel %vm466_vm0, %v545_v7, %v549_v59  ;;  %v695_v59 = vshrl.u32 %v5605_v13, 16  ;;  %v4933_v1 = vld [vmem:[%s6770_s1 + $0x460] sm:$0xff]   ;;  %v630_v2 = vsel %vm466_vm0, %v625_v36, %v629_v37  ;;  %v299_v36 = vld [vmem:[%s6771_s0 + $0x268] sm:$0x7f] }
  0x4a   :  { %v707_v7 = vshll.u32 %v5648_v53, 16 }
  0x4b   :  { %1472 = vmatmul.mubr.bf16.vlgmr.msra.gmra.mxu0 %v526_v0  ;;  %v622_v27 = vsel %vm466_vm0, %v617_v33, %v621_v15  ;;  %v83_v33 = vld [vmem:[%s6771_s0 + $0x220] sm:$0xff]  ;;  %v689_v62 = vor.u32 %v687_v38, %v621_v15  ;;  %v5661_v0 = vpack.c.bf16 %v82_v55, %v73_v50  ;;  %v301_v38 = vld [vmem:[%s6771_s0 + $0x278] sm:$0x7f] }
  0x4c   :  { %4737 = vmatpush3.bf16.msra.mxu0 %v4926_v31  ;;  %1544 = vmatmul.mubr.bf16.vlgmr.msra.gmra.mxu1 %v550_v19  ;;  %v4932_v31 = vld [vmem:[%s6770_s1 + $0x30] sm:$0xff]   ;;  %v5634_v42 = vpack.c.bf16 %v83_v33, %v74_v30  ;;  %v709_v16 = vrot.slane %v707_v7, 1  ;;  %v4936_v19 = vld [vmem:[%s6770_s1 + $0x60] sm:$0xff]   ;;  %v775_v33 = vshrl.u32 %v5648_v53, 16  ;;  %v319_v47 = vpack.c.bf16 %v301_v38, %v301_v38  ;;  %v4940_v7 = vld [vmem:[%s6770_s1 + $0x18] sm:$0xff]  }
  0x4d   :  { %4738 = vmatprep.subr.bf16.mxu0 %v5105_v54  ;;  %1479 = vmatprep.mubr.bf16.mxu0 %v622_v27  ;;  %v683_v15 = vshll.u32 %v5661_v0, 16  ;;  %v751_v43 = vshrl.u32 %v5661_v0, 16  ;;  %v4946_v38 = vld [vmem:[%s6770_s1 + $0x8] sm:$0xff]  }
  0x4e   :  { %4343 = vmatpush3.bf16.msra.mxu1 %v4929_v14  ;;  %1551 = vmatprep.mubr.bf16.mxu1 %v638_v34  ;;  %v691_v63 = vshll.u32 %v5634_v42, 16  ;;  %v681_v14 = vor.u32 %v679_v51, %v613_v28  ;;  %v710_v27 = vsel %vm466_vm0, %v705_v6, %v709_v16  ;;  %v697_v28 = vor.u32 %v695_v59, %v629_v37  ;;  %v300_v51 = vld [vmem:[%s6771_s0 + $0x270] sm:$0x7f] }
  0x4f   :  { %4344 = vmatprep.subr.bf16.mxu1 %v4931_v18  ;;  %v4935_v18 = vld [vmem:[%s6770_s1 + $0x28] sm:$0xff]   ;;  %v685_v22 = vrot.slane %v683_v15, 1  ;;  %v759_v30 = vshrl.u32 %v5634_v42, 16  ;;  %v317_v37 = vpack.c.bf16 %v299_v36, %v299_v36  ;;  %v5709_v59 = vpack.c.bf16 %v300_v51, %v300_v51 }
  0x50   :  { %4739 = vmatpush3.bf16.msra.mxu0 %v4927_v10  ;;  %v5668_v10 = vpack.c.bf16 %v84_v57, %v75_v56  ;;  %v693_v12 = vrot.slane %v691_v63, 1  ;;  %v777_v63 = vor.u32 %v775_v33, %v709_v16 }
  0x51   :  { %4740 = vmatprep.subr.bf16.mxu0 %v5105_v54  ;;  %v686_v34 = vsel %vm466_vm0, %v681_v14, %v685_v22  ;;  %v763_v57 = vshll.u32 %v317_v37, 16  ;;  %v771_v14 = vshll.u32 %v5709_v59, 16 }
  0x52   :  { %4345 = vmatpush3.bf16.msra.mxu1 %v4932_v31  ;;  %v699_v17 = vshll.u32 %v5668_v10, 16  ;;  %v694_v21 = vsel %vm466_vm0, %v689_v62, %v693_v12  ;;  %v4938_v31 = vld [vmem:[%s6770_s1 + $0x20] sm:$0xff]   ;;  %v767_v45 = vshrl.u32 %v5668_v10, 16  ;;  %v761_v56 = vor.u32 %v759_v30, %v693_v12  ;;  %v4939_v62 = vld [vmem:[%s6770_s1 + $0x58] sm:$0xff]  }
  0x53   :  { %1480 = vmatmul.mubr.bf16.gmra.mxu0 %v614_v39  ;;  %4346 = vmatprep.subr.bf16.mxu1 %v4934_v11  ;;  %v298_v39 = vld [vmem:[%s6771_s0 + $0x260] sm:$0x7f]  ;;  %v4941_v11 = vld [vmem:[%s6770_s1 + $0x450] sm:$0xff]   ;;  %v765_v12 = vrot.slane %v763_v57, 1 }
  0x54   :  { %4741 = vmatpush3.bf16.msra.mxu0 %v4930_v29  ;;  %1552 = vmatmul.mubr.bf16.gmra.mxu1 %v630_v2  ;;  %v701_v29 = vrot.slane %v699_v17, 1  ;;  %v316_v50 = vpack.c.bf16 %v298_v39, %v298_v39  ;;  %v753_v2 = vor.u32 %v751_v43, %v685_v22  ;;  %v4942_v17 = vld [vmem:[%s6770_s1 + $0x50] sm:$0xff]   ;;  %v773_v22 = vrot.slane %v771_v14, 1  ;;  %v4947_v39 = vld [vmem:[%s6770_s1 + $0x440] sm:$0xff]  }
  0x55   :  { %4742 = vmatprep.subr.bf16.mxu0 %v5105_v54  ;;  %1487 = vmatprep.mubr.bf16.mxu0 %v694_v21  ;;  %v4948_v43 = vld [vmem:[%s6770_s1 + $0x40] sm:$0xff]  }
  0x56   :  { %4347 = vmatpush3.bf16.msra.mxu1 %v4935_v18  ;;  %1559 = vmatprep.mubr.bf16.mxu1 %v710_v27  ;;  %v702_v55 = vsel %vm466_vm0, %v697_v28, %v701_v29  ;;  %v755_v6 = vshll.u32 %v316_v50, 16  ;;  %v4943_v18 = vld [vmem:[%s6770_s1 + $0x10] sm:$0xff]   ;;  %v769_v21 = vor.u32 %v767_v45, %v701_v29  ;;  %v4945_v29 = vld [vmem:[%s6770_s1 + $0x48] sm:$0xff]   ;;  %v809_v45 = vshrl.u32 %v5709_v59, 16  ;;  %v293_v57 = vld [vmem:[%s6771_s0 + $0x40] sm:$0xfe] }
  0x57   :  { %4348 = vmatprep.subr.bf16.mxu1 %v4936_v19  ;;  %v766_v19 = vsel %vm466_vm0, %v761_v56, %v765_v12  ;;  %v50_v56 = vld [vmem:[%s6771_s0 + $0x118] sm:$0xff]  ;;  %v16_v59 = vld [vmem:[%s6771_s0 + $0x8] sm:$0xff] }
  0x58   :  { %4743 = vmatpush3.bf16.msra.mxu0 %v4933_v1  ;;  %v779_v1 = vshll.u32 %v319_v47, 16  ;;  %v757_v16 = vrot.slane %v755_v6, 1  ;;  %v774_v30 = vsel %vm466_vm0, %v769_v21, %v773_v22 }
  0x59   :  { %4744 = vmatprep.subr.bf16.mxu0 %v5105_v54 }
  0x5a   :  { %4349 = vmatpush3.bf16.msra.mxu1 %v4938_v31  ;;  %v781_v15 = vrot.slane %v779_v1, 1  ;;  %v758_v28 = vsel %vm466_vm0, %v753_v2, %v757_v16  ;;  %v812_v31 = vshrl.u32 %v319_v47, 16  ;;  %v4949_v47 = vld [vmem:[%s6770_s1] sm:$0xff]   ;;  %v4950_v1 = vld [vmem:[%s6770_s1 + $0xf8] sm:$0xff]   ;;  %v811_v2 = vor.u32 %v809_v45, %v773_v22  ;;  %v77_v45 = vld [vmem:[%s6771_s0 + $0x1f0] sm:$0xff] }
  0x5b   :  { %1488 = vmatmul.mubr.bf16.gmra.mxu0 %v686_v34  ;;  %4350 = vmatprep.subr.bf16.mxu1 %v4939_v62  ;;  %v4944_v34 = vld [vmem:[%s6770_s1 + $0x448] sm:$0xff]  }
  0x5c   :  { %4745 = vmatpush3.bf16.msra.mxu0 %v4937_v24  ;;  %1560 = vmatmul.mubr.bf16.gmra.mxu1 %v702_v55  ;;  %v806_v24 = vshrl.u32 %v317_v37, 16  ;;  %v782_v27 = vsel %vm466_vm0, %v777_v63, %v781_v15  ;;  %v814_v33 = vor.u32 %v812_v31, %v781_v15  ;;  %v803_v37 = vshrl.u32 %v316_v50, 16  ;;  %v5756_v50 = vld [vmem:[%s6771_s0 + $0x88] sm:$0xff]  ;;  %v41_v55 = vld [vmem:[%s6771_s0 + $0xd0] sm:$0xff] }
  0x5d   :  { %4746 = vmatprep.subr.bf16.mxu0 %v5105_v54  ;;  %1495 = vmatprep.mubr.bf16.mxu0 %v766_v19  ;;  %v5770_v62 = vpack.c.bf16 %v50_v56, %v41_v55  ;;  %v311_v63 = vpack.c.bf16 %v5756_v50, %v293_v57  ;;  %v68_v19 = vld [vmem:[%s6771_s0 + $0x1a8] sm:$0xff]  ;;  %v4959_v57 = vld [vmem:[%s6770_s1 + $0x130] sm:$0xff]  }
  0x5e   :  { %4351 = vmatpush3.bf16.msra.mxu1 %v4940_v7  ;;  %1567 = vmatprep.mubr.bf16.mxu1 %v782_v27  ;;  %v808_v36 = vor.u32 %v806_v24, %v765_v12  ;;  %v805_v51 = vor.u32 %v803_v37, %v757_v16  ;;  %v5780_v12 = vld [vmem:[%s6771_s0 + $0x50] sm:$0xff]  ;;  %v4954_v24 = vld [vmem:[%s6770_s1 + $0x178] sm:$0xff]   ;;  %v4957_v56 = vld [vmem:[%s6770_s1 + $0xa8] sm:$0xff]  }
  0x5f   :  { %4352 = vmatprep.subr.bf16.mxu1 %v4942_v17  ;;  %v564_v6 = vshrl.u32 %v311_v63, 16  ;;  %v566_v7 = vshll.u32 %v311_v63, 16  ;;  %v97_v14 = vpack.c.bf16 %v5780_v12, %v16_v59  ;;  %v59_v17 = vld [vmem:[%s6771_s0 + $0x160] sm:$0xff]  ;;  %v4951_v27 = vld [vmem:[%s6770_s1 + $0xb8] sm:$0xff]   ;;  %v639_v31 = vshrl.u32 %v5770_v62, 16 }
  0x60   :  { %4747 = vmatpush3.bf16.msra.mxu0 %v4941_v11  ;;  %v571_v11 = vshll.u32 %v5770_v62, 16  ;;  %v5794_v22 = vpack.c.bf16 %v68_v19, %v59_v17  ;;  %v4955_v37 = vld [vmem:[%s6770_s1 + $0x138] sm:$0xff]   ;;  %v302_v17 = vld [vmem:[%s6771_s0 + $0x280] sm:$0x7f] }
  0x61   :  { %4748 = vmatprep.subr.bf16.mxu0 %v5105_v54  ;;  %v568_v15 = vrot.slane %v566_v7, 1  ;;  %v4961_v7 = vld [vmem:[%s6770_s1 + $0xa0] sm:$0xff]   ;;  %v320_v19 = vpack.c.bf16 %v302_v17, %v302_v17 }
  0x62   :  { %4353 = vmatpush3.bf16.msra.mxu1 %v4943_v18  ;;  %v573_v16 = vrot.slane %v571_v11, 1  ;;  %v15_v18 = vld [vmem:[%s6771_s0] sm:$0xff]  ;;  %v4963_v11 = vld [vmem:[%s6770_s1 + $0x128] sm:$0xff]  }
  0x63   :  { %1496 = vmatmul.mubr.bf16.gmra.mxu0 %v758_v28  ;;  %4354 = vmatprep.subr.bf16.mxu1 %v4945_v29  ;;  %v569_v21 = vor.u32 %v568_v15, %v564_v6  ;;  %v5811_v29 = vld [vmem:[%s6771_s0 + $0x48] sm:$0xff]  ;;  %v4965_v15 = vld [vmem:[%s6770_s1 + $0x160] sm:$0xff]  }
  0x64   :  { %1503 = vmatprep.mubr.bf16.mxu0 %v808_v36  ;;  %4749 = vmatpush3.bf16.msra.mxu0 %v4944_v34  ;;  %v643_v34 = vshll.u32 %v5794_v22, 16  ;;  %v4952_v36 = vld [vmem:[%s6770_s1 + $0xf0] sm:$0xff]   ;;  %v4962_v6 = vld [vmem:[%s6770_s1 + $0x168] sm:$0xff]   ;;  %v4981_v17 = vld [vmem:[%s6770_s1 + $0x100] sm:$0xff]  }
  0x65   :  { %4750 = vmatprep.subr.bf16.mxu0 %v5105_v54  ;;  %1568 = vmatmul.mubr.bf16.gmra.mxu1 %v774_v30  ;;  %v574_v28 = vsel %vm466_vm0, %v569_v21, %v573_v16  ;;  %v96_v30 = vpack.c.bf16 %v5811_v29, %v15_v18  ;;  %v4964_v18 = vld [vmem:[%s6770_s1 + $0xd8] sm:$0xff]  }
  0x66   :  { %1575 = vmatprep.mubr.bf16.mxu1 %v814_v33  ;;  %4355 = vmatpush3.bf16.msra.mxu1 %v4946_v38  ;;  %v4953_v33 = vld [vmem:[%s6770_s1 + $0xb0] sm:$0xff]   ;;  %v641_v38 = vor.u32 %v639_v31, %v573_v16  ;;  %v4966_v21 = vld [vmem:[%s6770_s1 + $0x98] sm:$0xff]   ;;  %v787_v31 = vshll.u32 %v320_v19, 16 }
  0x67   :  { %4356 = vmatprep.subr.bf16.mxu1 %v4948_v43  ;;  %v4958_v43 = vld [vmem:[%s6770_s1 + $0x170] sm:$0xff]  }
  0x68   :  { %4751 = vmatpush3.bf16.msra.mxu0 %v4947_v39  ;;  %v645_v39 = vrot.slane %v643_v34, 1  ;;  %v4968_v34 = vld [vmem:[%s6770_s1 + $0x158] sm:$0xff]  }
  0x69   :  { %4388 = vmatprep.subr.bf16.mxu0 %v4950_v1  ;;  %v4960_v1 = vld [vmem:[%s6770_s1 + $0xe0] sm:$0xff]  }
  0x6a   :  { %4357 = vmatpush3.bf16.msra.mxu1 %v4949_v47  ;;  %v86_v47 = vld [vmem:[%s6771_s0 + $0x238] sm:$0xff]  ;;  %v646_v63 = vsel %vm466_vm0, %v641_v38, %v645_v39  ;;  %v4971_v38 = vld [vmem:[%s6770_s1 + $0x90] sm:$0xff]  }
  0x6b   :  { %1504 = vmatmul.mubr.bf16.gmra.mxu0 %v805_v51  ;;  %4434 = vmatprep.subr.bf16.mxu1 %v4954_v24  ;;  %v4956_v51 = vld [vmem:[%s6770_s1 + $0xe8] sm:$0xff]   ;;  %v5834_v55 = vpack.c.bf16 %v86_v47, %v77_v45  ;;  %v4967_v24 = vld [vmem:[%s6770_s1 + $0x120] sm:$0xff]  }
  0x6c   :  { %4752 = vmatprep.mubr.msk.bf16.mxu0 %vm5106_vm1, %v5105_v54  ;;  %v4974_v45 = vld [vmem:[%s6770_s1 + $0xc8] sm:$0xff]  }
  0x6d   :  { %1576 = vmatmul.mubr.bf16.gmra.mxu1 %v811_v2  ;;  %v715_v59 = vshll.u32 %v5834_v55, 16  ;;  %v711_v2 = vshrl.u32 %v5794_v22, 16  ;;  %v88_v47 = vld [vmem:[%s6771_s0 + $0x248] sm:$0x3f] }
  0x6e   :  { %2119 = vmatprep.mubr.bf16.mxu1 %v97_v14 }
  0x6f   :  { %v717_v14 = vrot.slane %v715_v59, 1  ;;  %v713_v16 = vor.u32 %v711_v2, %v645_v39  ;;  %v4972_v39 = vld [vmem:[%s6770_s1 + $0x150] sm:$0xff]   ;;  %v4978_v59 = vld [vmem:[%s6770_s1 + $0xc0] sm:$0xff]   ;;  %v4977_v2 = vld [vmem:[%s6770_s1 + $0x108] sm:$0xff]  }
  0x73   :  { %4753 = vmatmul.mubr.bf16.vlgmr.msra.gmra.mxu0 %v574_v28  ;;  %v718_v28 = vsel %vm466_vm0, %v713_v16, %v717_v14 }
  0x74   :  { %4389 = vmatpush3.bf16.msra.mxu0 %v4951_v27  ;;  %4756 = vmatprep.mubr.msk.bf16.mxu0 %vm5106_vm1, %v5105_v54  ;;  %v783_v27 = vshrl.u32 %v5834_v55, 16 }
  0x75   :  { %4390 = vmatprep.subr.bf16.mxu0 %v4952_v36  ;;  %2120 = vmatmul.mubr.bf16.vlgmr.msra.gmra.mxu1 %v96_v30  ;;  %v4969_v36 = vld [vmem:[%s6770_s1 + $0xd0] sm:$0xff]   ;;  %v4970_v30 = vld [vmem:[%s6770_s1 + $0x118] sm:$0xff]  }
  0x76   :  { %2127 = vmatprep.mubr.bf16.mxu1 %v5232_v35  ;;  %4435 = vmatpush3.bf16.msra.mxu1 %v4955_v37  ;;  %v789_v37 = vrot.slane %v787_v31, 1  ;;  %v5958_v31 = vld [vmem:[%s6771_s0 + $0x58] sm:$0xff] }
  0x77   :  { %4436 = vmatprep.subr.bf16.mxu1 %v4958_v43  ;;  %v4973_v43 = vld [vmem:[%s6770_s1 + $0x110] sm:$0xff]  }
  0x78   :  { %4391 = vmatpush3.bf16.msra.mxu0 %v4953_v33  ;;  %v785_v33 = vor.u32 %v783_v27, %v717_v14  ;;  %v4982_v14 = vld [vmem:[%s6770_s1 + $0x1f8] sm:$0xff]  }
  0x79   :  { %4392 = vmatprep.subr.bf16.mxu0 %v4956_v51  ;;  %v4975_v51 = vld [vmem:[%s6770_s1 + $0x88] sm:$0xff]  }
  0x7a   :  { %4437 = vmatpush3.bf16.msra.mxu1 %v4959_v57  ;;  %v4976_v57 = vld [vmem:[%s6770_s1 + $0x148] sm:$0xff]  }
  0x7b   :  { %4757 = vmatmul.mubr.bf16.gmra.mxu0 %v646_v63  ;;  %4438 = vmatprep.subr.bf16.mxu1 %v4962_v6  ;;  %v133_v63 = vpack.c.bf16 %v88_v47, %v88_v47  ;;  %v4979_v6 = vld [vmem:[%s6770_s1 + $0x80] sm:$0xff]   ;;  %v4992_v47 = vld [vmem:[%s6770_s1 + $0x228] sm:$0xff]  }
  0x7c   :  { %4393 = vmatpush3.bf16.msra.mxu0 %v4957_v56  ;;  %4760 = vmatprep.mubr.msk.bf16.mxu0 %vm5106_vm1, %v5105_v54  ;;  %v790_v56 = vsel %vm466_vm0, %v785_v33, %v789_v37 }
  0x7d   :  { %4394 = vmatprep.subr.bf16.mxu0 %v4960_v1  ;;  %2128 = vmatmul.mubr.bf16.gmra.mxu1 %v5265_v52  ;;  %v815_v1 = vshrl.u32 %v320_v19, 16 }
  0x7e   :  { %2135 = vmatprep.mubr.bf16.mxu1 %v5306_v26  ;;  %4439 = vmatpush3.bf16.msra.mxu1 %v4963_v11  ;;  %v18_v11 = vld [vmem:[%s6771_s0 + $0x18] sm:$0xff] }
  0x7f   :  { %4440 = vmatprep.subr.bf16.mxu1 %v4965_v15  ;;  %v87_v15 = vld [vmem:[%s6771_s0 + $0x240] sm:$0x3f]  ;;  %v817_v16 = vor.u32 %v815_v1, %v789_v37  ;;  %v4986_v37 = vld [vmem:[%s6770_s1 + $0x238] sm:$0xff]  }
  0x80   :  { %4395 = vmatpush3.bf16.msra.mxu0 %v4961_v7  ;;  %v4980_v7 = vld [vmem:[%s6770_s1 + $0x140] sm:$0xff]   ;;  %v4997_v1 = vld [vmem:[%s6770_s1 + $0x218] sm:$0xff]  }
  0x81   :  { %4396 = vmatprep.subr.bf16.mxu0 %v4964_v18  ;;  %v5944_v18 = vld [vmem:[%s6771_s0 + $0x60] sm:$0xff] }
  0x82   :  { %4441 = vmatpush3.bf16.msra.mxu1 %v4967_v24  ;;  %v99_v19 = vpack.c.bf16 %v5944_v18, %v18_v11  ;;  %v132_v24 = vpack.c.bf16 %v87_v15, %v87_v15  ;;  %v4999_v11 = vld [vmem:[%s6770_s1 + $0x210] sm:$0xff]  }
  0x83   :  { %4761 = vmatmul.mubr.bf16.gmra.mxu0 %v718_v28  ;;  %4442 = vmatprep.subr.bf16.mxu1 %v4968_v34  ;;  %v17_v28 = vld [vmem:[%s6771_s0 + $0x10] sm:$0xff] }
  0x84   :  { %4397 = vmatpush3.bf16.msra.mxu0 %v4966_v21  ;;  %4764 = vmatprep.mubr.msk.bf16.mxu0 %vm5106_vm1, %v5105_v54  ;;  %v20_v21 = vld [vmem:[%s6771_s0 + $0x28] sm:$0xff]  ;;  %v98_v34 = vpack.c.bf16 %v5958_v31, %v17_v28  ;;  %v22_v28 = vld [vmem:[%s6771_s0 + $0x38] sm:$0xff] }
  0x85   :  { %4398 = vmatprep.subr.bf16.mxu0 %v4969_v36  ;;  %2136 = vmatmul.mubr.bf16.gmra.mxu1 %v5331_v40  ;;  %v101_v27 = vpack.c.bf16 %v5494_v46, %v20_v21  ;;  %v19_v46 = vld [vmem:[%s6771_s0 + $0x20] sm:$0xff]  ;;  %v4983_v36 = vld [vmem:[%s6770_s1 + $0x1b8] sm:$0xff]   ;;  %v5002_v21 = vld [vmem:[%s6770_s1 + $0x208] sm:$0xff]  }
  0x86   :  { %2143 = vmatprep.mubr.bf16.mxu1 %v5375_v8  ;;  %4443 = vmatpush3.bf16.msra.mxu1 %v4970_v30  ;;  %v4984_v30 = vld [vmem:[%s6770_s1 + $0x1f0] sm:$0xff]   ;;  %v100_v33 = vpack.c.bf16 %v5524_v58, %v19_v46  ;;  %v91_v46 = vld [vmem:[%s6771_s0 + $0x260] sm:$0x3f] }
  0x87   :  { %4444 = vmatprep.subr.bf16.mxu1 %v4972_v39  ;;  %v4987_v39 = vld [vmem:[%s6770_s1 + $0x1e8] sm:$0xff]   ;;  %v4989_v58 = vld [vmem:[%s6770_s1 + $0x230] sm:$0xff]  }
  0x88   :  { %4399 = vmatpush3.bf16.msra.mxu0 %v4971_v38  ;;  %v4985_v38 = vld [vmem:[%s6770_s1 + $0x1b0] sm:$0xff]  }
  0x89   :  { %4400 = vmatprep.subr.bf16.mxu0 %v4974_v45  ;;  %v4990_v45 = vld [vmem:[%s6770_s1 + $0x1e0] sm:$0xff]  }
  0x8a   :  { %4445 = vmatpush3.bf16.msra.mxu1 %v4973_v43  ;;  %v4988_v43 = vld [vmem:[%s6770_s1 + $0x1a8] sm:$0xff]  }
  0x8b   :  { %4765 = vmatmul.mubr.bf16.gmra.mxu0 %v790_v56  ;;  %4446 = vmatprep.subr.bf16.mxu1 %v4976_v57  ;;  %v4993_v56 = vld [vmem:[%s6770_s1 + $0x1d8] sm:$0xff]   ;;  %v4995_v57 = vld [vmem:[%s6770_s1 + $0x220] sm:$0xff]  }
  0x8c   :  { %4768 = vmatprep.mubr.msk.bf16.mxu0 %vm5106_vm1, %v5105_v54  ;;  %4401 = vmatpush3.bf16.msra.mxu0 %v4975_v51  ;;  %v4991_v51 = vld [vmem:[%s6770_s1 + $0x1a0] sm:$0xff]  }
  0x8d   :  { %4402 = vmatprep.subr.bf16.mxu0 %v4978_v59  ;;  %2144 = vmatmul.mubr.bf16.gmra.mxu1 %v5395_v20  ;;  %v4994_v59 = vld [vmem:[%s6770_s1 + $0x198] sm:$0xff]  }
  0x8e   :  { %2151 = vmatprep.mubr.bf16.mxu1 %v133_v63  ;;  %4447 = vmatpush3.bf16.msra.mxu1 %v4977_v2  ;;  %v4996_v63 = vld [vmem:[%s6770_s1 + $0x1d0] sm:$0xff]  }
  0x8f   :  { %4448 = vmatprep.subr.bf16.mxu1 %v4980_v7  ;;  %v4998_v2 = vld [vmem:[%s6770_s1 + $0x190] sm:$0xff]   ;;  %v90_v7 = vld [vmem:[%s6771_s0 + $0x258] sm:$0x3f] }
  0x90   :  { %4403 = vmatpush3.bf16.msra.mxu0 %v4979_v6  ;;  %v5000_v6 = vld [vmem:[%s6770_s1 + $0x1c8] sm:$0xff]   ;;  %v135_v15 = vpack.c.bf16 %v90_v7, %v90_v7  ;;  %v5016_v7 = vld [vmem:[%s6770_s1 + $0x4e0] sm:$0xff]  }
  0x91   :  { %4480 = vmatprep.subr.bf16.mxu0 %v4982_v14  ;;  %v92_v14 = vld [vmem:[%s6771_s0 + $0x268] sm:$0x3f] }
  0x92   :  { %4449 = vmatpush3.bf16.msra.mxu1 %v4981_v17  ;;  %v5003_v17 = vld [vmem:[%s6770_s1 + $0x1c0] sm:$0xff]  }
  0x93   :  { %4769 = vmatmul.mubr.bf16.gmra.mxu0 %v817_v16  ;;  %4772 = vmatprep.subr.bf16.mxu1 %v5105_v54  ;;  %v5001_v16 = vld [vmem:[%s6770_s1 + $0x188] sm:$0xff]  }
  0x94   :  { %2191 = vmatprep.mubr.bf16.mxu0 %v99_v19  ;;  %v89_v19 = vld [vmem:[%s6771_s0 + $0x250] sm:$0x3f] }
  0x95   :  { %2152 = vmatmul.mubr.bf16.gmra.mxu1 %v132_v24  ;;  %v137_v24 = vpack.c.bf16 %v92_v14, %v92_v14  ;;  %v5017_v14 = vld [vmem:[%s6770_s1 + $0x4a0] sm:$0xff]  }
  0x96   :  { %2263 = vmatprep.mubr.bf16.mxu1 %v101_v27  ;;  %v5004_v27 = vld [vmem:[%s6770_s1 + $0x180] sm:$0xff]  }
  0x9b   :  { %2192 = vmatmul.mubr.bf16.vlgmr.msra.gmra.mxu0 %v98_v34  ;;  %v5006_v34 = vld [vmem:[%s6770_s1 + $0x4f8] sm:$0xff]  }
  0x9c   :  { %4481 = vmatpush3.bf16.msra.mxu0 %v4983_v36  ;;  %2199 = vmatprep.mubr.bf16.mxu0 %v5253_v44  ;;  %v134_v36 = vpack.c.bf16 %v89_v19, %v89_v19  ;;  %v5022_v19 = vld [vmem:[%s6770_s1 + $0x498] sm:$0xff]  }
  0x9d   :  { %4482 = vmatprep.subr.bf16.mxu0 %v4984_v30  ;;  %2264 = vmatmul.mubr.bf16.vlgmr.msra.gmra.mxu1 %v100_v33  ;;  %v5005_v30 = vld [vmem:[%s6770_s1 + $0x200] sm:$0xff]  }
  0x9e   :  { %2271 = vmatprep.mubr.bf16.mxu1 %v5502_v49  ;;  %4773 = vmatpush3.bf16.msra.mxu1 %v4986_v37  ;;  %v6074_v33 = vld [vmem:[%s6771_s0 + $0x80] sm:$0xff] }
  0x9f   :  { %4774 = vmatprep.subr.bf16.mxu1 %v5105_v54  ;;  %v103_v37 = vpack.c.bf16 %v6074_v33, %v22_v28  ;;  %v5026_v28 = vld [vmem:[%s6770_s1 + $0x518] sm:$0xff]  }
  0xa0   :  { %4483 = vmatpush3.bf16.msra.mxu0 %v4985_v38  ;;  %v5010_v38 = vld [vmem:[%s6770_s1 + $0x578] sm:$0xff]  }
  0xa1   :  { %4484 = vmatprep.subr.bf16.mxu0 %v4987_v39  ;;  %v136_v39 = vpack.c.bf16 %v91_v46, %v91_v46  ;;  %v5028_v46 = vld [vmem:[%s6770_s1 + $0x550] sm:$0xff]  }
  0xa2   :  { %4775 = vmatpush3.bf16.msra.mxu1 %v4989_v58  ;;  %v21_v58 = vld [vmem:[%s6771_s0 + $0x30] sm:$0xff] }
  0xa3   :  { %2200 = vmatmul.mubr.bf16.gmra.mxu0 %v5281_v4  ;;  %4776 = vmatprep.subr.bf16.mxu1 %v5105_v54 }
  0xa4   :  { %4485 = vmatpush3.bf16.msra.mxu0 %v4988_v43  ;;  %2207 = vmatprep.mubr.bf16.mxu0 %v5318_v32  ;;  %v6088_v43 = vld [vmem:[%s6771_s0 + $0x78] sm:$0xff] }
  0xa5   :  { %4486 = vmatprep.subr.bf16.mxu0 %v4990_v45  ;;  %2272 = vmatmul.mubr.bf16.gmra.mxu1 %v5539_v5  ;;  %v102_v45 = vpack.c.bf16 %v6088_v43, %v21_v58  ;;  %v5032_v58 = vld [vmem:[%s6770_s1 + $0x548] sm:$0xff]  }
  0xa6   :  { %2279 = vmatprep.mubr.bf16.mxu1 %v5572_v48  ;;  %4777 = vmatpush3.bf16.msra.mxu1 %v4992_v47  ;;  %v23_v47 = vld [vmem:[%s6771_s0 + $0x40] sm:$0xff] }
  0xa7   :  { %4778 = vmatprep.subr.bf16.mxu1 %v5105_v54 }
  0xa8   :  { %4487 = vmatpush3.bf16.msra.mxu0 %v4991_v51  ;;  %v5007_v51 = vld [vmem:[%s6770_s1 + $0x4b8] sm:$0xff]  }
  0xa9   :  { %4488 = vmatprep.subr.bf16.mxu0 %v4993_v56  ;;  %v5008_v56 = vld [vmem:[%s6770_s1 + $0x4f0] sm:$0xff]  }
  0xaa   :  { %4779 = vmatpush3.bf16.msra.mxu1 %v4995_v57  ;;  %v104_v57 = vpack.c.bf16 %v5756_v50, %v23_v47  ;;  %v5012_v50 = vld [vmem:[%s6770_s1 + $0x4e8] sm:$0xff]   ;;  %v5034_v47 = vld [vmem:[%s6770_s1 + $0x4c0] sm:$0xff]  }
  0xab   :  { %2208 = vmatmul.mubr.bf16.gmra.mxu0 %v5333_v41  ;;  %4780 = vmatprep.subr.bf16.mxu1 %v5105_v54 }
  0xac   :  { %4489 = vmatpush3.bf16.msra.mxu0 %v4994_v59  ;;  %2215 = vmatprep.mubr.bf16.mxu0 %v5377_v9  ;;  %v5009_v59 = vld [vmem:[%s6770_s1 + $0x4b0] sm:$0xff]  }
  0xad   :  { %4490 = vmatprep.subr.bf16.mxu0 %v4996_v63  ;;  %2280 = vmatmul.mubr.bf16.gmra.mxu1 %v5595_v3  ;;  %v5011_v63 = vld [vmem:[%s6770_s1 + $0x538] sm:$0xff]  }
  0xae   :  { %2287 = vmatprep.mubr.bf16.mxu1 %v5634_v42  ;;  %4781 = vmatpush3.bf16.msra.mxu1 %v4997_v1  ;;  %v5014_v1 = vld [vmem:[%s6770_s1 + $0x570] sm:$0xff]  }
  0xaf   :  { %4782 = vmatprep.subr.bf16.mxu1 %v5105_v54 }
  0xb0   :  { %4491 = vmatpush3.bf16.msra.mxu0 %v4998_v2  ;;  %v5015_v2 = vld [vmem:[%s6770_s1 + $0x530] sm:$0xff]  }
  0xb1   :  { %4492 = vmatprep.subr.bf16.mxu0 %v5000_v6  ;;  %v5013_v6 = vld [vmem:[%s6770_s1 + $0x4a8] sm:$0xff]  }
  0xb2   :  { %4783 = vmatpush3.bf16.msra.mxu1 %v4999_v11  ;;  %v5018_v11 = vld [vmem:[%s6770_s1 + $0x568] sm:$0xff]  }
  0xb3   :  { %2216 = vmatmul.mubr.bf16.gmra.mxu0 %v5403_v23  ;;  %4784 = vmatprep.subr.bf16.mxu1 %v5105_v54 }
  0xb4   :  { %2223 = vmatprep.mubr.bf16.mxu0 %v135_v15  ;;  %4493 = vmatpush3.bf16.msra.mxu0 %v5001_v16  ;;  %v5019_v15 = vld [vmem:[%s6770_s1 + $0x528] sm:$0xff]   ;;  %v5021_v16 = vld [vmem:[%s6770_s1 + $0x560] sm:$0xff]  }
  0xb5   :  { %4494 = vmatprep.subr.bf16.mxu0 %v5003_v17  ;;  %2288 = vmatmul.mubr.bf16.gmra.mxu1 %v5661_v0  ;;  %v5020_v17 = vld [vmem:[%s6770_s1 + $0x4d8] sm:$0xff]  }
  0xb6   :  { %2295 = vmatprep.mubr.bf16.mxu1 %v137_v24  ;;  %4785 = vmatpush3.bf16.msra.mxu1 %v5002_v21  ;;  %v5023_v21 = vld [vmem:[%s6770_s1 + $0x520] sm:$0xff]   ;;  %v5024_v24 = vld [vmem:[%s6770_s1 + $0x558] sm:$0xff]  }
  0xb7   :  { %4786 = vmatprep.subr.bf16.mxu1 %v5105_v54 }
  0xb8   :  { %4495 = vmatpush3.bf16.msra.mxu0 %v5004_v27  ;;  %v5025_v27 = vld [vmem:[%s6770_s1 + $0x4d0] sm:$0xff]  }
  0xb9   :  { %4539 = vmatprep.subr.bf16.mxu0 %v5006_v34  ;;  %v5027_v34 = vld [vmem:[%s6770_s1 + $0x490] sm:$0xff]  }
  0xba   :  { %4787 = vmatpush3.bf16.msra.mxu1 %v5005_v30  ;;  %v5029_v30 = vld [vmem:[%s6770_s1 + $0x510] sm:$0xff]  }
  0xbb   :  { %2224 = vmatmul.mubr.bf16.gmra.mxu0 %v134_v36  ;;  %4585 = vmatprep.subr.bf16.mxu1 %v5010_v38  ;;  %v5030_v36 = vld [vmem:[%s6770_s1 + $0x4c8] sm:$0xff]  }
  0xbc   :  { %2335 = vmatprep.mubr.bf16.mxu0 %v103_v37  ;;  %v94_v37 = vld [vmem:[%s6771_s0 + $0x278] sm:$0x3f]  ;;  %v5031_v38 = vld [vmem:[%s6770_s1 + $0x488] sm:$0xff]  }
  0xbd   :  { %2296 = vmatmul.mubr.bf16.gmra.mxu1 %v136_v39  ;;  %v2448_v39 = vld [vmem:[%s6771_s0 + $0x8] sm:$0xfc] }
  0xbe   :  { %4788 = vmatprep.mubr.msk.bf16.mxu1 %vm5106_vm1, %v5105_v54 }
  0xc3   :  { %2336 = vmatmul.mubr.bf16.vlgmr.msra.gmra.mxu0 %v102_v45  ;;  %v139_v45 = vpack.c.bf16 %v94_v37, %v94_v37 }
  0xc4   :  { %4540 = vmatpush3.bf16.msra.mxu0 %v5007_v51  ;;  %2343 = vmatprep.mubr.bf16.mxu0 %v5527_v60  ;;  %v2466_v51 = vpack.c.bf16 %v5780_v12, %v2448_v39  ;;  %v5035_v12 = vld [vmem:[%s6770_s1 + $0x480] sm:$0xff]  }
  0xc5   :  { %4541 = vmatprep.subr.bf16.mxu0 %v5008_v56  ;;  %4789 = vmatmul.mubr.bf16.vlgmr.msra.gmra.mxu1 %v104_v57  ;;  %v2450_v56 = vld [vmem:[%s6771_s0 + $0x18] sm:$0xfc] }
  0xc6   :  { %4792 = vmatprep.mubr.msk.bf16.mxu1 %vm5106_vm1, %v5105_v54  ;;  %4586 = vmatpush3.bf16.msra.mxu1 %v5011_v63  ;;  %v5033_v63 = vld [vmem:[%s6770_s1 + $0x508] sm:$0xff]  }
  0xc7   :  { %4587 = vmatprep.subr.bf16.mxu1 %v5014_v1  ;;  %v5036_v1 = vld [vmem:[%s6770_s1 + $0x540] sm:$0xff]  }
  0xc8   :  { %4542 = vmatpush3.bf16.msra.mxu0 %v5009_v59  ;;  %v93_v59 = vld [vmem:[%s6771_s0 + $0x270] sm:$0x3f] }
  0xc9   :  { %4543 = vmatprep.subr.bf16.mxu0 %v5012_v50  ;;  %v2678_v50 = vrot.slane %v5232_v35, 1  ;;  %v95_v35 = vld [vmem:[%s6771_s0 + $0x280] sm:$0x3f] }
  0xca   :  { %4588 = vmatpush3.bf16.msra.mxu1 %v5015_v2  ;;  %v2468_v2 = vpack.c.bf16 %v5944_v18, %v2450_v56  ;;  %v140_v37 = vpack.c.bf16 %v95_v35, %v95_v35  ;;  %v2707_v35 = vrot.slane %v5318_v32, 1  ;;  %v5043_v32 = vld [vmem:[%s6770_s1 + $0x638] sm:$0xff]  }
  0xcb   :  { %2344 = vmatmul.mubr.bf16.gmra.mxu0 %v5556_v25  ;;  %4589 = vmatprep.subr.bf16.mxu1 %v5018_v11  ;;  %v2677_v11 = vrot.slane %v2466_v51, 1 }
  0xcc   :  { %4544 = vmatpush3.bf16.msra.mxu0 %v5013_v6  ;;  %2351 = vmatprep.mubr.bf16.mxu0 %v5585_v61  ;;  %v2447_v6 = vld [vmem:[%s6771_s0] sm:$0xfc] }
  0xcd   :  { %4545 = vmatprep.subr.bf16.mxu0 %v5016_v7  ;;  %4793 = vmatmul.mubr.bf16.gmra.mxu1 %v5770_v62 }
  0xce   :  { %4796 = vmatprep.mubr.msk.bf16.mxu1 %vm5106_vm1, %v5105_v54  ;;  %4590 = vmatpush3.bf16.msra.mxu1 %v5019_v15 }
  0xcf   :  { %4591 = vmatprep.subr.bf16.mxu1 %v5021_v16  ;;  %v5037_v16 = vld [vmem:[%s6770_s1 + $0x500] sm:$0xff]  }
  0xd0   :  { %4546 = vmatpush3.bf16.msra.mxu0 %v5017_v14  ;;  %v5038_v14 = vld [vmem:[%s6770_s1 + $0x5f8] sm:$0xff]  }
  0xd1   :  { %4547 = vmatprep.subr.bf16.mxu0 %v5020_v17  ;;  %v2684_v17 = vrot.slane %v5253_v44, 1  ;;  %v5042_v44 = vld [vmem:[%s6770_s1 + $0x678] sm:$0xff]  }
  0xd2   :  { %4592 = vmatpush3.bf16.msra.mxu1 %v5023_v21 }
  0xd3   :  { %2352 = vmatmul.mubr.bf16.gmra.mxu0 %v5605_v13  ;;  %4593 = vmatprep.subr.bf16.mxu1 %v5024_v24  ;;  %v2449_v24 = vld [vmem:[%s6771_s0 + $0x10] sm:$0xfc] }
  0xd4   :  { %4548 = vmatpush3.bf16.msra.mxu0 %v5022_v19  ;;  %2359 = vmatprep.mubr.bf16.mxu0 %v5648_v53  ;;  %v138_v19 = vpack.c.bf16 %v93_v59, %v93_v59 }
  0xd5   :  { %4549 = vmatprep.subr.bf16.mxu0 %v5025_v27  ;;  %4797 = vmatmul.mubr.bf16.gmra.mxu1 %v5794_v22 }
  0xd6   :  { %4800 = vmatprep.mubr.msk.bf16.mxu1 %vm5106_vm1, %v5105_v54  ;;  %4594 = vmatpush3.bf16.msra.mxu1 %v5026_v28  ;;  %v2683_v28 = vrot.slane %v2468_v2, 1 }
  0xd7   :  { %4595 = vmatprep.subr.bf16.mxu1 %v5028_v46 }
  0xd8   :  { %4550 = vmatpush3.bf16.msra.mxu0 %v5027_v34  ;;  %v2465_v34 = vpack.c.bf16 %v5811_v29, %v2447_v6  ;;  %v2685_v51 = vsel %vm2673_vm2, %v2683_v28, %v2684_v17  ;;  %v5041_v28 = vld [vmem:[%s6770_s1 + $0x5b0] sm:$0xff]  }
  0xd9   :  { %4551 = vmatprep.subr.bf16.mxu0 %v5030_v36 }
  0xda   :  { %4596 = vmatpush3.bf16.msra.mxu1 %v5029_v30  ;;  %v2679_v30 = vsel %vm2673_vm2, %v2677_v11, %v2678_v50  ;;  %v2674_v56 = vrot.slane %v2465_v34, 1 }
  0xdb   :  { %2360 = vmatmul.mubr.bf16.gmra.mxu0 %v5668_v10  ;;  %4597 = vmatprep.subr.bf16.mxu1 %v5032_v58 }
  0xdc   :  { %2367 = vmatprep.mubr.bf16.mxu0 %v139_v45  ;;  %4552 = vmatpush3.bf16.msra.mxu0 %v5031_v38 }
  0xdd   :  { %4553 = vmatprep.subr.bf16.mxu0 %v5034_v47  ;;  %4801 = vmatmul.mubr.bf16.gmra.mxu1 %v5834_v55  ;;  %v2467_v47 = vpack.c.bf16 %v5958_v31, %v2449_v24  ;;  %v2681_v31 = vrot.slane %v5281_v4, 1 }
  0xde   :  { %4804 = vmatprep.mubr.msk.bf16.mxu1 %vm5106_vm1, %v5105_v54  ;;  %4598 = vmatpush3.bf16.msra.mxu1 %v5033_v63 }
  0xdf   :  { %4599 = vmatprep.subr.bf16.mxu1 %v5036_v1 }
  0xe0   :  { %4554 = vmatpush3.bf16.msra.mxu0 %v5035_v12  ;;  %v2703_v12 = vrot.slane %v5306_v26, 1 }
  0xe1   :  { %4631 = vmatprep.subr.bf16.mxu0 %v5038_v14 }
  0xe2   :  { %4600 = vmatpush3.bf16.msra.mxu1 %v5037_v16 }
  0xe3   :  { %v4161_v57 = vpop.f32.mrf.mxu0  ;;  %2368 = vmatmul.mubr.bf16.gmra.mxu0 %v138_v19  ;;  %4677 = vmatprep.subr.bf16.mxu1 %v5042_v44  ;;  %v2704_v19 = vsel %vm2673_vm2, %v2678_v50, %v2703_v12  ;;  %v2708_v50 = vsel %vm2673_vm2, %v2684_v17, %v2707_v35  ;;  %v2701_v44 = vrot.slane %v5331_v40, 1  ;;  %v5045_v17 = vld [vmem:[%s6770_s1 + $0x5a8] sm:$0xff]  }
  0xe4   :  { %v4207_v15 = vpop.f32.mrf.mxu1  ;;  %3264 = vmatprep.mubr.bf16.mxu0 %v2679_v30  ;;  %v2457_v40 = vld [vmem:[%s6771_s0 + $0x248] sm:$0xff] }
  0xe5   :  { %v4162_v7 = vpop.f32.mrf.mxu0  ;;  %4805 = vmatmul.mubr.bf16.gmra.mxu1 %v140_v37  ;;  %v5044_v37 = vld [vmem:[%s6770_s1 + $0x5e8] sm:$0xff]  }
  0xe6   :  { %v4163_v18 = vadd.f32 %v4162_v7, %v4161_v57  ;;  %v4208_v27 = vpop.f32.mrf.mxu1  ;;  %v2675_v57 = vrot.slane %v5265_v52, 1  ;;  %3336 = vmatprep.mubr.bf16.mxu1 %v2685_v51  ;;  %v2680_v7 = vrot.slane %v2467_v47, 1  ;;  %v5039_v52 = vld [vmem:[%s6770_s1 + $0x5b8] sm:$0xff]   ;;  %v2705_v47 = vrot.slane %v5333_v41, 1  ;;  %v5047_v51 = vld [vmem:[%s6770_s1 + $0x630] sm:$0xff]  }
  0xe7   :  { %v4164_v21 = vpop.f32.mrf.mxu0  ;;  %v4209_v46 = vadd.f32 %v4208_v27, %v4207_v15 }
  0xe8   :  { %v4210_v38 = vpop.f32.mrf.mxu1  ;;  %v2676_v14 = vsel %vm2673_vm2, %v2674_v56, %v2675_v57  ;;  %v2682_v24 = vsel %vm2673_vm2, %v2680_v7, %v2681_v31  ;;  %v2702_v56 = vsel %vm2673_vm2, %v2675_v57, %v2701_v44  ;;  %v5050_v57 = vld [vmem:[%s6770_s1 + $0x668] sm:$0xff]  }
  0xe9   :  { %v4165_v36 = vpop.f32.mrf.mxu0  ;;  %v6235_v58 = vadd.f32 %v4209_v46, %v4163_v18  ;;  %v5040_v18 = vld [vmem:[%s6770_s1 + $0x5f0] sm:$0xff]  }
  0xea   :  { %v4166_v39 = vadd.f32 %v4165_v36, %v4164_v21  ;;  %v4211_v29 = vpop.f32.mrf.mxu1  ;;  %v5046_v46 = vld [vmem:[%s6770_s1 + $0x670] sm:$0xff]  }
  0xeb   :  { %v4167_v45 = vpop.f32.mrf.mxu0  ;;  %v4212_v59 = vadd.f32 %v4211_v29, %v4210_v38  ;;  %3265 = vmatmul.mubr.bf16.vlgmr.msra.gmra.mxu0 %v2676_v14  ;;  %v2721_v38 = vrot.slane %v5375_v8, 1 }
  0xec   :  { %v4213_v1 = vpop.f32.mrf.mxu1  ;;  %4632 = vmatpush3.bf16.msra.mxu0 %v5039_v52  ;;  %3272 = vmatprep.mubr.bf16.mxu0 %v2704_v19  ;;  %v2475_v52 = vpack.c.bf16 %v2457_v40, %v2457_v40 }
  0xed   :  { %v4168_v63 = vpop.f32.mrf.mxu0  ;;  %v6241_v6 = vadd.f32 %v4212_v59, %v4166_v39  ;;  %4633 = vmatprep.subr.bf16.mxu0 %v5040_v18  ;;  %3337 = vmatmul.mubr.bf16.vlgmr.msra.gmra.mxu1 %v2682_v24  ;;  %v2722_v14 = vsel %vm2673_vm2, %v2703_v12, %v2721_v38  ;;  %v5049_v18 = vld [vmem:[%s6770_s1 + $0x5a0] sm:$0xff]   ;;  %v2706_v12 = vsel %vm2673_vm2, %v2681_v31, %v2705_v47 }
  0xee   :  { %v4169_v2 = vadd.f32 %v4168_v63, %v4167_v45  ;;  %v4214_v15 = vpop.f32.mrf.mxu1  ;;  %3344 = vmatprep.mubr.bf16.mxu1 %v2708_v50  ;;  %4678 = vmatpush3.bf16.msra.mxu1 %v5043_v32  ;;  %v5053_v31 = vld [vmem:[%s6770_s1 + $0x660] sm:$0xff]  }
  0xef   :  { %v4170_v11 = vpop.f32.mrf.mxu0  ;;  %v4215_v26 = vadd.f32 %v4214_v15, %v4213_v1  ;;  %4679 = vmatprep.subr.bf16.mxu1 %v5046_v46  ;;  %v2725_v1 = vrot.slane %v5377_v9, 1  ;;  %v2459_v15 = vld [vmem:[%s6771_s0 + $0x258] sm:$0xff]  ;;  %v5062_v9 = vld [vmem:[%s6770_s1 + $0x5c8] sm:$0xff]  }
  0xf0   :  { %v4216_v21 = vpop.f32.mrf.mxu1  ;;  %4634 = vmatpush3.bf16.msra.mxu0 %v5041_v28  ;;  %v2477_v50 = vpack.c.bf16 %v2459_v15, %v2459_v15 }
  0xf1   :  { %v4171_v16 = vpop.f32.mrf.mxu0  ;;  %v6254_v27 = vadd.f32 %v4215_v26, %v4169_v2  ;;  %v5048_v2 = vld [vmem:[%s6770_s1 + $0x5e0] sm:$0xff]   ;;  %4635 = vmatprep.subr.bf16.mxu0 %v5044_v37  ;;  %v2726_v32 = vsel %vm2673_vm2, %v2707_v35, %v2725_v1  ;;  %v2723_v35 = vrot.slane %v5403_v23, 1 }
  0xf2   :  { %v4172_v4 = vadd.f32 %v4171_v16, %v4170_v11  ;;  %v4217_v34 = vpop.f32.mrf.mxu1  ;;  %v5051_v16 = vld [vmem:[%s6770_s1 + $0x628] sm:$0xff]   ;;  %4680 = vmatpush3.bf16.msra.mxu1 %v5047_v51  ;;  %v5054_v51 = vld [vmem:[%s6770_s1 + $0x598] sm:$0xff]   ;;  %v5068_v23 = vld [vmem:[%s6770_s1 + $0x640] sm:$0xff]  }
  0xf3   :  { %v4218_v36 = vadd.f32 %v4217_v34, %v4216_v21  ;;  %v4173_v30 = vpop.f32.mrf.mxu0  ;;  %3273 = vmatmul.mubr.bf16.gmra.mxu0 %v2702_v56  ;;  %v2719_v34 = vrot.slane %v5395_v20, 1  ;;  %4681 = vmatprep.subr.bf16.mxu1 %v5050_v57  ;;  %v6333_v56 = vrot.slane %v2477_v50, 1  ;;  %v2724_v15 = vsel %vm2673_vm2, %v2705_v47, %v2723_v35  ;;  %v5059_v47 = vld [vmem:[%s6770_s1 + $0x590] sm:$0xff]  }
  0xf4   :  { %v4219_v39 = vpop.f32.mrf.mxu1  ;;  %4636 = vmatpush3.bf16.msra.mxu0 %v5045_v17  ;;  %3280 = vmatprep.mubr.bf16.mxu0 %v2722_v14  ;;  %v5055_v17 = vld [vmem:[%s6770_s1 + $0x620] sm:$0xff]   ;;  %v5057_v14 = vld [vmem:[%s6770_s1 + $0x5d0] sm:$0xff]  }
  0xf5   :  { %v6277_v45 = vadd.f32 %v4218_v36, %v4172_v4  ;;  %v4174_v29 = vpop.f32.mrf.mxu0  ;;  %v5052_v4 = vld [vmem:[%s6770_s1 + $0x5d8] sm:$0xff]   ;;  %4637 = vmatprep.subr.bf16.mxu0 %v5048_v2  ;;  %v6318_v36 = vrot.slane %v2475_v52, 1  ;;  %3345 = vmatmul.mubr.bf16.gmra.mxu1 %v2706_v12  ;;  %v2720_v40 = vsel %vm2673_vm2, %v2701_v44, %v2719_v34  ;;  %v2744_v12 = vsel %vm2673_vm2, %v2725_v1, %v6333_v56 }
  0xf6   :  { %v4175_v59 = vadd.f32 %v4174_v29, %v4173_v30  ;;  %v4220_v63 = vpop.f32.mrf.mxu1  ;;  %v2456_v30 = vld [vmem:[%s6771_s0 + $0x240] sm:$0xff]  ;;  %3352 = vmatprep.mubr.bf16.mxu1 %v2726_v32  ;;  %4682 = vmatpush3.bf16.msra.mxu1 %v5051_v16  ;;  %v2452_v32 = vld [vmem:[%s6771_s0 + $0x28] sm:$0xfc] }
  0xf7   :  { %v4221_v7 = vadd.f32 %v4220_v63, %v4219_v39  ;;  %v4176_v11 = vpop.f32.mrf.mxu0  ;;  %4683 = vmatprep.subr.bf16.mxu1 %v5053_v31  ;;  %v2458_v63 = vld [vmem:[%s6771_s0 + $0x250] sm:$0xff]  ;;  %v2740_v44 = vsel %vm2673_vm2, %v2721_v38, %v6318_v36 }
  0xf8   :  { %v4222_v26 = vpop.f32.mrf.mxu1  ;;  %4638 = vmatpush3.bf16.msra.mxu0 %v5049_v18  ;;  %v2476_v38 = vpack.c.bf16 %v2458_v63, %v2458_v63 }
  0xf9   :  { %v6306_v19 = vadd.f32 %v4221_v7, %v4175_v59  ;;  %v4177_v21 = vpop.f32.mrf.mxu0  ;;  %v2474_v59 = vpack.c.bf16 %v2456_v30, %v2456_v30  ;;  %4639 = vmatprep.subr.bf16.mxu0 %v5052_v4 }
  0xfa   :  { %v4178_v24 = vadd.f32 %v4177_v21, %v4176_v11  ;;  %v4223_v28 = vpop.f32.mrf.mxu1  ;;  %v5056_v11 = vld [vmem:[%s6770_s1 + $0x658] sm:$0xff]   ;;  %4684 = vmatpush3.bf16.msra.mxu1 %v5055_v17  ;;  %v5060_v21 = vld [vmem:[%s6770_s1 + $0x650] sm:$0xff]   ;;  %v2741_v50 = vrot.slane %v2476_v38, 1  ;;  %v5063_v17 = vld [vmem:[%s6770_s1 + $0x588] sm:$0xff]  }
  0xfb   :  { %v4224_v46 = vadd.f32 %v4223_v28, %v4222_v26  ;;  %v4179_v37 = vpop.f32.mrf.mxu0  ;;  %3281 = vmatmul.mubr.bf16.gmra.mxu0 %v2720_v40  ;;  %v5058_v26 = vld [vmem:[%s6770_s1 + $0x618] sm:$0xff]   ;;  %v6362_v41 = vrot.slane %v2474_v59, 1  ;;  %4685 = vmatprep.subr.bf16.mxu1 %v5056_v11  ;;  %v5066_v59 = vld [vmem:[%s6770_s1 + $0x5c0] sm:$0xff]  }
  0xfc   :  { %v4225_v20 = vpop.f32.mrf.mxu1  ;;  %4640 = vmatpush3.bf16.msra.mxu0 %v5054_v51  ;;  %3288 = vmatprep.mubr.bf16.mxu0 %v2740_v44  ;;  %v5064_v51 = vld [vmem:[%s6770_s1 + $0x648] sm:$0xff]   ;;  %v2742_v11 = vsel %vm2673_vm2, %v2723_v35, %v2741_v50 }
  0xfd   :  { %v6323_v39 = vadd.f32 %v4224_v46, %v4178_v24  ;;  %v4180_v29 = vpop.f32.mrf.mxu0  ;;  %4641 = vmatprep.subr.bf16.mxu0 %v5057_v14  ;;  %3353 = vmatmul.mubr.bf16.gmra.mxu1 %v2724_v15  ;;  %v5061_v46 = vld [vmem:[%s6770_s1 + $0x610] sm:$0xff]  }
  0xfe   :  { %v4181_v2 = vadd.f32 %v4180_v29, %v4179_v37  ;;  %v4226_v7 = vpop.f32.mrf.mxu1  ;;  %3360 = vmatprep.mubr.bf16.mxu1 %v2744_v12  ;;  %4686 = vmatpush3.bf16.msra.mxu1 %v5058_v26  ;;  %v2738_v37 = vsel %vm2673_vm2, %v2719_v34, %v6362_v41  ;;  %v5102_v34 = vld [vmem:[%s6771_s0 + $0x70] sm:$0xff]  ;;  %v5069_v12 = vld [vmem:[%s6770_s1 + $0x600] sm:$0xff]  }
  0xff   :  { %v4227_v57 = vadd.f32 %v4226_v7, %v4225_v20  ;;  %v4182_v52 = vpop.f32.mrf.mxu0  ;;  %4687 = vmatprep.subr.bf16.mxu1 %v5060_v21  ;;  %v2470_v63 = vpack.c.bf16 %v5102_v34, %v2452_v32 }
 0x100   :  { %v4228_v8 = vpop.f32.mrf.mxu1  ;;  %4642 = vmatpush3.bf16.msra.mxu0 %v5059_v47  ;;  %v2696_v47 = vrot.slane %v5527_v60, 1 }
 0x101   :  { %v6356_v18 = vadd.f32 %v4227_v57, %v4181_v2  ;;  %v4183_v16 = vpop.f32.mrf.mxu0  ;;  %4643 = vmatprep.subr.bf16.mxu0 %v5062_v9  ;;  %v2454_v2 = vld [vmem:[%s6771_s0 + $0x38] sm:$0xfc]  ;;  %v5065_v57 = vld [vmem:[%s6770_s1 + $0x608] sm:$0xff]   ;;  %v2689_v26 = vrot.slane %v2470_v63, 1 }
 0x102   :  { %v4184_v4 = vadd.f32 %v4183_v16, %v4182_v52  ;;  %v4229_v24 = vpop.f32.mrf.mxu1  ;;  %4688 = vmatpush3.bf16.msra.mxu1 %v5061_v46  ;;  %v2472_v35 = vpack.c.bf16 %v6074_v33, %v2454_v2  ;;  %v2690_v16 = vrot.slane %v5502_v49, 1  ;;  %v5103_v49 = vld [vmem:[%s6771_s0 + $0x68] sm:$0xff] }
 0x103   :  { %v4230_v1 = vadd.f32 %v4229_v24, %v4228_v8  ;;  %v4185_v28 = vpop.f32.mrf.mxu0  ;;  %3289 = vmatmul.mubr.bf16.gmra.mxu0 %v2738_v37  ;;  %v5067_v8 = vld [vmem:[%s6770_s1 + $0x580] sm:$0xff]   ;;  %4689 = vmatprep.subr.bf16.mxu1 %v5064_v51  ;;  %v2715_v51 = vrot.slane %v5585_v61, 1  ;;  %v5071_v61 = vld [vmem:[%s6770_s1 + $0x6b0] sm:$0xff]  }
 0x104   :  { %v4231_v31 = vpop.f32.mrf.mxu1  ;;  %3296 = vmatprep.mubr.bf16.mxu0 %v6318_v36  ;;  %4644 = vmatpush3.bf16.msra.mxu0 %v5063_v17  ;;  %v2451_v36 = vld [vmem:[%s6771_s0 + $0x20] sm:$0xfc]  ;;  %v2695_v33 = vrot.slane %v2472_v35, 1  ;;  %v2693_v17 = vrot.slane %v5556_v25, 1  ;;  %v2461_v35 = vld [vmem:[%s6771_s0 + $0x268] sm:$0xff] }
 0x105   :  { %v6379_v30 = vadd.f32 %v4230_v1, %v4184_v4  ;;  %v4186_v20 = vpop.f32.mrf.mxu0  ;;  %4645 = vmatprep.subr.bf16.mxu0 %v5066_v59  ;;  %3361 = vmatmul.mubr.bf16.gmra.mxu1 %v2742_v11  ;;  %v2469_v21 = vpack.c.bf16 %v5103_v49, %v2451_v36  ;;  %v2453_v4 = vld [vmem:[%s6771_s0 + $0x30] sm:$0xfc]  ;;  %v2716_v11 = vsel %vm2673_vm2, %v2696_v47, %v2715_v51 }
 0x106   :  { %v4187_v40 = vadd.f32 %v4186_v20, %v4185_v28  ;;  %v4232_v29 = vpop.f32.mrf.mxu1  ;;  %3368 = vmatprep.mubr.bf16.mxu1 %v6333_v56  ;;  %4690 = vmatpush3.bf16.msra.mxu1 %v5065_v57  ;;  %v2691_v56 = vsel %vm2673_vm2, %v2689_v26, %v2690_v16  ;;  %v2471_v9 = vpack.c.bf16 %v6088_v43, %v2453_v4  ;;  %v2687_v28 = vrot.slane %v5539_v5, 1  ;;  %v5070_v5 = vld [vmem:[%s6770_s1 + $0x6b8] sm:$0xff]  }
 0x107   :  { %v4233_v7 = vadd.f32 %v4232_v29, %v4231_v31  ;;  %v4188_v44 = vpop.f32.mrf.mxu0  ;;  %4691 = vmatprep.subr.bf16.mxu1 %v5068_v23  ;;  %v2697_v60 = vsel %vm2673_vm2, %v2695_v33, %v2696_v47  ;;  %v2686_v1 = vrot.slane %v2469_v21, 1  ;;  %v2711_v31 = vrot.slane %v5572_v48, 1  ;;  %v5072_v33 = vld [vmem:[%s6770_s1 + $0x6a8] sm:$0xff]  }
 0x108   :  { %v4234_v14 = vpop.f32.mrf.mxu1  ;;  %4646 = vmatpush3.bf16.msra.mxu0 %v5067_v8  ;;  %v2729_v8 = vrot.slane %v5634_v42, 1  ;;  %v2713_v26 = vrot.slane %v5605_v13, 1  ;;  %v2733_v47 = vrot.slane %v5648_v53, 1  ;;  %v2479_v4 = vpack.c.bf16 %v2461_v35, %v2461_v35  ;;  %v5075_v35 = vld [vmem:[%s6770_s1 + $0x690] sm:$0xff]  }
 0x109   :  { %v6404_v52 = vadd.f32 %v4233_v7, %v4187_v40  ;;  %v4189_v15 = vpop.f32.mrf.mxu0  ;;  %4808 = vmatprep.subr.bf16.mxu0 %v5105_v54  ;;  %v2688_v29 = vsel %vm2673_vm2, %v2686_v1, %v2687_v28  ;;  %v2709_v14 = vrot.slane %v5595_v3, 1 }
 0x10a   :  { %v4235_v38 = vpop.f32.mrf.mxu1  ;;  %4692 = vmatpush3.bf16.msra.mxu1 %v5069_v12  ;;  %v2714_v53 = vsel %vm2673_vm2, %v2693_v17, %v2713_v26 }
 0x10b   :  { %v4253_v24 = vpop.f32.mrf.mxu0  ;;  %3297 = vmatmul.mubr.bf16.gmra.mxu0 %v6362_v41  ;;  %4844 = vmatprep.subr.bf16.mxu1 %v5105_v54  ;;  %v2692_v41 = vrot.slane %v2471_v9, 1  ;;  %v2710_v12 = vsel %vm2673_vm2, %v2687_v28, %v2709_v14 }
 0x10c   :  { %3408 = vmatprep.mubr.bf16.mxu0 %v2691_v56  ;;  %v4299_v46 = vpop.f32.mrf.mxu1  ;;  %v2463_v56 = vld [vmem:[%s6771_s0 + $0x278] sm:$0xff] }
 0x10d   :  { %v4254_v32 = vpop.f32.mrf.mxu0  ;;  %3369 = vmatmul.mubr.bf16.gmra.mxu1 %v2741_v50  ;;  %v2712_v50 = vsel %vm2673_vm2, %v2690_v16, %v2711_v31  ;;  %v2694_v25 = vsel %vm2673_vm2, %v2692_v41, %v2693_v17  ;;  %v6489_v17 = vrot.slane %v2479_v4, 1 }
 0x10e   :  { %v4255_v37 = vadd.f32 %v4254_v32, %v4253_v24  ;;  %3480 = vmatprep.mubr.bf16.mxu1 %v2697_v60  ;;  %v4300_v40 = vpop.f32.mrf.mxu1 }
 0x10f   :  { %v4256_v20 = vpop.f32.mrf.mxu0  ;;  %v4301_v48 = vadd.f32 %v4300_v40, %v4299_v46  ;;  %v2727_v46 = vrot.slane %v5661_v0, 1 }
 0x110   :  { %v1474_v43 = vadd.f32 %v4255_v37, %v6235_v58  ;;  %v4302_v34 = vpop.f32.mrf.mxu1  ;;  %v5073_v37 = vld [vmem:[%s6770_s1 + $0x6a0] sm:$0xff]  }
 0x111   :  { %v4257_v59 = vpop.f32.mrf.mxu0 }
 0x112   :  { %v4258_v63 = vadd.f32 %v4257_v59, %v4256_v20  ;;  %v6446_v58 = vadd.f32 %v4301_v48, %v1474_v43  ;;  %v4303_v44 = vpop.f32.mrf.mxu1  ;;  %v2481_v20 = vpack.c.bf16 %v2463_v56, %v2463_v56 }
 0x113   :  { %v4259_v2 = vpop.f32.mrf.mxu0  ;;  %3409 = vmatmul.mubr.bf16.vlgmr.msra.gmra.mxu0 %v2688_v29  ;;  %v4304_v57 = vadd.f32 %v4303_v44, %v4302_v34  ;;  %v5074_v34 = vld [vmem:[%s6770_s1 + $0x698] sm:$0xff]  }
 0x114   :  { %v1477_v7 = vadd.f32 %v4258_v63, %v6241_v6  ;;  %4809 = vmatpush3.bf16.msra.mxu0 %v5070_v5  ;;  %3416 = vmatprep.mubr.bf16.mxu0 %v2712_v50  ;;  %v4305_v23 = vpop.f32.mrf.mxu1  ;;  %v2728_v50 = vsel %vm2673_vm2, %v2709_v14, %v2727_v46  ;;  %v6503_v63 = vrot.slane %v2481_v20, 1 }
 0x115   :  { %v4260_v15 = vpop.f32.mrf.mxu0  ;;  %4810 = vmatprep.subr.bf16.mxu0 %v5105_v54  ;;  %3481 = vmatmul.mubr.bf16.vlgmr.msra.gmra.mxu1 %v2694_v25 }
 0x116   :  { %v4261_v6 = vadd.f32 %v4260_v15, %v4259_v2  ;;  %3488 = vmatprep.mubr.bf16.mxu1 %v2716_v11  ;;  %4852 = vmatpush3.bf16.msra.mxu1 %v5070_v5  ;;  %v6460_v16 = vadd.f32 %v4304_v57, %v1477_v7  ;;  %v4306_v36 = vpop.f32.mrf.mxu1  ;;  %v2731_v5 = vrot.slane %v5668_v10, 1  ;;  %v2462_v10 = vld [vmem:[%s6771_s0 + $0x270] sm:$0xff]  ;;  %v2752_v42 = vsel %vm2673_vm2, %v2733_v47, %v6503_v63 }
 0x117   :  { %v4262_v38 = vpop.f32.mrf.mxu0  ;;  %4845 = vmatprep.subr.bf16.mxu1 %v5105_v54  ;;  %v4307_v49 = vadd.f32 %v4306_v36, %v4305_v23  ;;  %v2480_v57 = vpack.c.bf16 %v2462_v10, %v2462_v10 }
 0x118   :  { %v1482_v3 = vadd.f32 %v4261_v6, %v6254_v27  ;;  %4811 = vmatpush3.bf16.msra.mxu0 %v5071_v61  ;;  %v2730_v27 = vsel %vm2673_vm2, %v2711_v31, %v2729_v8  ;;  %v4308_v24 = vpop.f32.mrf.mxu1  ;;  %v2734_v31 = vsel %vm2673_vm2, %v2715_v51, %v2733_v47  ;;  %v2732_v14 = vsel %vm2673_vm2, %v2713_v26, %v2731_v5 }
 0x119   :  { %v4263_v21 = vpop.f32.mrf.mxu0  ;;  %4812 = vmatprep.subr.bf16.mxu0 %v5105_v54  ;;  %v2749_v36 = vrot.slane %v2480_v57, 1 }
 0x11a   :  { %v4264_v9 = vadd.f32 %v4263_v21, %v4262_v38  ;;  %4853 = vmatpush3.bf16.msra.mxu1 %v5071_v61  ;;  %v6479_v1 = vadd.f32 %v4307_v49, %v1482_v3  ;;  %v4309_v32 = vpop.f32.mrf.mxu1  ;;  %v5076_v21 = vld [vmem:[%s6770_s1 + $0x688] sm:$0xff]  }
 0x11b   :  { %v4265_v60 = vpop.f32.mrf.mxu0  ;;  %3417 = vmatmul.mubr.bf16.gmra.mxu0 %v2710_v12  ;;  %v4310_v41 = vadd.f32 %v4309_v32, %v4308_v24  ;;  %4846 = vmatprep.subr.bf16.mxu1 %v5105_v54  ;;  %v5077_v32 = vld [vmem:[%s6770_s1 + $0x680] sm:$0xff]  }
 0x11c   :  { %v1485_v28 = vadd.f32 %v4264_v9, %v6277_v45  ;;  %4813 = vmatpush3.bf16.msra.mxu0 %v5072_v33  ;;  %3424 = vmatprep.mubr.bf16.mxu0 %v2730_v27  ;;  %v2460_v45 = vld [vmem:[%s6771_s0 + $0x260] sm:$0xff]  ;;  %v4311_v40 = vpop.f32.mrf.mxu1 }
 0x11d   :  { %v4266_v43 = vpop.f32.mrf.mxu0  ;;  %4814 = vmatprep.subr.bf16.mxu0 %v5105_v54  ;;  %3489 = vmatmul.mubr.bf16.gmra.mxu1 %v2714_v53  ;;  %v2478_v2 = vpack.c.bf16 %v2460_v45, %v2460_v45 }
 0x11e   :  { %v4267_v0 = vadd.f32 %v4266_v43, %v4265_v60  ;;  %3496 = vmatprep.mubr.bf16.mxu1 %v2734_v31  ;;  %4854 = vmatpush3.bf16.msra.mxu1 %v5072_v33  ;;  %v6495_v51 = vadd.f32 %v4310_v41, %v1485_v28  ;;  %v4312_v59 = vpop.f32.mrf.mxu1 }
 0x11f   :  { %v4268_v29 = vpop.f32.mrf.mxu0  ;;  %4847 = vmatprep.subr.bf16.mxu1 %v5105_v54  ;;  %v4313_v25 = vadd.f32 %v4312_v59, %v4311_v40  ;;  %v5104_v40 = vld [vmem:[%s6771_s0 + $0x88] sm:$0xff] }
 0x120   :  { %v1490_v48 = vadd.f32 %v4267_v0, %v6306_v19  ;;  %4815 = vmatpush3.bf16.msra.mxu0 %v5073_v37  ;;  %v2748_v19 = vsel %vm2673_vm2, %v2729_v8, %v6489_v17  ;;  %v4314_v44 = vpop.f32.mrf.mxu1  ;;  %v2745_v8 = vrot.slane %v2478_v2, 1 }
 0x121   :  { %v4269_v7 = vpop.f32.mrf.mxu0  ;;  %4816 = vmatprep.subr.bf16.mxu0 %v5105_v54 }
 0x122   :  { %v4270_v61 = vadd.f32 %v4269_v7, %v4268_v29  ;;  %4855 = vmatpush3.bf16.msra.mxu1 %v5073_v37  ;;  %v6516_v15 = vadd.f32 %v4313_v25, %v1490_v48  ;;  %v4315_v6 = vpop.f32.mrf.mxu1  ;;  %v2746_v49 = vsel %vm2673_vm2, %v2727_v46, %v2745_v8  ;;  %v2455_v37 = vld [vmem:[%s6771_s0 + $0x40] sm:$0xfc]  ;;  %v2699_v25 = vrot.slane %v5770_v62, 1 }
 0x123   :  { %v4271_v11 = vpop.f32.mrf.mxu0  ;;  %3425 = vmatmul.mubr.bf16.gmra.mxu0 %v2728_v50  ;;  %v4316_v13 = vadd.f32 %v4315_v6, %v4314_v44  ;;  %4848 = vmatprep.subr.bf16.mxu1 %v5105_v54  ;;  %v2473_v0 = vpack.c.bf16 %v5104_v40, %v2455_v37  ;;  %v2464_v29 = vld [vmem:[%s6771_s0 + $0x280] sm:$0xff] }
 0x124   :  { %v1493_v23 = vadd.f32 %v4270_v61, %v6323_v39  ;;  %4817 = vmatpush3.bf16.msra.mxu0 %v5074_v34  ;;  %3432 = vmatprep.mubr.bf16.mxu0 %v2748_v19  ;;  %v2735_v61 = vrot.slane %v5834_v55, 1  ;;  %v2717_v55 = vrot.slane %v5794_v22, 1 }
 0x125   :  { %v4272_v38 = vpop.f32.mrf.mxu0  ;;  %4818 = vmatprep.subr.bf16.mxu0 %v5105_v54  ;;  %v4317_v26 = vpop.f32.mrf.mxu1  ;;  %3497 = vmatmul.mubr.bf16.gmra.mxu1 %v2732_v14  ;;  %v2698_v10 = vrot.slane %v2473_v0, 1 }
 0x126   :  { %v4273_v39 = vadd.f32 %v4272_v38, %v4271_v11  ;;  %3504 = vmatprep.mubr.bf16.mxu1 %v2752_v42  ;;  %4856 = vmatpush3.bf16.msra.mxu1 %v5074_v34  ;;  %v6526_v12 = vadd.f32 %v4316_v13, %v1493_v23 }
 0x127   :  { %v4274_v3 = vpop.f32.mrf.mxu0  ;;  %v4318_v47 = vpop.f32.mrf.mxu1  ;;  %4849 = vmatprep.subr.bf16.mxu1 %v5105_v54 }
 0x128   :  { %v1498_v33 = vadd.f32 %v4273_v39, %v6356_v18  ;;  %4819 = vmatpush3.bf16.msra.mxu0 %v5075_v35  ;;  %v4319_v27 = vadd.f32 %v4318_v47, %v4317_v26  ;;  %v2750_v18 = vsel %vm2673_vm2, %v2731_v5, %v2749_v36 }
 0x129   :  { %v4275_v4 = vpop.f32.mrf.mxu0  ;;  %4820 = vmatprep.subr.bf16.mxu0 %v5105_v54  ;;  %v4320_v56 = vpop.f32.mrf.mxu1 }
 0x12a   :  { %v4276_v24 = vadd.f32 %v4275_v4, %v4274_v3  ;;  %4857 = vmatpush3.bf16.msra.mxu1 %v5075_v35  ;;  %v6536_v60 = vadd.f32 %v4319_v27, %v1498_v33 }
 0x12b   :  { %v4277_v9 = vpop.f32.mrf.mxu0  ;;  %3433 = vmatmul.mubr.bf16.gmra.mxu0 %v2746_v49  ;;  %v4321_v28 = vpop.f32.mrf.mxu1  ;;  %4850 = vmatprep.subr.bf16.mxu1 %v5105_v54 }
 0x12c   :  { %v1501_v53 = vadd.f32 %v4276_v24, %v6379_v30  ;;  %3440 = vmatprep.mubr.bf16.mxu0 %v6489_v17  ;;  %4821 = vmatpush3.bf16.msra.mxu0 %v5076_v21  ;;  %v4322_v31 = vadd.f32 %v4321_v28, %v4320_v56 }
 0x12d   :  { %v4278_v46 = vpop.f32.mrf.mxu0  ;;  %4822 = vmatprep.subr.bf16.mxu0 %v5105_v54  ;;  %v4323_v20 = vpop.f32.mrf.mxu1  ;;  %3505 = vmatmul.mubr.bf16.gmra.mxu1 %v2750_v18 }
 0x12e   :  { %v4279_v30 = vadd.f32 %v4278_v46, %v4277_v9  ;;  %3512 = vmatprep.mubr.bf16.mxu1 %v6503_v63  ;;  %4858 = vmatpush3.bf16.msra.mxu1 %v5076_v21  ;;  %v6549_v43 = vadd.f32 %v4322_v31, %v1501_v53  ;;  %v2736_v46 = vsel %vm2673_vm2, %v2717_v55, %v2735_v61 }
 0x12f   :  { %v4280_v41 = vpop.f32.mrf.mxu0  ;;  %v4324_v45 = vpop.f32.mrf.mxu1  ;;  %4851 = vmatprep.subr.bf16.mxu1 %v5105_v54 }
 0x130   :  { %v1506_v17 = vadd.f32 %v4279_v30, %v6404_v52  ;;  %4823 = vmatpush3.bf16.msra.mxu0 %v5077_v32  ;;  %v4325_v5 = vadd.f32 %v4324_v45, %v4323_v20  ;;  %v2482_v52 = vpack.c.bf16 %v2464_v29, %v2464_v29 }
 0x131   :  { %v4281_v48 = vpop.f32.mrf.mxu0  ;;  %v4326_v59 = vpop.f32.mrf.mxu1 }
 0x132   :  { %4859 = vmatpush3.bf16.msra.mxu1 %v5077_v32  ;;  %v6559_v34 = vadd.f32 %v4325_v5, %v1506_v17  ;;  %v2753_v11 = vrot.slane %v2482_v52, 1 }
 0x133   :  { %v1617_v50 = vpop.f32.mrf.mxu0  ;;  %3441 = vmatmul.mubr.bf16.gmra.mxu0 %v2745_v8  ;;  %v4327_v63 = vpop.f32.mrf.mxu1 }
 0x134   :  { %v1618_v2 = vadd.f32 %v1617_v50, %v6446_v58  ;;  %4824 = vmatprep.mubr.msk.bf16.mxu0 %vm5106_vm1, %v5105_v54  ;;  %v2700_v58 = vsel %vm2673_vm2, %v2698_v10, %v2699_v25  ;;  %v2754_v35 = vsel %vm2673_vm2, %v2735_v61, %v2753_v11 }
 0x135   :  { %v4754_v7 = vpop.f32.mrf.mxu0  ;;  %v4358_v19 = vpop.f32.mrf.mxu1  ;;  %3513 = vmatmul.mubr.bf16.gmra.mxu1 %v2749_v36 }
 0x136   :  { %4836 = vmatprep.mubr.msk.bf16.mxu1 %vm5106_vm1, %v5105_v54 }
 0x137   :  { %v1620_v44 = vpop.f32.mrf.mxu0  ;;  %v4359_v14 = vpop.f32.mrf.mxu1 }
 0x138   :  { %v1621_v57 = vadd.f32 %v1620_v44, %v6460_v16  ;;  %v4360_v23 = vadd.f32 %v4359_v14, %v4358_v19 }
 0x139   :  { %v4755_v6 = vpop.f32.mrf.mxu0  ;;  %v4361_v42 = vpop.f32.mrf.mxu1 }
 0x13a   :  { %v6570_v8 = vadd.f32 %v4360_v23, %v1618_v2 }
 0x13b   :  { %v1625_v62 = vpop.f32.mrf.mxu0  ;;  %4825 = vmatmul.mubr.bf16.vlgmr.msra.gmra.mxu0 %v2700_v58  ;;  %v4362_v13 = vpop.f32.mrf.mxu1 }
 0x13c   :  { %v1626_v38 = vadd.f32 %v1625_v62, %v6479_v1  ;;  %4828 = vmatprep.mubr.msk.bf16.mxu0 %vm5106_vm1, %v5105_v54  ;;  %v4363_v16 = vadd.f32 %v4362_v13, %v4361_v42  ;;  %v2718_v1 = vsel %vm2673_vm2, %v2699_v25, %v2717_v55 }
 0x13d   :  { %v4758_v26 = vpop.f32.mrf.mxu0  ;;  %v4364_v39 = vpop.f32.mrf.mxu1  ;;  %4837 = vmatmul.mubr.bf16.vlgmr.msra.gmra.mxu1 %v2754_v35 }
 0x13e   :  { %v6577_v3 = vadd.f32 %v4363_v16, %v1621_v57  ;;  %4840 = vmatprep.mubr.msk.bf16.mxu1 %vm5106_vm1, %v5105_v54 }
 0x13f   :  { %v1628_v36 = vpop.f32.mrf.mxu0  ;;  %v4365_v33 = vpop.f32.mrf.mxu1 }
 0x140   :  { %v1629_v47 = vadd.f32 %v1628_v36, %v6495_v51  ;;  %v4366_v49 = vadd.f32 %v4365_v33, %v4364_v39 }
 0x141   :  { %v4759_v21 = vpop.f32.mrf.mxu0  ;;  %v4367_v27 = vpop.f32.mrf.mxu1 }
 0x142   :  { %v6583_v4 = vadd.f32 %v4366_v49, %v1626_v38 }
 0x143   :  { %v1633_v22 = vpop.f32.mrf.mxu0  ;;  %4829 = vmatmul.mubr.bf16.gmra.mxu0 %v2718_v1  ;;  %v4368_v56 = vpop.f32.mrf.mxu1 }
 0x144   :  { %v1634_v24 = vadd.f32 %v1633_v22, %v6516_v15  ;;  %4832 = vmatprep.mubr.msk.bf16.mxu0 %vm5106_vm1, %v5105_v54  ;;  %v4369_v9 = vadd.f32 %v4368_v56, %v4367_v27 }
 0x145   :  { %v4762_v18 = vpop.f32.mrf.mxu0  ;;  %v4370_v53 = vpop.f32.mrf.mxu1  ;;  %4841 = vmatmul.mubr.bf16.gmra.mxu1 %v2753_v11 }
 0x146   :  { %v6588_v51 = vadd.f32 %v4369_v9, %v1629_v47 }
 0x147   :  { %v1636_v28 = vpop.f32.mrf.mxu0  ;;  %v4371_v32 = vpop.f32.mrf.mxu1 }
 0x148   :  { %v1637_v31 = vadd.f32 %v1636_v28, %v6526_v12  ;;  %v4372_v37 = vadd.f32 %v4371_v32, %v4370_v53 }
 0x149   :  { %v4763_v20 = vpop.f32.mrf.mxu0  ;;  %v4373_v30 = vpop.f32.mrf.mxu1 }
 0x14a   :  { %v6592_v41 = vadd.f32 %v4372_v37, %v1634_v24 }
 0x14b   :  { %v1641_v15 = vpop.f32.mrf.mxu0  ;;  %4833 = vmatmul.mubr.bf16.gmra.mxu0 %v2736_v46  ;;  %v4374_v17 = vpop.f32.mrf.mxu1 }
 0x14c   :  { %v1642_v45 = vadd.f32 %v1641_v15, %v6536_v60  ;;  %v4375_v40 = vadd.f32 %v4374_v17, %v4373_v30 }
 0x14d   :  { %v4766_v0 = vpop.f32.mrf.mxu0  ;;  %v4376_v29 = vpop.f32.mrf.mxu1 }
 0x14e   :  { %v6595_v5 = vadd.f32 %v4375_v40, %v1637_v31 }
 0x14f   :  { %v1644_v48 = vpop.f32.mrf.mxu0  ;;  %v4377_v59 = vpop.f32.mrf.mxu1 }
 0x150   :  { %v1645_v12 = vadd.f32 %v1644_v48, %v6549_v43  ;;  %v4378_v50 = vadd.f32 %v4377_v59, %v4376_v29 }
 0x151   :  { %v4767_v52 = vpop.f32.mrf.mxu0  ;;  %v4379_v63 = vpop.f32.mrf.mxu1 }
 0x152   :  { %v6598_v2 = vadd.f32 %v4378_v50, %v1642_v45 }
 0x153   :  { %v1649_v10 = vpop.f32.mrf.mxu0  ;;  %v4380_v25 = vpop.f32.mrf.mxu1 }
 0x154   :  { %v1650_v7 = vadd.f32 %v1649_v10, %v6559_v34  ;;  %v4381_v19 = vadd.f32 %v4380_v25, %v4379_v63 }
 0x155   :  { %v4770_v60 = vpop.f32.mrf.mxu0  ;;  %v4382_v44 = vpop.f32.mrf.mxu1 }
 0x156   :  { %v6601_v61 = vadd.f32 %v4381_v19, %v1645_v12 }
 0x157   :  { %v1652_v11 = vpop.f32.mrf.mxu0  ;;  %v4383_v14 = vpop.f32.mrf.mxu1 }
 0x158   :  { %v4384_v57 = vadd.f32 %v4383_v14, %v4382_v44 }
 0x159   :  { %v4771_v58 = vpop.f32.mrf.mxu0  ;;  %v4385_v23 = vpop.f32.mrf.mxu1 }
 0x15a   :  { %v6603_v43 = vadd.f32 %v4384_v57, %v1650_v7 }
 0x15b   :  { %v4404_v6 = vpop.f32.mrf.mxu0  ;;  %v4386_v42 = vpop.f32.mrf.mxu1 }
 0x15d   :  { %v4405_v62 = vpop.f32.mrf.mxu0  ;;  %v4450_v35 = vpop.f32.mrf.mxu1 }
 0x15e   :  { %v4406_v13 = vadd.f32 %v4405_v62, %v4404_v6 }
 0x15f   :  { %v4407_v38 = vpop.f32.mrf.mxu0  ;;  %v4451_v55 = vpop.f32.mrf.mxu1 }
 0x160   :  { %v2194_v34 = vadd.f32 %v4406_v13, %v6570_v8  ;;  %v4452_v16 = vadd.f32 %v4451_v55, %v4450_v35 }
 0x161   :  { %v4408_v26 = vpop.f32.mrf.mxu0  ;;  %v4453_v39 = vpop.f32.mrf.mxu1 }
 0x162   :  { %v4409_v36 = vadd.f32 %v4408_v26, %v4407_v38  ;;  %v6606_v33 = vadd.f32 %v4452_v16, %v2194_v34 }
 0x163   :  { %v4410_v47 = vpop.f32.mrf.mxu0  ;;  %v4454_v49 = vpop.f32.mrf.mxu1 }
 0x164   :  { %v2197_v1 = vadd.f32 %v4409_v36, %v6577_v3  ;;  %v4455_v21 = vadd.f32 %v4454_v49, %v4453_v39 }
 0x165   :  { %v4411_v27 = vpop.f32.mrf.mxu0  ;;  %v4456_v22 = vpop.f32.mrf.mxu1 }
 0x166   :  { %v4412_v56 = vadd.f32 %v4411_v27, %v4410_v47  ;;  %v6609_v24 = vadd.f32 %v4455_v21, %v2197_v1 }
 0x167   :  { %v4413_v9 = vpop.f32.mrf.mxu0  ;;  %v4457_v18 = vpop.f32.mrf.mxu1 }
 0x168   :  { %v2202_v8 = vadd.f32 %v4412_v56, %v6583_v4  ;;  %v4458_v53 = vadd.f32 %v4457_v18, %v4456_v22 }
 0x169   :  { %v4414_v28 = vpop.f32.mrf.mxu0  ;;  %v4459_v32 = vpop.f32.mrf.mxu1 }
 0x16a   :  { %v4415_v31 = vadd.f32 %v4414_v28, %v4413_v9  ;;  %v6612_v46 = vadd.f32 %v4458_v53, %v2202_v8 }
 0x16b   :  { %v4416_v37 = vpop.f32.mrf.mxu0  ;;  %v4460_v20 = vpop.f32.mrf.mxu1 }
 0x16c   :  { %v2205_v3 = vadd.f32 %v4415_v31, %v6588_v51  ;;  %v4461_v30 = vadd.f32 %v4460_v20, %v4459_v32 }
 0x16d   :  { %v4417_v15 = vpop.f32.mrf.mxu0  ;;  %v4462_v17 = vpop.f32.mrf.mxu1 }
 0x16e   :  { %v4418_v45 = vadd.f32 %v4417_v15, %v4416_v37  ;;  %v6615_v40 = vadd.f32 %v4461_v30, %v2205_v3 }
 0x16f   :  { %v4419_v0 = vpop.f32.mrf.mxu0  ;;  %v4463_v29 = vpop.f32.mrf.mxu1 }
 0x170   :  { %v2210_v4 = vadd.f32 %v4418_v45, %v6592_v41  ;;  %v4464_v48 = vadd.f32 %v4463_v29, %v4462_v17 }
 0x171   :  { %v4420_v59 = vpop.f32.mrf.mxu0  ;;  %v4465_v12 = vpop.f32.mrf.mxu1 }
 0x172   :  { %v4421_v50 = vadd.f32 %v4420_v59, %v4419_v0  ;;  %v6618_v52 = vadd.f32 %v4464_v48, %v2210_v4 }
 0x173   :  { %v4422_v63 = vpop.f32.mrf.mxu0  ;;  %v4466_v10 = vpop.f32.mrf.mxu1 }
 0x174   :  { %v2213_v51 = vadd.f32 %v4421_v50, %v6595_v5  ;;  %v4467_v25 = vadd.f32 %v4466_v10, %v4465_v12 }
 0x175   :  { %v4423_v7 = vpop.f32.mrf.mxu0  ;;  %v4468_v19 = vpop.f32.mrf.mxu1 }
 0x176   :  { %v4424_v60 = vadd.f32 %v4423_v7, %v4422_v63  ;;  %v6621_v44 = vadd.f32 %v4467_v25, %v2213_v51 }
 0x177   :  { %v4425_v11 = vpop.f32.mrf.mxu0  ;;  %v4469_v14 = vpop.f32.mrf.mxu1 }
 0x178   :  { %v2218_v41 = vadd.f32 %v4424_v60, %v6598_v2  ;;  %v4470_v57 = vadd.f32 %v4469_v14, %v4468_v19 }
 0x179   :  { %v4426_v58 = vpop.f32.mrf.mxu0  ;;  %v4471_v23 = vpop.f32.mrf.mxu1 }
 0x17a   :  { %v4427_v6 = vadd.f32 %v4426_v58, %v4425_v11  ;;  %v6624_v42 = vadd.f32 %v4470_v57, %v2218_v41 }
 0x17b   :  { %v4428_v62 = vpop.f32.mrf.mxu0  ;;  %v4472_v35 = vpop.f32.mrf.mxu1 }
 0x17c   :  { %v2221_v5 = vadd.f32 %v4427_v6, %v6601_v61  ;;  %v4473_v13 = vadd.f32 %v4472_v35, %v4471_v23 }
 0x17d   :  { %v4429_v38 = vpop.f32.mrf.mxu0  ;;  %v4474_v34 = vpop.f32.mrf.mxu1 }
 0x17e   :  { %v4430_v2 = vadd.f32 %v4429_v38, %v4428_v62  ;;  %v6631_v55 = vadd.f32 %v4473_v13, %v2221_v5 }
 0x17f   :  { %v4431_v16 = vpop.f32.mrf.mxu0  ;;  %v4475_v39 = vpop.f32.mrf.mxu1 }
 0x180   :  { %v2226_v26 = vadd.f32 %v4430_v2, %v6603_v43  ;;  %v4476_v36 = vadd.f32 %v4475_v39, %v4474_v34 }
 0x181   :  { %v4432_v47 = vpop.f32.mrf.mxu0  ;;  %v4477_v1 = vpop.f32.mrf.mxu1 }
 0x182   :  { %v6634_v61 = vadd.f32 %v4476_v36, %v2226_v26 }
 0x183   :  { %v4496_v49 = vpop.f32.mrf.mxu0  ;;  %v4478_v21 = vpop.f32.mrf.mxu1 }
 0x185   :  { %v4497_v27 = vpop.f32.mrf.mxu0  ;;  %v2409_v22 = vpop.f32.mrf.mxu1 }
 0x186   :  { %v4498_v56 = vadd.f32 %v4497_v27, %v4496_v49 }
 0x187   :  { %v4499_v9 = vpop.f32.mrf.mxu0  ;;  %v4790_v8 = vpop.f32.mrf.mxu1 }
 0x188   :  { %v2338_v54 = vadd.f32 %v4498_v56, %v6606_v33 }
 0x189   :  { %v4500_v18 = vpop.f32.mrf.mxu0  ;;  %v2412_v53 = vpop.f32.mrf.mxu1 }
 0x18a   :  { %v4501_v28 = vadd.f32 %v4500_v18, %v4499_v9  ;;  %v6637_v32 = vadd.f32 %v2409_v22, %v2338_v54 }
 0x18b   :  { %v4502_v43 = vpop.f32.mrf.mxu0  ;;  %v4791_v37 = vpop.f32.mrf.mxu1 }
 0x18c   :  { %v2341_v31 = vadd.f32 %v4501_v28, %v6609_v24 }
 0x18d   :  { %v4503_v3 = vpop.f32.mrf.mxu0  ;;  %v2417_v20 = vpop.f32.mrf.mxu1 }
 0x18e   :  { %v4504_v30 = vadd.f32 %v4503_v3, %v4502_v43  ;;  %v6640_v15 = vadd.f32 %v2412_v53, %v2341_v31 }
 0x18f   :  { %v4505_v17 = vpop.f32.mrf.mxu0  ;;  %v4794_v0 = vpop.f32.mrf.mxu1 }
 0x190   :  { %v2346_v45 = vadd.f32 %v4504_v30, %v6612_v46 }
 0x191   :  { %v4506_v33 = vpop.f32.mrf.mxu0  ;;  %v2420_v4 = vpop.f32.mrf.mxu1 }
 0x192   :  { %v4507_v29 = vadd.f32 %v4506_v33, %v4505_v17  ;;  %v6643_v48 = vadd.f32 %v2417_v20, %v2346_v45 }
 0x193   :  { %v4508_v59 = vpop.f32.mrf.mxu0  ;;  %v4795_v50 = vpop.f32.mrf.mxu1 }
 0x194   :  { %6774 = vst [vmem:[#allocation2_spill] sm:$0xff] %v6643_v48  ;;  %v2349_v12 = vadd.f32 %v4507_v29, %v6615_v40 }
 0x195   :  { %v4509_v24 = vpop.f32.mrf.mxu0  ;;  %v2425_v63 = vpop.f32.mrf.mxu1 }
 0x196   :  { %v4510_v51 = vadd.f32 %v4509_v24, %v4508_v59  ;;  %v6646_v10 = vadd.f32 %v2420_v4, %v2349_v12 }
 0x197   :  { %v4511_v25 = vpop.f32.mrf.mxu0  ;;  %v4798_v19 = vpop.f32.mrf.mxu1 }
 0x198   :  { %6775 = vst [vmem:[#allocation3_spill] sm:$0xff] %v6646_v10  ;;  %v2354_v7 = vadd.f32 %v4510_v51, %v6618_v52 }
 0x199   :  { %v4512_v46 = vpop.f32.mrf.mxu0  ;;  %v2428_v60 = vpop.f32.mrf.mxu1 }
 0x19a   :  { %v4513_v11 = vadd.f32 %v4512_v46, %v4511_v25  ;;  %v6649_v41 = vadd.f32 %v2425_v63, %v2354_v7 }
 0x19b   :  { %v4514_v14 = vpop.f32.mrf.mxu0  ;;  %v4799_v58 = vpop.f32.mrf.mxu1 }
 0x19c   :  { %6776 = vst [vmem:[#allocation4_spill] sm:$0xff] %v6649_v41  ;;  %v2357_v57 = vadd.f32 %v4513_v11, %v6621_v44 }
 0x19d   :  { %v4515_v40 = vpop.f32.mrf.mxu0  ;;  %v2433_v23 = vpop.f32.mrf.mxu1 }
 0x19e   :  { %v4516_v6 = vadd.f32 %v4515_v40, %v4514_v14  ;;  %v6652_v62 = vadd.f32 %v2428_v60, %v2357_v57 }
 0x19f   :  { %v4517_v5 = vpop.f32.mrf.mxu0  ;;  %v4802_v13 = vpop.f32.mrf.mxu1 }
 0x1a0   :  { %6777 = vst [vmem:[#allocation5_spill] sm:$0xff] %v6652_v62  ;;  %v2362_v35 = vadd.f32 %v4516_v6, %v6624_v42 }
 0x1a1   :  { %v4518_v52 = vpop.f32.mrf.mxu0  ;;  %v2436_v38 = vpop.f32.mrf.mxu1 }
 0x1a2   :  { %v4519_v34 = vadd.f32 %v4518_v52, %v4517_v5  ;;  %v6655_v2 = vadd.f32 %v2433_v23, %v2362_v35 }
 0x1a3   :  { %v4520_v16 = vpop.f32.mrf.mxu0  ;;  %v4803_v39 = vpop.f32.mrf.mxu1 }
 0x1a4   :  { %v2365_v26 = vadd.f32 %v4519_v34, %v6631_v55 }
 0x1a5   :  { %v4521_v44 = vpop.f32.mrf.mxu0  ;;  %v2441_v36 = vpop.f32.mrf.mxu1 }
 0x1a6   :  { %v4522_v47 = vadd.f32 %v4521_v44, %v4520_v16  ;;  %v6658_v1 = vadd.f32 %v2436_v38, %v2365_v26 }
 0x1a7   :  { %v4523_v49 = vpop.f32.mrf.mxu0  ;;  %v4806_v27 = vpop.f32.mrf.mxu1 }
 0x1a8   :  { %6778 = vst [vmem:[#allocation6_spill] sm:$0xff] %v6658_v1  ;;  %v2370_v21 = vadd.f32 %v4522_v47, %v6634_v61 }
 0x1a9   :  { %v4524_v42 = vpop.f32.mrf.mxu0  ;;  %v2444_v22 = vpop.f32.mrf.mxu1 }
 0x1aa   :  { %v6661_v56 = vadd.f32 %v2441_v36, %v2370_v21 }
 0x1ab   :  { %v4555_v9 = vpop.f32.mrf.mxu0  ;;  %v4807_v54 = vpop.f32.mrf.mxu1 }
 0x1ac   :  { %6779 = vst [vmem:[#allocation7_spill] sm:$0xff] %v6661_v56 }
 0x1ad   :  { %v4556_v8 = vpop.f32.mrf.mxu0  ;;  %v4601_v18 = vpop.f32.mrf.mxu1 }
 0x1ae   :  { %v4557_v53 = vadd.f32 %v4556_v8, %v4555_v9 }
 0x1af   :  { %v4558_v55 = vpop.f32.mrf.mxu0  ;;  %v4602_v28 = vpop.f32.mrf.mxu1 }
 0x1b0   :  { %v4603_v43 = vadd.f32 %v4602_v28, %v4601_v18 }
 0x1b1   :  { %v4559_v31 = vpop.f32.mrf.mxu0  ;;  %v4604_v37 = vpop.f32.mrf.mxu1 }
 0x1b2   :  { %v4560_v3 = vadd.f32 %v4559_v31, %v4558_v55  ;;  %v6663_v20 = vadd.f32 %v4603_v43, %v4557_v53 }
 0x1b3   :  { %v4561_v30 = vpop.f32.mrf.mxu0  ;;  %v4605_v61 = vpop.f32.mrf.mxu1 }
 0x1b4   :  { %v4606_v17 = vadd.f32 %v4605_v61, %v4604_v37 }
 0x1b5   :  { %v4562_v45 = vpop.f32.mrf.mxu0  ;;  %v4607_v0 = vpop.f32.mrf.mxu1 }
 0x1b6   :  { %v4563_v33 = vadd.f32 %v4562_v45, %v4561_v30  ;;  %v6665_v4 = vadd.f32 %v4606_v17, %v4560_v3 }
 0x1b7   :  { %v4564_v29 = vpop.f32.mrf.mxu0  ;;  %v4608_v59 = vpop.f32.mrf.mxu1 }
 0x1b8   :  { %v4609_v12 = vadd.f32 %v4608_v59, %v4607_v0 }
 0x1b9   :  { %v4565_v50 = vpop.f32.mrf.mxu0  ;;  %v4610_v24 = vpop.f32.mrf.mxu1 }
 0x1ba   :  { %v4566_v63 = vadd.f32 %v4565_v50, %v4564_v29  ;;  %v6667_v51 = vadd.f32 %v4609_v12, %v4563_v33 }
 0x1bb   :  { %v4567_v25 = vpop.f32.mrf.mxu0  ;;  %v4611_v7 = vpop.f32.mrf.mxu1 }
 0x1bc   :  { %v4612_v19 = vadd.f32 %v4611_v7, %v4610_v24 }
 0x1bd   :  { %v4568_v46 = vpop.f32.mrf.mxu0  ;;  %v4613_v60 = vpop.f32.mrf.mxu1 }
 0x1be   :  { %v4569_v11 = vadd.f32 %v4568_v46, %v4567_v25  ;;  %v6669_v14 = vadd.f32 %v4612_v19, %v4566_v63 }
 0x1bf   :  { %v4570_v57 = vpop.f32.mrf.mxu0  ;;  %v4614_v58 = vpop.f32.mrf.mxu1 }
 0x1c0   :  { %v4615_v40 = vadd.f32 %v4614_v58, %v4613_v60 }
 0x1c1   :  { %v4571_v23 = vpop.f32.mrf.mxu0  ;;  %v4616_v6 = vpop.f32.mrf.mxu1 }
 0x1c2   :  { %v4572_v5 = vadd.f32 %v4571_v23, %v4570_v57  ;;  %v6671_v35 = vadd.f32 %v4615_v40, %v4569_v11 }
 0x1c3   :  { %v4573_v13 = vpop.f32.mrf.mxu0  ;;  %v4617_v52 = vpop.f32.mrf.mxu1 }
 0x1c4   :  { %v4618_v38 = vadd.f32 %v4617_v52, %v4616_v6 }
 0x1c5   :  { %v4574_v34 = vpop.f32.mrf.mxu0  ;;  %v4619_v16 = vpop.f32.mrf.mxu1 }
 0x1c6   :  { %v6673_v26 = vadd.f32 %v4618_v38, %v4572_v5  ;;  %v4575_v38 = vadd.f32 %v4574_v34, %v4573_v13 }
 0x1c7   :  { %v4576_v39 = vpop.f32.mrf.mxu0  ;;  %v4620_v44 = vpop.f32.mrf.mxu1 }
 0x1c8   :  { %6780 = vst [vmem:[#allocation8_spill] sm:$0xff] %v6673_v26 }
 0x1c9   :  { %v4577_v36 = vpop.f32.mrf.mxu0  ;;  %v4622_v47 = vpop.f32.mrf.mxu1 }
 0x1cb   :  { %v6675_v49 = vpop.f32.mrf.mxu0  ;;  %v4623_v21 = vpop.f32.mrf.mxu1 }
 0x1cc   :  { %v4624_v48 = vadd.f32 %v4623_v21, %v4622_v47 }
 0x1cd   :  { %v6677_v27 = vpop.f32.mrf.mxu0  ;;  %v6679_v42 = vpop.f32.mrf.mxu1 }
 0x1cf   :  { %v4582_v22 = vpop.f32.mrf.mxu0  ;;  %v6681_v9 = vpop.f32.mrf.mxu1 }
 0x1d0   :  { %v4621_v22 = vadd.f32 %v4620_v44, %v4619_v16 }
 0x1d1   :  { %v4583_v54 = vpop.f32.mrf.mxu0  ;;  %v4628_v8 = vpop.f32.mrf.mxu1 }
 0x1d2   :  { %v3363_v56 = vadd.f32 %v4621_v22, %v4575_v38  ;;  %v6790_v22 = vld [vmem:[#allocation2_spill] sm:$0xff] }
 0x1d3   :  { %v4647_v18 = vpop.f32.mrf.mxu0  ;;  %v4629_v53 = vpop.f32.mrf.mxu1 }
 0x1d5   :  { %v4648_v55 = vpop.f32.mrf.mxu0  ;;  %v4693_v28 = vpop.f32.mrf.mxu1 }
 0x1d6   :  { %v4649_v5 = vadd.f32 %v4648_v55, %v4647_v18 }
 0x1d7   :  { %v4650_v43 = vpop.f32.mrf.mxu0  ;;  %v4694_v31 = vpop.f32.mrf.mxu1 }
 0x1d8   :  { %v3411_v41 = vadd.f32 %v4649_v5, %v6663_v20  ;;  %v4695_v10 = vadd.f32 %v4694_v31, %v4693_v28  ;;  %v4581_v20 = vadd.f32 %v6677_v27, %v6675_v49 }
 0x1d9   :  { %v4651_v37 = vpop.f32.mrf.mxu0  ;;  %v4696_v3 = vpop.f32.mrf.mxu1 }
 0x1db   :  { %v4653_v30 = vpop.f32.mrf.mxu0  ;;  %v4697_v61 = vpop.f32.mrf.mxu1 }
 0x1dc   :  { %v4698_v16 = vadd.f32 %v4697_v61, %v4696_v3 }
 0x1dd   :  { %v4654_v17 = vpop.f32.mrf.mxu0  ;;  %v4699_v45 = vpop.f32.mrf.mxu1 }
 0x1df   :  { %v4656_v0 = vpop.f32.mrf.mxu0  ;;  %v4700_v33 = vpop.f32.mrf.mxu1 }
 0x1e0   :  { %v4701_v21 = vadd.f32 %v4700_v33, %v4699_v45 }
 0x1e1   :  { %v4657_v29 = vpop.f32.mrf.mxu0  ;;  %v6683_v59 = vpop.f32.mrf.mxu1 }
 0x1e3   :  { %v6685_v12 = vpop.f32.mrf.mxu0  ;;  %v6687_v50 = vpop.f32.mrf.mxu1 }
 0x1e5   :  { %v4660_v24 = vpop.f32.mrf.mxu0  ;;  %v6689_v63 = vpop.f32.mrf.mxu1 }
 0x1e7   :  { %v6691_v25 = vpop.f32.mrf.mxu0  ;;  %v6693_v7 = vpop.f32.mrf.mxu1 }
 0x1e8   :  { %6781 = vst [vmem:[#allocation9_spill] sm:$0xff] %v6691_v25  ;;  %6782 = vst [vmem:[#allocation10_spill] sm:$0xff] %v6693_v7  ;;  %v4655_v25 = vadd.f32 %v4654_v17, %v4653_v30  ;;  %v4661_v30 = vadd.f32 %v4660_v24, %v6685_v12 }
 0x1e9   :  { %v6695_v19 = vpop.f32.mrf.mxu0  ;;  %v6697_v46 = vpop.f32.mrf.mxu1 }
 0x1ea   :  { %6783 = vst [vmem:[#allocation11_spill] sm:$0xff] %v6695_v19  ;;  %6784 = vst [vmem:[#allocation12_spill] sm:$0xff] %v6697_v46  ;;  %v4652_v46 = vadd.f32 %v4651_v37, %v4650_v43  ;;  %v3419_v47 = vadd.f32 %v4655_v25, %v6667_v51 }
 0x1eb   :  { %v4665_v60 = vpop.f32.mrf.mxu0  ;;  %v6699_v11 = vpop.f32.mrf.mxu1 }
 0x1ec   :  { %6785 = vst [vmem:[#allocation13_spill] sm:$0xff] %v6699_v11  ;;  %v4578_v11 = vadd.f32 %v4577_v36, %v4576_v39  ;;  %v3414_v34 = vadd.f32 %v4652_v46, %v6665_v4  ;;  %v4627_v39 = vadd.f32 %v6681_v9, %v6679_v42  ;;  %v4658_v4 = vadd.f32 %v4657_v29, %v4656_v0 }
 0x1ed   :  { %v4666_v57 = vpop.f32.mrf.mxu0  ;;  %v4711_v58 = vpop.f32.mrf.mxu1  ;;  %v3491_v45 = vadd.f32 %v4701_v21, %v3419_v47  ;;  %v4704_v29 = vadd.f32 %v6687_v50, %v6683_v59 }
 0x1ee   :  { %v4667_v53 = vadd.f32 %v4666_v57, %v4665_v60  ;;  %v3483_v60 = vadd.f32 %v4695_v10, %v3411_v41  ;;  %v3366_v57 = vadd.f32 %v4624_v48, %v4578_v11  ;;  %v6711_v10 = vld [vmem:[%s6773_s2] ss:$0 sm:$0xff]  ;;  %v3486_v42 = vadd.f32 %v4698_v16, %v3414_v34  ;;  %v6791_v16 = vld [vmem:[#allocation7_spill] sm:$0xff] }
 0x1ef   :  { %v4668_v40 = vpop.f32.mrf.mxu0  ;;  %v4712_v23 = vpop.f32.mrf.mxu1  ;;  %v3371_v9 = vadd.f32 %v4627_v39, %v4581_v20  ;;  %v6792_v20 = vld [vmem:[#allocation8_spill] sm:$0xff] }
 0x1f0   :  { %v3435_v7 = vadd.f32 %v4667_v53, %v3363_v56  ;;  %v4713_v18 = vadd.f32 %v4712_v23, %v4711_v58  ;;  %v6786_v23 = vld [vmem:[#allocation10_spill] sm:$0xff] }
 0x1f1   :  { %v4669_v6 = vpop.f32.mrf.mxu0  ;;  %v4714_v52 = vpop.f32.mrf.mxu1 }
 0x1f2   :  { %v4670_v55 = vadd.f32 %v4669_v6, %v4668_v40  ;;  %v3507_v48 = vadd.f32 %v4713_v18, %v3435_v7  ;;  %v3427_v40 = vadd.f32 %v4661_v30, %v6671_v35  ;;  %v6787_v6 = vld [vmem:[#allocation6_spill] sm:$0xff] }
 0x1f3   :  { %v4671_v54 = vpop.f32.mrf.mxu0  ;;  %v4715_v8 = vpop.f32.mrf.mxu1  ;;  %v6794_v47 = vld [vmem:[#allocation13_spill] sm:$0xff] }
 0x1f4   :  { %v3438_v43 = vadd.f32 %v4670_v55, %v3366_v57  ;;  %v4716_v31 = vadd.f32 %v4715_v8, %v4714_v52  ;;  %v6789_v52 = vld [vmem:[#allocation11_spill] sm:$0xff] }
 0x1f5   :  { %v4672_v62 = vpop.f32.mrf.mxu0  ;;  %v4717_v26 = vpop.f32.mrf.mxu1 }
 0x1f6   :  { %v4673_v37 = vadd.f32 %v4672_v62, %v4671_v54 }
 0x1f7   :  { %v4674_v19 = vpop.f32.mrf.mxu0  ;;  %v4718_v1 = vpop.f32.mrf.mxu1 }
 0x1f8   :  { %v3443_v33 = vadd.f32 %v4673_v37, %v3371_v9  ;;  %v4719_v25 = vadd.f32 %v4718_v1, %v4717_v26  ;;  %v3510_v19 = vadd.f32 %v4716_v31, %v3438_v43 }
 0x1f9   :  { %v4675_v13 = vpop.f32.mrf.mxu0  ;;  %v4720_v44 = vpop.f32.mrf.mxu1 }
 0x1fa   :  { %v3515_v50 = vadd.f32 %v4719_v25, %v3443_v33 }
 0x1fb   :  { %v3554_v36 = vpop.f32.mrf.mxu0  ;;  %v4721_v56 = vpop.f32.mrf.mxu1 }
 0x1fc   :  { %v3555_v28 = vadd.f32 %v3554_v36, %v3483_v60  ;;  %v6793_v36 = vld [vmem:[#allocation12_spill] sm:$0xff]  ;;  %v6795_v56 = vld [vmem:[#allocation3_spill] sm:$0xff] }
 0x1fd   :  { %v4826_v41 = vpop.f32.mrf.mxu0  ;;  %v3578_v27 = vpop.f32.mrf.mxu1  ;;  %v4710_v21 = vadd.f32 %v6794_v47, %v6793_v36 }
 0x1fe   :  { %v3592_v49 = vadd.f32 %v3555_v28, %v6637_v32  ;;  %v3579_v51 = vadd.f32 %v3578_v27, %v3507_v48  ;;  %v3422_v32 = vadd.f32 %v4658_v4, %v6669_v14  ;;  %v4707_v14 = vadd.f32 %v6786_v23, %v6689_v63  ;;  %v6796_v27 = vld [vmem:[#allocation4_spill] sm:$0xff] }
 0x1ff   :  { %v3557_v3 = vpop.f32.mrf.mxu0  ;;  %v4838_v62 = vpop.f32.mrf.mxu1 }
 0x200   :  { %v3608_v61 = vadd.f32 %v6711_v10, %v3592_v49  ;;  %v3558_v17 = vadd.f32 %v3557_v3, %v3486_v42  ;;  %v3598_v7 = vadd.f32 %v3579_v51, %v6655_v2  ;;  %v3494_v35 = vadd.f32 %v4704_v29, %v3422_v32 }
 0x201   :  { %v4827_v0 = vpop.f32.mrf.mxu0  ;;  %v3581_v12 = vpop.f32.mrf.mxu1  ;;  %v3499_v57 = vadd.f32 %v4707_v14, %v3427_v40 }
 0x202   :  { %5078 = vtanh.f32 %v3608_v61  ;;  %v3593_v46 = vadd.f32 %v3558_v17, %v6640_v15  ;;  %v3614_v24 = vadd.f32 %v6711_v10, %v3598_v7  ;;  %v3582_v11 = vadd.f32 %v3581_v12, %v3510_v19  ;;  %v6788_v15 = vld [vmem:[#allocation9_spill] sm:$0xff] }
 0x203   :  { %v3562_v58 = vpop.f32.mrf.mxu0  ;;  %v4839_v2 = vpop.f32.mrf.mxu1  ;;  %v4664_v38 = vadd.f32 %v6789_v52, %v6788_v15 }
 0x204   :  { %v3609_v1 = vadd.f32 %v6711_v10, %v3593_v46  ;;  %v3563_v26 = vadd.f32 %v3562_v58, %v3491_v45  ;;  %5080 = vtanh.f32 %v3614_v24  ;;  %v3599_v59 = vadd.f32 %v3582_v11, %v6787_v6  ;;  %v6797_v45 = vld [vmem:[#allocation5_spill] sm:$0xff] }
 0x205   :  { %v4830_v5 = vpop.f32.mrf.mxu0  ;;  %v3586_v8 = vpop.f32.mrf.mxu1  ;;  %v3430_v39 = vadd.f32 %v4664_v38, %v6792_v20 }
 0x206   :  { %5082 = vtanh.f32 %v3609_v1  ;;  %v3594_v54 = vadd.f32 %v3563_v26, %v6790_v22  ;;  %v3615_v53 = vadd.f32 %v6711_v10, %v3599_v59  ;;  %v3587_v18 = vadd.f32 %v3586_v8, %v3515_v50 }
 0x207   :  { %v3565_v55 = vpop.f32.mrf.mxu0  ;;  %v4842_v34 = vpop.f32.mrf.mxu1  ;;  %v3502_v9 = vadd.f32 %v4710_v21, %v3430_v39 }
 0x208   :  { %v3610_v13 = vadd.f32 %v6711_v10, %v3594_v54  ;;  %v3566_v63 = vadd.f32 %v3565_v55, %v3494_v35  ;;  %5084 = vtanh.f32 %v3615_v53  ;;  %v3600_v44 = vadd.f32 %v3587_v18, %v6791_v16 }
 0x209   :  { %v4831_v60 = vpop.f32.mrf.mxu0  ;;  %v3589_v43 = vpop.f32.mrf.mxu1 }
 0x20a   :  { %5086 = vtanh.f32 %v3610_v13  ;;  %v3595_v28 = vadd.f32 %v3566_v63, %v6795_v56  ;;  %v3616_v31 = vadd.f32 %v6711_v10, %v3600_v44 }
 0x20b   :  { %v3570_v37 = vpop.f32.mrf.mxu0  ;;  %v4843_v4 = vpop.f32.mrf.mxu1 }
 0x20c   :  { %v3611_v48 = vadd.f32 %v6711_v10, %v3595_v28  ;;  %v3571_v41 = vadd.f32 %v3570_v37, %v3499_v57  ;;  %5088 = vtanh.f32 %v3616_v31 }
 0x20d   :  { %v4834_v49 = vpop.f32.mrf.mxu0 }
 0x20e   :  { %5090 = vtanh.f32 %v3611_v48  ;;  %v3596_v42 = vadd.f32 %v3571_v41, %v6796_v27 }
 0x20f   :  { %v5079_v51 = vpop.eup %5078  ;;  %v3573_v3 = vpop.f32.mrf.mxu0 }
 0x210   :  { %3626 = vst [vmem:[%s6772_s3] sm:$0xff] %v5079_v51  ;;  %v3612_v30 = vadd.f32 %v6711_v10, %v3596_v42  ;;  %v3574_v61 = vadd.f32 %v3573_v3, %v3502_v9 }
 0x211   :  { %v4835_v62 = vpop.f32.mrf.mxu0  ;;  %v5081_v17 = vpop.eup %5080 }
 0x212   :  { %5092 = vtanh.f32 %v3612_v30  ;;  %v3597_v33 = vadd.f32 %v3574_v61, %v6797_v45  ;;  %3632 = vst [vmem:[%s6772_s3 + $0x30] sm:$0xff] %v5081_v17 }
 0x213   :  { %v5083_v25 = vpop.eup %5082 }
 0x214   :  { %3627 = vst [vmem:[%s6772_s3 + $0x8] sm:$0xff] %v5083_v25  ;;  %v3613_v7 = vadd.f32 %v6711_v10, %v3597_v33 }
 0x215   :  { %v5085_v19 = vpop.eup %5084 }
 0x216   :  { %5094 = vtanh.f32 %v3613_v7  ;;  %3633 = vst [vmem:[%s6772_s3 + $0x38] sm:$0xff] %v5085_v19 }
 0x217   :  { %v5087_v0 = vpop.eup %5086 }
 0x218   :  { %3628 = vst [vmem:[%s6772_s3 + $0x10] sm:$0xff] %v5087_v0 }
 0x219   :  { %v5089_v32 = vpop.eup %5088 }
 0x21a   :  { %3634 = vst [vmem:[%s6772_s3 + $0x40] sm:$0x3f] %v5089_v32 }
 0x21b   :  { %v5091_v29 = vpop.eup %5090 }
 0x21c   :  { %3629 = vst [vmem:[%s6772_s3 + $0x18] sm:$0xff] %v5091_v29 }
 0x21f   :  { %v5093_v10 = vpop.eup %5092 }
 0x220   :  { %3630 = vst [vmem:[%s6772_s3 + $0x20] sm:$0xff] %v5093_v10 }
 0x223   :  { %v5095_v46 = vpop.eup %5094 }
 0x224   :  { %3631 = vst [vmem:[%s6772_s3 + $0x28] sm:$0xff] %v5095_v46 }

// kernel: generator_forward.2
= control target key start
LH: loop header
LB: loop body
LE: loop exit
PB: predicated region body
PF: predicated region fallthrough
CT: control target
= control target key end

     0   :  { %11 = vsyncpa [#allocation3], 0  ;;  %s14003_s0 = inlined_call_operand.vmem [shape: f32[72,576], index: 0, kind: input, shape index: {}]   ;;  %s14004_s1 = inlined_call_operand.vmem [shape: f32[72,1], index: 1, kind: input, shape index: {}]   ;;  %s14005_s2 = inlined_call_operand.hbm [shape: bf16[3,576,896], index: 2, kind: input, shape index: {}]   ;;  %s14006_s3 = inlined_call_operand.hbm [shape: f32[1,896], index: 3, kind: input, shape index: {}]   ;;  %s14007_s4 = inlined_call_operand.vmem [shape: f32[72,896], index: 4, kind: output, shape index: {0}]   ;;  %s14008_s5 = inlined_call_operand.vmem [shape: f32[1,2,896], index: 5, kind: output, shape index: {1}]  }
   0x1   :  { %12 = vsyncpa [#allocation5], 0  ;;  %s11260_s18 = smov [#allocation2]  }
   0x2   :  { %s22_s19 = sshll.u32 %s11260_s18, 4  ;;  %s23_s19 = int_to_ptr.vmem [resolvable:$true] %s22_s19 }
   0x3   :  { %s11224_s20 = scalar_lea.vmem %s23_s19, 96768  ;;  %p11229_p1 = scmp.lt.s32.totalorder %s23_s19, %s23_s19 }
   0x4   :  { %p11225_p0 = scmp.ne.s32.totalorder %s23_s19, %s11224_s20  ;;  %p11230_p2 = scmp.lt.s32.totalorder %s11224_s20, %s11224_s20 }
   0x6   :  { %p11231_p3 = por %p11230_p2, %p11229_p1 }
   0x8   :  { %p11232_p4 = pnand %p11231_p3, %p11225_p0 }
   0xa   :  { %11235 = shalt.err (!%p11232_p4)
}
   0xb   :  { %s11261_s21 = smov 448   ;;  %s11262_s22 = smov 28  }
   0xc   :  { %28 = dma.hbm_to_vmem [thread:$0]  %s14005_s2, 96768, %s23_s19, [#allocation3], %s11261_s21, %s11261_s21, %s11262_s22  }
   0xd   :  { %s11263_s25 = smov [#allocation4]  }
   0xe   :  { %s35_s26 = sshll.u32 %s11263_s25, 4  ;;  %s36_s26 = int_to_ptr.vmem [resolvable:$true] %s35_s26 }
   0xf   :  { %s11244_s27 = scalar_lea.vmem %s36_s26, 112  ;;  %s11248_s28 = scalar_lea.vmem %s36_s26, 128 }
  0x10   :  { %p11245_p5 = scmp.ne.s32.totalorder %s36_s26, %s11244_s27  ;;  %p11249_p6 = scmp.lt.s32.totalorder %s36_s26, %s36_s26 }
  0x11   :  { %p11250_p7 = scmp.lt.s32.totalorder %s11248_s28, %s11244_s27 }
  0x13   :  { %p11251_p8 = por %p11250_p7, %p11249_p6 }
  0x15   :  { %p11252_p9 = pnand %p11251_p8, %p11245_p5 }
  0x17   :  { %11255 = shalt.err (!%p11252_p9)
}
  0x18   :  { %38 = dma.hbm_to_vmem [thread:$0]  %s14006_s3, 112, %s36_s26, [#allocation5]  }
  0x19   :  { %11256 = dma.done.wait [#allocation3], 96768  }
  0x1a   :  { %11257 = vsyncadd [#allocation3], 4294870528 }
  0x1b   :  { %11258 = dma.done.wait [#allocation5], 112  }
  0x1c   :  { %11259 = vsyncadd [#allocation5], 4294967184  ;;  %v14011_v0 = vmov 0   ;;  %v10125_v1 = vld [vmem:[#allocation2 + $0x96c] ss:$28 sps:$4 sm:$0xff]   ;;  %v52_v49 = vld [vmem:[%s14003_s0 + $0x30] sm:$0xff] }
  0x1d   :  { %10123 = vset.pattern.permute.xlu0 %v14011_v0  ;;  %10124 = vset.pattern.permute.xlu1 %v14011_v0  ;;  %v10127_v2 = vld [vmem:[#allocation2 + $0xcec] ss:$28 sps:$4 sm:$0xff]   ;;  %v10131_v5 = vld [vmem:[#allocation2 + $0x934] ss:$28 sps:$4 sm:$0xff]   ;;  %v10137_v9 = vld [vmem:[#allocation2 + $0x8fc] ss:$28 sps:$4 sm:$0xff]  }
  0x1e   :  { %2241 = vmatprep.subr.bf16.mxu0 %v10125_v1  ;;  %v10129_v3 = vld [vmem:[#allocation2 + $0x968] ss:$28 sps:$4 sm:$0xff]   ;;  %2322 = vmatprep.subr.bf16.mxu1 %v10127_v2  ;;  %v10133_v6 = vld [vmem:[#allocation2 + $0xcb4] ss:$28 sps:$4 sm:$0xff]   ;;  %v10139_v10 = vld [vmem:[#allocation2 + $0xc7c] ss:$28 sps:$4 sm:$0xff]  }
  0x1f   :  { %v10130_v4 = vld [vmem:[#allocation2 + $0xce8] ss:$28 sps:$4 sm:$0xff]   ;;  %2242 = vmatpush1.bf16.msra.mxu0 %v10129_v3  ;;  %v10135_v7 = vld [vmem:[#allocation2 + $0x930] ss:$28 sps:$4 sm:$0xff]   ;;  %v10141_v11 = vld [vmem:[#allocation2 + $0x8f8] ss:$28 sps:$4 sm:$0xff]  }
  0x20   :  { %2323 = vmatpush1.bf16.msra.mxu1 %v10130_v4  ;;  %2243 = vmatprep.subr.bf16.mxu0 %v10131_v5  ;;  %v10136_v8 = vld [vmem:[#allocation2 + $0xcb0] ss:$28 sps:$4 sm:$0xff]   ;;  %v10142_v12 = vld [vmem:[#allocation2 + $0xc78] ss:$28 sps:$4 sm:$0xff]   ;;  %v10143_v13 = vld [vmem:[#allocation2 + $0x8c4] ss:$28 sps:$4 sm:$0xff]  }
  0x21   :  { %2324 = vmatprep.subr.bf16.mxu1 %v10133_v6  ;;  %v10145_v14 = vld [vmem:[#allocation2 + $0xc44] ss:$28 sps:$4 sm:$0xff]   ;;  %v10149_v17 = vld [vmem:[#allocation2 + $0x88c] ss:$28 sps:$4 sm:$0xff]   ;;  %v10155_v21 = vld [vmem:[#allocation2 + $0x854] ss:$28 sps:$4 sm:$0xff]  }
  0x22   :  { %v10147_v15 = vld [vmem:[#allocation2 + $0x8c0] ss:$28 sps:$4 sm:$0xff]   ;;  %v10151_v18 = vld [vmem:[#allocation2 + $0xc0c] ss:$28 sps:$4 sm:$0xff]   ;;  %v10157_v22 = vld [vmem:[#allocation2 + $0xbd4] ss:$28 sps:$4 sm:$0xff]  }
  0x23   :  { %2244 = vmatpush1.bf16.msra.mxu0 %v10135_v7  ;;  %v10148_v16 = vld [vmem:[#allocation2 + $0xc40] ss:$28 sps:$4 sm:$0xff]   ;;  %v10153_v19 = vld [vmem:[#allocation2 + $0x888] ss:$28 sps:$4 sm:$0xff]   ;;  %v10159_v23 = vld [vmem:[#allocation2 + $0x850] ss:$28 sps:$4 sm:$0xff]  }
  0x24   :  { %2325 = vmatpush1.bf16.msra.mxu1 %v10136_v8  ;;  %2245 = vmatprep.subr.bf16.mxu0 %v10137_v9  ;;  %v10154_v20 = vld [vmem:[#allocation2 + $0xc08] ss:$28 sps:$4 sm:$0xff]   ;;  %v10160_v24 = vld [vmem:[#allocation2 + $0xbd0] ss:$28 sps:$4 sm:$0xff]   ;;  %v10161_v25 = vld [vmem:[#allocation2 + $0x81c] ss:$28 sps:$4 sm:$0xff]  }
  0x25   :  { %2326 = vmatprep.subr.bf16.mxu1 %v10139_v10  ;;  %v10163_v26 = vld [vmem:[#allocation2 + $0xb9c] ss:$28 sps:$4 sm:$0xff]   ;;  %v10167_v29 = vld [vmem:[#allocation2 + $0x7e4] ss:$28 sps:$4 sm:$0xff]   ;;  %v10173_v33 = vld [vmem:[#allocation2 + $0xb2c] ss:$28 sps:$4 sm:$0xff]  }
  0x26   :  { %v10165_v27 = vld [vmem:[#allocation2 + $0x818] ss:$28 sps:$4 sm:$0xff]   ;;  %v10169_v30 = vld [vmem:[#allocation2 + $0xb64] ss:$28 sps:$4 sm:$0xff]   ;;  %v10175_v34 = vld [vmem:[#allocation2 + $0xeac] ss:$28 sps:$4 sm:$0xff]  }
  0x27   :  { %2246 = vmatpush1.bf16.msra.mxu0 %v10141_v11  ;;  %v10166_v28 = vld [vmem:[#allocation2 + $0xb98] ss:$28 sps:$4 sm:$0xff]   ;;  %v10171_v31 = vld [vmem:[#allocation2 + $0x7e0] ss:$28 sps:$4 sm:$0xff]   ;;  %v10177_v35 = vld [vmem:[#allocation2 + $0xb28] ss:$28 sps:$4 sm:$0xff]  }
  0x28   :  { %2327 = vmatpush1.bf16.msra.mxu1 %v10142_v12  ;;  %2247 = vmatprep.subr.bf16.mxu0 %v10143_v13  ;;  %v10172_v32 = vld [vmem:[#allocation2 + $0xb60] ss:$28 sps:$4 sm:$0xff]   ;;  %v10178_v36 = vld [vmem:[#allocation2 + $0xea8] ss:$28 sps:$4 sm:$0xff]   ;;  %v10179_v37 = vld [vmem:[#allocation2 + $0xaf4] ss:$28 sps:$4 sm:$0xff]  }
  0x29   :  { %2328 = vmatprep.subr.bf16.mxu1 %v10145_v14  ;;  %v10181_v38 = vld [vmem:[#allocation2 + $0xe74] ss:$28 sps:$4 sm:$0xff]   ;;  %v10185_v41 = vld [vmem:[#allocation2 + $0xabc] ss:$28 sps:$4 sm:$0xff]   ;;  %v10191_v45 = vld [vmem:[#allocation2 + $0xa84] ss:$28 sps:$4 sm:$0xff]  }
  0x2a   :  { %v10183_v39 = vld [vmem:[#allocation2 + $0xaf0] ss:$28 sps:$4 sm:$0xff]   ;;  %v10187_v42 = vld [vmem:[#allocation2 + $0xe3c] ss:$28 sps:$4 sm:$0xff]   ;;  %v10193_v46 = vld [vmem:[#allocation2 + $0xe04] ss:$28 sps:$4 sm:$0xff]  }
  0x2b   :  { %2248 = vmatpush1.bf16.msra.mxu0 %v10147_v15  ;;  %v10184_v40 = vld [vmem:[#allocation2 + $0xe70] ss:$28 sps:$4 sm:$0xff]   ;;  %v10189_v43 = vld [vmem:[#allocation2 + $0xab8] ss:$28 sps:$4 sm:$0xff]   ;;  %v10195_v47 = vld [vmem:[#allocation2 + $0xa80] ss:$28 sps:$4 sm:$0xff]  }
  0x2c   :  { %2329 = vmatpush1.bf16.msra.mxu1 %v10148_v16  ;;  %2249 = vmatprep.subr.bf16.mxu0 %v10149_v17  ;;  %v10190_v44 = vld [vmem:[#allocation2 + $0xe38] ss:$28 sps:$4 sm:$0xff]   ;;  %v10196_v48 = vld [vmem:[#allocation2 + $0xe00] ss:$28 sps:$4 sm:$0xff]   ;;  %v405_v52 = vld [vmem:[%s14003_s0 + $0x8] sm:$0xfe] }
  0x2d   :  { %2330 = vmatprep.subr.bf16.mxu1 %v10151_v18  ;;  %v57_v50 = vld [vmem:[%s14003_s0 + $0x58] sm:$0xff]  ;;  %v62_v51 = vld [vmem:[%s14003_s0 + $0x80] sm:$0xff]  ;;  %v415_v54 = vpack.c.bf16 %v52_v49, %v405_v52  ;;  %v59_v56 = vld [vmem:[%s14003_s0 + $0x68] sm:$0xff]  ;;  %vm713_vm0 = vsmask.f32 7424  ;;  %vm2225_vm1 = vcmask 523264  }
  0x2e   :  { %v11318_v53 = vpack.c.bf16 %v62_v51, %v57_v50  ;;  %v54_v55 = vld [vmem:[%s14003_s0 + $0x40] sm:$0xff]  ;;  %v64_v57 = vld [vmem:[%s14003_s0 + $0x90] sm:$0xff]  ;;  %v10197_v58 = vld [vmem:[#allocation2 + $0xa4c] ss:$28 sps:$4 sm:$0xff]   ;;  %vm11266_vm2 = vmmov 0   ;;  %vm5773_vm3 = vcmask 1046528  }
  0x2f   :  { %2250 = vmatpush1.bf16.msra.mxu0 %v10153_v19  ;;  %v10199_v59 = vld [vmem:[#allocation2 + $0xdcc] ss:$28 sps:$4 sm:$0xff]   ;;  %v11329_v60 = vpack.c.bf16 %v64_v57, %v59_v56  ;;  %v407_v61 = vld [vmem:[%s14003_s0 + $0x18] sm:$0xfe]  ;;  %v727_v1 = vshrl.u32 %v415_v54, 16  ;;  %v729_v2 = vshll.u32 %v415_v54, 16 }
  0x30   :  { %2331 = vmatpush1.bf16.msra.mxu1 %v10154_v20  ;;  %2251 = vmatprep.subr.bf16.mxu0 %v10155_v21  ;;  %v10201_v62 = vld [vmem:[#allocation2 + $0xa48] ss:$28 sps:$4 sm:$0xff]   ;;  %v734_v3 = vshll.u32 %v11318_v53, 16  ;;  %v417_v4 = vpack.c.bf16 %v54_v55, %v407_v61  ;;  %v56_v6 = vld [vmem:[%s14003_s0 + $0x50] sm:$0xff]  ;;  %v61_v7 = vld [vmem:[%s14003_s0 + $0x78] sm:$0xff]  ;;  %vm8515_vm4 = vcmask 1045504  }
  0x31   :  { %2332 = vmatprep.subr.bf16.mxu1 %v10157_v22  ;;  %v10202_v63 = vld [vmem:[#allocation2 + $0xdc8] ss:$28 sps:$4 sm:$0xff]   ;;  %v10203_v8 = vld [vmem:[#allocation2 + $0xa14] ss:$28 sps:$4 sm:$0xff]   ;;  %v758_v10 = vshll.u32 %v11329_v60, 16  ;;  %v53_v12 = vld [vmem:[%s14003_s0 + $0x38] sm:$0xff]  ;;  %v11359_v19 = vpack.c.bf16 %v61_v7, %v56_v6 }
  0x32   :  { %v51_v5 = vld [vmem:[%s14003_s0 + $0x28] sm:$0xff]  ;;  %v10205_v9 = vld [vmem:[#allocation2 + $0xd94] ss:$28 sps:$4 sm:$0xff]   ;;  %v404_v11 = vld [vmem:[%s14003_s0] sm:$0xfe]  ;;  %v731_v14 = vrot.slane %v729_v2, 1 }
  0x33   :  { %2252 = vmatpush1.bf16.msra.mxu0 %v10159_v23  ;;  %v58_v13 = vld [vmem:[%s14003_s0 + $0x60] sm:$0xff]  ;;  %v11354_v15 = vrot.slane %v734_v3, 1  ;;  %v751_v16 = vshrl.u32 %v417_v4, 16  ;;  %v753_v17 = vshll.u32 %v417_v4, 16  ;;  %v63_v18 = vld [vmem:[%s14003_s0 + $0x88] sm:$0xff]  ;;  %v414_v20 = vpack.c.bf16 %v51_v5, %v404_v11  ;;  %v68_v55 = vld [vmem:[%s14003_s0 + $0xb0] sm:$0xff] }
  0x34   :  { %2333 = vmatpush1.bf16.msra.mxu1 %v10160_v24  ;;  %2253 = vmatprep.subr.bf16.mxu0 %v10161_v25  ;;  %v406_v21 = vld [vmem:[%s14003_s0 + $0x10] sm:$0xfe]  ;;  %v732_v22 = vor.u32 %v731_v14, %v727_v1  ;;  %v11364_v24 = vrot.slane %v758_v10, 1  ;;  %v71_v52 = vld [vmem:[%s14003_s0 + $0xc8] sm:$0xff]  ;;  %v10217_v54 = vld [vmem:[#allocation2 + $0xd24] ss:$28 sps:$4 sm:$0xff]  }
  0x35   :  { %2334 = vmatprep.subr.bf16.mxu1 %v10163_v26  ;;  %v755_v23 = vrot.slane %v753_v17, 1  ;;  %v416_v25 = vpack.c.bf16 %v53_v12, %v406_v21  ;;  %v10207_v26 = vld [vmem:[#allocation2 + $0xa10] ss:$28 sps:$4 sm:$0xff]   ;;  %v73_v56 = vld [vmem:[%s14003_s0 + $0xd8] sm:$0xff]  ;;  %v82_v10 = vld [vmem:[%s14003_s0 + $0x120] sm:$0xff]  ;;  %v774_v17 = vshrl.u32 %v11359_v19, 16 }
  0x36   :  { %v10219_v57 = vld [vmem:[#allocation2 + $0x9a0] ss:$28 sps:$4 sm:$0xff]   ;;  %v10223_v6 = vld [vmem:[#allocation2 + $0xf8c] ss:$28 sps:$4 sm:$0xff]   ;;  %v10226_v7 = vld [vmem:[#allocation2 + $0x974] ss:$28 sps:$4 sm:$0xff]  }
  0x37   :  { %2254 = vmatpush1.bf16.msra.mxu0 %v10165_v27  ;;  %v11366_v27 = vpack.c.bf16 %v63_v18, %v58_v13  ;;  %v79_v11 = vld [vmem:[%s14003_s0 + $0x108] sm:$0xff]  ;;  %v10229_v21 = vld [vmem:[#allocation2 + $0x93c] ss:$28 sps:$4 sm:$0xff]  }
  0x38   :  { %2335 = vmatpush1.bf16.msra.mxu1 %v10166_v28  ;;  %2255 = vmatprep.subr.bf16.mxu0 %v10167_v29  ;;  %v10208_v28 = vld [vmem:[#allocation2 + $0xd90] ss:$28 sps:$4 sm:$0xff]   ;;  %v11370_v29 = vsel %vm713_vm0, %v732_v22, %v11354_v15  ;;  %v10221_v12 = vld [vmem:[#allocation2 + $0xf88] ss:$28 sps:$4 sm:$0xff]  }
  0x39   :  { %2336 = vmatprep.subr.bf16.mxu1 %v10169_v30  ;;  %v756_v30 = vor.u32 %v755_v23, %v751_v16  ;;  %2273 = vmatprep.mubr.bf16.mxu0 %v11370_v29  ;;  %v746_v51 = vshll.u32 %v11366_v27, 16  ;;  %v10224_v13 = vld [vmem:[#allocation2 + $0x970] ss:$28 sps:$4 sm:$0xff]  }
  0x3b   :  { %2256 = vmatpush1.bf16.msra.mxu0 %v10171_v31  ;;  %v717_v31 = vshll.u32 %v414_v20, 16  ;;  %v748_v5 = vrot.slane %v746_v51, 1 }
  0x3c   :  { %2337 = vmatpush1.bf16.msra.mxu1 %v10172_v32  ;;  %2257 = vmatprep.subr.bf16.mxu0 %v10173_v33  ;;  %v741_v32 = vshll.u32 %v416_v25, 16  ;;  %v67_v33 = vld [vmem:[%s14003_s0 + $0xa8] sm:$0xff] }
  0x3d   :  { %2338 = vmatprep.subr.bf16.mxu1 %v10175_v34  ;;  %v10209_v34 = vld [vmem:[#allocation2 + $0x9dc] ss:$28 sps:$4 sm:$0xff]   ;;  %v719_v49 = vrot.slane %v717_v31, 1  ;;  %v790_v31 = vshrl.u32 %v11366_v27, 16 }
  0x3e   :  { %v743_v50 = vrot.slane %v741_v32, 1 }
  0x3f   :  { %2258 = vmatpush2.bf16.msra.mxu0 %v10177_v35  ;;  %v10211_v35 = vld [vmem:[#allocation2 + $0xd5c] ss:$28 sps:$4 sm:$0xff]  }
  0x40   :  { %2339 = vmatpush2.bf16.msra.mxu1 %v10178_v36  ;;  %2259 = vmatprep.subr.bf16.mxu0 %v10179_v37  ;;  %v10213_v36 = vld [vmem:[#allocation2 + $0x9d8] ss:$28 sps:$4 sm:$0xff]  }
  0x41   :  { %2340 = vmatprep.subr.bf16.mxu1 %v10181_v38  ;;  %v10214_v37 = vld [vmem:[#allocation2 + $0xd58] ss:$28 sps:$4 sm:$0xff]   ;;  %v11378_v38 = vsel %vm713_vm0, %v756_v30, %v11364_v24 }
  0x42   :  { %2354 = vmatprep.mubr.bf16.mxu1 %v11378_v38 }
  0x43   :  { %2260 = vmatpush2.bf16.msra.mxu0 %v10183_v39  ;;  %v722_v39 = vshll.u32 %v11359_v19, 16 }
  0x44   :  { %2341 = vmatpush2.bf16.msra.mxu1 %v10184_v40  ;;  %2261 = vmatprep.subr.bf16.mxu0 %v10185_v41  ;;  %v72_v40 = vld [vmem:[%s14003_s0 + $0xd0] sm:$0xff]  ;;  %v69_v41 = vld [vmem:[%s14003_s0 + $0xb8] sm:$0xff] }
  0x45   :  { %2342 = vmatprep.subr.bf16.mxu1 %v10187_v42  ;;  %v74_v42 = vld [vmem:[%s14003_s0 + $0xe0] sm:$0xff] }
  0x47   :  { %2262 = vmatpush2.bf16.msra.mxu0 %v10189_v43  ;;  %v10215_v43 = vld [vmem:[#allocation2 + $0x9a4] ss:$28 sps:$4 sm:$0xff]  }
  0x48   :  { %2343 = vmatpush2.bf16.msra.mxu1 %v10190_v44  ;;  %2263 = vmatprep.subr.bf16.mxu0 %v10191_v45  ;;  %v715_v44 = vshrl.u32 %v414_v20, 16  ;;  %v739_v45 = vshrl.u32 %v416_v25, 16  ;;  %v84_v20 = vld [vmem:[%s14003_s0 + $0x130] sm:$0xff] }
  0x49   :  { %2344 = vmatprep.subr.bf16.mxu1 %v10193_v46  ;;  %v11391_v46 = vpack.c.bf16 %v72_v40, %v67_v33  ;;  %v78_v33 = vld [vmem:[%s14003_s0 + $0x100] sm:$0xff] }
  0x4a   :  { %v720_v3 = vor.u32 %v719_v49, %v715_v44  ;;  %v744_v4 = vor.u32 %v743_v50, %v739_v45  ;;  %v792_v50 = vor.u32 %v790_v31, %v748_v5  ;;  %v10236_v31 = vld [vmem:[#allocation2 + $0x8c8] ss:$28 sps:$4 sm:$0xff]  }
  0x4b   :  { %2264 = vmatpush2.bf16.msra.mxu0 %v10195_v47  ;;  %v11393_v47 = vpack.c.bf16 %v74_v42, %v69_v41  ;;  %v786_v61 = vshll.u32 %v11391_v46, 16  ;;  %v10227_v42 = vld [vmem:[#allocation2 + $0x938] ss:$28 sps:$4 sm:$0xff]  }
  0x4c   :  { %2345 = vmatpush2.bf16.msra.mxu1 %v10196_v48  ;;  %2265 = vmatprep.subr.bf16.mxu0 %v10197_v58  ;;  %v66_v48 = vld [vmem:[%s14003_s0 + $0xa0] sm:$0xff] }
  0x4d   :  { %2346 = vmatprep.subr.bf16.mxu1 %v10199_v59  ;;  %v10220_v58 = vld [vmem:[#allocation2 + $0xd20] ss:$28 sps:$4 sm:$0xff]   ;;  %v782_v59 = vshrl.u32 %v11318_v53, 16  ;;  %v802_v1 = vshll.u32 %v11393_v47, 16  ;;  %v11412_v2 = vpack.c.bf16 %v71_v52, %v66_v48  ;;  %v788_v16 = vrot.slane %v786_v61, 1 }
  0x4e   :  { %v838_v40 = vshrl.u32 %v11393_v47, 16  ;;  %v10232_v48 = vld [vmem:[#allocation2 + $0x904] ss:$28 sps:$4 sm:$0xff]   ;;  %v10233_v52 = vld [vmem:[#allocation2 + $0xf50] ss:$28 sps:$4 sm:$0xff]  }
  0x4f   :  { %2266 = vmatpush2.bf16.msra.mxu0 %v10201_v62  ;;  %v724_v62 = vrot.slane %v722_v39, 1  ;;  %v784_v14 = vor.u32 %v782_v59, %v11354_v15  ;;  %v804_v23 = vrot.slane %v802_v1, 1  ;;  %v778_v25 = vshll.u32 %v11412_v2, 16  ;;  %v76_v15 = vld [vmem:[%s14003_s0 + $0xf0] sm:$0xff]  ;;  %v412_v61 = vld [vmem:[%s14003_s0 + $0x158] sm:$0x7f] }
  0x50   :  { %2347 = vmatpush2.bf16.msra.mxu1 %v10202_v63  ;;  %2267 = vmatprep.subr.bf16.mxu0 %v10203_v8  ;;  %v798_v63 = vshrl.u32 %v11329_v60, 16  ;;  %v11414_v8 = vpack.c.bf16 %v73_v56, %v68_v55  ;;  %v10235_v39 = vld [vmem:[#allocation2 + $0xf54] ss:$28 sps:$4 sm:$0xff]   ;;  %v410_v55 = vld [vmem:[%s14003_s0 + $0x148] sm:$0x7f]  ;;  %v11482_v1 = vpack.c.bf16 %v412_v61, %v412_v61 }
  0x51   :  { %2348 = vmatprep.subr.bf16.mxu1 %v10205_v9  ;;  %v77_v9 = vld [vmem:[%s14003_s0 + $0xf8] sm:$0xff]  ;;  %v11443_v30 = vsel %vm713_vm0, %v720_v3, %v724_v62  ;;  %v776_v44 = vor.u32 %v774_v17, %v724_v62  ;;  %v780_v45 = vrot.slane %v778_v25, 1  ;;  %v11476_v59 = vpack.c.bf16 %v410_v55, %v410_v55  ;;  %v411_v17 = vld [vmem:[%s14003_s0 + $0x150] sm:$0x7f] }
  0x52   :  { %v11427_v18 = vpack.c.bf16 %v82_v10, %v77_v9  ;;  %v800_v22 = vor.u32 %v798_v63, %v11364_v24  ;;  %v11446_v24 = vsel %vm713_vm0, %v744_v4, %v748_v5  ;;  %v794_v32 = vshll.u32 %v11414_v8, 16  ;;  %v10230_v4 = vld [vmem:[#allocation2 + $0x900] ss:$28 sps:$4 sm:$0xff]   ;;  %v10238_v9 = vld [vmem:[#allocation2 + $0x8cc] ss:$28 sps:$4 sm:$0xff]  }
  0x53   :  { %2268 = vmatpush2.bf16.msra.mxu0 %v10207_v26  ;;  %v11434_v26 = vpack.c.bf16 %v84_v20, %v79_v11  ;;  %v840_v62 = vor.u32 %v838_v40, %v804_v23  ;;  %v11485_v3 = vsel %vm713_vm0, %v776_v44, %v780_v45  ;;  %v814_v5 = vshrl.u32 %v11412_v2, 16  ;;  %v10254_v44 = vld [vmem:[#allocation2 + $0xee0] ss:$28 sps:$4 sm:$0xff]  }
  0x54   :  { %2349 = vmatpush2.bf16.msra.mxu1 %v10208_v28  ;;  %2269 = vmatprep.subr.bf16.mxu0 %v10209_v34  ;;  %v81_v28 = vld [vmem:[%s14003_s0 + $0x118] sm:$0xff]  ;;  %v83_v34 = vld [vmem:[%s14003_s0 + $0x128] sm:$0xff]  ;;  %v796_v51 = vrot.slane %v794_v32, 1  ;;  %v830_v10 = vshrl.u32 %v11414_v8, 16 }
  0x55   :  { %2350 = vmatprep.subr.bf16.mxu1 %v10211_v35  ;;  %v822_v35 = vshrl.u32 %v11391_v46, 16  ;;  %v842_v41 = vshll.u32 %v11434_v26, 16  ;;  %v11468_v49 = vpack.c.bf16 %v81_v28, %v76_v15  ;;  %v816_v25 = vor.u32 %v814_v5, %v780_v45  ;;  %v10256_v28 = vld [vmem:[#allocation2 + $0xee4] ss:$28 sps:$4 sm:$0xff]  }
  0x56   :  { %v832_v32 = vor.u32 %v830_v10, %v796_v51  ;;  %v10250_v5 = vld [vmem:[#allocation2 + $0x824] ss:$28 sps:$4 sm:$0xff]  }
  0x57   :  { %2270 = vmatpush2.bf16.msra.mxu0 %v10213_v36  ;;  %v826_v36 = vshll.u32 %v11427_v18, 16  ;;  %v824_v56 = vor.u32 %v822_v35, %v788_v16  ;;  %v844_v63 = vrot.slane %v842_v41, 1  ;;  %v11515_v35 = vpack.c.bf16 %v411_v17, %v411_v17  ;;  %v10248_v17 = vld [vmem:[#allocation2 + $0x820] ss:$28 sps:$4 sm:$0xff]  }
  0x58   :  { %2351 = vmatpush2.bf16.msra.mxu1 %v10214_v37  ;;  %2271 = vmatprep.subr.bf16.mxu0 %v10215_v43  ;;  %v11459_v37 = vsel %vm713_vm0, %v784_v14, %v788_v16  ;;  %v11466_v43 = vsel %vm713_vm0, %v800_v22, %v804_v23  ;;  %v866_v14 = vshll.u32 %v11476_v59, 16  ;;  %v409_v16 = vld [vmem:[%s14003_s0 + $0x140] sm:$0x7f]  ;;  %v878_v22 = vshrl.u32 %v11434_v26, 16 }
  0x59   :  { %2352 = vmatprep.subr.bf16.mxu1 %v10217_v54  ;;  %v11470_v54 = vpack.c.bf16 %v83_v34, %v78_v33  ;;  %v11506_v20 = vsel %vm713_vm0, %v840_v62, %v844_v63  ;;  %v882_v23 = vshll.u32 %v11482_v1, 16  ;;  %v11513_v34 = vpack.c.bf16 %v409_v16, %v409_v16  ;;  %v10265_v62 = vld [vmem:[#allocation2 + $0xcf4] ss:$28 sps:$4 sm:$0xff]   ;;  %v408_v16 = vld [vmem:[%s14003_s0 + $0x20] sm:$0xfe] }
  0x5a   :  { %v868_v40 = vrot.slane %v866_v14, 1  ;;  %v880_v41 = vor.u32 %v878_v22, %v844_v63  ;;  %v10245_v63 = vld [vmem:[#allocation2 + $0x858] ss:$28 sps:$4 sm:$0xff]   ;;  %v903_v14 = vshrl.u32 %v11482_v1, 16  ;;  %v10253_v22 = vld [vmem:[#allocation2 + $0x7ec] ss:$28 sps:$4 sm:$0xff]  }
  0x5b   :  { %2272 = vmatpush2.bf16.msra.mxu0 %v10219_v57  ;;  %v828_v57 = vrot.slane %v826_v36, 1  ;;  %v834_v11 = vshll.u32 %v11470_v54, 16  ;;  %v10241_v36 = vld [vmem:[#allocation2 + $0x894] ss:$28 sps:$4 sm:$0xff]   ;;  %v870_v55 = vshrl.u32 %v11470_v54, 16 }
  0x5c   :  { %2353 = vmatpush2.bf16.msra.mxu1 %v10220_v58  ;;  %2411 = vmatprep.subr.bf16.mxu0 %v10223_v6  ;;  %v10244_v58 = vld [vmem:[#allocation2 + $0xf1c] ss:$28 sps:$4 sm:$0xff]   ;;  %v818_v6 = vshll.u32 %v11468_v49, 16  ;;  %v60_v1 = vld [vmem:[%s14003_s0 + $0x70] sm:$0xff] }
  0x5d   :  { %2484 = vmatprep.subr.bf16.mxu1 %v10226_v7  ;;  %v11490_v7 = vsel %vm713_vm0, %v792_v50, %v796_v51  ;;  %v836_v33 = vrot.slane %v834_v11, 1  ;;  %v10239_v51 = vld [vmem:[#allocation2 + $0x890] ss:$28 sps:$4 sm:$0xff]   ;;  %v897_v11 = vshrl.u32 %v11476_v59, 16 }
  0x5e   :  { %2274 = vmatmul.mubr.bf16.vlgmr.msra.gmra.mxu0 %v11443_v30  ;;  %v820_v15 = vrot.slane %v818_v6, 1 }
  0x5f   :  { %2355 = vmatmul.mubr.bf16.vlgmr.msra.gmra.mxu1 %v11446_v24  ;;  %2412 = vmatpush1.bf16.msra.mxu0 %v10221_v12  ;;  %v862_v12 = vshrl.u32 %v11427_v18, 16  ;;  %v11523_v50 = vsel %vm713_vm0, %v832_v32, %v836_v33  ;;  %v900_v32 = vshrl.u32 %v11515_v35, 16 }
  0x60   :  { %2485 = vmatpush1.bf16.msra.mxu1 %v10224_v13  ;;  %2283 = vmatprep.mubr.bf16.mxu0 %v11459_v37  ;;  %v11496_v13 = vsel %vm713_vm0, %v824_v56, %v828_v57  ;;  %v11519_v45 = vsel %vm713_vm0, %v816_v25, %v820_v15  ;;  %v874_v56 = vshll.u32 %v11515_v35, 16 }
  0x61   :  { %2486 = vmatprep.subr.bf16.mxu1 %v10229_v21  ;;  %2364 = vmatprep.mubr.bf16.mxu1 %v11466_v43  ;;  %v10242_v21 = vld [vmem:[#allocation2 + $0xf18] ss:$28 sps:$4 sm:$0xff]  }
  0x62   :  { %2413 = vmatprep.subr.bf16.mxu0 %v10235_v39  ;;  %v864_v39 = vor.u32 %v862_v12, %v828_v57  ;;  %v10247_v57 = vld [vmem:[#allocation2 + $0x85c] ss:$28 sps:$4 sm:$0xff]   ;;  %v876_v10 = vrot.slane %v874_v56, 1  ;;  %v55_v12 = vld [vmem:[%s14003_s0 + $0x48] sm:$0xff] }
  0x63   :  { %2414 = vmatpush1.bf16.msra.mxu0 %v10233_v52  ;;  %v858_v52 = vshll.u32 %v11513_v34, 16  ;;  %v418_v25 = vpack.c.bf16 %v55_v12, %v408_v16  ;;  %v10260_v56 = vld [vmem:[#allocation2 + $0xaf8] ss:$28 sps:$4 sm:$0xff]  }
  0x64   :  { %2487 = vmatpush1.bf16.msra.mxu1 %v10227_v42  ;;  %2415 = vmatprep.subr.bf16.mxu0 %v10244_v58  ;;  %v884_v42 = vrot.slane %v882_v23, 1  ;;  %v11529_v58 = vsel %vm713_vm0, %v864_v39, %v868_v40  ;;  %v11552_v23 = vor.u32 %v897_v11, %v868_v40  ;;  %v10259_v40 = vld [vmem:[#allocation2 + $0xb34] ss:$28 sps:$4 sm:$0xff]  }
  0x65   :  { %2488 = vmatprep.subr.bf16.mxu1 %v10232_v48  ;;  %v854_v48 = vshrl.u32 %v11468_v49, 16  ;;  %v860_v6 = vrot.slane %v858_v52, 1  ;;  %v765_v39 = vshll.u32 %v418_v25, 16  ;;  %v70_v52 = vld [vmem:[%s14003_s0 + $0xc0] sm:$0xff]  ;;  %v80_v16 = vld [vmem:[%s14003_s0 + $0x110] sm:$0xff] }
  0x66   :  { %2284 = vmatmul.mubr.bf16.gmra.mxu0 %v11485_v3  ;;  %v11532_v61 = vsel %vm713_vm0, %v880_v41, %v884_v42 }
  0x67   :  { %2365 = vmatmul.mubr.bf16.gmra.mxu1 %v11490_v7  ;;  %2293 = vmatprep.mubr.bf16.mxu0 %v11496_v13  ;;  %v767_v35 = vrot.slane %v765_v39, 1  ;;  %v10275_v39 = vld [vmem:[#allocation2 + $0xc80] ss:$28 sps:$4 sm:$0xff]  }
  0x68   :  { %2489 = vmatpush1.bf16.msra.mxu1 %v10230_v4  ;;  %2374 = vmatprep.mubr.bf16.mxu1 %v11506_v20  ;;  %v856_v4 = vor.u32 %v854_v48, %v820_v15  ;;  %v11554_v15 = vor.u32 %v903_v14, %v884_v42  ;;  %v11572_v42 = vor.u32 %v900_v32, %v876_v10  ;;  %v10262_v48 = vld [vmem:[#allocation2 + $0xafc] ss:$28 sps:$4 sm:$0xff]  }
  0x69   :  { %2490 = vmatprep.subr.bf16.mxu1 %v10238_v9  ;;  %2416 = vmatpush1.bf16.msra.mxu0 %v10242_v21  ;;  %v872_v9 = vor.u32 %v870_v55, %v836_v33  ;;  %v10251_v33 = vld [vmem:[#allocation2 + $0x7e8] ss:$28 sps:$4 sm:$0xff]  }
  0x6a   :  { %2417 = vmatprep.subr.bf16.mxu0 %v10256_v28  ;;  %v11547_v21 = vsel %vm713_vm0, %v856_v4, %v860_v6  ;;  %v65_v28 = vld [vmem:[%s14003_s0 + $0x98] sm:$0xff]  ;;  %v75_v55 = vld [vmem:[%s14003_s0 + $0xe8] sm:$0xff]  ;;  %v10268_v4 = vld [vmem:[#allocation2 + $0xac4] ss:$28 sps:$4 sm:$0xff]  }
  0x6b   :  { %v11550_v59 = vsel %vm713_vm0, %v872_v9, %v876_v10  ;;  %v10271_v9 = vld [vmem:[#allocation2 + $0xcbc] ss:$28 sps:$4 sm:$0xff]   ;;  %v10274_v10 = vld [vmem:[#allocation2 + $0xa8c] ss:$28 sps:$4 sm:$0xff]  }
  0x6c   :  { %2491 = vmatpush1.bf16.msra.mxu1 %v10236_v31  ;;  %v894_v31 = vshrl.u32 %v11513_v34, 16  ;;  %v763_v34 = vshrl.u32 %v418_v25, 16  ;;  %v10272_v25 = vld [vmem:[#allocation2 + $0xa88] ss:$28 sps:$4 sm:$0xff]  }
  0x6d   :  { %2492 = vmatprep.subr.bf16.mxu1 %v10241_v36  ;;  %2418 = vmatpush1.bf16.msra.mxu0 %v10254_v44  ;;  %v11567_v36 = vpack.c.bf16 %v65_v28, %v60_v1  ;;  %v10257_v44 = vld [vmem:[#allocation2 + $0xb30] ss:$28 sps:$4 sm:$0xff]   ;;  %v10277_v1 = vld [vmem:[#allocation2 + $0xc84] ss:$28 sps:$4 sm:$0xff]  }
  0x6e   :  { %2294 = vmatmul.mubr.bf16.gmra.mxu0 %v11519_v45  ;;  %2565 = vmatprep.subr.bf16.mxu0 %v10265_v62  ;;  %v11570_v41 = vor.u32 %v894_v31, %v860_v6  ;;  %v10266_v6 = vld [vmem:[#allocation2 + $0xac0] ss:$28 sps:$4 sm:$0xff]  }
  0x6f   :  { %2375 = vmatmul.mubr.bf16.gmra.mxu1 %v11523_v50  ;;  %2303 = vmatprep.mubr.bf16.mxu0 %v11529_v58  ;;  %14050 = vst [vmem:[#allocation8_spill] sm:$0xff] %v11567_v36  ;;  %v806_v12 = vshrl.u32 %v11567_v36, 16 }
  0x70   :  { %2493 = vmatpush1.bf16.msra.mxu1 %v10239_v51  ;;  %2384 = vmatprep.mubr.bf16.mxu1 %v11532_v61  ;;  %v770_v51 = vshll.u32 %v11567_v36, 16 }
  0x71   :  { %2494 = vmatprep.subr.bf16.mxu1 %v10247_v57  ;;  %v768_v57 = vor.u32 %v767_v35, %v763_v34  ;;  %v10286_v34 = vld [vmem:[#allocation2 + $0xa1c] ss:$28 sps:$4 sm:$0xff]  }
  0x72   :  { %v772_v62 = vrot.slane %v770_v51, 1 }
  0x74   :  { %2495 = vmatpush1.bf16.msra.mxu1 %v10245_v63  ;;  %v11584_v63 = vpack.c.bf16 %v75_v55, %v70_v52  ;;  %v11588_v11 = vsel %vm713_vm0, %v768_v57, %v772_v62  ;;  %v808_v28 = vor.u32 %v806_v12, %v772_v62  ;;  %v413_v52 = vld [vmem:[%s14003_s0 + $0x160] sm:$0x7f]  ;;  %v10289_v57 = vld [vmem:[#allocation2 + $0xc14] ss:$28 sps:$4 sm:$0xff]  }
  0x75   :  { %2496 = vmatprep.subr.bf16.mxu1 %v10250_v5  ;;  %v10263_v5 = vld [vmem:[#allocation2 + $0xcf0] ss:$28 sps:$4 sm:$0xff]   ;;  %v10281_v55 = vld [vmem:[#allocation2 + $0xc48] ss:$28 sps:$4 sm:$0xff]  }
  0x76   :  { %2304 = vmatmul.mubr.bf16.gmra.mxu0 %v11547_v21  ;;  %14051 = vst [vmem:[#allocation9_spill] sm:$0xff] %v11584_v63  ;;  %v810_v14 = vshll.u32 %v11584_v63, 16  ;;  %v846_v35 = vshrl.u32 %v11584_v63, 16 }
  0x77   :  { %2385 = vmatmul.mubr.bf16.gmra.mxu1 %v11550_v59  ;;  %2313 = vmatprep.mubr.bf16.mxu0 %v11552_v23 }
  0x78   :  { %2497 = vmatpush1.bf16.msra.mxu1 %v10248_v17  ;;  %2394 = vmatprep.mubr.bf16.mxu1 %v11554_v15  ;;  %v85_v17 = vld [vmem:[%s14003_s0 + $0x138] sm:$0xff]  ;;  %v812_v31 = vrot.slane %v810_v14, 1 }
  0x79   :  { %2498 = vmatprep.subr.bf16.mxu1 %v10253_v22  ;;  %v10269_v22 = vld [vmem:[#allocation2 + $0xcb8] ss:$28 sps:$4 sm:$0xff]   ;;  %v11600_v32 = vpack.c.bf16 %v85_v17, %v80_v16 }
  0x7a   :  { %v848_v62 = vor.u32 %v846_v35, %v812_v31  ;;  %v10295_v14 = vld [vmem:[#allocation2 + $0xbdc] ss:$28 sps:$4 sm:$0xff]   ;;  %v10305_v35 = vld [vmem:[#allocation2 + $0xf90] ss:$28 sps:$4 sm:$0xff]  }
  0x7b   :  { %14052 = vst [vmem:[#allocation10_spill] sm:$0xff] %v11600_v32  ;;  %v850_v51 = vshll.u32 %v11600_v32, 16  ;;  %v886_v16 = vshrl.u32 %v11600_v32, 16 }
  0x7c   :  { %2499 = vmatpush1.bf16.msra.mxu1 %v10251_v33  ;;  %v10280_v33 = vld [vmem:[#allocation2 + $0xa54] ss:$28 sps:$4 sm:$0xff]  }
  0x7d   :  { %2500 = vmatprep.subr.bf16.mxu1 %v10259_v40  ;;  %v10278_v40 = vld [vmem:[#allocation2 + $0xa50] ss:$28 sps:$4 sm:$0xff]  }
  0x7e   :  { %2314 = vmatmul.mubr.bf16.gmra.mxu0 %v11570_v41 }
  0x7f   :  { %2395 = vmatmul.mubr.bf16.gmra.mxu1 %v11572_v42  ;;  %2435 = vmatprep.mubr.bf16.mxu0 %v14011_v0 }
  0x80   :  { %2501 = vmatpush2.bf16.msra.mxu1 %v10257_v44  ;;  %2516 = vmatprep.mubr.bf16.mxu1 %v11370_v29  ;;  %v10283_v44 = vld [vmem:[#allocation2 + $0xc4c] ss:$28 sps:$4 sm:$0xff]  }
  0x81   :  { %2502 = vmatprep.subr.bf16.mxu1 %v10262_v48  ;;  %v11604_v48 = vsel %vm713_vm0, %v808_v28, %v812_v31  ;;  %v10301_v28 = vld [vmem:[#allocation2 + $0xba4] ss:$28 sps:$4 sm:$0xff]  }
  0x84   :  { %2503 = vmatpush2.bf16.msra.mxu1 %v10260_v56  ;;  %v10284_v56 = vld [vmem:[#allocation2 + $0xa18] ss:$28 sps:$4 sm:$0xff]  }
  0x85   :  { %2504 = vmatprep.subr.bf16.mxu1 %v10268_v4  ;;  %v852_v4 = vrot.slane %v850_v51, 1 }
  0x86   :  { %9163 = vmatmul.mubr.msk.bf16.vlgmr.msra.gmra.mxu0 %vm2225_vm1, %v11588_v11 }
  0x87   :  { %2566 = vmatpush1.bf16.msra.mxu0 %v10263_v5  ;;  %2445 = vmatprep.mubr.bf16.mxu0 %v14011_v0  ;;  %v423_v5 = vpack.c.bf16 %v413_v52, %v413_v52  ;;  %v11615_v12 = vsel %vm713_vm0, %v848_v62, %v852_v4  ;;  %v888_v31 = vor.u32 %v886_v16, %v852_v4  ;;  %v10319_v52 = vld [vmem:[#allocation2 + $0xf5c] ss:$28 sps:$4 sm:$0xff]   ;;  %v10308_v62 = vld [vmem:[#allocation2 + $0xeb0] ss:$28 sps:$4 sm:$0xff]   ;;  %v10316_v16 = vld [vmem:[#allocation2 + $0xe44] ss:$28 sps:$4 sm:$0xff]  }
  0x88   :  { %2505 = vmatpush2.bf16.msra.mxu1 %v10266_v6  ;;  %2567 = vmatprep.subr.bf16.mxu0 %v10271_v9  ;;  %v10292_v6 = vld [vmem:[#allocation2 + $0x9e4] ss:$28 sps:$4 sm:$0xff]   ;;  %v10287_v9 = vld [vmem:[#allocation2 + $0xc10] ss:$28 sps:$4 sm:$0xff]  }
  0x89   :  { %2506 = vmatprep.subr.bf16.mxu1 %v10274_v10  ;;  %v10290_v10 = vld [vmem:[#allocation2 + $0x9e0] ss:$28 sps:$4 sm:$0xff]   ;;  %v890_v17 = vshll.u32 %v423_v5, 16  ;;  %v906_v51 = vshrl.u32 %v423_v5, 16 }
  0x8a   :  { %v10326_v5 = vld [vmem:[#allocation2 + $0xf20] ss:$28 sps:$4 sm:$0xff]  }
  0x8b   :  { %2568 = vmatpush1.bf16.msra.mxu0 %v10269_v22  ;;  %v10298_v22 = vld [vmem:[#allocation2 + $0x9ac] ss:$28 sps:$4 sm:$0xff]  }
  0x8c   :  { %2507 = vmatpush2.bf16.msra.mxu1 %v10272_v25  ;;  %2569 = vmatprep.subr.bf16.mxu0 %v10277_v1  ;;  %v10293_v25 = vld [vmem:[#allocation2 + $0xbd8] ss:$28 sps:$4 sm:$0xff]   ;;  %v10296_v1 = vld [vmem:[#allocation2 + $0x9a8] ss:$28 sps:$4 sm:$0xff]  }
  0x8d   :  { %2508 = vmatprep.subr.bf16.mxu1 %v10280_v33  ;;  %v892_v33 = vrot.slane %v890_v17, 1  ;;  %v10338_v17 = vld [vmem:[#allocation2 + $0xee8] ss:$28 sps:$4 sm:$0xff]  }
  0x8e   :  { %9164 = vmatmul.mubr.msk.bf16.gmra.mxu0 %vm2225_vm1, %v11604_v48 }
  0x8f   :  { %2570 = vmatpush1.bf16.msra.mxu0 %v10275_v39  ;;  %2455 = vmatprep.mubr.bf16.mxu0 %v14011_v0  ;;  %v10307_v39 = vld [vmem:[#allocation2 + $0xf94] ss:$28 sps:$4 sm:$0xff]   ;;  %v11629_v4 = vor.u32 %v906_v51, %v892_v33  ;;  %v10332_v51 = vld [vmem:[#allocation2 + $0xd60] ss:$28 sps:$4 sm:$0xff]  }
  0x90   :  { %2509 = vmatpush2.bf16.msra.mxu1 %v10278_v40  ;;  %2571 = vmatprep.subr.bf16.mxu0 %v10283_v44  ;;  %v10299_v40 = vld [vmem:[#allocation2 + $0xba0] ss:$28 sps:$4 sm:$0xff]   ;;  %v11622_v44 = vsel %vm713_vm0, %v888_v31, %v892_v33  ;;  %v10325_v31 = vld [vmem:[#allocation2 + $0xdd4] ss:$28 sps:$4 sm:$0xff]  }
  0x91   :  { %2510 = vmatprep.subr.bf16.mxu1 %v10286_v34  ;;  %v10304_v34 = vld [vmem:[#allocation2 + $0xb6c] ss:$28 sps:$4 sm:$0xff]  }
  0x92   :  { %v10323_v33 = vld [vmem:[#allocation2 + $0xdd0] ss:$28 sps:$4 sm:$0xff]  }
  0x93   :  { %2572 = vmatpush1.bf16.msra.mxu0 %v10281_v55  ;;  %v10302_v55 = vld [vmem:[#allocation2 + $0xb68] ss:$28 sps:$4 sm:$0xff]  }
  0x94   :  { %2511 = vmatpush2.bf16.msra.mxu1 %v10284_v56  ;;  %2573 = vmatprep.subr.bf16.mxu0 %v10289_v57  ;;  %v10310_v56 = vld [vmem:[#allocation2 + $0xeb4] ss:$28 sps:$4 sm:$0xff]  }
  0x95   :  { %2512 = vmatprep.subr.bf16.mxu1 %v10292_v6  ;;  %v10317_v57 = vld [vmem:[#allocation2 + $0xf58] ss:$28 sps:$4 sm:$0xff]  }
  0x96   :  { %9165 = vmatmul.mubr.msk.bf16.gmra.mxu0 %vm2225_vm1, %v11615_v12  ;;  %v10313_v6 = vld [vmem:[#allocation2 + $0xe7c] ss:$28 sps:$4 sm:$0xff]  }
  0x97   :  { %2574 = vmatpush1.bf16.msra.mxu0 %v10287_v9  ;;  %2465 = vmatprep.mubr.bf16.mxu0 %v14011_v0  ;;  %v10328_v9 = vld [vmem:[#allocation2 + $0xf24] ss:$28 sps:$4 sm:$0xff]  }
  0x98   :  { %2513 = vmatpush2.bf16.msra.mxu1 %v10290_v10  ;;  %2575 = vmatprep.subr.bf16.mxu0 %v10295_v14  ;;  %v10340_v10 = vld [vmem:[#allocation2 + $0xeec] ss:$28 sps:$4 sm:$0xff]   ;;  %v10311_v14 = vld [vmem:[#allocation2 + $0xe78] ss:$28 sps:$4 sm:$0xff]  }
  0x99   :  { %2514 = vmatprep.subr.bf16.mxu1 %v10298_v22  ;;  %v10346_v22 = vld [vmem:[#allocation2 + $0xcfc] ss:$28 sps:$4 sm:$0xff]  }
  0x9b   :  { %2576 = vmatpush1.bf16.msra.mxu0 %v10293_v25  ;;  %v10314_v25 = vld [vmem:[#allocation2 + $0xe40] ss:$28 sps:$4 sm:$0xff]  }
  0x9c   :  { %2515 = vmatpush2.bf16.msra.mxu1 %v10296_v1  ;;  %2577 = vmatprep.subr.bf16.mxu0 %v10301_v28  ;;  %v10322_v1 = vld [vmem:[#allocation2 + $0xe0c] ss:$28 sps:$4 sm:$0xff]  }
  0x9d   :  { %2654 = vmatprep.subr.bf16.mxu1 %v10307_v39  ;;  %v10320_v28 = vld [vmem:[#allocation2 + $0xe08] ss:$28 sps:$4 sm:$0xff]   ;;  %v10331_v39 = vld [vmem:[#allocation2 + $0xd9c] ss:$28 sps:$4 sm:$0xff]  }
  0x9e   :  { %9166 = vmatmul.mubr.msk.bf16.gmra.mxu0 %vm2225_vm1, %v11622_v44 }
  0x9f   :  { %2517 = vmatmul.mubr.bf16.vlgmr.msra.gmra.mxu1 %v11443_v30  ;;  %2578 = vmatpush1.bf16.msra.mxu0 %v10299_v40  ;;  %v14009_v40 = vmov 0.0  }
  0xa0   :  { %2475 = vmatprep.mubr.bf16.mxu0 %v14011_v0  ;;  %2579 = vmatprep.subr.bf16.mxu0 %v10304_v34  ;;  %8384 = vst [vmem:[%s14007_s4 + $0x1c0] sm:$0xc0] %v14009_v40  ;;  %8385 = vst [vmem:[%s14007_s4 + $0x1c8] sm:$0xc0] %v14009_v40  ;;  %v10329_v34 = vld [vmem:[#allocation2 + $0xd98] ss:$28 sps:$4 sm:$0xff]  }
  0xa1   :  { %2526 = vmatprep.mubr.bf16.mxu1 %v11459_v37  ;;  %2655 = vmatpush1.bf16.msra.mxu1 %v10305_v35  ;;  %8386 = vst [vmem:[%s14007_s4 + $0x1d0] sm:$0xc0] %v14009_v40  ;;  %8387 = vst [vmem:[%s14007_s4 + $0x1d8] sm:$0xc0] %v14009_v40  ;;  %v10334_v35 = vld [vmem:[#allocation2 + $0xd64] ss:$28 sps:$4 sm:$0xff]  }
  0xa2   :  { %2656 = vmatprep.subr.bf16.mxu1 %v10319_v52  ;;  %8388 = vst [vmem:[%s14007_s4 + $0x1e0] sm:$0xc0] %v14009_v40  ;;  %8389 = vst [vmem:[%s14007_s4 + $0x1e8] sm:$0xc0] %v14009_v40  ;;  %v10337_v52 = vld [vmem:[#allocation2 + $0xd2c] ss:$28 sps:$4 sm:$0xff]  }
  0xa3   :  { %2580 = vmatpush1.bf16.msra.mxu0 %v10302_v55  ;;  %8390 = vst [vmem:[%s14007_s4 + $0x1f0] sm:$0xc0] %v14009_v40  ;;  %v10335_v55 = vld [vmem:[#allocation2 + $0xd28] ss:$28 sps:$4 sm:$0xff]  }
  0xa4   :  { %2581 = vmatprep.subr.bf16.mxu0 %v10310_v56  ;;  %v10343_v56 = vld [vmem:[#allocation2 + $0x97c] ss:$28 sps:$4 sm:$0xff]  }
  0xa5   :  { %2657 = vmatpush1.bf16.msra.mxu1 %v10317_v57  ;;  %v10341_v57 = vld [vmem:[#allocation2 + $0x978] ss:$28 sps:$4 sm:$0xff]  }
  0xa6   :  { %9167 = vmatmul.mubr.msk.bf16.gmra.mxu0 %vm2225_vm1, %v11629_v4  ;;  %2658 = vmatprep.subr.bf16.mxu1 %v10328_v9  ;;  %v10352_v9 = vld [vmem:[#allocation2 + $0xcc4] ss:$28 sps:$4 sm:$0xff]  }
  0xa7   :  { %2527 = vmatmul.mubr.bf16.gmra.mxu1 %v11485_v3  ;;  %2582 = vmatpush2.bf16.msra.mxu0 %v10308_v62  ;;  %v10344_v62 = vld [vmem:[#allocation2 + $0xcf8] ss:$28 sps:$4 sm:$0xff]  }
  0xa8   :  { %2536 = vmatprep.mubr.bf16.mxu1 %v11496_v13  ;;  %2583 = vmatprep.subr.bf16.mxu0 %v10313_v6  ;;  %v10349_v6 = vld [vmem:[#allocation2 + $0x944] ss:$28 sps:$4 sm:$0xff]  }
  0xa9   :  { %2659 = vmatpush1.bf16.msra.mxu1 %v10326_v5  ;;  %2597 = vmatprep.mubr.bf16.mxu0 %v11378_v38  ;;  %v10347_v5 = vld [vmem:[#allocation2 + $0x940] ss:$28 sps:$4 sm:$0xff]  }
  0xaa   :  { %2660 = vmatprep.subr.bf16.mxu1 %v10340_v10  ;;  %v10350_v10 = vld [vmem:[#allocation2 + $0xcc0] ss:$28 sps:$4 sm:$0xff]  }
  0xab   :  { %2584 = vmatpush2.bf16.msra.mxu0 %v10311_v14  ;;  %v10355_v14 = vld [vmem:[#allocation2 + $0x90c] ss:$28 sps:$4 sm:$0xff]  }
  0xac   :  { %2585 = vmatprep.subr.bf16.mxu0 %v10316_v16  ;;  %v10358_v16 = vld [vmem:[#allocation2 + $0xc8c] ss:$28 sps:$4 sm:$0xff]  }
  0xad   :  { %2661 = vmatpush1.bf16.msra.mxu1 %v10338_v17  ;;  %v10353_v17 = vld [vmem:[#allocation2 + $0x908] ss:$28 sps:$4 sm:$0xff]  }
  0xae   :  { %2808 = vmatprep.subr.bf16.mxu1 %v10346_v22  ;;  %v10356_v22 = vld [vmem:[#allocation2 + $0xc88] ss:$28 sps:$4 sm:$0xff]  }
  0xaf   :  { %2537 = vmatmul.mubr.bf16.gmra.mxu1 %v11519_v45  ;;  %2586 = vmatpush2.bf16.msra.mxu0 %v10314_v25  ;;  %v10361_v25 = vld [vmem:[#allocation2 + $0x8d4] ss:$28 sps:$4 sm:$0xff]  }
  0xb0   :  { %2546 = vmatprep.mubr.bf16.mxu1 %v11529_v58  ;;  %2587 = vmatprep.subr.bf16.mxu0 %v10322_v1  ;;  %v10364_v1 = vld [vmem:[#allocation2 + $0xc54] ss:$28 sps:$4 sm:$0xff]  }
  0xb3   :  { %2588 = vmatpush2.bf16.msra.mxu0 %v10320_v28  ;;  %v10359_v28 = vld [vmem:[#allocation2 + $0x8d0] ss:$28 sps:$4 sm:$0xff]  }
  0xb4   :  { %2589 = vmatprep.subr.bf16.mxu0 %v10325_v31  ;;  %v10362_v31 = vld [vmem:[#allocation2 + $0xc50] ss:$28 sps:$4 sm:$0xff]  }
  0xb7   :  { %2547 = vmatmul.mubr.bf16.gmra.mxu1 %v11547_v21  ;;  %2590 = vmatpush2.bf16.msra.mxu0 %v10323_v33  ;;  %v10367_v33 = vld [vmem:[#allocation2 + $0x89c] ss:$28 sps:$4 sm:$0xff]  }
  0xb8   :  { %2556 = vmatprep.mubr.bf16.mxu1 %v11552_v23  ;;  %2591 = vmatprep.subr.bf16.mxu0 %v10331_v39  ;;  %v10370_v39 = vld [vmem:[#allocation2 + $0xc1c] ss:$28 sps:$4 sm:$0xff]  }
  0xbb   :  { %2592 = vmatpush2.bf16.msra.mxu0 %v10329_v34  ;;  %v10365_v34 = vld [vmem:[#allocation2 + $0x898] ss:$28 sps:$4 sm:$0xff]  }
  0xbc   :  { %2593 = vmatprep.subr.bf16.mxu0 %v10334_v35  ;;  %v10368_v35 = vld [vmem:[#allocation2 + $0xc18] ss:$28 sps:$4 sm:$0xff]  }
  0xbf   :  { %2557 = vmatmul.mubr.bf16.gmra.mxu1 %v11570_v41  ;;  %2594 = vmatpush2.bf16.msra.mxu0 %v10332_v51  ;;  %v10373_v51 = vld [vmem:[#allocation2 + $0x864] ss:$28 sps:$4 sm:$0xff]  }
  0xc0   :  { %2678 = vmatprep.mubr.bf16.mxu1 %v14011_v0  ;;  %2595 = vmatprep.subr.bf16.mxu0 %v10337_v52  ;;  %v10376_v52 = vld [vmem:[#allocation2 + $0xbe4] ss:$28 sps:$4 sm:$0xff]  }
  0xc3   :  { %2596 = vmatpush2.bf16.msra.mxu0 %v10335_v55  ;;  %v10371_v55 = vld [vmem:[#allocation2 + $0x860] ss:$28 sps:$4 sm:$0xff]  }
  0xc4   :  { %2727 = vmatprep.subr.bf16.mxu0 %v10343_v56  ;;  %v10374_v56 = vld [vmem:[#allocation2 + $0xbe0] ss:$28 sps:$4 sm:$0xff]  }
  0xc6   :  { %2598 = vmatmul.mubr.bf16.vlgmr.msra.gmra.mxu0 %v11446_v24 }
  0xc7   :  { %9168 = vmatmul.mubr.msk.bf16.vlgmr.msra.gmra.mxu1 %vm2225_vm1, %v11588_v11  ;;  %2728 = vmatpush1.bf16.msra.mxu0 %v10341_v57  ;;  %v10379_v57 = vld [vmem:[#allocation2 + $0x82c] ss:$28 sps:$4 sm:$0xff]  }
  0xc8   :  { %2809 = vmatpush1.bf16.msra.mxu1 %v10344_v62  ;;  %2729 = vmatprep.subr.bf16.mxu0 %v10349_v6  ;;  %v10382_v62 = vld [vmem:[#allocation2 + $0xbac] ss:$28 sps:$4 sm:$0xff]  }
  0xc9   :  { %2810 = vmatprep.subr.bf16.mxu1 %v10352_v9  ;;  %2607 = vmatprep.mubr.bf16.mxu0 %v11466_v43  ;;  %v10377_v6 = vld [vmem:[#allocation2 + $0x828] ss:$28 sps:$4 sm:$0xff]  }
  0xca   :  { %2688 = vmatprep.mubr.bf16.mxu1 %v14011_v0  ;;  %v10380_v9 = vld [vmem:[#allocation2 + $0xba8] ss:$28 sps:$4 sm:$0xff]  }
  0xcb   :  { %2730 = vmatpush1.bf16.msra.mxu0 %v10347_v5  ;;  %v10385_v5 = vld [vmem:[#allocation2 + $0x7f4] ss:$28 sps:$4 sm:$0xff]  }
  0xcc   :  { %2811 = vmatpush1.bf16.msra.mxu1 %v10350_v10  ;;  %2731 = vmatprep.subr.bf16.mxu0 %v10355_v14  ;;  %v10388_v10 = vld [vmem:[#allocation2 + $0xb74] ss:$28 sps:$4 sm:$0xff]  }
  0xcd   :  { %2812 = vmatprep.subr.bf16.mxu1 %v10358_v16  ;;  %v10383_v14 = vld [vmem:[#allocation2 + $0x7f0] ss:$28 sps:$4 sm:$0xff]  }
  0xce   :  { %2608 = vmatmul.mubr.bf16.gmra.mxu0 %v11490_v7  ;;  %v10386_v16 = vld [vmem:[#allocation2 + $0xb70] ss:$28 sps:$4 sm:$0xff]  }
  0xcf   :  { %9169 = vmatmul.mubr.msk.bf16.gmra.mxu1 %vm2225_vm1, %v11604_v48  ;;  %2732 = vmatpush1.bf16.msra.mxu0 %v10353_v17  ;;  %v10391_v17 = vld [vmem:[#allocation2 + $0xb3c] ss:$28 sps:$4 sm:$0xff]  }
  0xd0   :  { %2813 = vmatpush1.bf16.msra.mxu1 %v10356_v22  ;;  %2733 = vmatprep.subr.bf16.mxu0 %v10361_v25  ;;  %v10394_v22 = vld [vmem:[#allocation2 + $0xebc] ss:$28 sps:$4 sm:$0xff]  }
  0xd1   :  { %2814 = vmatprep.subr.bf16.mxu1 %v10364_v1  ;;  %2617 = vmatprep.mubr.bf16.mxu0 %v11506_v20  ;;  %v10389_v25 = vld [vmem:[#allocation2 + $0xb38] ss:$28 sps:$4 sm:$0xff]  }
  0xd2   :  { %2698 = vmatprep.mubr.bf16.mxu1 %v14011_v0  ;;  %v10392_v1 = vld [vmem:[#allocation2 + $0xeb8] ss:$28 sps:$4 sm:$0xff]  }
  0xd3   :  { %2734 = vmatpush1.bf16.msra.mxu0 %v10359_v28  ;;  %v10397_v28 = vld [vmem:[#allocation2 + $0xb04] ss:$28 sps:$4 sm:$0xff]  }
  0xd4   :  { %2815 = vmatpush1.bf16.msra.mxu1 %v10362_v31  ;;  %2735 = vmatprep.subr.bf16.mxu0 %v10367_v33  ;;  %v10400_v31 = vld [vmem:[#allocation2 + $0xe84] ss:$28 sps:$4 sm:$0xff]  }
  0xd5   :  { %2816 = vmatprep.subr.bf16.mxu1 %v10370_v39  ;;  %v10395_v33 = vld [vmem:[#allocation2 + $0xb00] ss:$28 sps:$4 sm:$0xff]  }
  0xd6   :  { %2618 = vmatmul.mubr.bf16.gmra.mxu0 %v11523_v50  ;;  %v10398_v39 = vld [vmem:[#allocation2 + $0xe80] ss:$28 sps:$4 sm:$0xff]  }
  0xd7   :  { %9170 = vmatmul.mubr.msk.bf16.gmra.mxu1 %vm2225_vm1, %v11615_v12  ;;  %2736 = vmatpush1.bf16.msra.mxu0 %v10365_v34  ;;  %v10403_v34 = vld [vmem:[#allocation2 + $0xacc] ss:$28 sps:$4 sm:$0xff]  }
  0xd8   :  { %2817 = vmatpush1.bf16.msra.mxu1 %v10368_v35  ;;  %2737 = vmatprep.subr.bf16.mxu0 %v10373_v51  ;;  %v10406_v35 = vld [vmem:[#allocation2 + $0xe4c] ss:$28 sps:$4 sm:$0xff]  }
  0xd9   :  { %2818 = vmatprep.subr.bf16.mxu1 %v10376_v52  ;;  %2627 = vmatprep.mubr.bf16.mxu0 %v11532_v61  ;;  %v10401_v51 = vld [vmem:[#allocation2 + $0xac8] ss:$28 sps:$4 sm:$0xff]  }
  0xda   :  { %2708 = vmatprep.mubr.bf16.mxu1 %v14011_v0  ;;  %v10404_v52 = vld [vmem:[#allocation2 + $0xe48] ss:$28 sps:$4 sm:$0xff]  }
  0xdb   :  { %2738 = vmatpush1.bf16.msra.mxu0 %v10371_v55  ;;  %v10409_v55 = vld [vmem:[#allocation2 + $0xa94] ss:$28 sps:$4 sm:$0xff]  }
  0xdc   :  { %2819 = vmatpush1.bf16.msra.mxu1 %v10374_v56  ;;  %2739 = vmatprep.subr.bf16.mxu0 %v10379_v57  ;;  %v10412_v56 = vld [vmem:[#allocation2 + $0xe14] ss:$28 sps:$4 sm:$0xff]  }
  0xdd   :  { %2820 = vmatprep.subr.bf16.mxu1 %v10382_v62  ;;  %v10407_v57 = vld [vmem:[#allocation2 + $0xa90] ss:$28 sps:$4 sm:$0xff]  }
  0xde   :  { %2628 = vmatmul.mubr.bf16.gmra.mxu0 %v11550_v59  ;;  %v10410_v62 = vld [vmem:[#allocation2 + $0xe10] ss:$28 sps:$4 sm:$0xff]  }
  0xdf   :  { %9171 = vmatmul.mubr.msk.bf16.gmra.mxu1 %vm2225_vm1, %v11622_v44  ;;  %2740 = vmatpush1.bf16.msra.mxu0 %v10377_v6  ;;  %v10415_v6 = vld [vmem:[#allocation2 + $0xa5c] ss:$28 sps:$4 sm:$0xff]  }
  0xe0   :  { %2821 = vmatpush1.bf16.msra.mxu1 %v10380_v9  ;;  %2741 = vmatprep.subr.bf16.mxu0 %v10385_v5  ;;  %v10418_v9 = vld [vmem:[#allocation2 + $0xddc] ss:$28 sps:$4 sm:$0xff]  }
  0xe1   :  { %2822 = vmatprep.subr.bf16.mxu1 %v10388_v10  ;;  %2637 = vmatprep.mubr.bf16.mxu0 %v11554_v15  ;;  %v10413_v5 = vld [vmem:[#allocation2 + $0xa58] ss:$28 sps:$4 sm:$0xff]  }
  0xe2   :  { %2718 = vmatprep.mubr.bf16.mxu1 %v14011_v0  ;;  %v10416_v10 = vld [vmem:[#allocation2 + $0xdd8] ss:$28 sps:$4 sm:$0xff]  }
  0xe3   :  { %2742 = vmatpush1.bf16.msra.mxu0 %v10383_v14  ;;  %v10421_v14 = vld [vmem:[#allocation2 + $0xa24] ss:$28 sps:$4 sm:$0xff]  }
  0xe4   :  { %2823 = vmatpush1.bf16.msra.mxu1 %v10386_v16  ;;  %2743 = vmatprep.subr.bf16.mxu0 %v10391_v17  ;;  %v10424_v16 = vld [vmem:[#allocation2 + $0xda4] ss:$28 sps:$4 sm:$0xff]  }
  0xe5   :  { %2824 = vmatprep.subr.bf16.mxu1 %v10394_v22  ;;  %v10419_v17 = vld [vmem:[#allocation2 + $0xa20] ss:$28 sps:$4 sm:$0xff]  }
  0xe6   :  { %2638 = vmatmul.mubr.bf16.gmra.mxu0 %v11572_v42  ;;  %v10422_v22 = vld [vmem:[#allocation2 + $0xda0] ss:$28 sps:$4 sm:$0xff]  }
  0xe7   :  { %9172 = vmatmul.mubr.msk.bf16.gmra.mxu1 %vm2225_vm1, %v11629_v4  ;;  %2744 = vmatpush2.bf16.msra.mxu0 %v10389_v25  ;;  %v10427_v25 = vld [vmem:[#allocation2 + $0x9ec] ss:$28 sps:$4 sm:$0xff]  }
  0xe8   :  { %2825 = vmatpush2.bf16.msra.mxu1 %v10392_v1  ;;  %2745 = vmatprep.subr.bf16.mxu0 %v10397_v28  ;;  %v10430_v1 = vld [vmem:[#allocation2 + $0xd6c] ss:$28 sps:$4 sm:$0xff]  }
  0xe9   :  { %2826 = vmatprep.subr.bf16.mxu1 %v10400_v31  ;;  %2759 = vmatprep.mubr.bf16.mxu0 %v11370_v29  ;;  %v10425_v28 = vld [vmem:[#allocation2 + $0x9e8] ss:$28 sps:$4 sm:$0xff]  }
  0xea   :  { %2840 = vmatprep.mubr.bf16.mxu1 %v11378_v38  ;;  %v10428_v31 = vld [vmem:[#allocation2 + $0xd68] ss:$28 sps:$4 sm:$0xff]  }
  0xeb   :  { %2746 = vmatpush2.bf16.msra.mxu0 %v10395_v33  ;;  %v10433_v33 = vld [vmem:[#allocation2 + $0x9b4] ss:$28 sps:$4 sm:$0xff]  }
  0xec   :  { %2827 = vmatpush2.bf16.msra.mxu1 %v10398_v39  ;;  %2747 = vmatprep.subr.bf16.mxu0 %v10403_v34  ;;  %v10436_v39 = vld [vmem:[#allocation2 + $0xd34] ss:$28 sps:$4 sm:$0xff]  }
  0xed   :  { %2828 = vmatprep.subr.bf16.mxu1 %v10406_v35  ;;  %v10431_v34 = vld [vmem:[#allocation2 + $0x9b0] ss:$28 sps:$4 sm:$0xff]  }
  0xee   :  { %v10434_v35 = vld [vmem:[#allocation2 + $0xd30] ss:$28 sps:$4 sm:$0xff]  }
  0xef   :  { %2748 = vmatpush2.bf16.msra.mxu0 %v10401_v51  ;;  %v10439_v51 = vld [vmem:[#allocation2 + $0xf9c] ss:$28 sps:$4 sm:$0xff]  }
  0xf0   :  { %2829 = vmatpush2.bf16.msra.mxu1 %v10404_v52  ;;  %2749 = vmatprep.subr.bf16.mxu0 %v10409_v55  ;;  %v10440_v52 = vld [vmem:[#allocation2 + $0xb40] ss:$28 sps:$4 sm:$0xff]   ;;  %v10437_v55 = vld [vmem:[#allocation2 + $0xf98] ss:$28 sps:$4 sm:$0xff]  }
  0xf1   :  { %2830 = vmatprep.subr.bf16.mxu1 %v10412_v56  ;;  %v10441_v56 = vld [vmem:[#allocation2 + $0x980] ss:$28 sps:$4 sm:$0xff]  }
  0xf3   :  { %2750 = vmatpush2.bf16.msra.mxu0 %v10407_v57  ;;  %v10442_v57 = vld [vmem:[#allocation2 + $0xf60] ss:$28 sps:$4 sm:$0xff]  }
  0xf4   :  { %2831 = vmatpush2.bf16.msra.mxu1 %v10410_v62  ;;  %2751 = vmatprep.subr.bf16.mxu0 %v10415_v6  ;;  %v10444_v62 = vld [vmem:[#allocation2 + $0xf64] ss:$28 sps:$4 sm:$0xff]  }
  0xf5   :  { %2832 = vmatprep.subr.bf16.mxu1 %v10418_v9  ;;  %v10445_v6 = vld [vmem:[#allocation2 + $0xb08] ss:$28 sps:$4 sm:$0xff]  }
  0xf6   :  { %v10446_v9 = vld [vmem:[#allocation2 + $0x948] ss:$28 sps:$4 sm:$0xff]  }
  0xf7   :  { %2752 = vmatpush2.bf16.msra.mxu0 %v10413_v5  ;;  %v10451_v5 = vld [vmem:[#allocation2 + $0xf2c] ss:$28 sps:$4 sm:$0xff]  }
  0xf8   :  { %2833 = vmatpush2.bf16.msra.mxu1 %v10416_v10  ;;  %2753 = vmatprep.subr.bf16.mxu0 %v10421_v14  ;;  %v10447_v10 = vld [vmem:[#allocation2 + $0xad0] ss:$28 sps:$4 sm:$0xff]  }
  0xf9   :  { %2834 = vmatprep.subr.bf16.mxu1 %v10424_v16  ;;  %v10448_v14 = vld [vmem:[#allocation2 + $0x910] ss:$28 sps:$4 sm:$0xff]   ;;  %v10449_v16 = vld [vmem:[#allocation2 + $0xf28] ss:$28 sps:$4 sm:$0xff]  }
  0xfb   :  { %2754 = vmatpush2.bf16.msra.mxu0 %v10419_v17  ;;  %v10452_v17 = vld [vmem:[#allocation2 + $0xa98] ss:$28 sps:$4 sm:$0xff]  }
  0xfc   :  { %2835 = vmatpush2.bf16.msra.mxu1 %v10422_v22  ;;  %2755 = vmatprep.subr.bf16.mxu0 %v10427_v25  ;;  %v10460_v22 = vld [vmem:[#allocation2 + $0xef4] ss:$28 sps:$4 sm:$0xff]  }
  0xfd   :  { %2836 = vmatprep.subr.bf16.mxu1 %v10430_v1  ;;  %v10453_v25 = vld [vmem:[#allocation2 + $0x8d8] ss:$28 sps:$4 sm:$0xff]   ;;  %v10458_v1 = vld [vmem:[#allocation2 + $0xef0] ss:$28 sps:$4 sm:$0xff]  }
  0xff   :  { %2756 = vmatpush2.bf16.msra.mxu0 %v10425_v28  ;;  %v10454_v28 = vld [vmem:[#allocation2 + $0xa60] ss:$28 sps:$4 sm:$0xff]  }
 0x100   :  { %2837 = vmatpush2.bf16.msra.mxu1 %v10428_v31  ;;  %2757 = vmatprep.subr.bf16.mxu0 %v10433_v33  ;;  %v10465_v31 = vld [vmem:[#allocation2 + $0xec0] ss:$28 sps:$4 sm:$0xff]  }
 0x101   :  { %2838 = vmatprep.subr.bf16.mxu1 %v10436_v39  ;;  %v10455_v33 = vld [vmem:[#allocation2 + $0x8a0] ss:$28 sps:$4 sm:$0xff]   ;;  %v10456_v39 = vld [vmem:[#allocation2 + $0xa28] ss:$28 sps:$4 sm:$0xff]  }
 0x103   :  { %2758 = vmatpush2.bf16.msra.mxu0 %v10431_v34  ;;  %v10457_v34 = vld [vmem:[#allocation2 + $0x868] ss:$28 sps:$4 sm:$0xff]  }
 0x104   :  { %2839 = vmatpush2.bf16.msra.mxu1 %v10434_v35  ;;  %2897 = vmatprep.subr.bf16.mxu0 %v10439_v51  ;;  %v10461_v35 = vld [vmem:[#allocation2 + $0x9f0] ss:$28 sps:$4 sm:$0xff]  }
 0x105   :  { %9728 = vmatprep.subr.bf16.mxu1 %v10440_v52  ;;  %v10462_v51 = vld [vmem:[#allocation2 + $0x830] ss:$28 sps:$4 sm:$0xff]   ;;  %v10463_v52 = vld [vmem:[#allocation2 + $0x9b8] ss:$28 sps:$4 sm:$0xff]  }
 0x106   :  { %2760 = vmatmul.mubr.bf16.vlgmr.msra.gmra.mxu0 %v11443_v30 }
 0x107   :  { %2841 = vmatmul.mubr.bf16.vlgmr.msra.gmra.mxu1 %v11446_v24  ;;  %2898 = vmatpush1.bf16.msra.mxu0 %v10437_v55 }
 0x108   :  { %2769 = vmatprep.mubr.bf16.mxu0 %v11459_v37  ;;  %2850 = vmatprep.mubr.bf16.mxu1 %v11466_v43 }
 0x109   :  { %9729 = vmatpush3.bf16.msra.mxu1 %v10441_v56  ;;  %2899 = vmatprep.subr.bf16.mxu0 %v10444_v62 }
 0x10a   :  { %9730 = vmatprep.subr.bf16.mxu1 %v10445_v6 }
 0x10b   :  { %2900 = vmatpush1.bf16.msra.mxu0 %v10442_v57 }
 0x10c   :  { %2901 = vmatprep.subr.bf16.mxu0 %v10451_v5 }
 0x10d   :  { %9731 = vmatpush3.bf16.msra.mxu1 %v10446_v9  ;;  %v10464_v9 = vld [vmem:[#allocation2 + $0x7f8] ss:$28 sps:$4 sm:$0xff]  }
 0x10e   :  { %9732 = vmatprep.subr.bf16.mxu1 %v10447_v10  ;;  %2770 = vmatmul.mubr.bf16.gmra.mxu0 %v11485_v3 }
 0x10f   :  { %2851 = vmatmul.mubr.bf16.gmra.mxu1 %v11490_v7  ;;  %2779 = vmatprep.mubr.bf16.mxu0 %v11496_v13 }
 0x110   :  { %2860 = vmatprep.mubr.bf16.mxu1 %v11506_v20  ;;  %2902 = vmatpush1.bf16.msra.mxu0 %v10449_v16 }
 0x111   :  { %9733 = vmatpush3.bf16.msra.mxu1 %v10448_v14  ;;  %2903 = vmatprep.subr.bf16.mxu0 %v10460_v22 }
 0x112   :  { %9734 = vmatprep.subr.bf16.mxu1 %v10452_v17 }
 0x114   :  { %2904 = vmatpush1.bf16.msra.mxu0 %v10458_v1 }
 0x115   :  { %9735 = vmatpush3.bf16.msra.mxu1 %v10453_v25  ;;  %9774 = vmatprep.subr.bf16.mxu0 %v10465_v31 }
 0x116   :  { %9736 = vmatprep.subr.bf16.mxu1 %v10454_v28  ;;  %2780 = vmatmul.mubr.bf16.gmra.mxu0 %v11519_v45 }
 0x117   :  { %2861 = vmatmul.mubr.bf16.gmra.mxu1 %v11523_v50  ;;  %2789 = vmatprep.mubr.bf16.mxu0 %v11529_v58 }
 0x118   :  { %2870 = vmatprep.mubr.bf16.mxu1 %v11532_v61 }
 0x119   :  { %9737 = vmatpush3.bf16.msra.mxu1 %v10455_v33 }
 0x11a   :  { %9738 = vmatprep.subr.bf16.mxu1 %v10456_v39 }
 0x11d   :  { %9739 = vmatpush3.bf16.msra.mxu1 %v10457_v34  ;;  %v10466_v34 = vld [vmem:[#allocation2 + $0xd00] ss:$28 sps:$4 sm:$0xff]  }
 0x11e   :  { %9740 = vmatprep.subr.bf16.mxu1 %v10461_v35  ;;  %2790 = vmatmul.mubr.bf16.gmra.mxu0 %v11547_v21  ;;  %v2275_v55 = vpop.f32.mrf.mxu0 }
 0x11f   :  { %2871 = vmatmul.mubr.bf16.gmra.mxu1 %v11550_v59  ;;  %v2356_v56 = vpop.f32.mrf.mxu1  ;;  %2799 = vmatprep.mubr.bf16.mxu0 %v11552_v23 }
 0x120   :  { %v11709_v57 = vadd.f32 %v2356_v56, %v2275_v55  ;;  %2880 = vmatprep.mubr.bf16.mxu1 %v11554_v15  ;;  %v2277_v62 = vpop.f32.mrf.mxu0 }
 0x121   :  { %v2358_v6 = vpop.f32.mrf.mxu1  ;;  %9741 = vmatpush3.bf16.msra.mxu1 %v10462_v51 }
 0x122   :  { %v11713_v5 = vadd.f32 %v2358_v6, %v2277_v62  ;;  %9742 = vmatprep.subr.bf16.mxu1 %v10463_v52  ;;  %v2279_v10 = vpop.f32.mrf.mxu0  ;;  %v10467_v62 = vld [vmem:[#allocation2 + $0xe88] ss:$28 sps:$4 sm:$0xff]  }
 0x123   :  { %v2360_v14 = vpop.f32.mrf.mxu1  ;;  %v10468_v6 = vld [vmem:[#allocation2 + $0xcc8] ss:$28 sps:$4 sm:$0xff]  }
 0x124   :  { %v11715_v16 = vadd.f32 %v2360_v14, %v2279_v10  ;;  %v11717_v17 = vpop.f32.mrf.mxu0 }
 0x125   :  { %14053 = vst [vmem:[#allocation11_spill] sm:$0xff] %v11717_v17  ;;  %v11719_v22 = vpop.f32.mrf.mxu1  ;;  %9743 = vmatpush3.bf16.msra.mxu1 %v10464_v9  ;;  %v10469_v9 = vld [vmem:[#allocation2 + $0xfa0] ss:$28 sps:$4 sm:$0xff]  }
 0x126   :  { %14054 = vst [vmem:[#allocation12_spill] sm:$0xff] %v11719_v22  ;;  %10031 = vmatprep.subr.bf16.mxu1 %v14009_v40  ;;  %2800 = vmatmul.mubr.bf16.gmra.mxu0 %v11570_v41  ;;  %v2285_v25 = vpop.f32.mrf.mxu0  ;;  %v10481_v22 = vld [vmem:[#allocation2 + $0xbb0] ss:$28 sps:$4 sm:$0xff]  }
 0x127   :  { %2881 = vmatmul.mubr.bf16.gmra.mxu1 %v11572_v42  ;;  %v2366_v1 = vpop.f32.mrf.mxu1  ;;  %2921 = vmatprep.mubr.bf16.mxu0 %v14011_v0 }
 0x128   :  { %v11724_v28 = vadd.f32 %v2366_v1, %v2285_v25  ;;  %3002 = vmatprep.mubr.bf16.mxu1 %v11370_v29  ;;  %v2287_v31 = vpop.f32.mrf.mxu0  ;;  %v10470_v25 = vld [vmem:[#allocation2 + $0xe50] ss:$28 sps:$4 sm:$0xff]   ;;  %v10474_v1 = vld [vmem:[#allocation2 + $0xf68] ss:$28 sps:$4 sm:$0xff]  }
 0x129   :  { %v2368_v33 = vpop.f32.mrf.mxu1 }
 0x12a   :  { %v11728_v39 = vadd.f32 %v2368_v33, %v2287_v31  ;;  %v2289_v35 = vpop.f32.mrf.mxu0 }
 0x12b   :  { %v2370_v51 = vpop.f32.mrf.mxu1 }
 0x12c   :  { %v11730_v52 = vadd.f32 %v2370_v51, %v2289_v35  ;;  %v11732_v55 = vpop.f32.mrf.mxu0 }
 0x12d   :  { %14055 = vst [vmem:[#allocation13_spill] sm:$0xff] %v11732_v55  ;;  %v11734_v56 = vpop.f32.mrf.mxu1 }
 0x12e   :  { %14056 = vst [vmem:[#allocation14_spill] sm:$0xff] %v11734_v56  ;;  %9173 = vmatmul.mubr.msk.bf16.vlgmr.msra.gmra.mxu0 %vm2225_vm1, %v11588_v11  ;;  %v2295_v29 = vpop.f32.mrf.mxu0 }
 0x12f   :  { %3003 = vmatmul.mubr.bf16.vlgmr.msra.gmra.mxu1 %v11443_v30  ;;  %v2376_v10 = vpop.f32.mrf.mxu1  ;;  %9775 = vmatpush3.bf16.msra.mxu0 %v10466_v34  ;;  %v14057_v30 = vmov 0.0   ;;  %v10471_v34 = vld [vmem:[#allocation2 + $0xc90] ss:$28 sps:$4 sm:$0xff]  }
 0x130   :  { %v11739_v14 = vadd.f32 %v2376_v10, %v2295_v29  ;;  %2931 = vmatprep.mubr.bf16.mxu0 %v14011_v0  ;;  %v2297_v31 = vpop.f32.mrf.mxu0  ;;  %9776 = vmatprep.subr.bf16.mxu0 %v10467_v62  ;;  %v10472_v0 = vld [vmem:[#allocation2 + $0xe18] ss:$28 sps:$4 sm:$0xff]   ;;  %v10479_v62 = vld [vmem:[#allocation2 + $0xf30] ss:$28 sps:$4 sm:$0xff]  }
 0x131   :  { %v2378_v33 = vpop.f32.mrf.mxu1  ;;  %3010 = vmatprep.mubr.bf16.mxu1 %v11459_v37  ;;  %10032 = vmatpush3.bf16.msra.mxu1 %v10469_v9 }
 0x132   :  { %v11743_v35 = vadd.f32 %v2378_v33, %v2297_v31  ;;  %v2299_v51 = vpop.f32.mrf.mxu0  ;;  %10033 = vmatprep.subr.bf16.mxu1 %v14057_v30  ;;  %v10475_v33 = vld [vmem:[#allocation2 + $0xde0] ss:$28 sps:$4 sm:$0xff]  }
 0x133   :  { %v2380_v40 = vpop.f32.mrf.mxu1  ;;  %9777 = vmatpush3.bf16.msra.mxu0 %v10468_v6  ;;  %v10473_v6 = vld [vmem:[#allocation2 + $0xc58] ss:$28 sps:$4 sm:$0xff]  }
 0x134   :  { %v11746_v56 = vadd.f32 %v2380_v40, %v2299_v51  ;;  %v11748_v29 = vpop.f32.mrf.mxu0  ;;  %9778 = vmatprep.subr.bf16.mxu0 %v10470_v25  ;;  %v14060_v40 = vmov 0  }
 0x135   :  { %14058 = vst [vmem:[#allocation15_spill] sm:$0xff] %v11748_v29  ;;  %v11750_v10 = vpop.f32.mrf.mxu1  ;;  %10034 = vmatpush3.bf16.msra.mxu1 %v10474_v1 }
 0x136   :  { %14059 = vst [vmem:[#allocation16_spill] sm:$0xff] %v11750_v10  ;;  %9174 = vmatmul.mubr.msk.bf16.gmra.mxu0 %vm2225_vm1, %v11604_v48  ;;  %v2305_v37 = vpop.f32.mrf.mxu0  ;;  %10035 = vmatprep.subr.bf16.mxu1 %v14057_v30 }
 0x137   :  { %3011 = vmatmul.mubr.bf16.gmra.mxu1 %v11485_v3  ;;  %v2386_v9 = vpop.f32.mrf.mxu1  ;;  %9779 = vmatpush3.bf16.msra.mxu0 %v10471_v34  ;;  %v10476_v34 = vld [vmem:[#allocation2 + $0xc20] ss:$28 sps:$4 sm:$0xff]  }
 0x138   :  { %v11755_v31 = vadd.f32 %v2386_v9, %v2305_v37  ;;  %2941 = vmatprep.mubr.bf16.mxu0 %v14060_v40  ;;  %v2307_v51 = vpop.f32.mrf.mxu0  ;;  %3018 = vmatprep.mubr.bf16.mxu1 %v11496_v13  ;;  %v10477_v37 = vld [vmem:[#allocation2 + $0xda8] ss:$28 sps:$4 sm:$0xff]  }
 0x139   :  { %v2388_v10 = vpop.f32.mrf.mxu1  ;;  %9780 = vmatprep.subr.bf16.mxu0 %v10472_v0  ;;  %10036 = vmatpush3.bf16.msra.mxu1 %v10479_v62  ;;  %v10484_v0 = vld [vmem:[#allocation2 + $0xef8] ss:$28 sps:$4 sm:$0xff]   ;;  %v10490_v13 = vld [vmem:[#allocation2 + $0x50c] ss:$28 sps:$4 sm:$0xff]  }
 0x13a   :  { %v11759_v25 = vadd.f32 %v2388_v10, %v2307_v51  ;;  %v2309_v1 = vpop.f32.mrf.mxu0  ;;  %10037 = vmatprep.subr.bf16.mxu1 %v14057_v30 }
 0x13b   :  { %v2390_v3 = vpop.f32.mrf.mxu1  ;;  %9781 = vmatpush3.bf16.msra.mxu0 %v10473_v6  ;;  %v10478_v6 = vld [vmem:[#allocation2 + $0xbe8] ss:$28 sps:$4 sm:$0xff]  }
 0x13c   :  { %v11762_v29 = vadd.f32 %v2390_v3, %v2309_v1  ;;  %v11765_v9 = vpop.f32.mrf.mxu0  ;;  %9782 = vmatprep.subr.bf16.mxu0 %v10475_v33  ;;  %v10480_v33 = vld [vmem:[#allocation2 + $0xd70] ss:$28 sps:$4 sm:$0xff]  }
 0x13d   :  { %14061 = vst [vmem:[#allocation17_spill] sm:$0xff] %v11765_v9  ;;  %v11767_v55 = vpop.f32.mrf.mxu1  ;;  %10038 = vmatpush3.bf16.msra.mxu1 %v10484_v0  ;;  %v10483_v0 = vld [vmem:[#allocation2 + $0xb78] ss:$28 sps:$4 sm:$0xff]  }
 0x13e   :  { %14062 = vst [vmem:[#allocation18_spill] sm:$0xff] %v11767_v55  ;;  %9175 = vmatmul.mubr.msk.bf16.gmra.mxu0 %vm2225_vm1, %v11615_v12  ;;  %v2315_v10 = vpop.f32.mrf.mxu0  ;;  %4575 = vmatprep.subr.bf16.mxu1 %v10490_v13 }
 0x13f   :  { %3019 = vmatmul.mubr.bf16.gmra.mxu1 %v11519_v45  ;;  %v2396_v62 = vpop.f32.mrf.mxu1  ;;  %9783 = vmatpush3.bf16.msra.mxu0 %v10476_v34 }
 0x140   :  { %v11772_v51 = vadd.f32 %v2396_v62, %v2315_v10  ;;  %2951 = vmatprep.mubr.bf16.mxu0 %v14060_v40  ;;  %v2317_v1 = vpop.f32.mrf.mxu0  ;;  %3026 = vmatprep.mubr.bf16.mxu1 %v11529_v58  ;;  %v10482_v62 = vld [vmem:[#allocation2 + $0xd38] ss:$28 sps:$4 sm:$0xff]  }
 0x141   :  { %v2398_v3 = vpop.f32.mrf.mxu1  ;;  %9784 = vmatprep.subr.bf16.mxu0 %v10477_v37 }
 0x142   :  { %v11776_v55 = vadd.f32 %v2398_v3, %v2317_v1  ;;  %v2319_v9 = vpop.f32.mrf.mxu0 }
 0x143   :  { %v2400_v45 = vpop.f32.mrf.mxu1  ;;  %9785 = vmatpush3.bf16.msra.mxu0 %v10478_v6  ;;  %v10487_v6 = vld [vmem:[#allocation2 + $0x18c] ss:$28 sps:$4 sm:$0xff]  }
 0x144   :  { %v2320_v10 = vpop.f32.mrf.mxu0  ;;  %9786 = vmatprep.subr.bf16.mxu0 %v10480_v33  ;;  %v10488_v33 = vld [vmem:[#allocation2 + $0x508] ss:$28 sps:$4 sm:$0xff]  }
 0x145   :  { %v2401_v34 = vpop.f32.mrf.mxu1  ;;  %v10493_v10 = vld [vmem:[#allocation2 + $0x154] ss:$28 sps:$4 sm:$0xff]  }
 0x146   :  { %9176 = vmatmul.mubr.msk.bf16.gmra.mxu0 %vm2225_vm1, %v11622_v44  ;;  %v2437_v58 = vpop.f32.mrf.mxu0 }
 0x147   :  { %3027 = vmatmul.mubr.bf16.gmra.mxu1 %v11547_v21  ;;  %v11782_v37 = vadd.f32 %v2437_v58, %v11709_v57  ;;  %2961 = vmatprep.mubr.bf16.mxu0 %v14060_v40 }
 0x148   :  { %3034 = vmatprep.mubr.bf16.mxu1 %v11552_v23  ;;  %v2439_v9 = vpop.f32.mrf.mxu0  ;;  %9787 = vmatpush3.bf16.msra.mxu0 %v10481_v22  ;;  %v10485_v22 = vld [vmem:[#allocation2 + $0x188] ss:$28 sps:$4 sm:$0xff]  }
 0x149   :  { %v11787_v13 = vadd.f32 %v2439_v9, %v11713_v5  ;;  %9788 = vmatprep.subr.bf16.mxu0 %v10482_v62  ;;  %v10491_v62 = vld [vmem:[#allocation2 + $0x150] ss:$28 sps:$4 sm:$0xff]  }
 0x14a   :  { %v2441_v1 = vpop.f32.mrf.mxu0 }
 0x14b   :  { %v11790_v3 = vadd.f32 %v2441_v1, %v11715_v16  ;;  %v10500_v1 = vld [vmem:[#allocation2 + $0x498] ss:$28 sps:$4 sm:$0xff]  }
 0x14c   :  { %v11792_v21 = vpop.f32.mrf.mxu0  ;;  %9789 = vmatpush3.bf16.msra.mxu0 %v10483_v0 }
 0x14d   :  { %14063 = vst [vmem:[#allocation19_spill] sm:$0xff] %v11792_v21  ;;  %4494 = vmatprep.subr.bf16.mxu0 %v10487_v6  ;;  %v10566_v21 = vld [vmem:[#allocation2 + $0x5b0] ss:$28 sps:$4 sm:$0xff]  }
 0x14e   :  { %9177 = vmatmul.mubr.msk.bf16.gmra.mxu0 %vm2225_vm1, %v11629_v4  ;;  %v2447_v23 = vpop.f32.mrf.mxu0 }
 0x14f   :  { %3035 = vmatmul.mubr.bf16.gmra.mxu1 %v11570_v41  ;;  %v11798_v57 = vadd.f32 %v2447_v23, %v11724_v28  ;;  %3074 = vmatprep.mubr.bf16.mxu0 %v11378_v38  ;;  %v10496_v28 = vld [vmem:[#allocation2 + $0x4d4] ss:$28 sps:$4 sm:$0xff]  }
 0x150   :  { %10039 = vmatprep.mubr.msk.bf16.mxu1 %vm11266_vm2, %v14057_v30  ;;  %v2449_v5 = vpop.f32.mrf.mxu0  ;;  %v10494_v38 = vld [vmem:[#allocation2 + $0x4d0] ss:$28 sps:$4 sm:$0xff]  }
 0x151   :  { %v11804_v16 = vadd.f32 %v2449_v5, %v11728_v39  ;;  %v10499_v39 = vld [vmem:[#allocation2 + $0x11c] ss:$28 sps:$4 sm:$0xff]   ;;  %v10505_v5 = vld [vmem:[#allocation2 + $0xe4] ss:$28 sps:$4 sm:$0xff]  }
 0x152   :  { %v2451_v45 = vpop.f32.mrf.mxu0 }
 0x153   :  { %v11807_v41 = vadd.f32 %v2451_v45, %v11730_v52  ;;  %v10502_v52 = vld [vmem:[#allocation2 + $0x49c] ss:$28 sps:$4 sm:$0xff]  }
 0x154   :  { %v11809_v34 = vpop.f32.mrf.mxu0 }
 0x155   :  { %14064 = vst [vmem:[#allocation20_spill] sm:$0xff] %v11809_v34  ;;  %v10563_v34 = vld [vmem:[#allocation2 + $0x230] ss:$28 sps:$4 sm:$0xff]  }
 0x156   :  { %3075 = vmatmul.mubr.bf16.vlgmr.msra.gmra.mxu0 %v11446_v24  ;;  %v2457_v58 = vpop.f32.mrf.mxu0 }
 0x157   :  { %10040 = vmatmul.mubr.msk.bf16.vlgmr.msra.gmra.mxu1 %vm2225_vm1, %v11588_v11  ;;  %4495 = vmatpush1.bf16.msra.mxu0 %v10485_v22  ;;  %v11815_v9 = vadd.f32 %v2457_v58, %v11739_v14  ;;  %v10497_v14 = vld [vmem:[#allocation2 + $0x118] ss:$28 sps:$4 sm:$0xff]   ;;  %v10503_v22 = vld [vmem:[#allocation2 + $0xe0] ss:$28 sps:$4 sm:$0xff]   ;;  %v10509_v58 = vld [vmem:[#allocation2 + $0xa8] ss:$28 sps:$4 sm:$0xff]  }
 0x158   :  { %4576 = vmatpush1.bf16.msra.mxu1 %v10488_v33  ;;  %v2459_v0 = vpop.f32.mrf.mxu0  ;;  %4496 = vmatprep.subr.bf16.mxu0 %v10493_v10  ;;  %v10506_v33 = vld [vmem:[#allocation2 + $0x460] ss:$28 sps:$4 sm:$0xff]  }
 0x159   :  { %4577 = vmatprep.subr.bf16.mxu1 %v10496_v28  ;;  %v11818_v6 = vadd.f32 %v2459_v0, %v11743_v35  ;;  %3082 = vmatprep.mubr.bf16.mxu0 %v11466_v43  ;;  %v10508_v35 = vld [vmem:[#allocation2 + $0x464] ss:$28 sps:$4 sm:$0xff]  }
 0x15a   :  { %10043 = vmatprep.mubr.msk.bf16.mxu1 %vm11266_vm2, %v14057_v30  ;;  %v2461_v24 = vpop.f32.mrf.mxu0 }
 0x15b   :  { %4497 = vmatpush1.bf16.msra.mxu0 %v10491_v62  ;;  %v11824_v11 = vadd.f32 %v2461_v24, %v11746_v56  ;;  %v10511_v56 = vld [vmem:[#allocation2 + $0xac] ss:$28 sps:$4 sm:$0xff]  }
 0x15c   :  { %4578 = vmatpush1.bf16.msra.mxu1 %v10494_v38  ;;  %v11826_v23 = vpop.f32.mrf.mxu0  ;;  %4498 = vmatprep.subr.bf16.mxu0 %v10499_v39  ;;  %v10514_v38 = vld [vmem:[#allocation2 + $0x42c] ss:$28 sps:$4 sm:$0xff]  }
 0x15d   :  { %14065 = vst [vmem:[#allocation21_spill] sm:$0xff] %v11824_v11  ;;  %14066 = vst [vmem:[#allocation22_spill] sm:$0xff] %v11826_v23  ;;  %4579 = vmatprep.subr.bf16.mxu1 %v10502_v52  ;;  %v10512_v39 = vld [vmem:[#allocation2 + $0x428] ss:$28 sps:$4 sm:$0xff]  }
 0x15e   :  { %3083 = vmatmul.mubr.bf16.gmra.mxu0 %v11490_v7  ;;  %v2467_v43 = vpop.f32.mrf.mxu0 }
 0x15f   :  { %v11829_v45 = vpop.f32.mrf.mxu1  ;;  %10044 = vmatmul.mubr.msk.bf16.gmra.mxu1 %vm2225_vm1, %v11604_v48  ;;  %4499 = vmatpush1.bf16.msra.mxu0 %v10497_v14  ;;  %v11834_v10 = vadd.f32 %v2467_v43, %v11755_v31  ;;  %v10517_v31 = vld [vmem:[#allocation2 + $0x74] ss:$28 sps:$4 sm:$0xff]  }
 0x160   :  { %4580 = vmatpush1.bf16.msra.mxu1 %v10500_v1  ;;  %v2469_v28 = vpop.f32.mrf.mxu0  ;;  %4500 = vmatprep.subr.bf16.mxu0 %v10505_v5  ;;  %v10515_v14 = vld [vmem:[#allocation2 + $0x70] ss:$28 sps:$4 sm:$0xff]  }
 0x161   :  { %14067 = vst [vmem:[#allocation23_spill] sm:$0xff] %v11834_v10  ;;  %v11836_v62 = vpop.f32.mrf.mxu1  ;;  %4581 = vmatprep.subr.bf16.mxu1 %v10508_v35  ;;  %v11839_v7 = vadd.f32 %v2469_v28, %v11759_v25  ;;  %3090 = vmatprep.mubr.bf16.mxu0 %v11506_v20  ;;  %v10520_v20 = vld [vmem:[#allocation2 + $0x3f4] ss:$28 sps:$4 sm:$0xff]   ;;  %v10682_v10 = vld [vmem:[#allocation2 + $0x62c] ss:$28 sps:$4 sm:$0xff]  }
 0x162   :  { %10047 = vmatprep.mubr.msk.bf16.mxu1 %vm11266_vm2, %v14057_v30  ;;  %v2471_v48 = vpop.f32.mrf.mxu0  ;;  %v10518_v35 = vld [vmem:[#allocation2 + $0x3f0] ss:$28 sps:$4 sm:$0xff]   ;;  %v10521_v28 = vld [vmem:[#allocation2 + $0x38] ss:$28 sps:$4 sm:$0xff]  }
 0x163   :  { %14068 = vst [vmem:[#allocation24_spill] sm:$0xff] %v11839_v7  ;;  %v11844_v0 = vpop.f32.mrf.mxu1  ;;  %4501 = vmatpush1.bf16.msra.mxu0 %v10503_v22  ;;  %v11847_v52 = vadd.f32 %v2471_v48, %v11762_v29  ;;  %v10523_v22 = vld [vmem:[#allocation2 + $0x3c] ss:$28 sps:$4 sm:$0xff]   ;;  %v10532_v48 = vld [vmem:[#allocation2 + $0x384] ss:$28 sps:$4 sm:$0xff]  }
 0x164   :  { %4582 = vmatpush1.bf16.msra.mxu1 %v10506_v33  ;;  %v11849_v24 = vpop.f32.mrf.mxu0  ;;  %4502 = vmatprep.subr.bf16.mxu0 %v10511_v56  ;;  %v10526_v56 = vld [vmem:[#allocation2 + $0x3bc] ss:$28 sps:$4 sm:$0xff]  }
 0x165   :  { %14069 = vst [vmem:[#allocation25_spill] sm:$0xff] %v11847_v52  ;;  %14070 = vst [vmem:[#allocation26_spill] sm:$0xff] %v11849_v24  ;;  %v11851_v25 = vpop.f32.mrf.mxu1  ;;  %4583 = vmatprep.subr.bf16.mxu1 %v10514_v38  ;;  %v10562_v24 = vld [vmem:[#allocation2 + $0x5ec] ss:$28 sps:$4 sm:$0xff]  }
 0x166   :  { %14071 = vst [vmem:[#allocation27_spill] sm:$0xff] %v11851_v25  ;;  %3091 = vmatmul.mubr.bf16.gmra.mxu0 %v11523_v50  ;;  %v2477_v1 = vpop.f32.mrf.mxu0 }
 0x167   :  { %v11854_v5 = vpop.f32.mrf.mxu1  ;;  %10048 = vmatmul.mubr.msk.bf16.gmra.mxu1 %vm2225_vm1, %v11615_v12  ;;  %4503 = vmatpush1.bf16.msra.mxu0 %v10509_v58  ;;  %v11859_v29 = vadd.f32 %v2477_v1, %v11772_v51  ;;  %v10524_v12 = vld [vmem:[#allocation2 + $0x3b8] ss:$28 sps:$4 sm:$0xff]   ;;  %v10538_v1 = vld [vmem:[#allocation2 + $0x6cc] ss:$28 sps:$4 sm:$0xff]  }
 0x168   :  { %4584 = vmatpush1.bf16.msra.mxu1 %v10512_v39  ;;  %v2479_v33 = vpop.f32.mrf.mxu0  ;;  %4504 = vmatprep.subr.bf16.mxu0 %v10517_v31  ;;  %v10529_v39 = vld [vmem:[#allocation2 + $0x4] ss:$28 sps:$4 sm:$0xff]  }
 0x169   :  { %14072 = vst [vmem:[#allocation28_spill] sm:$0xff] %v11859_v29  ;;  %v11861_v43 = vpop.f32.mrf.mxu1  ;;  %4585 = vmatprep.subr.bf16.mxu1 %v10520_v20  ;;  %v11864_v50 = vadd.f32 %v2479_v33, %v11776_v55  ;;  %3098 = vmatprep.mubr.bf16.mxu0 %v11532_v61  ;;  %v10527_v31 = vld [vmem:[#allocation2] ss:$28 sps:$4 sm:$0xff]   ;;  %v10536_v33 = vld [vmem:[#allocation2 + $0x6c8] ss:$28 sps:$4 sm:$0xff]  }
 0x16a   :  { %10051 = vmatprep.mubr.msk.bf16.mxu1 %vm11266_vm2, %v14057_v30  ;;  %v2481_v38 = vpop.f32.mrf.mxu0  ;;  %v10530_v20 = vld [vmem:[#allocation2 + $0x380] ss:$28 sps:$4 sm:$0xff]  }
 0x16b   :  { %14073 = vst [vmem:[#allocation29_spill] sm:$0xff] %v11864_v50  ;;  %v11869_v51 = vpop.f32.mrf.mxu1  ;;  %4505 = vmatpush1.bf16.msra.mxu0 %v10515_v14  ;;  %v10535_v14 = vld [vmem:[#allocation2 + $0x34c] ss:$28 sps:$4 sm:$0xff]   ;;  %v10544_v38 = vld [vmem:[#allocation2 + $0x694] ss:$28 sps:$4 sm:$0xff]  }
 0x16c   :  { %4586 = vmatpush1.bf16.msra.mxu1 %v10518_v35  ;;  %4506 = vmatprep.subr.bf16.mxu0 %v10523_v22  ;;  %v2482_v55 = vpop.f32.mrf.mxu0  ;;  %v47_v22 = vld [vmem:[%s14003_s0 + $0x8] sm:$0xff] }
 0x16d   :  { %v11871_v58 = vpop.f32.mrf.mxu1  ;;  %4587 = vmatprep.subr.bf16.mxu1 %v10526_v56 }
 0x16e   :  { %14074 = vst [vmem:[#allocation30_spill] sm:$0xff] %v11871_v58  ;;  %3099 = vmatmul.mubr.bf16.gmra.mxu0 %v11550_v59  ;;  %v10533_v59 = vld [vmem:[#allocation2 + $0x348] ss:$28 sps:$4 sm:$0xff]  }
 0x16f   :  { %v11874_v61 = vpop.f32.mrf.mxu1  ;;  %10052 = vmatmul.mubr.msk.bf16.gmra.mxu1 %vm2225_vm1, %v11622_v44  ;;  %4507 = vmatpush1.bf16.msra.mxu0 %v10521_v28  ;;  %v49_v44 = vld [vmem:[%s14003_s0 + $0x18] sm:$0xff]  ;;  %v10541_v28 = vld [vmem:[#allocation2 + $0x314] ss:$28 sps:$4 sm:$0xff]   ;;  %v11206_v58 = vld [vmem:[%s14003_s0 + $0x40] sm:$0xff] }
 0x170   :  { %4588 = vmatpush1.bf16.msra.mxu1 %v10524_v12  ;;  %4508 = vmatprep.subr.bf16.mxu0 %v10529_v39  ;;  %v10542_v39 = vld [vmem:[#allocation2 + $0x690] ss:$28 sps:$4 sm:$0xff]   ;;  %v11901_v25 = vpack.c.bf16 %v11206_v58, %v49_v44  ;;  %v10554_v44 = vld [vmem:[#allocation2 + $0x620] ss:$28 sps:$4 sm:$0xff]  }
 0x171   :  { %v11878_v35 = vpop.f32.mrf.mxu1  ;;  %4589 = vmatprep.subr.bf16.mxu1 %v10532_v48  ;;  %3106 = vmatprep.mubr.bf16.mxu0 %v11554_v15  ;;  %v10539_v15 = vld [vmem:[#allocation2 + $0x310] ss:$28 sps:$4 sm:$0xff]  }
 0x172   :  { %10055 = vmatprep.mubr.msk.bf16.mxu1 %vm11266_vm2, %v14057_v30  ;;  %v11205_v48 = vld [vmem:[%s14003_s0 + $0x30] sm:$0xff] }
 0x173   :  { %v11889_v56 = vpop.f32.mrf.mxu1  ;;  %4509 = vmatpush1.bf16.msra.mxu0 %v10527_v31  ;;  %v11896_v55 = vpack.c.bf16 %v11205_v48, %v47_v22  ;;  %v10545_v22 = vld [vmem:[#allocation2 + $0x2d8] ss:$28 sps:$4 sm:$0xff]  }
 0x174   :  { %4590 = vmatpush1.bf16.msra.mxu1 %v10530_v20  ;;  %4510 = vmatprep.subr.bf16.mxu0 %v10535_v14  ;;  %v10547_v14 = vld [vmem:[#allocation2 + $0x2dc] ss:$28 sps:$4 sm:$0xff]  }
 0x175   :  { %v11891_v12 = vpop.f32.mrf.mxu1  ;;  %4591 = vmatprep.subr.bf16.mxu1 %v10538_v1  ;;  %v10550_v1 = vld [vmem:[#allocation2 + $0x65c] ss:$28 sps:$4 sm:$0xff]  }
 0x176   :  { %14075 = vst [vmem:[#allocation31_spill] sm:$0xff] %v11891_v12  ;;  %3107 = vmatmul.mubr.bf16.gmra.mxu0 %v11572_v42  ;;  %v10548_v48 = vld [vmem:[#allocation2 + $0x658] ss:$28 sps:$4 sm:$0xff]   ;;  %v10559_v12 = vld [vmem:[#allocation2 + $0x26c] ss:$28 sps:$4 sm:$0xff]  }
 0x177   :  { %v11904_v31 = vpop.f32.mrf.mxu1  ;;  %10056 = vmatmul.mubr.msk.bf16.gmra.mxu1 %vm2225_vm1, %v11629_v4  ;;  %4511 = vmatpush2.bf16.msra.mxu0 %v10533_v59  ;;  %v10553_v4 = vld [vmem:[#allocation2 + $0x2a4] ss:$28 sps:$4 sm:$0xff]  }
 0x178   :  { %4592 = vmatpush2.bf16.msra.mxu1 %v10536_v33  ;;  %4512 = vmatprep.subr.bf16.mxu0 %v10541_v28  ;;  %v10556_v59 = vld [vmem:[#allocation2 + $0x624] ss:$28 sps:$4 sm:$0xff]  }
 0x179   :  { %v11908_v20 = vpop.f32.mrf.mxu1  ;;  %4593 = vmatprep.subr.bf16.mxu1 %v10544_v38  ;;  %4526 = vmatprep.mubr.bf16.mxu0 %v11896_v55  ;;  %v10551_v33 = vld [vmem:[#allocation2 + $0x2a0] ss:$28 sps:$4 sm:$0xff]  }
 0x17a   :  { %4607 = vmatprep.mubr.bf16.mxu1 %v11901_v25 }
 0x17b   :  { %v11912_v42 = vpop.f32.mrf.mxu1  ;;  %4513 = vmatpush2.bf16.msra.mxu0 %v10539_v15  ;;  %v10557_v15 = vld [vmem:[#allocation2 + $0x268] ss:$28 sps:$4 sm:$0xff]  }
 0x17c   :  { %4594 = vmatpush2.bf16.msra.mxu1 %v10542_v39  ;;  %4514 = vmatprep.subr.bf16.mxu0 %v10547_v14  ;;  %v10560_v39 = vld [vmem:[#allocation2 + $0x5e8] ss:$28 sps:$4 sm:$0xff]  }
 0x17d   :  { %v11914_v58 = vpop.f32.mrf.mxu1  ;;  %4595 = vmatprep.subr.bf16.mxu1 %v10550_v1  ;;  %v10565_v1 = vld [vmem:[#allocation2 + $0x234] ss:$28 sps:$4 sm:$0xff]  }
 0x17e   :  { %14076 = vst [vmem:[#allocation32_spill] sm:$0xff] %v11914_v58  ;;  %v10568_v58 = vld [vmem:[#allocation2 + $0x5b4] ss:$28 sps:$4 sm:$0xff]  }
 0x17f   :  { %v11916_v28 = vpop.f32.mrf.mxu1  ;;  %4515 = vmatpush2.bf16.msra.mxu0 %v10545_v22 }
 0x180   :  { %4596 = vmatpush2.bf16.msra.mxu1 %v10548_v48  ;;  %4516 = vmatprep.subr.bf16.mxu0 %v10553_v4 }
 0x181   :  { %v11918_v38 = vpop.f32.mrf.mxu1  ;;  %4597 = vmatprep.subr.bf16.mxu1 %v10556_v59 }
 0x183   :  { %v2562_v23 = vpop.f32.mrf.mxu1  ;;  %4517 = vmatpush2.bf16.msra.mxu0 %v10551_v33  ;;  %v10574_v33 = vld [vmem:[#allocation2 + $0x57c] ss:$28 sps:$4 sm:$0xff]  }
 0x184   :  { %4598 = vmatpush2.bf16.msra.mxu1 %v10554_v44  ;;  %4518 = vmatprep.subr.bf16.mxu0 %v10559_v12  ;;  %v10571_v23 = vld [vmem:[#allocation2 + $0x1fc] ss:$28 sps:$4 sm:$0xff]  }
 0x185   :  { %v2563_v14 = vpop.f32.mrf.mxu1  ;;  %4599 = vmatprep.subr.bf16.mxu1 %v10562_v24  ;;  %v10569_v12 = vld [vmem:[#allocation2 + $0x1f8] ss:$28 sps:$4 sm:$0xff]  }
 0x186   :  { %v2599_v22 = vpop.f32.mrf.mxu0  ;;  %v10572_v14 = vld [vmem:[#allocation2 + $0x578] ss:$28 sps:$4 sm:$0xff]  }
 0x187   :  { %v2680_v48 = vpop.f32.mrf.mxu1  ;;  %v2600_v17 = vadd.f32 %v2599_v22, %v11829_v45  ;;  %4519 = vmatpush2.bf16.msra.mxu0 %v10557_v15 }
 0x188   :  { %4600 = vmatpush2.bf16.msra.mxu1 %v10560_v39  ;;  %v2601_v4 = vpop.f32.mrf.mxu0  ;;  %4520 = vmatprep.subr.bf16.mxu0 %v10565_v1  ;;  %v48_v1 = vld [vmem:[%s14003_s0 + $0x10] sm:$0xff] }
 0x189   :  { %v2682_v59 = vpop.f32.mrf.mxu1  ;;  %4601 = vmatprep.subr.bf16.mxu1 %v10568_v58  ;;  %v11921_v44 = vadd.f32 %v2680_v48, %v2600_v17  ;;  %v2602_v24 = vadd.f32 %v2601_v4, %v11836_v62  ;;  %v10577_v17 = vld [vmem:[#allocation2 + $0x1c4] ss:$28 sps:$4 sm:$0xff]  }
 0x18a   :  { %v2603_v50 = vpop.f32.mrf.mxu0  ;;  %v10580_v58 = vld [vmem:[#allocation2 + $0x544] ss:$28 sps:$4 sm:$0xff]  }
 0x18b   :  { %14077 = vst [vmem:[#allocation33_spill] sm:$0xff] %v11921_v44  ;;  %v2684_v29 = vpop.f32.mrf.mxu1  ;;  %v11924_v52 = vadd.f32 %v2682_v59, %v2602_v24  ;;  %v2604_v45 = vadd.f32 %v2603_v50, %v11844_v0  ;;  %4521 = vmatpush2.bf16.msra.mxu0 %v10563_v34  ;;  %v46_v62 = vld [vmem:[%s14003_s0] sm:$0xff] }
 0x18c   :  { %4602 = vmatpush2.bf16.msra.mxu1 %v10566_v21  ;;  %v11927_v15 = vpop.f32.mrf.mxu0  ;;  %4522 = vmatprep.subr.bf16.mxu0 %v10571_v23  ;;  %v10575_v34 = vld [vmem:[#allocation2 + $0x1c0] ss:$28 sps:$4 sm:$0xff]   ;;  %v10583_v23 = vld [vmem:[#allocation2 + $0x7ac] ss:$28 sps:$4 sm:$0xff]  }
 0x18d   :  { %14078 = vst [vmem:[#allocation34_spill] sm:$0xff] %v11924_v52  ;;  %14079 = vst [vmem:[#allocation35_spill] sm:$0xff] %v11927_v15  ;;  %v11929_v39 = vpop.f32.mrf.mxu1  ;;  %4603 = vmatprep.subr.bf16.mxu1 %v10574_v33  ;;  %v11937_v22 = vadd.f32 %v2684_v29, %v2604_v45  ;;  %v10578_v21 = vld [vmem:[#allocation2 + $0x540] ss:$28 sps:$4 sm:$0xff]   ;;  %v10586_v33 = vld [vmem:[#allocation2 + $0x194] ss:$28 sps:$4 sm:$0xff]  }
 0x18e   :  { %14080 = vst [vmem:[#allocation36_spill] sm:$0xff] %v11929_v39  ;;  %v2609_v0 = vpop.f32.mrf.mxu0  ;;  %v10581_v29 = vld [vmem:[#allocation2 + $0x7a8] ss:$28 sps:$4 sm:$0xff]   ;;  %v10584_v45 = vld [vmem:[#allocation2 + $0x190] ss:$28 sps:$4 sm:$0xff]  }
 0x18f   :  { %14081 = vst [vmem:[#allocation37_spill] sm:$0xff] %v11937_v22  ;;  %v2690_v50 = vpop.f32.mrf.mxu1  ;;  %v2610_v48 = vadd.f32 %v2609_v0, %v11854_v5  ;;  %4523 = vmatpush2.bf16.msra.mxu0 %v10569_v12  ;;  %v11207_v15 = vld [vmem:[%s14003_s0 + $0x28] sm:$0xff]  ;;  %v11208_v5 = vld [vmem:[%s14003_s0 + $0x38] sm:$0xff] }
 0x190   :  { %4604 = vmatpush2.bf16.msra.mxu1 %v10572_v14  ;;  %v2611_v4 = vpop.f32.mrf.mxu0  ;;  %4524 = vmatprep.subr.bf16.mxu0 %v10577_v17  ;;  %v11946_v22 = vpack.c.bf16 %v11207_v15, %v46_v62  ;;  %v11951_v12 = vpack.c.bf16 %v11208_v5, %v48_v1  ;;  %v10589_v62 = vld [vmem:[#allocation2 + $0x15c] ss:$28 sps:$4 sm:$0xff]   ;;  %v10593_v1 = vld [vmem:[#allocation2 + $0x770] ss:$28 sps:$4 sm:$0xff]  }
 0x191   :  { %4605 = vmatprep.subr.bf16.mxu1 %v10580_v58  ;;  %v2692_v59 = vpop.f32.mrf.mxu1  ;;  %v2612_v24 = vadd.f32 %v2611_v4, %v11861_v43  ;;  %v11941_v39 = vadd.f32 %v2690_v50, %v2610_v48  ;;  %v10587_v48 = vld [vmem:[#allocation2 + $0x158] ss:$28 sps:$4 sm:$0xff]  }
 0x192   :  { %v2613_v14 = vpop.f32.mrf.mxu0  ;;  %v10595_v4 = vld [vmem:[#allocation2 + $0x774] ss:$28 sps:$4 sm:$0xff]   ;;  %v10706_v52 = vld [vmem:[#allocation2 + $0x51c] ss:$28 sps:$4 sm:$0xff]  }
 0x193   :  { %14082 = vst [vmem:[#allocation38_spill] sm:$0xff] %v11941_v39  ;;  %v2694_v17 = vpop.f32.mrf.mxu1  ;;  %v2614_v43 = vadd.f32 %v2613_v14, %v11869_v51  ;;  %v11954_v58 = vadd.f32 %v2692_v59, %v2612_v24  ;;  %4525 = vmatpush2.bf16.msra.mxu0 %v10575_v34  ;;  %v10688_v39 = vld [vmem:[#allocation2 + $0x744] ss:$28 sps:$4 sm:$0xff]  }
 0x194   :  { %4606 = vmatpush2.bf16.msra.mxu1 %v10578_v21  ;;  %v11956_v0 = vpop.f32.mrf.mxu0  ;;  %4664 = vmatprep.subr.bf16.mxu0 %v10583_v23  ;;  %v10592_v23 = vld [vmem:[#allocation2 + $0x124] ss:$28 sps:$4 sm:$0xff]  }
 0x195   :  { %14083 = vst [vmem:[#allocation39_spill] sm:$0xff] %v11954_v58  ;;  %14084 = vst [vmem:[#allocation40_spill] sm:$0xff] %v11956_v0  ;;  %4737 = vmatprep.subr.bf16.mxu1 %v10586_v33  ;;  %v11958_v15 = vpop.f32.mrf.mxu1  ;;  %v11960_v50 = vadd.f32 %v2694_v17, %v2614_v43  ;;  %v10604_v33 = vld [vmem:[#allocation2 + $0x73c] ss:$28 sps:$4 sm:$0xff]  }
 0x196   :  { %14085 = vst [vmem:[#allocation41_spill] sm:$0xff] %v11958_v15  ;;  %4527 = vmatmul.mubr.bf16.vlgmr.msra.gmra.mxu0 %v11946_v22  ;;  %v2619_v5 = vpop.f32.mrf.mxu0  ;;  %v10590_v17 = vld [vmem:[#allocation2 + $0x120] ss:$28 sps:$4 sm:$0xff]  }
 0x197   :  { %14086 = vst [vmem:[#allocation42_spill] sm:$0xff] %v11960_v50  ;;  %4608 = vmatmul.mubr.bf16.vlgmr.msra.gmra.mxu1 %v11951_v12  ;;  %v2700_v51 = vpop.f32.mrf.mxu1  ;;  %v2620_v34 = vadd.f32 %v2619_v5, %v11874_v61  ;;  %4665 = vmatpush1.bf16.msra.mxu0 %v10581_v29  ;;  %v10646_v0 = vld [vmem:[#allocation2 + $0x23c] ss:$28 sps:$4 sm:$0xff]  }
 0x198   :  { %4738 = vmatpush1.bf16.msra.mxu1 %v10584_v45  ;;  %v2621_v21 = vpop.f32.mrf.mxu0  ;;  %4536 = vmatprep.mubr.bf16.mxu0 %v11318_v53 }
 0x199   :  { %4739 = vmatprep.subr.bf16.mxu1 %v10589_v62  ;;  %v2702_v59 = vpop.f32.mrf.mxu1  ;;  %v2622_v24 = vadd.f32 %v2621_v21, %v11878_v35  ;;  %v11967_v14 = vadd.f32 %v2700_v51, %v2620_v34  ;;  %4617 = vmatprep.mubr.bf16.mxu1 %v11329_v60  ;;  %v10598_v35 = vld [vmem:[#allocation2 + $0xec] ss:$28 sps:$4 sm:$0xff]   ;;  %v10602_v34 = vld [vmem:[#allocation2 + $0x738] ss:$28 sps:$4 sm:$0xff]  }
 0x19a   :  { %4666 = vmatprep.subr.bf16.mxu0 %v10595_v4  ;;  %v2623_v43 = vpop.f32.mrf.mxu0  ;;  %v10596_v51 = vld [vmem:[#allocation2 + $0xe8] ss:$28 sps:$4 sm:$0xff]  }
 0x19b   :  { %14087 = vst [vmem:[#allocation43_spill] sm:$0xff] %v11967_v14  ;;  %v2704_v15 = vpop.f32.mrf.mxu1  ;;  %v2624_v61 = vadd.f32 %v2623_v43, %v11889_v56  ;;  %v11971_v29 = vadd.f32 %v2702_v59, %v2622_v24  ;;  %4667 = vmatpush1.bf16.msra.mxu0 %v10593_v1  ;;  %v10616_v4 = vld [vmem:[#allocation2 + $0x704] ss:$28 sps:$4 sm:$0xff]   ;;  %v10599_v24 = vld [vmem:[#allocation2 + $0xb0] ss:$28 sps:$4 sm:$0xff]  }
 0x19c   :  { %4740 = vmatpush1.bf16.msra.mxu1 %v10587_v48  ;;  %v11973_v45 = vpop.f32.mrf.mxu0  ;;  %4668 = vmatprep.subr.bf16.mxu0 %v10604_v33  ;;  %v10614_v43 = vld [vmem:[#allocation2 + $0x700] ss:$28 sps:$4 sm:$0xff]  }
 0x19d   :  { %14088 = vst [vmem:[#allocation44_spill] sm:$0xff] %v11971_v29  ;;  %14089 = vst [vmem:[#allocation45_spill] sm:$0xff] %v11973_v45  ;;  %4741 = vmatprep.subr.bf16.mxu1 %v10592_v23  ;;  %v11975_v62 = vpop.f32.mrf.mxu1  ;;  %v11977_v5 = vadd.f32 %v2704_v15, %v2624_v61  ;;  %v10601_v23 = vld [vmem:[#allocation2 + $0xb4] ss:$28 sps:$4 sm:$0xff]   ;;  %v10607_v45 = vld [vmem:[#allocation2 + $0x7c] ss:$28 sps:$4 sm:$0xff]  }
 0x19e   :  { %14090 = vst [vmem:[#allocation46_spill] sm:$0xff] %v11975_v62  ;;  %4537 = vmatmul.mubr.bf16.gmra.mxu0 %v11359_v19  ;;  %v2629_v21 = vpop.f32.mrf.mxu0  ;;  %v10664_v29 = vld [vmem:[#allocation2 + $0x38c] ss:$28 sps:$4 sm:$0xff]  }
 0x19f   :  { %14091 = vst [vmem:[#allocation47_spill] sm:$0xff] %v11977_v5  ;;  %4618 = vmatmul.mubr.bf16.gmra.mxu1 %v11366_v27  ;;  %v2710_v56 = vpop.f32.mrf.mxu1  ;;  %v2630_v48 = vadd.f32 %v2629_v21, %v11904_v31  ;;  %4546 = vmatprep.mubr.bf16.mxu0 %v11391_v46 }
 0x1a0   :  { %4742 = vmatpush1.bf16.msra.mxu1 %v10590_v17  ;;  %v2631_v1 = vpop.f32.mrf.mxu0  ;;  %4627 = vmatprep.mubr.bf16.mxu1 %v11393_v47 }
 0x1a1   :  { %4743 = vmatprep.subr.bf16.mxu1 %v10598_v35  ;;  %v2712_v59 = vpop.f32.mrf.mxu1  ;;  %v2632_v15 = vadd.f32 %v2631_v1, %v11908_v20  ;;  %v11985_v33 = vadd.f32 %v2710_v56, %v2630_v48  ;;  %4669 = vmatpush1.bf16.msra.mxu0 %v10602_v34  ;;  %v10605_v56 = vld [vmem:[#allocation2 + $0x78] ss:$28 sps:$4 sm:$0xff]  }
 0x1a2   :  { %v2633_v61 = vpop.f32.mrf.mxu0  ;;  %4670 = vmatprep.subr.bf16.mxu0 %v10616_v4  ;;  %v10625_v34 = vld [vmem:[#allocation2 + $0x514] ss:$28 sps:$4 sm:$0xff]  }
 0x1a3   :  { %14092 = vst [vmem:[#allocation48_spill] sm:$0xff] %v11985_v33  ;;  %v2714_v62 = vpop.f32.mrf.mxu1  ;;  %v2634_v31 = vadd.f32 %v2633_v61, %v11912_v42  ;;  %v11988_v17 = vadd.f32 %v2712_v59, %v2632_v15  ;;  %v10610_v59 = vld [vmem:[#allocation2 + $0x44] ss:$28 sps:$4 sm:$0xff]   ;;  %v10655_v33 = vld [vmem:[#allocation2 + $0x3fc] ss:$28 sps:$4 sm:$0xff]  }
 0x1a4   :  { %4744 = vmatpush1.bf16.msra.mxu1 %v10596_v51  ;;  %v11990_v35 = vpop.f32.mrf.mxu0 }
 0x1a5   :  { %14093 = vst [vmem:[#allocation49_spill] sm:$0xff] %v11988_v17  ;;  %14094 = vst [vmem:[#allocation50_spill] sm:$0xff] %v11990_v35  ;;  %4745 = vmatprep.subr.bf16.mxu1 %v10601_v23  ;;  %v11992_v21 = vpop.f32.mrf.mxu1  ;;  %v11994_v20 = vadd.f32 %v2714_v62, %v2634_v31  ;;  %4671 = vmatpush1.bf16.msra.mxu0 %v10614_v43  ;;  %v87_v62 = vld [vmem:[%s14003_s0 + $0x148] sm:$0x3f]  ;;  %v10608_v43 = vld [vmem:[#allocation2 + $0x40] ss:$28 sps:$4 sm:$0xff]  }
 0x1a6   :  { %14095 = vst [vmem:[#allocation51_spill] sm:$0xff] %v11992_v21  ;;  %4547 = vmatmul.mubr.bf16.gmra.mxu0 %v11412_v2  ;;  %v2639_v48 = vpop.f32.mrf.mxu0  ;;  %4818 = vmatprep.subr.bf16.mxu0 %v10625_v34  ;;  %v12012_v31 = vpack.c.bf16 %v87_v62, %v87_v62  ;;  %v88_v34 = vld [vmem:[%s14003_s0 + $0x150] sm:$0x3f]  ;;  %v10635_v35 = vld [vmem:[#allocation2 + $0x4a0] ss:$28 sps:$4 sm:$0xff]  }
 0x1a7   :  { %14096 = vst [vmem:[#allocation52_spill] sm:$0xff] %v11994_v20  ;;  %4628 = vmatmul.mubr.bf16.gmra.mxu1 %v11414_v8  ;;  %v2720_v42 = vpop.f32.mrf.mxu1  ;;  %v2640_v4 = vadd.f32 %v2639_v48, %v11916_v28  ;;  %4556 = vmatprep.mubr.bf16.mxu0 %v11427_v18  ;;  %v89_v28 = vld [vmem:[%s14003_s0 + $0x158] sm:$0x3f]  ;;  %v10613_v48 = vld [vmem:[#allocation2 + $0xc] ss:$28 sps:$4 sm:$0xff]   ;;  %v12028_v62 = vpack.c.bf16 %v88_v34, %v88_v34 }
 0x1a8   :  { %4746 = vmatpush1.bf16.msra.mxu1 %v10599_v24  ;;  %v2641_v51 = vpop.f32.mrf.mxu0  ;;  %4637 = vmatprep.mubr.bf16.mxu1 %v11434_v26  ;;  %v12014_v21 = vpack.c.bf16 %v89_v28, %v89_v28  ;;  %v50_v28 = vld [vmem:[%s14003_s0 + $0x20] sm:$0xff]  ;;  %v10629_v34 = vld [vmem:[#allocation2 + $0x4d8] ss:$28 sps:$4 sm:$0xff]  }
 0x1a9   :  { %4747 = vmatprep.subr.bf16.mxu1 %v10607_v45  ;;  %v2722_v1 = vpop.f32.mrf.mxu1  ;;  %v2642_v23 = vadd.f32 %v2641_v51, %v11918_v38  ;;  %v12005_v15 = vadd.f32 %v2720_v42, %v2640_v4  ;;  %v10611_v4 = vld [vmem:[#allocation2 + $0x8] ss:$28 sps:$4 sm:$0xff]  }
 0x1aa   :  { %v2643_v24 = vpop.f32.mrf.mxu0  ;;  %v86_v51 = vld [vmem:[%s14003_s0 + $0x140] sm:$0x3f] }
 0x1ab   :  { %14097 = vst [vmem:[#allocation53_spill] sm:$0xff] %v12005_v15  ;;  %v2724_v45 = vpop.f32.mrf.mxu1  ;;  %v12010_v61 = vadd.f32 %v2722_v1, %v2642_v23  ;;  %v10617_v1 = vld [vmem:[#allocation2 + $0x350] ss:$28 sps:$4 sm:$0xff]   ;;  %v10622_v23 = vld [vmem:[#allocation2 + $0x31c] ss:$28 sps:$4 sm:$0xff]  }
 0x1ac   :  { %4748 = vmatpush1.bf16.msra.mxu1 %v10605_v56  ;;  %v2644_v38 = vpop.f32.mrf.mxu0  ;;  %v10619_v56 = vld [vmem:[#allocation2 + $0x354] ss:$28 sps:$4 sm:$0xff]  }
 0x1ad   :  { %14098 = vst [vmem:[#allocation54_spill] sm:$0xff] %v12010_v61  ;;  %4749 = vmatprep.subr.bf16.mxu1 %v10610_v59  ;;  %v2725_v42 = vpop.f32.mrf.mxu1  ;;  %v12026_v59 = vpack.c.bf16 %v86_v51, %v86_v51  ;;  %v10620_v24 = vld [vmem:[#allocation2 + $0x318] ss:$28 sps:$4 sm:$0xff]   ;;  %v10623_v45 = vld [vmem:[#allocation2 + $0x510] ss:$28 sps:$4 sm:$0xff]  }
 0x1ae   :  { %4557 = vmatmul.mubr.bf16.gmra.mxu0 %v11468_v49  ;;  %v11209_v38 = vld [vmem:[%s14003_s0 + $0x48] sm:$0xff]  ;;  %v10652_v61 = vld [vmem:[#allocation2 + $0x204] ss:$28 sps:$4 sm:$0xff]  }
 0x1af   :  { %4638 = vmatmul.mubr.bf16.gmra.mxu1 %v11470_v54  ;;  %4566 = vmatprep.mubr.bf16.mxu0 %v12012_v31  ;;  %v12040_v42 = vpack.c.bf16 %v11209_v38, %v50_v28  ;;  %v10634_v51 = vld [vmem:[#allocation2 + $0x2ac] ss:$28 sps:$4 sm:$0xff]  }
 0x1b0   :  { %4750 = vmatpush1.bf16.msra.mxu1 %v10608_v43  ;;  %4647 = vmatprep.mubr.bf16.mxu1 %v12014_v21  ;;  %v10628_v43 = vld [vmem:[#allocation2 + $0x2e4] ss:$28 sps:$4 sm:$0xff]   ;;  %v10638_v28 = vld [vmem:[#allocation2 + $0x270] ss:$28 sps:$4 sm:$0xff]  }
 0x1b1   :  { %4751 = vmatprep.subr.bf16.mxu1 %v10613_v48  ;;  %v10626_v48 = vld [vmem:[#allocation2 + $0x2e0] ss:$28 sps:$4 sm:$0xff]   ;;  %v10643_v38 = vld [vmem:[#allocation2 + $0x46c] ss:$28 sps:$4 sm:$0xff]  }
 0x1b4   :  { %4752 = vmatpush1.bf16.msra.mxu1 %v10611_v4  ;;  %v10631_v4 = vld [vmem:[#allocation2 + $0x4dc] ss:$28 sps:$4 sm:$0xff]  }
 0x1b5   :  { %4753 = vmatprep.subr.bf16.mxu1 %v10619_v56  ;;  %v10632_v56 = vld [vmem:[#allocation2 + $0x2a8] ss:$28 sps:$4 sm:$0xff]  }
 0x1b6   :  { %4567 = vmatmul.mubr.bf16.gmra.mxu0 %v12026_v59 }
 0x1b7   :  { %4648 = vmatmul.mubr.bf16.gmra.mxu1 %v12028_v62  ;;  %4688 = vmatprep.mubr.bf16.mxu0 %v14060_v40 }
 0x1b8   :  { %4754 = vmatpush2.bf16.msra.mxu1 %v10617_v1  ;;  %4769 = vmatprep.mubr.bf16.mxu1 %v11896_v55  ;;  %v10637_v1 = vld [vmem:[#allocation2 + $0x4a4] ss:$28 sps:$4 sm:$0xff]  }
 0x1b9   :  { %4755 = vmatprep.subr.bf16.mxu1 %v10622_v23  ;;  %v10640_v23 = vld [vmem:[#allocation2 + $0x274] ss:$28 sps:$4 sm:$0xff]  }
 0x1bc   :  { %4756 = vmatpush2.bf16.msra.mxu1 %v10620_v24 }
 0x1bd   :  { %4757 = vmatprep.subr.bf16.mxu1 %v10628_v43 }
 0x1be   :  { %9435 = vmatmul.mubr.msk.bf16.vlgmr.msra.gmra.mxu0 %vm2225_vm1, %v12040_v42 }
 0x1bf   :  { %4819 = vmatpush1.bf16.msra.mxu0 %v10623_v45  ;;  %4698 = vmatprep.mubr.bf16.mxu0 %v14060_v40  ;;  %v10641_v45 = vld [vmem:[#allocation2 + $0x468] ss:$28 sps:$4 sm:$0xff]  }
 0x1c0   :  { %4758 = vmatpush2.bf16.msra.mxu1 %v10626_v48  ;;  %4820 = vmatprep.subr.bf16.mxu0 %v10631_v4  ;;  %v10644_v48 = vld [vmem:[#allocation2 + $0x238] ss:$28 sps:$4 sm:$0xff]  }
 0x1c1   :  { %4759 = vmatprep.subr.bf16.mxu1 %v10634_v51  ;;  %v10649_v4 = vld [vmem:[#allocation2 + $0x434] ss:$28 sps:$4 sm:$0xff]  }
 0x1c3   :  { %4821 = vmatpush1.bf16.msra.mxu0 %v10629_v34 }
 0x1c4   :  { %4760 = vmatpush2.bf16.msra.mxu1 %v10632_v56  ;;  %4822 = vmatprep.subr.bf16.mxu0 %v10637_v1  ;;  %v10647_v56 = vld [vmem:[#allocation2 + $0x430] ss:$28 sps:$4 sm:$0xff]   ;;  %v10650_v1 = vld [vmem:[#allocation2 + $0x200] ss:$28 sps:$4 sm:$0xff]  }
 0x1c5   :  { %4761 = vmatprep.subr.bf16.mxu1 %v10640_v23 }
 0x1c6   :  { %9436 = vmatmul.mubr.msk.bf16.gmra.mxu0 %vm2225_vm1, %v11567_v36  ;;  %v2761_v24 = vpop.f32.mrf.mxu0 }
 0x1c7   :  { %v2842_v43 = vpop.f32.mrf.mxu1  ;;  %4823 = vmatpush1.bf16.msra.mxu0 %v10635_v35  ;;  %4708 = vmatprep.mubr.bf16.mxu0 %v14060_v40 }
 0x1c8   :  { %v12047_v51 = vadd.f32 %v2842_v43, %v2761_v24  ;;  %4762 = vmatpush2.bf16.msra.mxu1 %v10638_v28  ;;  %v2763_v15 = vpop.f32.mrf.mxu0  ;;  %4824 = vmatprep.subr.bf16.mxu0 %v10643_v38  ;;  %v10653_v38 = vld [vmem:[#allocation2 + $0x3f8] ss:$28 sps:$4 sm:$0xff]   ;;  %v10656_v24 = vld [vmem:[#allocation2 + $0x1c8] ss:$28 sps:$4 sm:$0xff]  }
 0x1c9   :  { %v2844_v20 = vpop.f32.mrf.mxu1  ;;  %4763 = vmatprep.subr.bf16.mxu1 %v10646_v0  ;;  %v10658_v0 = vld [vmem:[#allocation2 + $0x1cc] ss:$28 sps:$4 sm:$0xff]   ;;  %v10661_v43 = vld [vmem:[#allocation2 + $0x3c4] ss:$28 sps:$4 sm:$0xff]  }
 0x1ca   :  { %v12049_v34 = vadd.f32 %v2844_v20, %v2763_v15  ;;  %v2765_v23 = vpop.f32.mrf.mxu0 }
 0x1cb   :  { %v2846_v17 = vpop.f32.mrf.mxu1  ;;  %4825 = vmatpush1.bf16.msra.mxu0 %v10641_v45 }
 0x1cc   :  { %v12052_v5 = vadd.f32 %v2846_v17, %v2765_v23  ;;  %4764 = vmatpush2.bf16.msra.mxu1 %v10644_v48  ;;  %v12054_v35 = vpop.f32.mrf.mxu0  ;;  %4826 = vmatprep.subr.bf16.mxu0 %v10649_v4  ;;  %v10667_v17 = vld [vmem:[#allocation2 + $0x7b4] ss:$28 sps:$4 sm:$0xff]  }
 0x1cd   :  { %14099 = vst [vmem:[#allocation55_spill] sm:$0xff] %v12054_v35  ;;  %v12056_v28 = vpop.f32.mrf.mxu1  ;;  %4765 = vmatprep.subr.bf16.mxu1 %v10652_v61  ;;  %v10659_v61 = vld [vmem:[#allocation2 + $0x3c0] ss:$28 sps:$4 sm:$0xff]  }
 0x1ce   :  { %14100 = vst [vmem:[#allocation56_spill] sm:$0xff] %v12056_v28  ;;  %9437 = vmatmul.mubr.msk.bf16.gmra.mxu0 %vm2225_vm1, %v11584_v63  ;;  %v2771_v20 = vpop.f32.mrf.mxu0 }
 0x1cf   :  { %v2852_v15 = vpop.f32.mrf.mxu1  ;;  %4827 = vmatpush1.bf16.msra.mxu0 %v10647_v56  ;;  %4718 = vmatprep.mubr.bf16.mxu0 %v14060_v40 }
 0x1d0   :  { %v12060_v45 = vadd.f32 %v2852_v15, %v2771_v20  ;;  %4766 = vmatpush2.bf16.msra.mxu1 %v10650_v1  ;;  %v2773_v48 = vpop.f32.mrf.mxu0  ;;  %4828 = vmatprep.subr.bf16.mxu0 %v10655_v33  ;;  %v10665_v20 = vld [vmem:[#allocation2 + $0x7b0] ss:$28 sps:$4 sm:$0xff]   ;;  %v10662_v33 = vld [vmem:[#allocation2 + $0x388] ss:$28 sps:$4 sm:$0xff]   ;;  %v10679_v15 = vld [vmem:[#allocation2 + $0x77c] ss:$28 sps:$4 sm:$0xff]  }
 0x1d1   :  { %v2854_v23 = vpop.f32.mrf.mxu1  ;;  %4767 = vmatprep.subr.bf16.mxu1 %v10658_v0  ;;  %v90_v0 = vld [vmem:[%s14003_s0 + $0x160] sm:$0x3f] }
 0x1d2   :  { %v12062_v4 = vadd.f32 %v2854_v23, %v2773_v48  ;;  %v2775_v28 = vpop.f32.mrf.mxu0  ;;  %v10668_v23 = vld [vmem:[#allocation2 + $0x6d0] ss:$28 sps:$4 sm:$0xff]   ;;  %v12083_v58 = vpack.c.bf16 %v90_v0, %v90_v0 }
 0x1d3   :  { %v2856_v35 = vpop.f32.mrf.mxu1  ;;  %4829 = vmatpush1.bf16.msra.mxu0 %v10653_v38 }
 0x1d4   :  { %v12065_v14 = vadd.f32 %v2856_v35, %v2775_v28  ;;  %4768 = vmatpush2.bf16.msra.mxu1 %v10656_v24  ;;  %v12067_v56 = vpop.f32.mrf.mxu0  ;;  %4830 = vmatprep.subr.bf16.mxu0 %v10661_v43 }
 0x1d5   :  { %14101 = vst [vmem:[#allocation57_spill] sm:$0xff] %v12067_v56  ;;  %v12069_v1 = vpop.f32.mrf.mxu1  ;;  %4907 = vmatprep.subr.bf16.mxu1 %v10667_v17  ;;  %v10670_v17 = vld [vmem:[#allocation2 + $0x6d4] ss:$28 sps:$4 sm:$0xff]  }
 0x1d6   :  { %14102 = vst [vmem:[#allocation58_spill] sm:$0xff] %v12069_v1  ;;  %9438 = vmatmul.mubr.msk.bf16.gmra.mxu0 %vm2225_vm1, %v11600_v32  ;;  %v2781_v35 = vpop.f32.mrf.mxu0  ;;  %v10677_v1 = vld [vmem:[#allocation2 + $0x778] ss:$28 sps:$4 sm:$0xff]  }
 0x1d7   :  { %4770 = vmatmul.mubr.bf16.vlgmr.msra.gmra.mxu1 %v11946_v22  ;;  %v2862_v28 = vpop.f32.mrf.mxu1  ;;  %4831 = vmatpush1.bf16.msra.mxu0 %v10659_v61  ;;  %v10673_v61 = vld [vmem:[#allocation2 + $0x69c] ss:$28 sps:$4 sm:$0xff]  }
 0x1d8   :  { %v12077_v38 = vadd.f32 %v2862_v28, %v2781_v35  ;;  %4728 = vmatprep.mubr.bf16.mxu0 %v14060_v40  ;;  %v2783_v24 = vpop.f32.mrf.mxu0  ;;  %4832 = vmatprep.subr.bf16.mxu0 %v10664_v29 }
 0x1d9   :  { %v2864_v43 = vpop.f32.mrf.mxu1  ;;  %4779 = vmatprep.mubr.bf16.mxu1 %v11318_v53  ;;  %4908 = vmatpush1.bf16.msra.mxu1 %v10665_v20  ;;  %v10700_v20 = vld [vmem:[#allocation2 + $0x70c] ss:$28 sps:$4 sm:$0xff]  }
 0x1da   :  { %v12081_v48 = vadd.f32 %v2864_v43, %v2783_v24  ;;  %v2785_v56 = vpop.f32.mrf.mxu0  ;;  %4909 = vmatprep.subr.bf16.mxu1 %v10679_v15  ;;  %v10671_v24 = vld [vmem:[#allocation2 + $0x698] ss:$28 sps:$4 sm:$0xff]   ;;  %v10686_v43 = vld [vmem:[#allocation2 + $0x740] ss:$28 sps:$4 sm:$0xff]  }
 0x1db   :  { %v2866_v50 = vpop.f32.mrf.mxu1  ;;  %4833 = vmatpush1.bf16.msra.mxu0 %v10662_v33  ;;  %v10676_v33 = vld [vmem:[#allocation2 + $0x664] ss:$28 sps:$4 sm:$0xff]  }
 0x1dc   :  { %v12085_v35 = vadd.f32 %v2866_v50, %v2785_v56  ;;  %v12087_v28 = vpop.f32.mrf.mxu0  ;;  %4834 = vmatprep.subr.bf16.mxu0 %v10670_v17 }
 0x1dd   :  { %14103 = vst [vmem:[#allocation59_spill] sm:$0xff] %v12087_v28  ;;  %v12089_v29 = vpop.f32.mrf.mxu1  ;;  %4910 = vmatpush1.bf16.msra.mxu1 %v10677_v1  ;;  %v10698_v1 = vld [vmem:[#allocation2 + $0x708] ss:$28 sps:$4 sm:$0xff]   ;;  %v10674_v28 = vld [vmem:[#allocation2 + $0x660] ss:$28 sps:$4 sm:$0xff]  }
 0x1de   :  { %14104 = vst [vmem:[#allocation60_spill] sm:$0xff] %v12089_v29  ;;  %9439 = vmatmul.mubr.msk.bf16.gmra.mxu0 %vm2225_vm1, %v12083_v58  ;;  %v2791_v0 = vpop.f32.mrf.mxu0  ;;  %4911 = vmatprep.subr.bf16.mxu1 %v10688_v39 }
 0x1df   :  { %4780 = vmatmul.mubr.bf16.gmra.mxu1 %v11359_v19  ;;  %v2872_v15 = vpop.f32.mrf.mxu1  ;;  %4835 = vmatpush2.bf16.msra.mxu0 %v10668_v23 }
 0x1e0   :  { %v12094_v50 = vadd.f32 %v2872_v15, %v2791_v0  ;;  %4789 = vmatprep.mubr.bf16.mxu1 %v11391_v46  ;;  %v2793_v56 = vpop.f32.mrf.mxu0  ;;  %4836 = vmatprep.subr.bf16.mxu0 %v10673_v61 }
 0x1e1   :  { %v2874_v17 = vpop.f32.mrf.mxu1  ;;  %4912 = vmatpush1.bf16.msra.mxu1 %v10686_v43  ;;  %4850 = vmatprep.mubr.bf16.mxu0 %v11901_v25  ;;  %v10680_v43 = vld [vmem:[#allocation2 + $0x628] ss:$28 sps:$4 sm:$0xff]  }
 0x1e2   :  { %v12097_v29 = vadd.f32 %v2874_v17, %v2793_v56  ;;  %v2795_v44 = vpop.f32.mrf.mxu0  ;;  %4913 = vmatprep.subr.bf16.mxu1 %v10700_v20 }
 0x1e3   :  { %v2876_v7 = vpop.f32.mrf.mxu1  ;;  %4837 = vmatpush2.bf16.msra.mxu0 %v10671_v24  ;;  %v10685_v24 = vld [vmem:[#allocation2 + $0x5f4] ss:$28 sps:$4 sm:$0xff]  }
 0x1e4   :  { %v12100_v23 = vadd.f32 %v2876_v7, %v2795_v44  ;;  %v12102_v0 = vpop.f32.mrf.mxu0  ;;  %4838 = vmatprep.subr.bf16.mxu0 %v10676_v33 }
 0x1e5   :  { %14105 = vst [vmem:[#allocation61_spill] sm:$0xff] %v12102_v0  ;;  %v12104_v15 = vpop.f32.mrf.mxu1  ;;  %4914 = vmatpush1.bf16.msra.mxu1 %v10698_v1  ;;  %v10683_v1 = vld [vmem:[#allocation2 + $0x5f0] ss:$28 sps:$4 sm:$0xff]  }
 0x1e6   :  { %14106 = vst [vmem:[#allocation62_spill] sm:$0xff] %v12104_v15  ;;  %v2801_v39 = vpop.f32.mrf.mxu0  ;;  %5061 = vmatprep.subr.bf16.mxu1 %v10706_v52  ;;  %v10691_v15 = vld [vmem:[#allocation2 + $0x5bc] ss:$28 sps:$4 sm:$0xff]  }
 0x1e7   :  { %4790 = vmatmul.mubr.bf16.gmra.mxu1 %v11412_v2  ;;  %v2882_v61 = vpop.f32.mrf.mxu1  ;;  %4839 = vmatpush2.bf16.msra.mxu0 %v10674_v28  ;;  %v10689_v52 = vld [vmem:[#allocation2 + $0x5b8] ss:$28 sps:$4 sm:$0xff]  }
 0x1e8   :  { %v12107_v56 = vadd.f32 %v2882_v61, %v2801_v39  ;;  %4799 = vmatprep.mubr.bf16.mxu1 %v11427_v18  ;;  %v2803_v7 = vpop.f32.mrf.mxu0  ;;  %4840 = vmatprep.subr.bf16.mxu0 %v10682_v10  ;;  %v10694_v10 = vld [vmem:[#allocation2 + $0x584] ss:$28 sps:$4 sm:$0xff]  }
 0x1e9   :  { %v2884_v44 = vpop.f32.mrf.mxu1 }
 0x1ea   :  { %v12110_v20 = vadd.f32 %v2884_v44, %v2803_v7  ;;  %v2805_v17 = vpop.f32.mrf.mxu0 }
 0x1eb   :  { %v2886_v33 = vpop.f32.mrf.mxu1  ;;  %4841 = vmatpush2.bf16.msra.mxu0 %v10680_v43 }
 0x1ec   :  { %v2806_v0 = vpop.f32.mrf.mxu0  ;;  %4842 = vmatprep.subr.bf16.mxu0 %v10685_v24  ;;  %v10697_v33 = vld [vmem:[#allocation2 + $0x54c] ss:$28 sps:$4 sm:$0xff]  }
 0x1ed   :  { %v2887_v11 = vpop.f32.mrf.mxu1  ;;  %v10692_v0 = vld [vmem:[#allocation2 + $0x580] ss:$28 sps:$4 sm:$0xff]  }
 0x1ee   :  { %v2923_v28 = vpop.f32.mrf.mxu0 }
 0x1ef   :  { %4800 = vmatmul.mubr.bf16.gmra.mxu1 %v11468_v49  ;;  %v9744_v39 = vpop.f32.mrf.mxu1  ;;  %4843 = vmatpush2.bf16.msra.mxu0 %v10683_v1  ;;  %v12114_v61 = vadd.f32 %v2923_v28, %v12047_v51 }
 0x1f0   :  { %4809 = vmatprep.mubr.bf16.mxu1 %v12012_v31  ;;  %v2925_v7 = vpop.f32.mrf.mxu0  ;;  %4844 = vmatprep.subr.bf16.mxu0 %v10691_v15 }
 0x1f1   :  { %14107 = vst [vmem:[#allocation63_spill] sm:$0xff] %v12114_v61  ;;  %v9745_v44 = vpop.f32.mrf.mxu1  ;;  %v12118_v43 = vadd.f32 %v2925_v7, %v12049_v34  ;;  %v10695_v7 = vld [vmem:[#allocation2 + $0x548] ss:$28 sps:$4 sm:$0xff]  }
 0x1f2   :  { %v12120_v11 = vadd.f32 %v9745_v44, %v9744_v39  ;;  %v2927_v24 = vpop.f32.mrf.mxu0  ;;  %v10712_v61 = vld [vmem:[#allocation2 + $0x4e4] ss:$28 sps:$4 sm:$0xff]  }
 0x1f3   :  { %14108 = vst [vmem:[#allocation64_spill] sm:$0xff] %v12118_v43  ;;  %v12122_v17 = vpop.f32.mrf.mxu1  ;;  %4845 = vmatpush2.bf16.msra.mxu0 %v10689_v52  ;;  %v12125_v51 = vadd.f32 %v2927_v24, %v12052_v5  ;;  %v10703_v5 = vld [vmem:[#allocation2 + $0x19c] ss:$28 sps:$4 sm:$0xff]  }
 0x1f4   :  { %v12127_v1 = vpop.f32.mrf.mxu0  ;;  %4846 = vmatprep.subr.bf16.mxu0 %v10694_v10 }
 0x1f5   :  { %14109 = vst [vmem:[#allocation65_spill] sm:$0xff] %v12125_v51  ;;  %14110 = vst [vmem:[#allocation66_spill] sm:$0xff] %v12127_v1  ;;  %v12129_v28 = vpop.f32.mrf.mxu1 }
 0x1f6   :  { %v2933_v34 = vpop.f32.mrf.mxu0 }
 0x1f7   :  { %4810 = vmatmul.mubr.bf16.gmra.mxu1 %v12026_v59  ;;  %v9750_v15 = vpop.f32.mrf.mxu1  ;;  %4847 = vmatpush2.bf16.msra.mxu0 %v10692_v0  ;;  %v12133_v39 = vadd.f32 %v2933_v34, %v12060_v45  ;;  %v10701_v45 = vld [vmem:[#allocation2 + $0x198] ss:$28 sps:$4 sm:$0xff]  }
 0x1f8   :  { %4931 = vmatprep.mubr.bf16.mxu1 %v14060_v40  ;;  %v2935_v52 = vpop.f32.mrf.mxu0  ;;  %4848 = vmatprep.subr.bf16.mxu0 %v10697_v33  ;;  %v10704_v34 = vld [vmem:[#allocation2 + $0x518] ss:$28 sps:$4 sm:$0xff]   ;;  %v10709_v33 = vld [vmem:[#allocation2 + $0x164] ss:$28 sps:$4 sm:$0xff]  }
 0x1f9   :  { %14111 = vst [vmem:[#allocation67_spill] sm:$0xff] %v12133_v39  ;;  %v9751_v44 = vpop.f32.mrf.mxu1  ;;  %v12137_v24 = vadd.f32 %v2935_v52, %v12062_v4  ;;  %v10710_v52 = vld [vmem:[#allocation2 + $0x4e0] ss:$28 sps:$4 sm:$0xff]  }
 0x1fa   :  { %v12139_v1 = vadd.f32 %v9751_v44, %v9750_v15  ;;  %v2937_v10 = vpop.f32.mrf.mxu0 }
 0x1fb   :  { %14112 = vst [vmem:[#allocation68_spill] sm:$0xff] %v12137_v24  ;;  %v12141_v51 = vpop.f32.mrf.mxu1  ;;  %4849 = vmatpush2.bf16.msra.mxu0 %v10695_v7  ;;  %v12144_v0 = vadd.f32 %v2937_v10, %v12065_v14  ;;  %v10707_v7 = vld [vmem:[#allocation2 + $0x160] ss:$28 sps:$4 sm:$0xff]  }
 0x1fc   :  { %v12146_v39 = vpop.f32.mrf.mxu0  ;;  %4980 = vmatprep.subr.bf16.mxu0 %v10703_v5  ;;  %v10715_v5 = vld [vmem:[#allocation2 + $0x12c] ss:$28 sps:$4 sm:$0xff]  }
 0x1fd   :  { %14113 = vst [vmem:[#allocation69_spill] sm:$0xff] %v12144_v0  ;;  %14114 = vst [vmem:[#allocation70_spill] sm:$0xff] %v12146_v39  ;;  %v12148_v43 = vpop.f32.mrf.mxu1  ;;  %v10718_v39 = vld [vmem:[#allocation2 + $0x4ac] ss:$28 sps:$4 sm:$0xff]  }
 0x1fe   :  { %4851 = vmatmul.mubr.bf16.vlgmr.msra.gmra.mxu0 %v11951_v12  ;;  %v2943_v4 = vpop.f32.mrf.mxu0 }
 0x1ff   :  { %9440 = vmatmul.mubr.msk.bf16.vlgmr.msra.gmra.mxu1 %vm2225_vm1, %v12040_v42  ;;  %v9756_v15 = vpop.f32.mrf.mxu1  ;;  %4981 = vmatpush1.bf16.msra.mxu0 %v10701_v45  ;;  %v12154_v14 = vadd.f32 %v2943_v4, %v12077_v38 }
 0x200   :  { %5062 = vmatpush1.bf16.msra.mxu1 %v10704_v34  ;;  %v2945_v44 = vpop.f32.mrf.mxu0  ;;  %4982 = vmatprep.subr.bf16.mxu0 %v10709_v33  ;;  %v10716_v33 = vld [vmem:[#allocation2 + $0x4a8] ss:$28 sps:$4 sm:$0xff]  }
 0x201   :  { %14115 = vst [vmem:[#allocation71_spill] sm:$0xff] %v12154_v14  ;;  %v9757_v10 = vpop.f32.mrf.mxu1  ;;  %5063 = vmatprep.subr.bf16.mxu1 %v10712_v61  ;;  %v12157_v0 = vadd.f32 %v2945_v44, %v12081_v48  ;;  %4860 = vmatprep.mubr.bf16.mxu0 %v11329_v60  ;;  %v10713_v61 = vld [vmem:[#allocation2 + $0x128] ss:$28 sps:$4 sm:$0xff]   ;;  %v10724_v44 = vld [vmem:[#allocation2 + $0x474] ss:$28 sps:$4 sm:$0xff]  }
 0x202   :  { %v12159_v24 = vadd.f32 %v9757_v10, %v9756_v15  ;;  %4941 = vmatprep.mubr.bf16.mxu1 %v14060_v40  ;;  %v2947_v45 = vpop.f32.mrf.mxu0  ;;  %v10721_v15 = vld [vmem:[#allocation2 + $0xf4] ss:$28 sps:$4 sm:$0xff]  }
 0x203   :  { %14116 = vst [vmem:[#allocation72_spill] sm:$0xff] %v12157_v0  ;;  %v12163_v38 = vpop.f32.mrf.mxu1  ;;  %4983 = vmatpush1.bf16.msra.mxu0 %v10707_v7  ;;  %v12166_v34 = vadd.f32 %v2947_v45, %v12085_v35  ;;  %v10719_v7 = vld [vmem:[#allocation2 + $0xf0] ss:$28 sps:$4 sm:$0xff]  }
 0x204   :  { %5064 = vmatpush1.bf16.msra.mxu1 %v10710_v52  ;;  %v12168_v4 = vpop.f32.mrf.mxu0  ;;  %4984 = vmatprep.subr.bf16.mxu0 %v10715_v5  ;;  %v10722_v52 = vld [vmem:[#allocation2 + $0x470] ss:$28 sps:$4 sm:$0xff]   ;;  %v10730_v5 = vld [vmem:[#allocation2 + $0x43c] ss:$28 sps:$4 sm:$0xff]  }
 0x205   :  { %14117 = vst [vmem:[#allocation73_spill] sm:$0xff] %v12166_v34  ;;  %14118 = vst [vmem:[#allocation74_spill] sm:$0xff] %v12168_v4  ;;  %v12170_v48 = vpop.f32.mrf.mxu1  ;;  %5065 = vmatprep.subr.bf16.mxu1 %v10718_v39  ;;  %v10727_v39 = vld [vmem:[#allocation2 + $0xbc] ss:$28 sps:$4 sm:$0xff]  }
 0x206   :  { %4861 = vmatmul.mubr.bf16.gmra.mxu0 %v11366_v27  ;;  %v2953_v10 = vpop.f32.mrf.mxu0 }
 0x207   :  { %v9762_v0 = vpop.f32.mrf.mxu1  ;;  %9441 = vmatmul.mubr.msk.bf16.gmra.mxu1 %vm2225_vm1, %v11567_v36  ;;  %4985 = vmatpush1.bf16.msra.mxu0 %v10713_v61  ;;  %v12176_v35 = vadd.f32 %v2953_v10, %v12094_v50 }
 0x208   :  { %5066 = vmatpush1.bf16.msra.mxu1 %v10716_v33  ;;  %v2955_v45 = vpop.f32.mrf.mxu0  ;;  %4986 = vmatprep.subr.bf16.mxu0 %v10721_v15  ;;  %v10725_v15 = vld [vmem:[#allocation2 + $0xb8] ss:$28 sps:$4 sm:$0xff]  }
 0x209   :  { %14119 = vst [vmem:[#allocation75_spill] sm:$0xff] %v12176_v35  ;;  %v9763_v4 = vpop.f32.mrf.mxu1  ;;  %5067 = vmatprep.subr.bf16.mxu1 %v10724_v44  ;;  %v12179_v34 = vadd.f32 %v2955_v45, %v12097_v29  ;;  %4870 = vmatprep.mubr.bf16.mxu0 %v11393_v47  ;;  %v10728_v44 = vld [vmem:[#allocation2 + $0x438] ss:$28 sps:$4 sm:$0xff]  }
 0x20a   :  { %v12181_v14 = vadd.f32 %v9763_v4, %v9762_v0  ;;  %4951 = vmatprep.mubr.bf16.mxu1 %v14060_v40  ;;  %v2957_v61 = vpop.f32.mrf.mxu0  ;;  %v10733_v0 = vld [vmem:[#allocation2 + $0x84] ss:$28 sps:$4 sm:$0xff]  }
 0x20b   :  { %14120 = vst [vmem:[#allocation76_spill] sm:$0xff] %v12179_v34  ;;  %v12185_v50 = vpop.f32.mrf.mxu1  ;;  %4987 = vmatpush1.bf16.msra.mxu0 %v10719_v7  ;;  %v12188_v33 = vadd.f32 %v2957_v61, %v12100_v23  ;;  %v10736_v4 = vld [vmem:[#allocation2 + $0x404] ss:$28 sps:$4 sm:$0xff]  }
 0x20c   :  { %5068 = vmatpush1.bf16.msra.mxu1 %v10722_v52  ;;  %v12190_v10 = vpop.f32.mrf.mxu0  ;;  %4988 = vmatprep.subr.bf16.mxu0 %v10727_v39  ;;  %v10731_v7 = vld [vmem:[#allocation2 + $0x80] ss:$28 sps:$4 sm:$0xff]   ;;  %v10739_v39 = vld [vmem:[#allocation2 + $0x4c] ss:$28 sps:$4 sm:$0xff]  }
 0x20d   :  { %14121 = vst [vmem:[#allocation77_spill] sm:$0xff] %v12188_v33  ;;  %14122 = vst [vmem:[#allocation78_spill] sm:$0xff] %v12190_v10  ;;  %v12192_v29 = vpop.f32.mrf.mxu1  ;;  %5069 = vmatprep.subr.bf16.mxu1 %v10730_v5  ;;  %v10734_v52 = vld [vmem:[#allocation2 + $0x400] ss:$28 sps:$4 sm:$0xff]   ;;  %v10742_v5 = vld [vmem:[#allocation2 + $0x3cc] ss:$28 sps:$4 sm:$0xff]  }
 0x20e   :  { %4871 = vmatmul.mubr.bf16.gmra.mxu0 %v11414_v8  ;;  %v2963_v45 = vpop.f32.mrf.mxu0 }
 0x20f   :  { %v9768_v34 = vpop.f32.mrf.mxu1  ;;  %9442 = vmatmul.mubr.msk.bf16.gmra.mxu1 %vm2225_vm1, %v11584_v63  ;;  %4989 = vmatpush1.bf16.msra.mxu0 %v10725_v15  ;;  %v12198_v23 = vadd.f32 %v2963_v45, %v12107_v56  ;;  %v10740_v45 = vld [vmem:[#allocation2 + $0x3c8] ss:$28 sps:$4 sm:$0xff]   ;;  %v10748_v63 = vld [vmem:[#allocation2 + $0x394] ss:$28 sps:$4 sm:$0xff]  }
 0x210   :  { %5070 = vmatpush1.bf16.msra.mxu1 %v10728_v44  ;;  %v2965_v61 = vpop.f32.mrf.mxu0  ;;  %4990 = vmatprep.subr.bf16.mxu0 %v10733_v0  ;;  %v10737_v44 = vld [vmem:[#allocation2 + $0x48] ss:$28 sps:$4 sm:$0xff]  }
 0x211   :  { %14123 = vst [vmem:[#allocation79_spill] sm:$0xff] %v12198_v23  ;;  %v9769_v10 = vpop.f32.mrf.mxu1  ;;  %5071 = vmatprep.subr.bf16.mxu1 %v10736_v4  ;;  %v12201_v33 = vadd.f32 %v2965_v61, %v12110_v20  ;;  %4880 = vmatprep.mubr.bf16.mxu0 %v11434_v26  ;;  %v10745_v4 = vld [vmem:[#allocation2 + $0x14] ss:$28 sps:$4 sm:$0xff]  }
 0x212   :  { %v12203_v35 = vadd.f32 %v9769_v10, %v9768_v34  ;;  %4961 = vmatprep.mubr.bf16.mxu1 %v14060_v40  ;;  %v2967_v15 = vpop.f32.mrf.mxu0  ;;  %v10743_v10 = vld [vmem:[#allocation2 + $0x10] ss:$28 sps:$4 sm:$0xff]  }
 0x213   :  { %14124 = vst [vmem:[#allocation80_spill] sm:$0xff] %v12201_v33  ;;  %v9771_v56 = vpop.f32.mrf.mxu1  ;;  %4991 = vmatpush1.bf16.msra.mxu0 %v10731_v7  ;;  %v10746_v7 = vld [vmem:[#allocation2 + $0x390] ss:$28 sps:$4 sm:$0xff]  }
 0x214   :  { %5072 = vmatpush1.bf16.msra.mxu1 %v10734_v52  ;;  %v2968_v23 = vpop.f32.mrf.mxu0  ;;  %4992 = vmatprep.subr.bf16.mxu0 %v10739_v39  ;;  %v10754_v39 = vld [vmem:[#allocation2 + $0x6dc] ss:$28 sps:$4 sm:$0xff]  }
 0x215   :  { %v9772_v0 = vpop.f32.mrf.mxu1  ;;  %5073 = vmatprep.subr.bf16.mxu1 %v10742_v5  ;;  %v10751_v23 = vld [vmem:[#allocation2 + $0x35c] ss:$28 sps:$4 sm:$0xff]  }
 0x216   :  { %4881 = vmatmul.mubr.bf16.gmra.mxu0 %v11470_v54  ;;  %v9790_v20 = vpop.f32.mrf.mxu0 }
 0x217   :  { %v3148_v34 = vpop.f32.mrf.mxu1  ;;  %9443 = vmatmul.mubr.msk.bf16.gmra.mxu1 %vm2225_vm1, %v11600_v32  ;;  %4993 = vmatpush1.bf16.msra.mxu0 %v10737_v44  ;;  %v10749_v44 = vld [vmem:[#allocation2 + $0x358] ss:$28 sps:$4 sm:$0xff]  }
 0x218   :  { %5074 = vmatpush1.bf16.msra.mxu1 %v10740_v45  ;;  %v9791_v52 = vpop.f32.mrf.mxu0  ;;  %4994 = vmatprep.subr.bf16.mxu0 %v10745_v4  ;;  %v10752_v45 = vld [vmem:[#allocation2 + $0x6d8] ss:$28 sps:$4 sm:$0xff]   ;;  %v10760_v4 = vld [vmem:[#allocation2 + $0x6a4] ss:$28 sps:$4 sm:$0xff]  }
 0x219   :  { %v10041_v61 = vpop.f32.mrf.mxu1  ;;  %5075 = vmatprep.subr.bf16.mxu1 %v10748_v63  ;;  %v9792_v5 = vadd.f32 %v9791_v52, %v9790_v20  ;;  %4890 = vmatprep.mubr.bf16.mxu0 %v12014_v21  ;;  %v10757_v63 = vld [vmem:[#allocation2 + $0x324] ss:$28 sps:$4 sm:$0xff]   ;;  %v9749_v20 = vadd.f32 %v12129_v28, %v12122_v17  ;;  %v10766_v17 = vld [vmem:[#allocation2 + $0x66c] ss:$28 sps:$4 sm:$0xff]  }
 0x21a   :  { %4971 = vmatprep.mubr.bf16.mxu1 %v14060_v40  ;;  %v9793_v15 = vpop.f32.mrf.mxu0 }
 0x21b   :  { %v3151_v56 = vpop.f32.mrf.mxu1  ;;  %v3077_v0 = vadd.f32 %v9792_v5, %v12120_v11  ;;  %4995 = vmatpush1.bf16.msra.mxu0 %v10743_v10 }
 0x21c   :  { %5076 = vmatpush1.bf16.msra.mxu1 %v10746_v7  ;;  %v9794_v33 = vpop.f32.mrf.mxu0  ;;  %4996 = vmatprep.subr.bf16.mxu0 %v10751_v23  ;;  %v10758_v7 = vld [vmem:[#allocation2 + $0x6a0] ss:$28 sps:$4 sm:$0xff]  }
 0x21d   :  { %v10042_v32 = vpop.f32.mrf.mxu1  ;;  %5077 = vmatprep.subr.bf16.mxu1 %v10754_v39  ;;  %v9795_v52 = vadd.f32 %v9794_v33, %v9793_v15  ;;  %v12215_v61 = vadd.f32 %v3148_v34, %v3077_v0  ;;  %v10763_v39 = vld [vmem:[#allocation2 + $0x2ec] ss:$28 sps:$4 sm:$0xff]  }
 0x21e   :  { %4891 = vmatmul.mubr.bf16.gmra.mxu0 %v12028_v62  ;;  %v9796_v36 = vpop.f32.mrf.mxu0  ;;  %v10755_v32 = vld [vmem:[#allocation2 + $0x320] ss:$28 sps:$4 sm:$0xff]  }
 0x21f   :  { %14125 = vst [vmem:[#allocation81_spill] sm:$0xff] %v12215_v61  ;;  %9444 = vmatmul.mubr.msk.bf16.gmra.mxu1 %vm2225_vm1, %v12083_v58  ;;  %v3156_v11 = vpop.f32.mrf.mxu1  ;;  %v3080_v10 = vadd.f32 %v9795_v52, %v9749_v20  ;;  %4997 = vmatpush2.bf16.msra.mxu0 %v10749_v44  ;;  %v10761_v44 = vld [vmem:[#allocation2 + $0x2e8] ss:$28 sps:$4 sm:$0xff]   ;;  %v10772_v20 = vld [vmem:[#allocation2 + $0x634] ss:$28 sps:$4 sm:$0xff]   ;;  %v9755_v52 = vadd.f32 %v12148_v43, %v12141_v51 }
 0x220   :  { %5078 = vmatpush2.bf16.msra.mxu1 %v10752_v45  ;;  %v9797_v23 = vpop.f32.mrf.mxu0  ;;  %4998 = vmatprep.subr.bf16.mxu0 %v10757_v63  ;;  %v10764_v45 = vld [vmem:[#allocation2 + $0x668] ss:$28 sps:$4 sm:$0xff]  }
 0x221   :  { %5079 = vmatprep.subr.bf16.mxu1 %v10760_v4  ;;  %v10045_v28 = vpop.f32.mrf.mxu1  ;;  %v9798_v33 = vadd.f32 %v9797_v23, %v9796_v36  ;;  %5012 = vmatprep.mubr.bf16.mxu0 %v11896_v55  ;;  %v12222_v34 = vadd.f32 %v3151_v56, %v3080_v10  ;;  %v10769_v4 = vld [vmem:[#allocation2 + $0x2b4] ss:$28 sps:$4 sm:$0xff]  }
 0x222   :  { %5093 = vmatprep.mubr.bf16.mxu1 %v11901_v25  ;;  %v9799_v5 = vpop.f32.mrf.mxu0 }
 0x223   :  { %14126 = vst [vmem:[#allocation82_spill] sm:$0xff] %v12222_v34  ;;  %v3159_v15 = vpop.f32.mrf.mxu1  ;;  %4999 = vmatpush2.bf16.msra.mxu0 %v10755_v32  ;;  %v3085_v0 = vadd.f32 %v9798_v33, %v12139_v1  ;;  %v10767_v1 = vld [vmem:[#allocation2 + $0x2b0] ss:$28 sps:$4 sm:$0xff]  }
 0x224   :  { %5080 = vmatpush2.bf16.msra.mxu1 %v10758_v7  ;;  %v9800_v63 = vpop.f32.mrf.mxu0  ;;  %5000 = vmatprep.subr.bf16.mxu0 %v10763_v39  ;;  %v10770_v7 = vld [vmem:[#allocation2 + $0x630] ss:$28 sps:$4 sm:$0xff]   ;;  %v10775_v39 = vld [vmem:[#allocation2 + $0x27c] ss:$28 sps:$4 sm:$0xff]  }
 0x225   :  { %5081 = vmatprep.subr.bf16.mxu1 %v10766_v17  ;;  %v10046_v36 = vpop.f32.mrf.mxu1  ;;  %v9801_v23 = vadd.f32 %v9800_v63, %v9799_v5  ;;  %v12227_v56 = vadd.f32 %v3156_v11, %v3085_v0  ;;  %v10778_v17 = vld [vmem:[#allocation2 + $0x5fc] ss:$28 sps:$4 sm:$0xff]   ;;  %v10784_v63 = vld [vmem:[#allocation2 + $0x5c4] ss:$28 sps:$4 sm:$0xff]  }
 0x226   :  { %v9802_v10 = vpop.f32.mrf.mxu0  ;;  %v10773_v5 = vld [vmem:[#allocation2 + $0x278] ss:$28 sps:$4 sm:$0xff]  }
 0x227   :  { %v3164_v28 = vpop.f32.mrf.mxu1  ;;  %5001 = vmatpush2.bf16.msra.mxu0 %v10761_v44  ;;  %v3088_v32 = vadd.f32 %v9801_v23, %v9755_v52  ;;  %v10776_v0 = vld [vmem:[#allocation2 + $0x5f8] ss:$28 sps:$4 sm:$0xff]  }
 0x228   :  { %5082 = vmatpush2.bf16.msra.mxu1 %v10764_v45  ;;  %v9803_v33 = vpop.f32.mrf.mxu0  ;;  %5002 = vmatprep.subr.bf16.mxu0 %v10769_v4  ;;  %v10781_v45 = vld [vmem:[#allocation2 + $0x244] ss:$28 sps:$4 sm:$0xff]  }
 0x229   :  { %5083 = vmatprep.subr.bf16.mxu1 %v10772_v20  ;;  %v10049_v34 = vpop.f32.mrf.mxu1  ;;  %v9804_v36 = vadd.f32 %v9803_v33, %v9802_v10  ;;  %v12229_v61 = vadd.f32 %v3159_v15, %v3088_v32  ;;  %v10782_v32 = vld [vmem:[#allocation2 + $0x5c0] ss:$28 sps:$4 sm:$0xff]   ;;  %v10790_v33 = vld [vmem:[#allocation2 + $0x58c] ss:$28 sps:$4 sm:$0xff]  }
 0x22a   :  { %v9805_v43 = vpop.f32.mrf.mxu0  ;;  %v9761_v34 = vadd.f32 %v12170_v48, %v12163_v38 }
 0x22b   :  { %v3167_v51 = vpop.f32.mrf.mxu1  ;;  %5003 = vmatpush2.bf16.msra.mxu0 %v10767_v1  ;;  %v3093_v11 = vadd.f32 %v9804_v36, %v12159_v24  ;;  %v10779_v24 = vld [vmem:[#allocation2 + $0x240] ss:$28 sps:$4 sm:$0xff]  }
 0x22c   :  { %5084 = vmatpush2.bf16.msra.mxu1 %v10770_v7  ;;  %v9806_v44 = vpop.f32.mrf.mxu0  ;;  %5004 = vmatprep.subr.bf16.mxu0 %v10775_v39  ;;  %v10787_v7 = vld [vmem:[#allocation2 + $0x20c] ss:$28 sps:$4 sm:$0xff]  }
 0x22d   :  { %5085 = vmatprep.subr.bf16.mxu1 %v10778_v17  ;;  %v10050_v4 = vpop.f32.mrf.mxu1  ;;  %v9807_v20 = vadd.f32 %v9806_v44, %v9805_v43  ;;  %v12234_v15 = vadd.f32 %v3164_v28, %v3093_v11  ;;  %v10785_v43 = vld [vmem:[#allocation2 + $0x208] ss:$28 sps:$4 sm:$0xff]   ;;  %v10796_v44 = vld [vmem:[#allocation2 + $0x554] ss:$28 sps:$4 sm:$0xff]  }
 0x22e   :  { %v9808_v52 = vpop.f32.mrf.mxu0  ;;  %v10788_v11 = vld [vmem:[#allocation2 + $0x588] ss:$28 sps:$4 sm:$0xff]  }
 0x22f   :  { %v3172_v23 = vpop.f32.mrf.mxu1  ;;  %5005 = vmatpush2.bf16.msra.mxu0 %v10773_v5  ;;  %v3096_v10 = vadd.f32 %v9807_v20, %v9761_v34 }
 0x230   :  { %5086 = vmatpush2.bf16.msra.mxu1 %v10776_v0  ;;  %v9809_v1 = vpop.f32.mrf.mxu0  ;;  %5006 = vmatprep.subr.bf16.mxu0 %v10781_v45  ;;  %v10793_v0 = vld [vmem:[#allocation2 + $0x1d4] ss:$28 sps:$4 sm:$0xff]  }
 0x231   :  { %5087 = vmatprep.subr.bf16.mxu1 %v10784_v63  ;;  %v10053_v39 = vpop.f32.mrf.mxu1  ;;  %v9810_v17 = vadd.f32 %v9809_v1, %v9808_v52  ;;  %v12236_v36 = vadd.f32 %v3167_v51, %v3096_v10  ;;  %v9767_v63 = vadd.f32 %v12192_v29, %v12185_v50  ;;  %v10794_v10 = vld [vmem:[#allocation2 + $0x550] ss:$28 sps:$4 sm:$0xff]   ;;  %v10800_v1 = vld [vmem:[#allocation2 + $0x360] ss:$28 sps:$4 sm:$0xff]  }
 0x232   :  { %v9811_v38 = vpop.f32.mrf.mxu0 }
 0x233   :  { %v3175_v48 = vpop.f32.mrf.mxu1  ;;  %5007 = vmatpush2.bf16.msra.mxu0 %v10779_v24  ;;  %v3101_v28 = vadd.f32 %v9810_v17, %v12181_v14  ;;  %v10791_v14 = vld [vmem:[#allocation2 + $0x1d0] ss:$28 sps:$4 sm:$0xff]   ;;  %v10797_v17 = vld [vmem:[#allocation2 + $0x7b8] ss:$28 sps:$4 sm:$0xff]  }
 0x234   :  { %5088 = vmatpush2.bf16.msra.mxu1 %v10782_v32  ;;  %v9812_v5 = vpop.f32.mrf.mxu0  ;;  %5008 = vmatprep.subr.bf16.mxu0 %v10787_v7  ;;  %v10799_v32 = vld [vmem:[#allocation2 + $0x7bc] ss:$28 sps:$4 sm:$0xff]  }
 0x235   :  { %5089 = vmatprep.subr.bf16.mxu1 %v10790_v33  ;;  %v10054_v45 = vpop.f32.mrf.mxu1  ;;  %v9813_v4 = vadd.f32 %v9812_v5, %v9811_v38  ;;  %v12241_v51 = vadd.f32 %v3172_v23, %v3101_v28  ;;  %v10801_v38 = vld [vmem:[#allocation2 + $0x1a0] ss:$28 sps:$4 sm:$0xff]  }
 0x236   :  { %v9814_v34 = vpop.f32.mrf.mxu0  ;;  %v10804_v5 = vld [vmem:[#allocation2 + $0x784] ss:$28 sps:$4 sm:$0xff]   ;;  %v10807_v45 = vld [vmem:[#allocation2 + $0x2f0] ss:$28 sps:$4 sm:$0xff]  }
 0x237   :  { %v3180_v20 = vpop.f32.mrf.mxu1  ;;  %5009 = vmatpush2.bf16.msra.mxu0 %v10785_v43  ;;  %v3104_v52 = vadd.f32 %v9813_v4, %v9767_v63  ;;  %v10808_v63 = vld [vmem:[#allocation2 + $0x130] ss:$28 sps:$4 sm:$0xff]   ;;  %v10809_v4 = vld [vmem:[#allocation2 + $0x748] ss:$28 sps:$4 sm:$0xff]  }
 0x238   :  { %5090 = vmatpush2.bf16.msra.mxu1 %v10788_v11  ;;  %v9815_v24 = vpop.f32.mrf.mxu0  ;;  %5010 = vmatprep.subr.bf16.mxu0 %v10793_v0  ;;  %v10805_v0 = vld [vmem:[#allocation2 + $0x328] ss:$28 sps:$4 sm:$0xff]  }
 0x239   :  { %5091 = vmatprep.subr.bf16.mxu1 %v10796_v44  ;;  %v10057_v7 = vpop.f32.mrf.mxu1  ;;  %v9816_v33 = vadd.f32 %v9815_v24, %v9814_v34  ;;  %v12243_v39 = vadd.f32 %v3175_v48, %v3104_v52  ;;  %v10802_v48 = vld [vmem:[#allocation2 + $0x780] ss:$28 sps:$4 sm:$0xff]   ;;  %v10811_v44 = vld [vmem:[#allocation2 + $0x74c] ss:$28 sps:$4 sm:$0xff]   ;;  %v10812_v34 = vld [vmem:[#allocation2 + $0x2b8] ss:$28 sps:$4 sm:$0xff]  }
 0x23a   :  { %v9817_v50 = vpop.f32.mrf.mxu0  ;;  %v10813_v52 = vld [vmem:[#allocation2 + $0xf8] ss:$28 sps:$4 sm:$0xff]   ;;  %v10825_v24 = vld [vmem:[#allocation2 + $0x6e0] ss:$28 sps:$4 sm:$0xff]   ;;  %v10817_v7 = vld [vmem:[#allocation2 + $0x88] ss:$28 sps:$4 sm:$0xff]  }
 0x23b   :  { %v3183_v29 = vpop.f32.mrf.mxu1  ;;  %5011 = vmatpush2.bf16.msra.mxu0 %v10791_v14  ;;  %v3109_v23 = vadd.f32 %v9816_v33, %v12203_v35  ;;  %v10806_v35 = vld [vmem:[#allocation2 + $0x168] ss:$28 sps:$4 sm:$0xff]   ;;  %v10818_v14 = vld [vmem:[#allocation2 + $0x710] ss:$28 sps:$4 sm:$0xff]  }
 0x23c   :  { %5092 = vmatpush2.bf16.msra.mxu1 %v10794_v10  ;;  %5150 = vmatprep.subr.bf16.mxu0 %v10799_v32  ;;  %v9818_v28 = vpop.f32.mrf.mxu0  ;;  %v10814_v10 = vld [vmem:[#allocation2 + $0x280] ss:$28 sps:$4 sm:$0xff]   ;;  %v10821_v33 = vld [vmem:[#allocation2 + $0x210] ss:$28 sps:$4 sm:$0xff]   ;;  %v10823_v29 = vld [vmem:[#allocation2 + $0x1d8] ss:$28 sps:$4 sm:$0xff]  }
 0x23d   :  { %9829 = vmatprep.subr.bf16.mxu1 %v10800_v1  ;;  %v10058_v43 = vpop.f32.mrf.mxu1  ;;  %v12246_v11 = vadd.f32 %v3180_v20, %v3109_v23  ;;  %v10820_v20 = vld [vmem:[#allocation2 + $0x714] ss:$28 sps:$4 sm:$0xff]   ;;  %v10815_v32 = vld [vmem:[#allocation2 + $0xc0] ss:$28 sps:$4 sm:$0xff]   ;;  %v10816_v1 = vld [vmem:[#allocation2 + $0x248] ss:$28 sps:$4 sm:$0xff]  }
 0x23e   :  { %5013 = vmatmul.mubr.bf16.vlgmr.msra.gmra.mxu0 %v11946_v22  ;;  %v10822_v50 = vld [vmem:[#allocation2 + $0x50] ss:$28 sps:$4 sm:$0xff]  }
 0x23f   :  { %5094 = vmatmul.mubr.bf16.vlgmr.msra.gmra.mxu1 %v11951_v12  ;;  %5151 = vmatpush1.bf16.msra.mxu0 %v10797_v17 }
 0x240   :  { %5022 = vmatprep.mubr.bf16.mxu0 %v11318_v53  ;;  %5103 = vmatprep.mubr.bf16.mxu1 %v11329_v60 }
 0x241   :  { %9830 = vmatpush3.bf16.msra.mxu1 %v10801_v38  ;;  %5152 = vmatprep.subr.bf16.mxu0 %v10804_v5  ;;  %v10824_v5 = vld [vmem:[#allocation2 + $0x18] ss:$28 sps:$4 sm:$0xff]  }
 0x242   :  { %9831 = vmatprep.subr.bf16.mxu1 %v10805_v0 }
 0x243   :  { %5153 = vmatpush1.bf16.msra.mxu0 %v10802_v48 }
 0x244   :  { %5154 = vmatprep.subr.bf16.mxu0 %v10811_v44 }
 0x245   :  { %9832 = vmatpush3.bf16.msra.mxu1 %v10806_v35 }
 0x246   :  { %9833 = vmatprep.subr.bf16.mxu1 %v10807_v45  ;;  %5023 = vmatmul.mubr.bf16.gmra.mxu0 %v11359_v19 }
 0x247   :  { %5104 = vmatmul.mubr.bf16.gmra.mxu1 %v11366_v27  ;;  %5032 = vmatprep.mubr.bf16.mxu0 %v11391_v46 }
 0x248   :  { %5113 = vmatprep.mubr.bf16.mxu1 %v11393_v47  ;;  %5155 = vmatpush1.bf16.msra.mxu0 %v10809_v4 }
 0x249   :  { %9834 = vmatpush3.bf16.msra.mxu1 %v10808_v63  ;;  %5156 = vmatprep.subr.bf16.mxu0 %v10820_v20 }
 0x24a   :  { %9835 = vmatprep.subr.bf16.mxu1 %v10812_v34 }
 0x24c   :  { %5157 = vmatpush1.bf16.msra.mxu0 %v10818_v14 }
 0x24d   :  { %9836 = vmatpush3.bf16.msra.mxu1 %v10813_v52  ;;  %9875 = vmatprep.subr.bf16.mxu0 %v10825_v24 }
 0x24e   :  { %9837 = vmatprep.subr.bf16.mxu1 %v10814_v10  ;;  %5033 = vmatmul.mubr.bf16.gmra.mxu0 %v11412_v2 }
 0x24f   :  { %5114 = vmatmul.mubr.bf16.gmra.mxu1 %v11414_v8  ;;  %5042 = vmatprep.mubr.bf16.mxu0 %v11427_v18 }
 0x250   :  { %5123 = vmatprep.mubr.bf16.mxu1 %v11434_v26 }
 0x251   :  { %9838 = vmatpush3.bf16.msra.mxu1 %v10815_v32 }
 0x252   :  { %9839 = vmatprep.subr.bf16.mxu1 %v10816_v1 }
 0x255   :  { %9840 = vmatpush3.bf16.msra.mxu1 %v10817_v7 }
 0x256   :  { %9841 = vmatprep.subr.bf16.mxu1 %v10821_v33  ;;  %5043 = vmatmul.mubr.bf16.gmra.mxu0 %v11468_v49  ;;  %v4528_v23 = vpop.f32.mrf.mxu0 }
 0x257   :  { %5124 = vmatmul.mubr.bf16.gmra.mxu1 %v11470_v54  ;;  %v4609_v17 = vpop.f32.mrf.mxu1  ;;  %v4529_v38 = vadd.f32 %v4528_v23, %v11782_v37  ;;  %5052 = vmatprep.mubr.bf16.mxu0 %v12012_v31  ;;  %v10827_v23 = vld [vmem:[#allocation2 + $0x6a8] ss:$28 sps:$4 sm:$0xff]  }
 0x258   :  { %5133 = vmatprep.mubr.bf16.mxu1 %v12014_v21  ;;  %v4530_v28 = vpop.f32.mrf.mxu0 }
 0x259   :  { %v4611_v43 = vpop.f32.mrf.mxu1  ;;  %9842 = vmatpush3.bf16.msra.mxu1 %v10822_v50  ;;  %v12265_v0 = vadd.f32 %v4609_v17, %v4529_v38  ;;  %v4531_v48 = vadd.f32 %v4530_v28, %v11787_v13  ;;  %v10826_v50 = vld [vmem:[#allocation2 + $0x520] ss:$28 sps:$4 sm:$0xff]   ;;  %v10828_v28 = vld [vmem:[#allocation2 + $0x4e8] ss:$28 sps:$4 sm:$0xff]  }
 0x25a   :  { %9843 = vmatprep.subr.bf16.mxu1 %v10823_v29  ;;  %v4532_v35 = vpop.f32.mrf.mxu0 }
 0x25b   :  { %v4613_v44 = vpop.f32.mrf.mxu1  ;;  %v12268_v45 = vadd.f32 %v4611_v43, %v4531_v48  ;;  %v4533_v63 = vadd.f32 %v4532_v35, %v11790_v3  ;;  %v10830_v48 = vld [vmem:[#allocation2 + $0x670] ss:$28 sps:$4 sm:$0xff]  }
 0x25c   :  { %v12271_v37 = vpop.f32.mrf.mxu0 }
 0x25d   :  { %14127 = vst [vmem:[#allocation83_spill] sm:$0xff] %v12271_v37  ;;  %v12273_v4 = vpop.f32.mrf.mxu1  ;;  %9844 = vmatpush3.bf16.msra.mxu1 %v10824_v5  ;;  %v12275_v34 = vadd.f32 %v4613_v44, %v4533_v63 }
 0x25e   :  { %14128 = vst [vmem:[#allocation84_spill] sm:$0xff] %v12273_v4  ;;  %10059 = vmatprep.subr.bf16.mxu1 %v14057_v30  ;;  %5053 = vmatmul.mubr.bf16.gmra.mxu0 %v12026_v59  ;;  %v4538_v13 = vpop.f32.mrf.mxu0 }
 0x25f   :  { %5134 = vmatmul.mubr.bf16.gmra.mxu1 %v12028_v62  ;;  %v4619_v20 = vpop.f32.mrf.mxu1  ;;  %v4539_v52 = vadd.f32 %v4538_v13, %v11798_v57  ;;  %5174 = vmatprep.mubr.bf16.mxu0 %v14060_v40 }
 0x260   :  { %5255 = vmatprep.mubr.bf16.mxu1 %v11896_v55  ;;  %v4540_v3 = vpop.f32.mrf.mxu0  ;;  %v10829_v55 = vld [vmem:[#allocation2 + $0x7c0] ss:$28 sps:$4 sm:$0xff]  }
 0x261   :  { %v4621_v14 = vpop.f32.mrf.mxu1  ;;  %v4541_v10 = vadd.f32 %v4540_v3, %v11804_v16  ;;  %v12284_v24 = vadd.f32 %v4619_v20, %v4539_v52  ;;  %v10831_v3 = vld [vmem:[#allocation2 + $0x4b0] ss:$28 sps:$4 sm:$0xff]  }
 0x262   :  { %v4542_v32 = vpop.f32.mrf.mxu0 }
 0x263   :  { %v4623_v1 = vpop.f32.mrf.mxu1  ;;  %v4543_v7 = vadd.f32 %v4542_v32, %v11807_v41  ;;  %v12287_v33 = vadd.f32 %v4621_v14, %v4541_v10 }
 0x264   :  { %v12289_v29 = vpop.f32.mrf.mxu0 }
 0x265   :  { %14129 = vst [vmem:[#allocation85_spill] sm:$0xff] %v12289_v29  ;;  %v12291_v57 = vpop.f32.mrf.mxu1  ;;  %v12293_v17 = vadd.f32 %v4623_v1, %v4543_v7  ;;  %v14134_v1 = vld [vmem:[#allocation8_spill] sm:$0xff]  ;;  %v14143_v29 = vld [vmem:[#allocation10_spill] sm:$0xff] }
 0x266   :  { %14130 = vst [vmem:[#allocation86_spill] sm:$0xff] %v12291_v57  ;;  %9445 = vmatmul.mubr.msk.bf16.vlgmr.msra.gmra.mxu0 %vm2225_vm1, %v12040_v42  ;;  %v4548_v16 = vpop.f32.mrf.mxu0 }
 0x267   :  { %5256 = vmatmul.mubr.bf16.vlgmr.msra.gmra.mxu1 %v11946_v22  ;;  %v4629_v38 = vpop.f32.mrf.mxu1  ;;  %v4549_v41 = vadd.f32 %v4548_v16, %v11815_v9  ;;  %9876 = vmatpush3.bf16.msra.mxu0 %v10826_v50  ;;  %v10834_v22 = vld [vmem:[#allocation2 + $0x788] ss:$28 sps:$4 sm:$0xff]   ;;  %v14131_v9 = vld [vmem:[#allocation21_spill] sm:$0xff] }
 0x268   :  { %5184 = vmatprep.mubr.bf16.mxu0 %v14060_v40  ;;  %v4550_v43 = vpop.f32.mrf.mxu0  ;;  %9877 = vmatprep.subr.bf16.mxu0 %v10827_v23  ;;  %v10839_v23 = vld [vmem:[#allocation2 + $0x750] ss:$28 sps:$4 sm:$0xff]  }
 0x269   :  { %v4631_v5 = vpop.f32.mrf.mxu1  ;;  %5263 = vmatprep.mubr.bf16.mxu1 %v11318_v53  ;;  %v4551_v35 = vadd.f32 %v4550_v43, %v11818_v6  ;;  %v12302_v44 = vadd.f32 %v4629_v38, %v4549_v41  ;;  %10060 = vmatpush3.bf16.msra.mxu1 %v10829_v55  ;;  %v10832_v6 = vld [vmem:[#allocation2 + $0x638] ss:$28 sps:$4 sm:$0xff]   ;;  %v14135_v55 = vld [vmem:[#allocation23_spill] sm:$0xff] }
 0x26a   :  { %v4552_v63 = vpop.f32.mrf.mxu0  ;;  %10061 = vmatprep.subr.bf16.mxu1 %v14057_v30  ;;  %v10833_v38 = vld [vmem:[#allocation2 + $0x478] ss:$28 sps:$4 sm:$0xff]   ;;  %v10835_v43 = vld [vmem:[#allocation2 + $0x600] ss:$28 sps:$4 sm:$0xff]  }
 0x26b   :  { %v4633_v13 = vpop.f32.mrf.mxu1  ;;  %v4553_v20 = vadd.f32 %v4552_v63, %v14131_v9  ;;  %v12306_v52 = vadd.f32 %v4631_v5, %v4551_v35  ;;  %9878 = vmatpush3.bf16.msra.mxu0 %v10828_v28  ;;  %v14136_v5 = vld [vmem:[#allocation24_spill] sm:$0xff] }
 0x26c   :  { %v12308_v14 = vpop.f32.mrf.mxu0  ;;  %9879 = vmatprep.subr.bf16.mxu0 %v10830_v48 }
 0x26d   :  { %14132 = vst [vmem:[#allocation21_spill] sm:$0xff] %v12308_v14  ;;  %v12310_v10 = vpop.f32.mrf.mxu1  ;;  %v12312_v32 = vadd.f32 %v4633_v13, %v4553_v20  ;;  %10062 = vmatpush3.bf16.msra.mxu1 %v10834_v22  ;;  %v14137_v13 = vld [vmem:[#allocation25_spill] sm:$0xff] }
 0x26e   :  { %14133 = vst [vmem:[#allocation87_spill] sm:$0xff] %v12310_v10  ;;  %9446 = vmatmul.mubr.msk.bf16.gmra.mxu0 %vm2225_vm1, %v14134_v1  ;;  %v4558_v7 = vpop.f32.mrf.mxu0  ;;  %10063 = vmatprep.subr.bf16.mxu1 %v14057_v30  ;;  %v10842_v14 = vld [vmem:[#allocation2 + $0x558] ss:$28 sps:$4 sm:$0xff]  }
 0x26f   :  { %5264 = vmatmul.mubr.bf16.gmra.mxu1 %v11359_v19  ;;  %v4639_v50 = vpop.f32.mrf.mxu1  ;;  %v4559_v16 = vadd.f32 %v4558_v7, %v14135_v55  ;;  %9880 = vmatpush3.bf16.msra.mxu0 %v10831_v3  ;;  %v10836_v3 = vld [vmem:[#allocation2 + $0x440] ss:$28 sps:$4 sm:$0xff]  }
 0x270   :  { %5194 = vmatprep.mubr.bf16.mxu0 %v14060_v40  ;;  %v4560_v41 = vpop.f32.mrf.mxu0  ;;  %5271 = vmatprep.mubr.bf16.mxu1 %v11391_v46 }
 0x271   :  { %v4641_v28 = vpop.f32.mrf.mxu1  ;;  %9881 = vmatprep.subr.bf16.mxu0 %v10832_v6  ;;  %v4561_v48 = vadd.f32 %v4560_v41, %v14136_v5  ;;  %v12321_v35 = vadd.f32 %v4639_v50, %v4559_v16  ;;  %10064 = vmatpush3.bf16.msra.mxu1 %v10839_v23  ;;  %v10837_v50 = vld [vmem:[#allocation2 + $0x5c8] ss:$28 sps:$4 sm:$0xff]   ;;  %v10844_v16 = vld [vmem:[#allocation2 + $0x718] ss:$28 sps:$4 sm:$0xff]  }
 0x272   :  { %v4562_v22 = vpop.f32.mrf.mxu0  ;;  %10065 = vmatprep.subr.bf16.mxu1 %v14057_v30  ;;  %v14140_v41 = vld [vmem:[#allocation9_spill] sm:$0xff]  ;;  %v14141_v5 = vld [vmem:[#allocation28_spill] sm:$0xff] }
 0x273   :  { %v4643_v63 = vpop.f32.mrf.mxu1  ;;  %v4563_v9 = vadd.f32 %v4562_v22, %v14137_v13  ;;  %v12325_v20 = vadd.f32 %v4641_v28, %v4561_v48  ;;  %9882 = vmatpush3.bf16.msra.mxu0 %v10833_v38  ;;  %v10850_v38 = vld [vmem:[#allocation2 + $0x14cc] ss:$28 sps:$4 sm:$0xff]  }
 0x274   :  { %v12328_v7 = vpop.f32.mrf.mxu0  ;;  %9883 = vmatprep.subr.bf16.mxu0 %v10835_v43  ;;  %v10838_v22 = vld [vmem:[#allocation2 + $0x408] ss:$28 sps:$4 sm:$0xff]  }
 0x275   :  { %14138 = vst [vmem:[#allocation8_spill] sm:$0xff] %v12328_v7  ;;  %v12330_v6 = vpop.f32.mrf.mxu1  ;;  %v12332_v55 = vadd.f32 %v4643_v63, %v4563_v9  ;;  %v10840_v63 = vld [vmem:[#allocation2 + $0x590] ss:$28 sps:$4 sm:$0xff]   ;;  %10066 = vmatpush3.bf16.msra.mxu1 %v10844_v16 }
 0x276   :  { %14139 = vst [vmem:[#allocation23_spill] sm:$0xff] %v12330_v6  ;;  %9447 = vmatmul.mubr.msk.bf16.gmra.mxu0 %vm2225_vm1, %v14140_v41  ;;  %v4568_v23 = vpop.f32.mrf.mxu0  ;;  %v14142_v9 = vld [vmem:[#allocation29_spill] sm:$0xff]  ;;  %7231 = vmatprep.subr.bf16.mxu1 %v10850_v38  ;;  %v10847_v16 = vld [vmem:[#allocation2 + $0x114c] ss:$28 sps:$4 sm:$0xff]  }
 0x277   :  { %5272 = vmatmul.mubr.bf16.gmra.mxu1 %v11412_v2  ;;  %v4649_v28 = vpop.f32.mrf.mxu1  ;;  %v4569_v48 = vadd.f32 %v4568_v23, %v14141_v5  ;;  %9884 = vmatpush3.bf16.msra.mxu0 %v10836_v3  ;;  %v10841_v23 = vld [vmem:[#allocation2 + $0x3d0] ss:$28 sps:$4 sm:$0xff]  }
 0x278   :  { %5204 = vmatprep.mubr.bf16.mxu0 %v14060_v40  ;;  %v4570_v13 = vpop.f32.mrf.mxu0  ;;  %5279 = vmatprep.mubr.bf16.mxu1 %v11427_v18 }
 0x279   :  { %v4651_v43 = vpop.f32.mrf.mxu1  ;;  %9885 = vmatprep.subr.bf16.mxu0 %v10837_v50  ;;  %v4571_v6 = vadd.f32 %v4570_v13, %v14142_v9  ;;  %v12341_v10 = vadd.f32 %v4649_v28, %v4569_v48  ;;  %v10853_v9 = vld [vmem:[#allocation2 + $0x1114] ss:$28 sps:$4 sm:$0xff]  }
 0x27a   :  { %v4572_v57 = vpop.f32.mrf.mxu0 }
 0x27b   :  { %v4653_v4 = vpop.f32.mrf.mxu1  ;;  %v12343_v7 = vadd.f32 %v4651_v43, %v4571_v6  ;;  %9886 = vmatpush3.bf16.msra.mxu0 %v10838_v22  ;;  %v10843_v57 = vld [vmem:[#allocation2 + $0x398] ss:$28 sps:$4 sm:$0xff]   ;;  %v10845_v43 = vld [vmem:[#allocation2 + $0x1148] ss:$28 sps:$4 sm:$0xff]  }
 0x27c   :  { %v4573_v3 = vpop.f32.mrf.mxu0  ;;  %9887 = vmatprep.subr.bf16.mxu0 %v10840_v63  ;;  %v10848_v63 = vld [vmem:[#allocation2 + $0x14c8] ss:$28 sps:$4 sm:$0xff]  }
 0x27d   :  { %v4654_v5 = vpop.f32.mrf.mxu1  ;;  %v10851_v3 = vld [vmem:[#allocation2 + $0x1110] ss:$28 sps:$4 sm:$0xff]  }
 0x27e   :  { %9448 = vmatmul.mubr.msk.bf16.gmra.mxu0 %vm2225_vm1, %v14143_v29  ;;  %v4690_v50 = vpop.f32.mrf.mxu0  ;;  %v10859_v5 = vld [vmem:[#allocation2 + $0x10dc] ss:$28 sps:$4 sm:$0xff]  }
 0x27f   :  { %5280 = vmatmul.mubr.bf16.gmra.mxu1 %v11468_v49  ;;  %v12349_v28 = vadd.f32 %v4690_v50, %v12265_v0  ;;  %5214 = vmatprep.mubr.bf16.mxu0 %v14060_v40  ;;  %v10862_v50 = vld [vmem:[#allocation2 + $0x145c] ss:$28 sps:$4 sm:$0xff]  }
 0x280   :  { %5287 = vmatprep.mubr.bf16.mxu1 %v12012_v31  ;;  %v4692_v4 = vpop.f32.mrf.mxu0  ;;  %9888 = vmatpush3.bf16.msra.mxu0 %v10841_v23 }
 0x281   :  { %14144 = vst [vmem:[#allocation24_spill] sm:$0xff] %v12349_v28  ;;  %v12354_v6 = vadd.f32 %v4692_v4, %v12268_v45  ;;  %9889 = vmatprep.subr.bf16.mxu0 %v10842_v14 }
 0x282   :  { %v4694_v38 = vpop.f32.mrf.mxu0 }
 0x283   :  { %14145 = vst [vmem:[#allocation25_spill] sm:$0xff] %v12354_v6  ;;  %v12357_v48 = vadd.f32 %v4694_v38, %v12275_v34  ;;  %v10865_v38 = vld [vmem:[#allocation2 + $0x10a4] ss:$28 sps:$4 sm:$0xff]  }
 0x284   :  { %v12359_v22 = vpop.f32.mrf.mxu0  ;;  %9890 = vmatpush3.bf16.msra.mxu0 %v10843_v57  ;;  %v10860_v57 = vld [vmem:[#allocation2 + $0x1458] ss:$28 sps:$4 sm:$0xff]  }
 0x285   :  { %14146 = vst [vmem:[#allocation9_spill] sm:$0xff] %v12357_v48  ;;  %14147 = vst [vmem:[#allocation28_spill] sm:$0xff] %v12359_v22  ;;  %7150 = vmatprep.subr.bf16.mxu0 %v10847_v16  ;;  %v10926_v48 = vld [vmem:[#allocation2 + $0x1570] ss:$28 sps:$4 sm:$0xff]  }
 0x286   :  { %9449 = vmatmul.mubr.msk.bf16.gmra.mxu0 %vm2225_vm1, %v12083_v58  ;;  %v4700_v31 = vpop.f32.mrf.mxu0  ;;  %v14251_v22 = vld [vmem:[#allocation77_spill] sm:$0xff] }
 0x287   :  { %5288 = vmatmul.mubr.bf16.gmra.mxu1 %v12026_v59  ;;  %v12365_v0 = vadd.f32 %v4700_v31, %v12284_v24  ;;  %5327 = vmatprep.mubr.bf16.mxu0 %v11901_v25  ;;  %v10856_v24 = vld [vmem:[#allocation2 + $0x1494] ss:$28 sps:$4 sm:$0xff]  }
 0x288   :  { %10067 = vmatprep.mubr.msk.bf16.mxu1 %vm11266_vm2, %v14057_v30  ;;  %v4702_v45 = vpop.f32.mrf.mxu0 }
 0x289   :  { %14148 = vst [vmem:[#allocation29_spill] sm:$0xff] %v12365_v0  ;;  %v12371_v34 = vadd.f32 %v4702_v45, %v12287_v33 }
 0x28a   :  { %v4704_v14 = vpop.f32.mrf.mxu0 }
 0x28b   :  { %14149 = vst [vmem:[#allocation10_spill] sm:$0xff] %v12371_v34  ;;  %v12374_v13 = vadd.f32 %v4704_v14, %v12293_v17  ;;  %v10854_v17 = vld [vmem:[#allocation2 + $0x1490] ss:$28 sps:$4 sm:$0xff]  }
 0x28c   :  { %v12376_v59 = vpop.f32.mrf.mxu0  ;;  %v14157_v14 = vld [vmem:[#allocation33_spill] sm:$0xff] }
 0x28d   :  { %14150 = vst [vmem:[#allocation88_spill] sm:$0xff] %v12374_v13  ;;  %14151 = vst [vmem:[#allocation89_spill] sm:$0xff] %v12376_v59  ;;  %v14179_v13 = vld [vmem:[#allocation54_spill] sm:$0xff] }
 0x28e   :  { %5328 = vmatmul.mubr.bf16.vlgmr.msra.gmra.mxu0 %v11951_v12  ;;  %v4710_v25 = vpop.f32.mrf.mxu0 }
 0x28f   :  { %10068 = vmatmul.mubr.msk.bf16.vlgmr.msra.gmra.mxu1 %vm2225_vm1, %v12040_v42  ;;  %7151 = vmatpush1.bf16.msra.mxu0 %v10845_v43  ;;  %v12382_v33 = vadd.f32 %v4710_v25, %v12302_v44  ;;  %v10857_v44 = vld [vmem:[#allocation2 + $0x10d8] ss:$28 sps:$4 sm:$0xff]  }
 0x290   :  { %7232 = vmatpush1.bf16.msra.mxu1 %v10848_v63  ;;  %v4712_v23 = vpop.f32.mrf.mxu0  ;;  %7152 = vmatprep.subr.bf16.mxu0 %v10853_v9  ;;  %v10863_v63 = vld [vmem:[#allocation2 + $0x10a0] ss:$28 sps:$4 sm:$0xff]  }
 0x291   :  { %14152 = vst [vmem:[#allocation90_spill] sm:$0xff] %v12382_v33  ;;  %7233 = vmatprep.subr.bf16.mxu1 %v10856_v24  ;;  %v12385_v4 = vadd.f32 %v4712_v23, %v12306_v52  ;;  %5335 = vmatprep.mubr.bf16.mxu0 %v11329_v60  ;;  %v10868_v52 = vld [vmem:[#allocation2 + $0x1424] ss:$28 sps:$4 sm:$0xff]  }
 0x292   :  { %10071 = vmatprep.mubr.msk.bf16.mxu1 %vm11266_vm2, %v14057_v30  ;;  %v4714_v12 = vpop.f32.mrf.mxu0  ;;  %v10866_v9 = vld [vmem:[#allocation2 + $0x1420] ss:$28 sps:$4 sm:$0xff]  }
 0x293   :  { %14153 = vst [vmem:[#allocation91_spill] sm:$0xff] %v12385_v4  ;;  %7153 = vmatpush1.bf16.msra.mxu0 %v10851_v3  ;;  %v12391_v42 = vadd.f32 %v4714_v12, %v12312_v32  ;;  %v10871_v3 = vld [vmem:[#allocation2 + $0x106c] ss:$28 sps:$4 sm:$0xff]  }
 0x294   :  { %7234 = vmatpush1.bf16.msra.mxu1 %v10854_v17  ;;  %v12393_v16 = vpop.f32.mrf.mxu0  ;;  %7154 = vmatprep.subr.bf16.mxu0 %v10859_v5  ;;  %v10874_v17 = vld [vmem:[#allocation2 + $0x13ec] ss:$28 sps:$4 sm:$0xff]   ;;  %v14159_v5 = vld [vmem:[#allocation34_spill] sm:$0xff] }
 0x295   :  { %14154 = vst [vmem:[#allocation92_spill] sm:$0xff] %v12391_v42  ;;  %14155 = vst [vmem:[#allocation93_spill] sm:$0xff] %v12393_v16  ;;  %7235 = vmatprep.subr.bf16.mxu1 %v10862_v50  ;;  %v10898_v42 = vld [vmem:[#allocation2 + $0x168c] ss:$28 sps:$4 sm:$0xff]   ;;  %v10932_v16 = vld [vmem:[#allocation2 + $0x1538] ss:$28 sps:$4 sm:$0xff]  }
 0x296   :  { %5336 = vmatmul.mubr.bf16.gmra.mxu0 %v11366_v27  ;;  %v4720_v31 = vpop.f32.mrf.mxu0  ;;  %v14171_v4 = vld [vmem:[#allocation44_spill] sm:$0xff] }
 0x297   :  { %v4771_v45 = vpop.f32.mrf.mxu1  ;;  %10072 = vmatmul.mubr.msk.bf16.gmra.mxu1 %vm2225_vm1, %v14134_v1  ;;  %7155 = vmatpush1.bf16.msra.mxu0 %v10857_v44  ;;  %v12399_v32 = vadd.f32 %v4720_v31, %v12321_v35 }
 0x298   :  { %7236 = vmatpush1.bf16.msra.mxu1 %v10860_v57  ;;  %v12402_v43 = vadd.f32 %v4771_v45, %v14157_v14  ;;  %v4722_v24 = vpop.f32.mrf.mxu0  ;;  %7156 = vmatprep.subr.bf16.mxu0 %v10865_v38  ;;  %v14161_v57 = vld [vmem:[#allocation37_spill] sm:$0xff] }
 0x299   :  { %14156 = vst [vmem:[#allocation94_spill] sm:$0xff] %v12399_v32  ;;  %v4773_v25 = vpop.f32.mrf.mxu1  ;;  %7237 = vmatprep.subr.bf16.mxu1 %v10868_v52  ;;  %v12405_v23 = vadd.f32 %v4722_v24, %v12325_v20  ;;  %5343 = vmatprep.mubr.bf16.mxu0 %v11393_v47  ;;  %v10869_v20 = vld [vmem:[#allocation2 + $0x1068] ss:$28 sps:$4 sm:$0xff]   ;;  %v10877_v14 = vld [vmem:[#allocation2 + $0x1034] ss:$28 sps:$4 sm:$0xff]  }
 0x29a   :  { %v12408_v50 = vadd.f32 %v4773_v25, %v14159_v5  ;;  %10075 = vmatprep.mubr.msk.bf16.mxu1 %vm11266_vm2, %v14057_v30  ;;  %v4724_v35 = vpop.f32.mrf.mxu0  ;;  %v10872_v52 = vld [vmem:[#allocation2 + $0x13e8] ss:$28 sps:$4 sm:$0xff]   ;;  %v10880_v24 = vld [vmem:[#allocation2 + $0x13b4] ss:$28 sps:$4 sm:$0xff]   ;;  %v14165_v25 = vld [vmem:[#allocation38_spill] sm:$0xff] }
 0x29b   :  { %14158 = vst [vmem:[#allocation33_spill] sm:$0xff] %v12405_v23  ;;  %v4775_v12 = vpop.f32.mrf.mxu1  ;;  %7157 = vmatpush1.bf16.msra.mxu0 %v10863_v63  ;;  %v12414_v44 = vadd.f32 %v4724_v35, %v12332_v55  ;;  %v10875_v35 = vld [vmem:[#allocation2 + $0x1030] ss:$28 sps:$4 sm:$0xff]   ;;  %v14167_v23 = vld [vmem:[#allocation39_spill] sm:$0xff] }
 0x29c   :  { %7238 = vmatpush1.bf16.msra.mxu1 %v10866_v9  ;;  %v12417_v38 = vadd.f32 %v4775_v12, %v14161_v57  ;;  %v12419_v31 = vpop.f32.mrf.mxu0  ;;  %7158 = vmatprep.subr.bf16.mxu0 %v10871_v3  ;;  %v10878_v3 = vld [vmem:[#allocation2 + $0x13b0] ss:$28 sps:$4 sm:$0xff]   ;;  %v10883_v57 = vld [vmem:[#allocation2 + $0xffc] ss:$28 sps:$4 sm:$0xff]  }
 0x29d   :  { %14160 = vst [vmem:[#allocation34_spill] sm:$0xff] %v12414_v44  ;;  %14162 = vst [vmem:[#allocation37_spill] sm:$0xff] %v12419_v31  ;;  %v12421_v45 = vpop.f32.mrf.mxu1  ;;  %7239 = vmatprep.subr.bf16.mxu1 %v10874_v17  ;;  %v10895_v32 = vld [vmem:[#allocation2 + $0x130c] ss:$28 sps:$4 sm:$0xff]  }
 0x29e   :  { %14163 = vst [vmem:[#allocation95_spill] sm:$0xff] %v12421_v45  ;;  %5344 = vmatmul.mubr.bf16.gmra.mxu0 %v11414_v8  ;;  %v4730_v63 = vpop.f32.mrf.mxu0  ;;  %v10886_v45 = vld [vmem:[#allocation2 + $0x137c] ss:$28 sps:$4 sm:$0xff]  }
 0x29f   :  { %v4781_v9 = vpop.f32.mrf.mxu1  ;;  %10076 = vmatmul.mubr.msk.bf16.gmra.mxu1 %vm2225_vm1, %v14140_v41  ;;  %7159 = vmatpush1.bf16.msra.mxu0 %v10869_v20  ;;  %v12427_v55 = vadd.f32 %v4730_v63, %v12341_v10 }
 0x2a0   :  { %7240 = vmatpush1.bf16.msra.mxu1 %v10872_v52  ;;  %v12430_v5 = vadd.f32 %v4781_v9, %v14165_v25  ;;  %v4732_v17 = vpop.f32.mrf.mxu0  ;;  %7160 = vmatprep.subr.bf16.mxu0 %v10877_v14  ;;  %v10881_v52 = vld [vmem:[#allocation2 + $0xff8] ss:$28 sps:$4 sm:$0xff]  }
 0x2a1   :  { %14164 = vst [vmem:[#allocation96_spill] sm:$0xff] %v12427_v55  ;;  %v4783_v12 = vpop.f32.mrf.mxu1  ;;  %7241 = vmatprep.subr.bf16.mxu1 %v10880_v24  ;;  %v12433_v44 = vadd.f32 %v4732_v17, %v12343_v7  ;;  %5351 = vmatprep.mubr.bf16.mxu0 %v11434_v26  ;;  %v14168_v14 = vld [vmem:[#allocation42_spill] sm:$0xff]  ;;  %v5440_v7 = vld [vmem:[%s14003_s0 + $0x8] sm:$0xfc]  ;;  %v10889_v17 = vld [vmem:[#allocation2 + $0xfc4] ss:$28 sps:$4 sm:$0xff]  }
 0x2a2   :  { %v12436_v20 = vadd.f32 %v4783_v12, %v14167_v23  ;;  %10079 = vmatprep.mubr.msk.bf16.mxu1 %vm11266_vm2, %v14057_v30  ;;  %v4734_v63 = vpop.f32.mrf.mxu0  ;;  %v10884_v9 = vld [vmem:[#allocation2 + $0x1378] ss:$28 sps:$4 sm:$0xff]   ;;  %v10892_v12 = vld [vmem:[#allocation2 + $0x1344] ss:$28 sps:$4 sm:$0xff]  }
 0x2a3   :  { %14166 = vst [vmem:[#allocation38_spill] sm:$0xff] %v12433_v44  ;;  %v4785_v10 = vpop.f32.mrf.mxu1  ;;  %7161 = vmatpush1.bf16.msra.mxu0 %v10875_v35  ;;  %v5442_v23 = vld [vmem:[%s14003_s0 + $0x18] sm:$0xfc] }
 0x2a4   :  { %7242 = vmatpush1.bf16.msra.mxu1 %v10878_v3  ;;  %v12442_v24 = vadd.f32 %v4785_v10, %v14168_v14  ;;  %7162 = vmatprep.subr.bf16.mxu0 %v10883_v57  ;;  %v4735_v35 = vpop.f32.mrf.mxu0  ;;  %v11210_v10 = vld [vmem:[%s14003_s0 + $0x30] sm:$0xff]  ;;  %v11211_v14 = vld [vmem:[%s14003_s0 + $0x40] sm:$0xff] }
 0x2a5   :  { %v12450_v25 = vpop.f32.mrf.mxu1  ;;  %7243 = vmatprep.subr.bf16.mxu1 %v10886_v45  ;;  %v5450_v63 = vpack.c.bf16 %v11210_v10, %v5440_v7  ;;  %v5452_v57 = vpack.c.bf16 %v11211_v14, %v5442_v23  ;;  %v14170_v45 = vld [vmem:[#allocation43_spill] sm:$0xff]  ;;  %v14020_v7 = vrot.slane %v11318_v53, 1  ;;  %v10904_v14 = vld [vmem:[#allocation2 + $0x1654] ss:$28 sps:$4 sm:$0xff]  }
 0x2a6   :  { %14169 = vst [vmem:[#allocation39_spill] sm:$0xff] %v12450_v25  ;;  %5352 = vmatmul.mubr.bf16.gmra.mxu0 %v11470_v54  ;;  %v10887_v25 = vld [vmem:[#allocation2 + $0xfc0] ss:$28 sps:$4 sm:$0xff]   ;;  %v10893_v10 = vld [vmem:[#allocation2 + $0x1308] ss:$28 sps:$4 sm:$0xff]  }
 0x2a7   :  { %v4791_v3 = vpop.f32.mrf.mxu1  ;;  %10080 = vmatmul.mubr.msk.bf16.gmra.mxu1 %vm2225_vm1, %v14143_v29  ;;  %7163 = vmatpush1.bf16.msra.mxu0 %v10881_v52  ;;  %v10890_v44 = vld [vmem:[#allocation2 + $0x1340] ss:$28 sps:$4 sm:$0xff]   ;;  %v5783_v23 = vrot.slane %v5452_v57, 1  ;;  %v10902_v57 = vld [vmem:[#allocation2 + $0x1650] ss:$28 sps:$4 sm:$0xff]  }
 0x2a8   :  { %7244 = vmatpush1.bf16.msra.mxu1 %v10884_v9  ;;  %v12462_v35 = vadd.f32 %v4791_v3, %v14170_v45  ;;  %7164 = vmatprep.subr.bf16.mxu0 %v10889_v17  ;;  %v5777_v9 = vrot.slane %v5450_v63, 1  ;;  %v14019_v3 = vrot.slane %v11329_v60, 1  ;;  %v14172_v17 = vld [vmem:[#allocation47_spill] sm:$0xff] }
 0x2a9   :  { %v4793_v55 = vpop.f32.mrf.mxu1  ;;  %7245 = vmatprep.subr.bf16.mxu1 %v10892_v12  ;;  %5359 = vmatprep.mubr.bf16.mxu0 %v12014_v21  ;;  %v10901_v21 = vld [vmem:[#allocation2 + $0x12d4] ss:$28 sps:$4 sm:$0xff]  }
 0x2aa   :  { %v12465_v33 = vadd.f32 %v4793_v55, %v14171_v4  ;;  %10083 = vmatprep.mubr.msk.bf16.mxu1 %vm11266_vm2, %v14057_v30  ;;  %v10896_v4 = vld [vmem:[#allocation2 + $0x1688] ss:$28 sps:$4 sm:$0xff]  }
 0x2ab   :  { %v4795_v52 = vpop.f32.mrf.mxu1  ;;  %7165 = vmatpush1.bf16.msra.mxu0 %v10887_v25  ;;  %v12488_v25 = vsel %vm5773_vm3, %v5783_v23, %v14019_v3 }
 0x2ac   :  { %7246 = vmatpush1.bf16.msra.mxu1 %v10890_v44  ;;  %v12473_v12 = vadd.f32 %v4795_v52, %v14172_v17  ;;  %7166 = vmatprep.subr.bf16.mxu0 %v10895_v32  ;;  %v12483_v44 = vsel %vm5773_vm3, %v5777_v9, %v14020_v7  ;;  %v10910_v52 = vld [vmem:[#allocation2 + $0x161c] ss:$28 sps:$4 sm:$0xff]   ;;  %v14175_v17 = vld [vmem:[#allocation49_spill] sm:$0xff] }
 0x2ad   :  { %v12475_v55 = vpop.f32.mrf.mxu1  ;;  %7247 = vmatprep.subr.bf16.mxu1 %v10898_v42  ;;  %v14174_v42 = vld [vmem:[#allocation48_spill] sm:$0xff] }
 0x2ae   :  { %14173 = vst [vmem:[#allocation42_spill] sm:$0xff] %v12475_v55  ;;  %5360 = vmatmul.mubr.bf16.gmra.mxu0 %v12028_v62  ;;  %v10899_v62 = vld [vmem:[#allocation2 + $0x12d0] ss:$28 sps:$4 sm:$0xff]   ;;  %v10911_v55 = vld [vmem:[#allocation2 + $0x1260] ss:$28 sps:$4 sm:$0xff]  }
 0x2af   :  { %v4801_v63 = vpop.f32.mrf.mxu1  ;;  %10084 = vmatmul.mubr.msk.bf16.gmra.mxu1 %vm2225_vm1, %v12083_v58  ;;  %7167 = vmatpush2.bf16.msra.mxu0 %v10893_v10  ;;  %v10907_v58 = vld [vmem:[#allocation2 + $0x129c] ss:$28 sps:$4 sm:$0xff]   ;;  %v14176_v10 = vld [vmem:[#allocation52_spill] sm:$0xff] }
 0x2b0   :  { %7248 = vmatpush2.bf16.msra.mxu1 %v10896_v4  ;;  %v12491_v32 = vadd.f32 %v4801_v63, %v14174_v42  ;;  %7168 = vmatprep.subr.bf16.mxu0 %v10901_v21  ;;  %v10905_v63 = vld [vmem:[#allocation2 + $0x1298] ss:$28 sps:$4 sm:$0xff]   ;;  %v10913_v21 = vld [vmem:[#allocation2 + $0x1264] ss:$28 sps:$4 sm:$0xff]  }
 0x2b1   :  { %v4803_v45 = vpop.f32.mrf.mxu1  ;;  %7249 = vmatprep.subr.bf16.mxu1 %v10904_v14  ;;  %7182 = vmatprep.mubr.bf16.mxu0 %v12483_v44  ;;  %v10908_v42 = vld [vmem:[#allocation2 + $0x1618] ss:$28 sps:$4 sm:$0xff]   ;;  %v10916_v14 = vld [vmem:[#allocation2 + $0x15e4] ss:$28 sps:$4 sm:$0xff]  }
 0x2b2   :  { %v12494_v9 = vadd.f32 %v4803_v45, %v14175_v17  ;;  %7263 = vmatprep.mubr.bf16.mxu1 %v12488_v25  ;;  %v14178_v17 = vld [vmem:[#allocation53_spill] sm:$0xff] }
 0x2b3   :  { %v4805_v23 = vpop.f32.mrf.mxu1  ;;  %7169 = vmatpush2.bf16.msra.mxu0 %v10899_v62  ;;  %v10914_v62 = vld [vmem:[#allocation2 + $0x15e0] ss:$28 sps:$4 sm:$0xff]  }
 0x2b4   :  { %7250 = vmatpush2.bf16.msra.mxu1 %v10902_v57  ;;  %v12499_v4 = vadd.f32 %v4805_v23, %v14176_v10  ;;  %7170 = vmatprep.subr.bf16.mxu0 %v10907_v58  ;;  %v10919_v23 = vld [vmem:[#allocation2 + $0x122c] ss:$28 sps:$4 sm:$0xff]  }
 0x2b5   :  { %v12501_v3 = vpop.f32.mrf.mxu1  ;;  %7251 = vmatprep.subr.bf16.mxu1 %v10910_v52  ;;  %v10922_v10 = vld [vmem:[#allocation2 + $0x15ac] ss:$28 sps:$4 sm:$0xff]  }
 0x2b6   :  { %14177 = vst [vmem:[#allocation43_spill] sm:$0xff] %v12501_v3  ;;  %v10917_v52 = vld [vmem:[#allocation2 + $0x1228] ss:$28 sps:$4 sm:$0xff]  }
 0x2b7   :  { %v4811_v45 = vpop.f32.mrf.mxu1  ;;  %7171 = vmatpush2.bf16.msra.mxu0 %v10905_v63  ;;  %v10920_v3 = vld [vmem:[#allocation2 + $0x15a8] ss:$28 sps:$4 sm:$0xff]  }
 0x2b8   :  { %7252 = vmatpush2.bf16.msra.mxu1 %v10908_v42  ;;  %v12504_v7 = vadd.f32 %v4811_v45, %v14178_v17  ;;  %7172 = vmatprep.subr.bf16.mxu0 %v10913_v21  ;;  %v10925_v42 = vld [vmem:[#allocation2 + $0x11f4] ss:$28 sps:$4 sm:$0xff]  }
 0x2b9   :  { %v4813_v57 = vpop.f32.mrf.mxu1  ;;  %7253 = vmatprep.subr.bf16.mxu1 %v10916_v14  ;;  %v10928_v45 = vld [vmem:[#allocation2 + $0x1574] ss:$28 sps:$4 sm:$0xff]  }
 0x2ba   :  { %v12507_v34 = vadd.f32 %v4813_v57, %v14179_v13  ;;  %v10923_v14 = vld [vmem:[#allocation2 + $0x11f0] ss:$28 sps:$4 sm:$0xff]   ;;  %v5439_v13 = vld [vmem:[%s14003_s0] sm:$0xfc]  ;;  %v10931_v57 = vld [vmem:[#allocation2 + $0x11bc] ss:$28 sps:$4 sm:$0xff]  }
 0x2bb   :  { %v4815_v58 = vpop.f32.mrf.mxu1  ;;  %7173 = vmatpush2.bf16.msra.mxu0 %v10911_v55 }
 0x2bc   :  { %7254 = vmatpush2.bf16.msra.mxu1 %v10914_v62  ;;  %7174 = vmatprep.subr.bf16.mxu0 %v10919_v23  ;;  %v10934_v23 = vld [vmem:[#allocation2 + $0x153c] ss:$28 sps:$4 sm:$0xff]  }
 0x2bd   :  { %v4816_v63 = vpop.f32.mrf.mxu1  ;;  %7255 = vmatprep.subr.bf16.mxu1 %v10922_v10  ;;  %v5441_v10 = vld [vmem:[%s14003_s0 + $0x10] sm:$0xfc] }
 0x2be   :  { %v4852_v17 = vpop.f32.mrf.mxu0  ;;  %v11212_v63 = vld [vmem:[%s14003_s0 + $0x28] sm:$0xff] }
 0x2bf   :  { %v4933_v0 = vpop.f32.mrf.mxu1  ;;  %v4853_v21 = vadd.f32 %v4852_v17, %v12402_v43  ;;  %7175 = vmatpush2.bf16.msra.mxu0 %v10917_v52  ;;  %v5449_v17 = vpack.c.bf16 %v11212_v63, %v5439_v13 }
 0x2c0   :  { %7256 = vmatpush2.bf16.msra.mxu1 %v10920_v3  ;;  %v4854_v55 = vpop.f32.mrf.mxu0  ;;  %7176 = vmatprep.subr.bf16.mxu0 %v10925_v42 }
 0x2c1   :  { %v4935_v62 = vpop.f32.mrf.mxu1  ;;  %7257 = vmatprep.subr.bf16.mxu1 %v10928_v45  ;;  %v12516_v58 = vadd.f32 %v4933_v0, %v4853_v21  ;;  %v4855_v43 = vadd.f32 %v4854_v55, %v12408_v50  ;;  %v10929_v45 = vld [vmem:[#allocation2 + $0x11b8] ss:$28 sps:$4 sm:$0xff]   ;;  %v8391_v21 = vld [vmem:[%s14004_s1] sm:$0xff]  ;;  %v5774_v63 = vrot.slane %v5449_v17, 1 }
 0x2c2   :  { %v4856_v3 = vpop.f32.mrf.mxu0  ;;  %v11213_v0 = vld [vmem:[%s14003_s0 + $0x38] sm:$0xff]  ;;  %8402 = vperm.xlu0 %10123, %v8391_v21   ;;  %v10943_v21 = vld [vmem:[#allocation2 + $0x176c] ss:$28 sps:$4 sm:$0xff]   ;;  %v10946_v17 = vld [vmem:[#allocation2 + $0x1154] ss:$28 sps:$4 sm:$0xff]  }
 0x2c3   :  { %14180 = vst [vmem:[#allocation44_spill] sm:$0xff] %v12516_v58  ;;  %v4937_v52 = vpop.f32.mrf.mxu1  ;;  %v12522_v31 = vadd.f32 %v4935_v62, %v4855_v43  ;;  %v4857_v42 = vadd.f32 %v4856_v3, %v12417_v38  ;;  %7177 = vmatpush2.bf16.msra.mxu0 %v10923_v14  ;;  %v5451_v50 = vpack.c.bf16 %v11213_v0, %v5441_v10  ;;  %v10937_v38 = vld [vmem:[#allocation2 + $0x1184] ss:$28 sps:$4 sm:$0xff]  }
 0x2c4   :  { %7258 = vmatpush2.bf16.msra.mxu1 %v10926_v48  ;;  %v12531_v55 = vpop.f32.mrf.mxu0  ;;  %7178 = vmatprep.subr.bf16.mxu0 %v10931_v57  ;;  %v10940_v14 = vld [vmem:[#allocation2 + $0x1504] ss:$28 sps:$4 sm:$0xff]  }
 0x2c5   :  { %14181 = vst [vmem:[#allocation47_spill] sm:$0xff] %v12522_v31  ;;  %14182 = vst [vmem:[#allocation48_spill] sm:$0xff] %v12531_v55  ;;  %v12533_v13 = vpop.f32.mrf.mxu1  ;;  %7259 = vmatprep.subr.bf16.mxu1 %v10934_v23  ;;  %v12535_v48 = vadd.f32 %v4937_v52, %v4857_v42  ;;  %v10935_v3 = vld [vmem:[#allocation2 + $0x1180] ss:$28 sps:$4 sm:$0xff]   ;;  %v5780_v58 = vrot.slane %v5451_v50, 1  ;;  %v8392_v23 = vld [vmem:[%s14004_s1 + $0x8] sm:$0xff] }
 0x2c6   :  { %14183 = vst [vmem:[#allocation49_spill] sm:$0xff] %v12533_v13  ;;  %v4862_v62 = vpop.f32.mrf.mxu0  ;;  %v10938_v31 = vld [vmem:[#allocation2 + $0x1500] ss:$28 sps:$4 sm:$0xff]   ;;  %8407 = vperm.xlu0 %10123, %v8392_v23   ;;  %v14186_v50 = vrot.slane %v11359_v19, 1  ;;  %v10944_v23 = vld [vmem:[#allocation2 + $0x1150] ss:$28 sps:$4 sm:$0xff]  }
 0x2c7   :  { %14184 = vst [vmem:[#allocation52_spill] sm:$0xff] %v12535_v48  ;;  %v4943_v43 = vpop.f32.mrf.mxu1  ;;  %v4863_v0 = vadd.f32 %v4862_v62, %v12430_v5  ;;  %7179 = vmatpush2.bf16.msra.mxu0 %v10929_v45  ;;  %v11028_v55 = vld [vmem:[#allocation2 + $0x1690] ss:$28 sps:$4 sm:$0xff]  }
 0x2c8   :  { %7260 = vmatpush2.bf16.msra.mxu1 %v10932_v16  ;;  %v4864_v52 = vpop.f32.mrf.mxu0  ;;  %7180 = vmatprep.subr.bf16.mxu0 %v10937_v38  ;;  %v14021_v16 = vrot.slane %v11391_v46, 1  ;;  %v12550_v62 = vsel %vm5773_vm3, %v5774_v63, %v14186_v50  ;;  %v14022_v38 = vrot.slane %v11393_v47, 1  ;;  %v8393_v63 = vld [vmem:[%s14004_s1 + $0x10] sm:$0xff] }
 0x2c9   :  { %7261 = vmatprep.subr.bf16.mxu1 %v10940_v14  ;;  %v4945_v42 = vpop.f32.mrf.mxu1  ;;  %v4865_v10 = vadd.f32 %v4864_v52, %v12436_v20  ;;  %v12544_v48 = vadd.f32 %v4943_v43, %v4863_v0  ;;  %v14188_v20 = vrot.slane %v11366_v27, 1  ;;  %v10941_v0 = vld [vmem:[#allocation2 + $0x1768] ss:$28 sps:$4 sm:$0xff]   ;;  %8412 = vperm.xlu1 %10124, %v8393_v63   ;;  %v10953_v63 = vld [vmem:[#allocation2 + $0x1730] ss:$28 sps:$4 sm:$0xff]  }
 0x2ca   :  { %v4866_v5 = vpop.f32.mrf.mxu0 }
 0x2cb   :  { %14185 = vst [vmem:[#allocation53_spill] sm:$0xff] %v12544_v48  ;;  %v4947_v45 = vpop.f32.mrf.mxu1  ;;  %v4867_v14 = vadd.f32 %v4866_v5, %v12442_v24  ;;  %v12554_v57 = vadd.f32 %v4945_v42, %v4865_v10  ;;  %7181 = vmatpush2.bf16.msra.mxu0 %v10935_v3  ;;  %v12559_v43 = vsel %vm5773_vm3, %v5780_v58, %v14188_v20  ;;  %v10949_v10 = vld [vmem:[#allocation2 + $0x111c] ss:$28 sps:$4 sm:$0xff]   ;;  %v10955_v42 = vld [vmem:[#allocation2 + $0x1734] ss:$28 sps:$4 sm:$0xff]   ;;  %v14194_v5 = vrot.slane %v11329_v60, 1 }
 0x2cc   :  { %7262 = vmatpush2.bf16.msra.mxu1 %v10938_v31  ;;  %14189 = vst [vmem:[#allocation97_spill] sm:$0xff] %v12559_v43  ;;  %v12564_v52 = vpop.f32.mrf.mxu0  ;;  %7320 = vmatprep.subr.bf16.mxu0 %v10943_v21  ;;  %v14193_v31 = vrot.slane %v11318_v53, 1  ;;  %v10964_v53 = vld [vmem:[#allocation2 + $0x16fc] ss:$28 sps:$4 sm:$0xff]   ;;  %v14214_v48 = vrot.slane %v11412_v2, 1 }
 0x2cd   :  { %14187 = vst [vmem:[#allocation54_spill] sm:$0xff] %v12554_v57  ;;  %14190 = vst [vmem:[#allocation98_spill] sm:$0xff] %v12564_v52  ;;  %7393 = vmatprep.subr.bf16.mxu1 %v10946_v17  ;;  %v12566_v24 = vpop.f32.mrf.mxu1  ;;  %v12568_v3 = vadd.f32 %v4947_v45, %v4867_v14  ;;  %v12584_v45 = vsel %vm5773_vm3, %v14194_v5, %v14022_v38  ;;  %v10947_v14 = vld [vmem:[#allocation2 + $0x1118] ss:$28 sps:$4 sm:$0xff]   ;;  %v10952_v5 = vld [vmem:[#allocation2 + $0x10e4] ss:$28 sps:$4 sm:$0xff]  }
 0x2ce   :  { %14191 = vst [vmem:[#allocation99_spill] sm:$0xff] %v12566_v24  ;;  %v12575_v58 = vsel %vm5773_vm3, %v14193_v31, %v14021_v16  ;;  %7183 = vmatmul.mubr.bf16.vlgmr.msra.gmra.mxu0 %v12550_v62  ;;  %v4872_v21 = vpop.f32.mrf.mxu0  ;;  %14195 = vst [vmem:[#allocation101_spill] sm:$0xff] %v12584_v45  ;;  %v8394_v31 = vld [vmem:[%s14004_s1 + $0x18] sm:$0xff]  ;;  %v14198_v38 = vrot.slane %v11359_v19, 1  ;;  %v14215_v24 = vrot.slane %v11470_v54, 1 }
 0x2cf   :  { %14192 = vst [vmem:[#allocation100_spill] sm:$0xff] %v12568_v3  ;;  %7264 = vmatmul.mubr.bf16.vlgmr.msra.gmra.mxu1 %v12559_v43  ;;  %v4953_v17 = vpop.f32.mrf.mxu1  ;;  %v4873_v50 = vadd.f32 %v4872_v21, %v12462_v35  ;;  %7321 = vmatpush1.bf16.msra.mxu0 %v10941_v0  ;;  %v14197_v3 = vrot.slane %v11412_v2, 1  ;;  %v10950_v19 = vld [vmem:[#allocation2 + $0x10e0] ss:$28 sps:$4 sm:$0xff]   ;;  %v8397_v2 = vld [vmem:[%s14004_s1 + $0x30] sm:$0xff] }
 0x2d0   :  { %7394 = vmatpush1.bf16.msra.mxu1 %v10944_v23  ;;  %v4874_v16 = vpop.f32.mrf.mxu0  ;;  %7192 = vmatprep.mubr.bf16.mxu0 %v12575_v58 }
 0x2d1   :  { %7395 = vmatprep.subr.bf16.mxu1 %v10949_v10  ;;  %v4955_v60 = vpop.f32.mrf.mxu1  ;;  %v4875_v35 = vadd.f32 %v4874_v16, %v12465_v33  ;;  %v12595_v0 = vadd.f32 %v4953_v17, %v4873_v50  ;;  %7273 = vmatprep.mubr.bf16.mxu1 %v12584_v45  ;;  %v5445_v10 = vld [vmem:[%s14003_s0 + $0x148] sm:$0xff]  ;;  %v12607_v57 = vsel %vm5773_vm3, %v14198_v38, %v14197_v3  ;;  %v5447_v33 = vld [vmem:[%s14003_s0 + $0x158] sm:$0xff]  ;;  %v14200_v17 = vrot.slane %v11414_v8, 1  ;;  %v8395_v38 = vld [vmem:[%s14004_s1 + $0x20] sm:$0xff] }
 0x2d2   :  { %7322 = vmatprep.subr.bf16.mxu0 %v10955_v42  ;;  %v4876_v21 = vpop.f32.mrf.mxu0  ;;  %8417 = vperm.xlu1 %10124, %v8394_v31   ;;  %v14201_v50 = vrot.slane %v11366_v27, 1  ;;  %v10958_v31 = vld [vmem:[#allocation2 + $0x10ac] ss:$28 sps:$4 sm:$0xff]  }
 0x2d3   :  { %14196 = vst [vmem:[#allocation102_spill] sm:$0xff] %v12595_v0  ;;  %v4957_v20 = vpop.f32.mrf.mxu1  ;;  %v4877_v16 = vadd.f32 %v4876_v21, %v12473_v12  ;;  %v12613_v42 = vadd.f32 %v4955_v60, %v4875_v35  ;;  %7323 = vmatpush1.bf16.msra.mxu0 %v10953_v63  ;;  %v14206_v60 = vrot.slane %v11391_v46, 1  ;;  %v5455_v35 = vpack.c.bf16 %v5445_v10, %v5445_v10  ;;  %v10976_v10 = vld [vmem:[#allocation2 + $0x16c4] ss:$28 sps:$4 sm:$0xff]  }
 0x2d4   :  { %7396 = vmatpush1.bf16.msra.mxu1 %v10947_v14  ;;  %v12620_v23 = vsel %vm5773_vm3, %v14201_v50, %v14200_v17  ;;  %v12625_v3 = vpop.f32.mrf.mxu0  ;;  %v14205_v14 = vrot.slane %v11427_v18, 1  ;;  %7324 = vmatprep.subr.bf16.mxu0 %v10964_v53  ;;  %v14208_v21 = vrot.slane %v11434_v26, 1  ;;  %v14209_v17 = vrot.slane %v11393_v47, 1  ;;  %v10962_v50 = vld [vmem:[#allocation2 + $0x16f8] ss:$28 sps:$4 sm:$0xff]  }
 0x2d5   :  { %14199 = vst [vmem:[#allocation103_spill] sm:$0xff] %v12613_v42  ;;  %14202 = vst [vmem:[#allocation104_spill] sm:$0xff] %v12620_v23  ;;  %7397 = vmatprep.subr.bf16.mxu1 %v10952_v5  ;;  %v12627_v12 = vpop.f32.mrf.mxu1  ;;  %v12636_v63 = vadd.f32 %v4957_v20, %v4877_v16  ;;  %v5457_v42 = vpack.c.bf16 %v5447_v33, %v5447_v33  ;;  %8422 = vperm.xlu0 %10123, %v8395_v38   ;;  %v10956_v47 = vld [vmem:[#allocation2 + $0x10a8] ss:$28 sps:$4 sm:$0xff]   ;;  %v10974_v53 = vld [vmem:[#allocation2 + $0x16c0] ss:$28 sps:$4 sm:$0xff]  }
 0x2d6   :  { %14203 = vst [vmem:[#allocation105_spill] sm:$0xff] %v12625_v3  ;;  %14204 = vst [vmem:[#allocation106_spill] sm:$0xff] %v12627_v12  ;;  %v12634_v27 = vsel %vm5773_vm3, %v14206_v60, %v14205_v14  ;;  %v12643_v5 = vsel %vm5773_vm3, %v14209_v17, %v14208_v21  ;;  %7193 = vmatmul.mubr.bf16.gmra.mxu0 %v12607_v57  ;;  %v4882_v46 = vpop.f32.mrf.mxu0  ;;  %v8396_v33 = vld [vmem:[%s14004_s1 + $0x28] sm:$0xff]  ;;  %v10961_v21 = vld [vmem:[#allocation2 + $0x1074] ss:$28 sps:$4 sm:$0xff]   ;;  %v12655_v17 = vrot.slane %v5455_v35, 1 }
 0x2d7   :  { %14207 = vst [vmem:[#allocation107_spill] sm:$0xff] %v12636_v63  ;;  %14210 = vst [vmem:[#allocation108_spill] sm:$0xff] %v12643_v5  ;;  %7274 = vmatmul.mubr.bf16.gmra.mxu1 %v12620_v23  ;;  %v4963_v14 = vpop.f32.mrf.mxu1  ;;  %v4883_v16 = vadd.f32 %v4882_v46, %v12491_v32  ;;  %7202 = vmatprep.mubr.bf16.mxu0 %v12634_v27  ;;  %v5444_v32 = vld [vmem:[%s14003_s0 + $0x140] sm:$0xff]  ;;  %v14213_v0 = vrot.slane %v11468_v49, 1 }
 0x2d8   :  { %7398 = vmatpush1.bf16.msra.mxu1 %v10950_v19  ;;  %v4884_v38 = vpop.f32.mrf.mxu0  ;;  %7283 = vmatprep.mubr.bf16.mxu1 %v12643_v5  ;;  %v5446_v19 = vld [vmem:[%s14003_s0 + $0x150] sm:$0xff] }
 0x2d9   :  { %7399 = vmatprep.subr.bf16.mxu1 %v10958_v31  ;;  %v4965_v60 = vpop.f32.mrf.mxu1  ;;  %v4885_v46 = vadd.f32 %v4884_v38, %v12494_v9  ;;  %v12664_v20 = vadd.f32 %v4963_v14, %v4883_v16  ;;  %7325 = vmatpush1.bf16.msra.mxu0 %v10962_v50  ;;  %v12666_v31 = vrot.slane %v5457_v42, 1  ;;  %v12673_v12 = vsel %vm5773_vm3, %v14214_v48, %v14213_v0  ;;  %v10959_v16 = vld [vmem:[#allocation2 + $0x1070] ss:$28 sps:$4 sm:$0xff]  }
 0x2da   :  { %8427 = vperm.xlu1 %10124, %v8396_v33   ;;  %v4886_v63 = vpop.f32.mrf.mxu0  ;;  %v14216_v9 = vrot.slane %v11414_v8, 1  ;;  %7326 = vmatprep.subr.bf16.mxu0 %v10976_v10  ;;  %v5454_v33 = vpack.c.bf16 %v5444_v32, %v5444_v32  ;;  %v5456_v38 = vpack.c.bf16 %v5446_v19, %v5446_v19  ;;  %v14221_v0 = vrot.slane %v11427_v18, 1  ;;  %v10965_v19 = vld [vmem:[#allocation2 + $0x1038] ss:$28 sps:$4 sm:$0xff]  }
 0x2db   :  { %14211 = vst [vmem:[#allocation109_spill] sm:$0xff] %v12664_v20  ;;  %14212 = vst [vmem:[#allocation110_spill] sm:$0xff] %v12666_v31  ;;  %v4967_v35 = vpop.f32.mrf.mxu1  ;;  %v4887_v42 = vadd.f32 %v4886_v63, %v12499_v4  ;;  %v12683_v50 = vadd.f32 %v4965_v60, %v4885_v46  ;;  %8432 = vperm.xlu0 %10123, %v8397_v2   ;;  %v14223_v10 = vrot.slane %v11434_v26, 1  ;;  %v10985_v60 = vld [vmem:[#allocation2 + $0x14d4] ss:$28 sps:$4 sm:$0xff]  }
 0x2dc   :  { %v12680_v14 = vsel %vm5773_vm3, %v14216_v9, %v14215_v24  ;;  %7400 = vmatpush1.bf16.msra.mxu1 %v10956_v47  ;;  %v12688_v48 = vpop.f32.mrf.mxu0  ;;  %v10967_v24 = vld [vmem:[#allocation2 + $0x103c] ss:$28 sps:$4 sm:$0xff]   ;;  %v12696_v4 = vsel %vm5773_vm3, %v14221_v0, %v12655_v17  ;;  %v12710_v46 = vrot.slane %v5454_v33, 1  ;;  %v12712_v26 = vrot.slane %v5456_v38, 1 }
 0x2dd   :  { %14217 = vst [vmem:[#allocation111_spill] sm:$0xff] %v12680_v14  ;;  %14218 = vst [vmem:[#allocation112_spill] sm:$0xff] %v12683_v50  ;;  %7401 = vmatprep.subr.bf16.mxu1 %v10961_v21  ;;  %v12690_v8 = vpop.f32.mrf.mxu1  ;;  %v12698_v63 = vadd.f32 %v4967_v35, %v4887_v42  ;;  %v12704_v47 = vsel %vm5773_vm3, %v14223_v10, %v12666_v31  ;;  %7327 = vmatpush1.bf16.msra.mxu0 %v10974_v53  ;;  %v8398_v53 = vld [vmem:[%s14004_s1 + $0x38] sm:$0xff]  ;;  %v10970_v42 = vld [vmem:[#allocation2 + $0x1004] ss:$28 sps:$4 sm:$0xff]   ;;  %v14228_v0 = vrot.slane %v11468_v49, 1 }
 0x2de   :  { %14219 = vst [vmem:[#allocation113_spill] sm:$0xff] %v12688_v48  ;;  %14220 = vst [vmem:[#allocation114_spill] sm:$0xff] %v12690_v8  ;;  %7203 = vmatmul.mubr.bf16.gmra.mxu0 %v12673_v12  ;;  %v4892_v21 = vpop.f32.mrf.mxu0  ;;  %7474 = vmatprep.subr.bf16.mxu0 %v10985_v60  ;;  %v14229_v10 = vrot.slane %v11470_v54, 1  ;;  %v8399_v60 = vld [vmem:[%s14004_s1 + $0x40] sm:$0x3f] }
 0x2df   :  { %14222 = vst [vmem:[#allocation115_spill] sm:$0xff] %v12698_v63  ;;  %14224 = vst [vmem:[#allocation116_spill] sm:$0xff] %v12704_v47  ;;  %7284 = vmatmul.mubr.bf16.gmra.mxu1 %v12680_v14  ;;  %v4973_v18 = vpop.f32.mrf.mxu1  ;;  %v4893_v32 = vadd.f32 %v4892_v21, %v12504_v7  ;;  %7212 = vmatprep.mubr.bf16.mxu0 %v12696_v4  ;;  %v10968_v21 = vld [vmem:[#allocation2 + $0x1000] ss:$28 sps:$4 sm:$0xff]   ;;  %v10971_v49 = vld [vmem:[#allocation2 + $0xfc8] ss:$28 sps:$4 sm:$0xff]  }
 0x2e0   :  { %7402 = vmatpush1.bf16.msra.mxu1 %v10959_v16  ;;  %14225 = vst [vmem:[#allocation117_spill] sm:$0xff] %v12712_v26  ;;  %v4894_v35 = vpop.f32.mrf.mxu0  ;;  %7293 = vmatprep.mubr.bf16.mxu1 %v12704_v47  ;;  %v10979_v54 = vld [vmem:[#allocation2 + $0x1314] ss:$28 sps:$4 sm:$0xff]   ;;  %v14234_v63 = vld [vmem:[#allocation64_spill] sm:$0xff]  ;;  %v11010_v20 = vld [vmem:[#allocation2 + $0x11c0] ss:$28 sps:$4 sm:$0xff]  }
 0x2e1   :  { %7403 = vmatprep.subr.bf16.mxu1 %v10967_v24  ;;  %v4975_v9 = vpop.f32.mrf.mxu1  ;;  %v4895_v7 = vadd.f32 %v4894_v35, %v12507_v34  ;;  %v12719_v16 = vadd.f32 %v4973_v18, %v4893_v32  ;;  %8437 = vperm.xlu1 %10124, %v8398_v53   ;;  %v12727_v24 = vsel %vm5773_vm3, %v14228_v0, %v12710_v46  ;;  %v10973_v18 = vld [vmem:[#allocation2 + $0xfcc] ss:$28 sps:$4 sm:$0xff]   ;;  %v5443_v53 = vld [vmem:[%s14003_s0 + $0x20] sm:$0xfc]  ;;  %v5787_v0 = vrot.slane %v14134_v1, 1 }
 0x2e2   :  { %v4896_v33 = vpop.f32.mrf.mxu0  ;;  %v12733_v34 = vsel %vm5773_vm3, %v14229_v10, %v12712_v26  ;;  %8442 = vperm.xlu0 %10123, %v8399_v60   ;;  %v10977_v35 = vld [vmem:[#allocation2 + $0x1310] ss:$28 sps:$4 sm:$0xff]   ;;  %v10988_v10 = vld [vmem:[#allocation2 + $0x12a4] ss:$28 sps:$4 sm:$0xff]  }
 0x2e3   :  { %14226 = vst [vmem:[#allocation118_spill] sm:$0xff] %v12719_v16  ;;  %v4977_v2 = vpop.f32.mrf.mxu1  ;;  %v12721_v38 = vadd.f32 %v4975_v9, %v4895_v7  ;;  %14230 = vst [vmem:[#allocation120_spill] sm:$0xff] %v12733_v34  ;;  %v11214_v9 = vld [vmem:[%s14003_s0 + $0x48] sm:$0xff]  ;;  %v10982_v7 = vld [vmem:[#allocation2 + $0x12dc] ss:$28 sps:$4 sm:$0xff]  }
 0x2e4   :  { %7404 = vmatpush1.bf16.msra.mxu1 %v10965_v19  ;;  %v4897_v32 = vpop.f32.mrf.mxu0  ;;  %v10980_v33 = vld [vmem:[#allocation2 + $0x12d8] ss:$28 sps:$4 sm:$0xff]   ;;  %v10992_v1 = vld [vmem:[#allocation2 + $0x1268] ss:$28 sps:$4 sm:$0xff]   ;;  %v11007_v50 = vld [vmem:[#allocation2 + $0x13f0] ss:$28 sps:$4 sm:$0xff]  }
 0x2e5   :  { %14227 = vst [vmem:[#allocation119_spill] sm:$0xff] %v12721_v38  ;;  %7405 = vmatprep.subr.bf16.mxu1 %v10970_v42  ;;  %v4978_v19 = vpop.f32.mrf.mxu1  ;;  %v5453_v42 = vpack.c.bf16 %v11214_v9, %v5443_v53  ;;  %v10991_v32 = vld [vmem:[#allocation2 + $0x149c] ss:$28 sps:$4 sm:$0xff]   ;;  %v10997_v53 = vld [vmem:[#allocation2 + $0x1464] ss:$28 sps:$4 sm:$0xff]  }
 0x2e6   :  { %7213 = vmatmul.mubr.bf16.gmra.mxu0 %v12727_v24  ;;  %v10994_v19 = vld [vmem:[#allocation2 + $0x126c] ss:$28 sps:$4 sm:$0xff]   ;;  %v10995_v9 = vld [vmem:[#allocation2 + $0x1460] ss:$28 sps:$4 sm:$0xff]  }
 0x2e7   :  { %7294 = vmatmul.mubr.bf16.gmra.mxu1 %v12733_v34  ;;  %7222 = vmatprep.mubr.bf16.mxu0 %v12655_v17  ;;  %v5786_v2 = vrot.slane %v5453_v42, 1  ;;  %v5448_v38 = vld [vmem:[%s14003_s0 + $0x160] sm:$0xff] }
 0x2e8   :  { %7406 = vmatpush1.bf16.msra.mxu1 %v10968_v21  ;;  %7303 = vmatprep.mubr.bf16.mxu1 %v12666_v31  ;;  %v10983_v21 = vld [vmem:[#allocation2 + $0x14d0] ss:$28 sps:$4 sm:$0xff]   ;;  %v5458_v8 = vpack.c.bf16 %v5448_v38, %v5448_v38  ;;  %v11013_v38 = vld [vmem:[#allocation2 + $0x13b8] ss:$28 sps:$4 sm:$0xff]  }
 0x2e9   :  { %7407 = vmatprep.subr.bf16.mxu1 %v10973_v18  ;;  %v12754_v60 = vsel %vm5773_vm3, %v5786_v2, %v5787_v0  ;;  %v10986_v18 = vld [vmem:[#allocation2 + $0x12a0] ss:$28 sps:$4 sm:$0xff]  }
 0x2ea   :  { %14231 = vst [vmem:[#allocation121_spill] sm:$0xff] %v12754_v60  ;;  %v11006_v2 = vld [vmem:[#allocation2 + $0x11fc] ss:$28 sps:$4 sm:$0xff]  }
 0x2ec   :  { %7408 = vmatpush1.bf16.msra.mxu1 %v10971_v49  ;;  %v10989_v49 = vld [vmem:[#allocation2 + $0x1498] ss:$28 sps:$4 sm:$0xff]  }
 0x2ed   :  { %7409 = vmatprep.subr.bf16.mxu1 %v10979_v54  ;;  %v5797_v54 = vrot.slane %v14140_v41, 1 }
 0x2ee   :  { %7223 = vmatmul.mubr.bf16.gmra.mxu0 %v12710_v46 }
 0x2ef   :  { %7304 = vmatmul.mubr.bf16.gmra.mxu1 %v12712_v26  ;;  %7344 = vmatprep.mubr.bf16.mxu0 %v14060_v40  ;;  %v12761_v42 = vsel %vm5773_vm3, %v5787_v0, %v5797_v54 }
 0x2f0   :  { %7410 = vmatpush2.bf16.msra.mxu1 %v10977_v35  ;;  %7425 = vmatprep.mubr.bf16.mxu1 %v12483_v44  ;;  %v11000_v35 = vld [vmem:[#allocation2 + $0x1234] ss:$28 sps:$4 sm:$0xff]   ;;  %14232 = vst [vmem:[#allocation122_spill] sm:$0xff] %v12761_v42 }
 0x2f1   :  { %7411 = vmatprep.subr.bf16.mxu1 %v10982_v7  ;;  %v10998_v7 = vld [vmem:[#allocation2 + $0x1230] ss:$28 sps:$4 sm:$0xff]  }
 0x2f4   :  { %7412 = vmatpush2.bf16.msra.mxu1 %v10980_v33  ;;  %v11003_v33 = vld [vmem:[#allocation2 + $0x142c] ss:$28 sps:$4 sm:$0xff]  }
 0x2f5   :  { %7413 = vmatprep.subr.bf16.mxu1 %v10988_v10 }
 0x2f6   :  { %9707 = vmatmul.mubr.msk.bf16.vlgmr.msra.gmra.mxu0 %vm2225_vm1, %v12754_v60 }
 0x2f7   :  { %7475 = vmatpush1.bf16.msra.mxu0 %v10983_v21  ;;  %7354 = vmatprep.mubr.bf16.mxu0 %v14060_v40  ;;  %v5807_v21 = vrot.slane %v14143_v29, 1 }
 0x2f8   :  { %7414 = vmatpush2.bf16.msra.mxu1 %v10986_v18  ;;  %7476 = vmatprep.subr.bf16.mxu0 %v10991_v32  ;;  %v14233_v18 = vld [vmem:[#allocation63_spill] sm:$0xff] }
 0x2f9   :  { %7415 = vmatprep.subr.bf16.mxu1 %v10994_v19  ;;  %v11001_v19 = vld [vmem:[#allocation2 + $0x1428] ss:$28 sps:$4 sm:$0xff]  }
 0x2fb   :  { %7477 = vmatpush1.bf16.msra.mxu0 %v10989_v49  ;;  %v11004_v49 = vld [vmem:[#allocation2 + $0x11f8] ss:$28 sps:$4 sm:$0xff]  }
 0x2fc   :  { %7416 = vmatpush2.bf16.msra.mxu1 %v10992_v1  ;;  %7478 = vmatprep.subr.bf16.mxu0 %v10997_v53  ;;  %v11009_v53 = vld [vmem:[#allocation2 + $0x13f4] ss:$28 sps:$4 sm:$0xff]  }
 0x2fd   :  { %7417 = vmatprep.subr.bf16.mxu1 %v11000_v35  ;;  %v11012_v35 = vld [vmem:[#allocation2 + $0x11c4] ss:$28 sps:$4 sm:$0xff]  }
 0x2fe   :  { %9708 = vmatmul.mubr.msk.bf16.gmra.mxu0 %vm2225_vm1, %v12761_v42  ;;  %v5014_v41 = vpop.f32.mrf.mxu0 }
 0x2ff   :  { %v5095_v10 = vpop.f32.mrf.mxu1  ;;  %7479 = vmatpush1.bf16.msra.mxu0 %v10995_v9  ;;  %v5015_v32 = vadd.f32 %v5014_v41, %v14233_v18  ;;  %7364 = vmatprep.mubr.bf16.mxu0 %v14060_v40  ;;  %v12775_v41 = vsel %vm5773_vm3, %v5797_v54, %v5807_v21 }
 0x300   :  { %7418 = vmatpush2.bf16.msra.mxu1 %v10998_v7  ;;  %v5016_v0 = vpop.f32.mrf.mxu0  ;;  %7480 = vmatprep.subr.bf16.mxu0 %v11003_v33  ;;  %14235 = vst [vmem:[#allocation63_spill] sm:$0xff] %v12775_v41  ;;  %v14236_v33 = vld [vmem:[#allocation65_spill] sm:$0xff] }
 0x301   :  { %v5097_v1 = vpop.f32.mrf.mxu1  ;;  %7419 = vmatprep.subr.bf16.mxu1 %v11006_v2  ;;  %v12770_v16 = vadd.f32 %v5095_v10, %v5015_v32  ;;  %v5017_v29 = vadd.f32 %v5016_v0, %v14234_v63  ;;  %v11015_v63 = vld [vmem:[#allocation2 + $0x13bc] ss:$28 sps:$4 sm:$0xff]   ;;  %v11018_v0 = vld [vmem:[#allocation2 + $0x118c] ss:$28 sps:$4 sm:$0xff]  }
 0x302   :  { %v5018_v9 = vpop.f32.mrf.mxu0 }
 0x303   :  { %v5099_v7 = vpop.f32.mrf.mxu1  ;;  %v12777_v18 = vadd.f32 %v5097_v1, %v5017_v29  ;;  %7481 = vmatpush1.bf16.msra.mxu0 %v11001_v19  ;;  %v5019_v2 = vadd.f32 %v5018_v9, %v14236_v33  ;;  %v11016_v29 = vld [vmem:[#allocation2 + $0x1188] ss:$28 sps:$4 sm:$0xff]   ;;  %v12789_v9 = vrot.slane %v5458_v8, 1 }
 0x304   :  { %7420 = vmatpush2.bf16.msra.mxu1 %v11004_v49  ;;  %v12780_v10 = vpop.f32.mrf.mxu0  ;;  %7482 = vmatprep.subr.bf16.mxu0 %v11009_v53  ;;  %v14239_v49 = vld [vmem:[#allocation67_spill] sm:$0xff] }
 0x305   :  { %14237 = vst [vmem:[#allocation64_spill] sm:$0xff] %v12780_v10  ;;  %v12782_v32 = vpop.f32.mrf.mxu1  ;;  %7421 = vmatprep.subr.bf16.mxu1 %v11012_v35  ;;  %v12784_v48 = vadd.f32 %v5099_v7, %v5019_v2  ;;  %v11021_v35 = vld [vmem:[#allocation2 + $0x1384] ss:$28 sps:$4 sm:$0xff]   ;;  %v11027_v7 = vld [vmem:[#allocation2 + $0x1774] ss:$28 sps:$4 sm:$0xff]  }
 0x306   :  { %14238 = vst [vmem:[#allocation65_spill] sm:$0xff] %v12782_v32  ;;  %9709 = vmatmul.mubr.msk.bf16.gmra.mxu0 %vm2225_vm1, %v12775_v41  ;;  %v5024_v54 = vpop.f32.mrf.mxu0  ;;  %v14240_v32 = vld [vmem:[#allocation68_spill] sm:$0xff] }
 0x307   :  { %v5105_v19 = vpop.f32.mrf.mxu1  ;;  %7483 = vmatpush1.bf16.msra.mxu0 %v11007_v50  ;;  %v5025_v1 = vadd.f32 %v5024_v54, %v14239_v49  ;;  %7374 = vmatprep.mubr.bf16.mxu0 %v14060_v40  ;;  %v11019_v49 = vld [vmem:[#allocation2 + $0x1380] ss:$28 sps:$4 sm:$0xff]  }
 0x308   :  { %7422 = vmatpush2.bf16.msra.mxu1 %v11010_v20  ;;  %v5026_v33 = vpop.f32.mrf.mxu0  ;;  %7484 = vmatprep.subr.bf16.mxu0 %v11015_v63  ;;  %v14241_v20 = vld [vmem:[#allocation69_spill] sm:$0xff]  ;;  %v12800_v63 = vsel %vm5773_vm3, %v5807_v21, %v12789_v9  ;;  %v14244_v21 = vld [vmem:[#allocation71_spill] sm:$0xff] }
 0x309   :  { %v5107_v53 = vpop.f32.mrf.mxu1  ;;  %7423 = vmatprep.subr.bf16.mxu1 %v11018_v0  ;;  %v12791_v2 = vadd.f32 %v5105_v19, %v5025_v1  ;;  %v5027_v10 = vadd.f32 %v5026_v33, %v14240_v32  ;;  %v11024_v32 = vld [vmem:[#allocation2 + $0x134c] ss:$28 sps:$4 sm:$0xff]   ;;  %v11039_v33 = vld [vmem:[#allocation2 + $0x173c] ss:$28 sps:$4 sm:$0xff]  }
 0x30a   :  { %v5028_v50 = vpop.f32.mrf.mxu0 }
 0x30b   :  { %v5109_v3 = vpop.f32.mrf.mxu1  ;;  %v12795_v54 = vadd.f32 %v5107_v53, %v5027_v10  ;;  %7485 = vmatpush1.bf16.msra.mxu0 %v11013_v38  ;;  %v5029_v8 = vadd.f32 %v5028_v50, %v14241_v20  ;;  %v11025_v10 = vld [vmem:[#allocation2 + $0x1770] ss:$28 sps:$4 sm:$0xff]   ;;  %v11022_v50 = vld [vmem:[#allocation2 + $0x1348] ss:$28 sps:$4 sm:$0xff]  }
 0x30c   :  { %7424 = vmatpush2.bf16.msra.mxu1 %v11016_v29  ;;  %v12802_v0 = vpop.f32.mrf.mxu0  ;;  %7486 = vmatprep.subr.bf16.mxu0 %v11021_v35 }
 0x30d   :  { %14242 = vst [vmem:[#allocation67_spill] sm:$0xff] %v12802_v0  ;;  %v12804_v19 = vpop.f32.mrf.mxu1  ;;  %7563 = vmatprep.subr.bf16.mxu1 %v11027_v7  ;;  %v12806_v1 = vadd.f32 %v5109_v3, %v5029_v8  ;;  %v11030_v3 = vld [vmem:[#allocation2 + $0x1694] ss:$28 sps:$4 sm:$0xff]   ;;  %v14245_v8 = vld [vmem:[#allocation72_spill] sm:$0xff] }
 0x30e   :  { %14243 = vst [vmem:[#allocation68_spill] sm:$0xff] %v12804_v19  ;;  %9710 = vmatmul.mubr.msk.bf16.gmra.mxu0 %vm2225_vm1, %v12800_v63  ;;  %v5034_v38 = vpop.f32.mrf.mxu0  ;;  %v11037_v0 = vld [vmem:[#allocation2 + $0x1738] ss:$28 sps:$4 sm:$0xff]  }
 0x30f   :  { %7426 = vmatmul.mubr.bf16.vlgmr.msra.gmra.mxu1 %v12550_v62  ;;  %v5115_v29 = vpop.f32.mrf.mxu1  ;;  %7487 = vmatpush1.bf16.msra.mxu0 %v11019_v49  ;;  %v5035_v53 = vadd.f32 %v5034_v38, %v14244_v21  ;;  %v14246_v38 = vld [vmem:[#allocation73_spill] sm:$0xff] }
 0x310   :  { %7384 = vmatprep.mubr.bf16.mxu0 %v14060_v40  ;;  %v5036_v35 = vpop.f32.mrf.mxu0  ;;  %7488 = vmatprep.subr.bf16.mxu0 %v11024_v32 }
 0x311   :  { %v5117_v20 = vpop.f32.mrf.mxu1  ;;  %7435 = vmatprep.mubr.bf16.mxu1 %v12575_v58  ;;  %v12814_v7 = vadd.f32 %v5115_v29, %v5035_v53  ;;  %v5037_v19 = vadd.f32 %v5036_v35, %v14245_v8  ;;  %7564 = vmatpush1.bf16.msra.mxu1 %v11025_v10  ;;  %v11033_v29 = vld [vmem:[#allocation2 + $0x165c] ss:$28 sps:$4 sm:$0xff]   ;;  %v11048_v53 = vld [vmem:[#allocation2 + $0x1704] ss:$28 sps:$4 sm:$0xff]  }
 0x312   :  { %v5038_v52 = vpop.f32.mrf.mxu0  ;;  %7565 = vmatprep.subr.bf16.mxu1 %v11039_v33  ;;  %v11046_v10 = vld [vmem:[#allocation2 + $0x1700] ss:$28 sps:$4 sm:$0xff]  }
 0x313   :  { %v5119_v13 = vpop.f32.mrf.mxu1  ;;  %v12817_v49 = vadd.f32 %v5117_v20, %v5037_v19  ;;  %7489 = vmatpush1.bf16.msra.mxu0 %v11022_v50  ;;  %v5039_v21 = vadd.f32 %v5038_v52, %v14246_v38  ;;  %v11060_v52 = vld [vmem:[#allocation2 + $0x16cc] ss:$28 sps:$4 sm:$0xff]   ;;  %v14249_v50 = vld [vmem:[#allocation75_spill] sm:$0xff]  ;;  %v11031_v20 = vld [vmem:[#allocation2 + $0x1658] ss:$28 sps:$4 sm:$0xff]  }
 0x314   :  { %v12820_v59 = vpop.f32.mrf.mxu0  ;;  %7490 = vmatprep.subr.bf16.mxu0 %v11030_v3  ;;  %v14250_v38 = vld [vmem:[#allocation76_spill] sm:$0xff] }
 0x315   :  { %14247 = vst [vmem:[#allocation69_spill] sm:$0xff] %v12820_v59  ;;  %v12822_v32 = vpop.f32.mrf.mxu1  ;;  %v12824_v6 = vadd.f32 %v5119_v13, %v5039_v21  ;;  %7566 = vmatpush1.bf16.msra.mxu1 %v11037_v0  ;;  %v11036_v13 = vld [vmem:[#allocation2 + $0x1624] ss:$28 sps:$4 sm:$0xff]  }
 0x316   :  { %14248 = vst [vmem:[#allocation71_spill] sm:$0xff] %v12822_v32  ;;  %9711 = vmatmul.mubr.msk.bf16.gmra.mxu0 %vm2225_vm1, %v12789_v9  ;;  %v5044_v19 = vpop.f32.mrf.mxu0  ;;  %7567 = vmatprep.subr.bf16.mxu1 %v11048_v53  ;;  %v11058_v32 = vld [vmem:[#allocation2 + $0x16c8] ss:$28 sps:$4 sm:$0xff]  }
 0x317   :  { %7436 = vmatmul.mubr.bf16.gmra.mxu1 %v12607_v57  ;;  %v5125_v33 = vpop.f32.mrf.mxu1  ;;  %7491 = vmatpush2.bf16.msra.mxu0 %v11028_v55  ;;  %v5045_v35 = vadd.f32 %v5044_v19, %v14249_v50  ;;  %v11066_v19 = vld [vmem:[#allocation2 + $0x14dc] ss:$28 sps:$4 sm:$0xff]  }
 0x318   :  { %7445 = vmatprep.mubr.bf16.mxu1 %v12634_v27  ;;  %v5046_v3 = vpop.f32.mrf.mxu0  ;;  %7492 = vmatprep.subr.bf16.mxu0 %v11033_v29  ;;  %v11034_v29 = vld [vmem:[#allocation2 + $0x1620] ss:$28 sps:$4 sm:$0xff]  }
 0x319   :  { %v5127_v8 = vpop.f32.mrf.mxu1  ;;  %v12831_v0 = vadd.f32 %v5125_v33, %v5045_v35  ;;  %v5047_v21 = vadd.f32 %v5046_v3, %v14250_v38  ;;  %7568 = vmatpush1.bf16.msra.mxu1 %v11046_v10  ;;  %7506 = vmatprep.mubr.bf16.mxu0 %v12488_v25  ;;  %v11042_v33 = vld [vmem:[#allocation2 + $0x15ec] ss:$28 sps:$4 sm:$0xff]   ;;  %v14254_v3 = vld [vmem:[#allocation79_spill] sm:$0xff]  ;;  %v11045_v38 = vld [vmem:[#allocation2 + $0x15b4] ss:$28 sps:$4 sm:$0xff]  }
 0x31a   :  { %v5048_v59 = vpop.f32.mrf.mxu0  ;;  %7569 = vmatprep.subr.bf16.mxu1 %v11060_v52 }
 0x31b   :  { %v5129_v55 = vpop.f32.mrf.mxu1  ;;  %v12835_v50 = vadd.f32 %v5127_v8, %v5047_v21  ;;  %7493 = vmatpush2.bf16.msra.mxu0 %v11031_v20  ;;  %v5049_v28 = vadd.f32 %v5048_v59, %v14251_v22  ;;  %v11040_v8 = vld [vmem:[#allocation2 + $0x15e8] ss:$28 sps:$4 sm:$0xff]  }
 0x31c   :  { %v12838_v37 = vpop.f32.mrf.mxu0  ;;  %7494 = vmatprep.subr.bf16.mxu0 %v11036_v13 }
 0x31d   :  { %14252 = vst [vmem:[#allocation72_spill] sm:$0xff] %v12838_v37  ;;  %v12840_v53 = vpop.f32.mrf.mxu1  ;;  %v12842_v10 = vadd.f32 %v5129_v55, %v5049_v28  ;;  %7570 = vmatpush1.bf16.msra.mxu1 %v11058_v32  ;;  %v14255_v28 = vld [vmem:[#allocation80_spill] sm:$0xff] }
 0x31e   :  { %14253 = vst [vmem:[#allocation73_spill] sm:$0xff] %v12840_v53  ;;  %v5054_v35 = vpop.f32.mrf.mxu0  ;;  %7717 = vmatprep.subr.bf16.mxu1 %v11066_v19  ;;  %v11043_v19 = vld [vmem:[#allocation2 + $0x15b0] ss:$28 sps:$4 sm:$0xff]  }
 0x31f   :  { %7446 = vmatmul.mubr.bf16.gmra.mxu1 %v12673_v12  ;;  %v5135_v52 = vpop.f32.mrf.mxu1  ;;  %7495 = vmatpush2.bf16.msra.mxu0 %v11034_v29  ;;  %v5055_v20 = vadd.f32 %v5054_v35, %v14254_v3  ;;  %v11051_v35 = vld [vmem:[#allocation2 + $0x157c] ss:$28 sps:$4 sm:$0xff]  }
 0x320   :  { %7455 = vmatprep.mubr.bf16.mxu1 %v12696_v4  ;;  %v5056_v22 = vpop.f32.mrf.mxu0  ;;  %7496 = vmatprep.subr.bf16.mxu0 %v11042_v33 }
 0x321   :  { %v5137_v59 = vpop.f32.mrf.mxu1  ;;  %v12847_v13 = vadd.f32 %v5135_v52, %v5055_v20  ;;  %v5057_v21 = vadd.f32 %v5056_v22, %v14255_v28  ;;  %v11049_v52 = vld [vmem:[#allocation2 + $0x1578] ss:$28 sps:$4 sm:$0xff]  }
 0x322   :  { %v5058_v32 = vpop.f32.mrf.mxu0 }
 0x323   :  { %v5139_v55 = vpop.f32.mrf.mxu1  ;;  %v12850_v53 = vadd.f32 %v5137_v59, %v5057_v21  ;;  %7497 = vmatpush2.bf16.msra.mxu0 %v11040_v8  ;;  %v11054_v8 = vld [vmem:[#allocation2 + $0x1544] ss:$28 sps:$4 sm:$0xff]   ;;  %v14258_v21 = vld [vmem:[#allocation81_spill] sm:$0xff] }
 0x324   :  { %v5059_v29 = vpop.f32.mrf.mxu0  ;;  %7498 = vmatprep.subr.bf16.mxu0 %v11045_v38  ;;  %v11052_v55 = vld [vmem:[#allocation2 + $0x1540] ss:$28 sps:$4 sm:$0xff]  }
 0x325   :  { %v5140_v37 = vpop.f32.mrf.mxu1 }
 0x326   :  { %v5176_v3 = vpop.f32.mrf.mxu0 }
 0x327   :  { %7456 = vmatmul.mubr.bf16.gmra.mxu1 %v12727_v24  ;;  %v9845_v30 = vpop.f32.mrf.mxu1  ;;  %7499 = vmatpush2.bf16.msra.mxu0 %v11043_v19  ;;  %v12854_v33 = vadd.f32 %v5176_v3, %v12770_v16 }
 0x328   :  { %7465 = vmatprep.mubr.bf16.mxu1 %v12655_v17  ;;  %v5178_v20 = vpop.f32.mrf.mxu0  ;;  %7500 = vmatprep.subr.bf16.mxu0 %v11051_v35  ;;  %v11057_v35 = vld [vmem:[#allocation2 + $0x150c] ss:$28 sps:$4 sm:$0xff]  }
 0x329   :  { %14256 = vst [vmem:[#allocation75_spill] sm:$0xff] %v12854_v33  ;;  %v9846_v22 = vpop.f32.mrf.mxu1  ;;  %v12858_v59 = vadd.f32 %v5178_v20, %v12777_v18  ;;  %v14261_v20 = vld [vmem:[#allocation82_spill] sm:$0xff]  ;;  %v14289_v33 = vld [vmem:[#allocation11_spill] sm:$0xff] }
 0x32a   :  { %v9847_v37 = vadd.f32 %v9846_v22, %v9845_v30  ;;  %v5180_v38 = vpop.f32.mrf.mxu0 }
 0x32b   :  { %14257 = vst [vmem:[#allocation76_spill] sm:$0xff] %v12858_v59  ;;  %v9848_v28 = vpop.f32.mrf.mxu1  ;;  %7501 = vmatpush2.bf16.msra.mxu0 %v11049_v52  ;;  %v12864_v16 = vadd.f32 %v5180_v38, %v12784_v48  ;;  %v11055_v48 = vld [vmem:[#allocation2 + $0x1508] ss:$28 sps:$4 sm:$0xff]  }
 0x32c   :  { %v12861_v32 = vadd.f32 %v9847_v37, %v14258_v21  ;;  %v12866_v19 = vpop.f32.mrf.mxu0  ;;  %7502 = vmatprep.subr.bf16.mxu0 %v11054_v8  ;;  %v11063_v8 = vld [vmem:[#allocation2 + $0x115c] ss:$28 sps:$4 sm:$0xff]   ;;  %v11198_v59 = vld [vmem:[#allocation2 + $0x13c8] ss:$28 sps:$4 sm:$0xff]  }
 0x32d   :  { %14259 = vst [vmem:[#allocation77_spill] sm:$0xff] %v12864_v16  ;;  %14260 = vst [vmem:[#allocation79_spill] sm:$0xff] %v12866_v19  ;;  %v9849_v29 = vpop.f32.mrf.mxu1  ;;  %v11072_v19 = vld [vmem:[#allocation2 + $0x14a4] ss:$28 sps:$4 sm:$0xff]  }
 0x32e   :  { %v9850_v3 = vadd.f32 %v9849_v29, %v9848_v28  ;;  %v5186_v18 = vpop.f32.mrf.mxu0 }
 0x32f   :  { %7466 = vmatmul.mubr.bf16.gmra.mxu1 %v12710_v46  ;;  %v9851_v30 = vpop.f32.mrf.mxu1  ;;  %7503 = vmatpush2.bf16.msra.mxu0 %v11052_v55  ;;  %v12873_v52 = vadd.f32 %v5186_v18, %v12791_v2  ;;  %v11061_v55 = vld [vmem:[#allocation2 + $0x1158] ss:$28 sps:$4 sm:$0xff]  }
 0x330   :  { %v12870_v22 = vadd.f32 %v9850_v3, %v14261_v20  ;;  %7587 = vmatprep.mubr.bf16.mxu1 %v14060_v40  ;;  %v5188_v37 = vpop.f32.mrf.mxu0  ;;  %7504 = vmatprep.subr.bf16.mxu0 %v11057_v35  ;;  %v11064_v18 = vld [vmem:[#allocation2 + $0x14d8] ss:$28 sps:$4 sm:$0xff]   ;;  %v11069_v35 = vld [vmem:[#allocation2 + $0x1124] ss:$28 sps:$4 sm:$0xff]  }
 0x331   :  { %14262 = vst [vmem:[#allocation80_spill] sm:$0xff] %v12873_v52  ;;  %v9852_v38 = vpop.f32.mrf.mxu1  ;;  %v12877_v28 = vadd.f32 %v5188_v37, %v12795_v54  ;;  %v11067_v37 = vld [vmem:[#allocation2 + $0x1120] ss:$28 sps:$4 sm:$0xff]  }
 0x332   :  { %v9853_v21 = vadd.f32 %v9852_v38, %v9851_v30  ;;  %v5190_v29 = vpop.f32.mrf.mxu0  ;;  %v11070_v38 = vld [vmem:[#allocation2 + $0x14a0] ss:$28 sps:$4 sm:$0xff]  }
 0x333   :  { %14263 = vst [vmem:[#allocation81_spill] sm:$0xff] %v12877_v28  ;;  %v9854_v16 = vpop.f32.mrf.mxu1  ;;  %7505 = vmatpush2.bf16.msra.mxu0 %v11055_v48  ;;  %v12883_v2 = vadd.f32 %v5190_v29, %v12806_v1 }
 0x334   :  { %v12880_v3 = vadd.f32 %v9853_v21, %v12227_v56  ;;  %v12885_v20 = vpop.f32.mrf.mxu0  ;;  %7636 = vmatprep.subr.bf16.mxu0 %v11063_v8 }
 0x335   :  { %14264 = vst [vmem:[#allocation82_spill] sm:$0xff] %v12883_v2  ;;  %14265 = vst [vmem:[#allocation123_spill] sm:$0xff] %v12885_v20  ;;  %v9855_v52 = vpop.f32.mrf.mxu1 }
 0x336   :  { %v9856_v54 = vadd.f32 %v9855_v52, %v9854_v16  ;;  %7507 = vmatmul.mubr.bf16.vlgmr.msra.gmra.mxu0 %v12559_v43  ;;  %v5196_v56 = vpop.f32.mrf.mxu0  ;;  %v11075_v16 = vld [vmem:[#allocation2 + $0x10ec] ss:$28 sps:$4 sm:$0xff]  }
 0x337   :  { %9712 = vmatmul.mubr.msk.bf16.vlgmr.msra.gmra.mxu1 %vm2225_vm1, %v12754_v60  ;;  %v9857_v30 = vpop.f32.mrf.mxu1  ;;  %7637 = vmatpush1.bf16.msra.mxu0 %v11061_v55  ;;  %v12894_v1 = vadd.f32 %v5196_v56, %v12814_v7  ;;  %v11078_v52 = vld [vmem:[#allocation2 + $0x146c] ss:$28 sps:$4 sm:$0xff]   ;;  %v11081_v56 = vld [vmem:[#allocation2 + $0x10b4] ss:$28 sps:$4 sm:$0xff]  }
 0x338   :  { %v12891_v48 = vadd.f32 %v9856_v54, %v12229_v61  ;;  %7718 = vmatpush1.bf16.msra.mxu1 %v11064_v18  ;;  %v5198_v8 = vpop.f32.mrf.mxu0  ;;  %7638 = vmatprep.subr.bf16.mxu0 %v11069_v35  ;;  %v11076_v35 = vld [vmem:[#allocation2 + $0x1468] ss:$28 sps:$4 sm:$0xff]  }
 0x339   :  { %14266 = vst [vmem:[#allocation124_spill] sm:$0xff] %v12894_v1  ;;  %v9858_v21 = vpop.f32.mrf.mxu1  ;;  %7719 = vmatprep.subr.bf16.mxu1 %v11072_v19  ;;  %v12897_v29 = vadd.f32 %v5198_v8, %v12817_v49  ;;  %7516 = vmatprep.mubr.bf16.mxu0 %v12584_v45  ;;  %v11073_v19 = vld [vmem:[#allocation2 + $0x10e8] ss:$28 sps:$4 sm:$0xff]   ;;  %v11204_v1 = vld [vmem:[#allocation2 + $0x16d8] ss:$28 sps:$4 sm:$0xff]  }
 0x33a   :  { %v9859_v2 = vadd.f32 %v9858_v21, %v9857_v30  ;;  %7597 = vmatprep.mubr.bf16.mxu1 %v14060_v40  ;;  %v5200_v61 = vpop.f32.mrf.mxu0  ;;  %v11084_v30 = vld [vmem:[#allocation2 + $0x1434] ss:$28 sps:$4 sm:$0xff]  }
 0x33b   :  { %14267 = vst [vmem:[#allocation125_spill] sm:$0xff] %v12897_v29  ;;  %v9860_v55 = vpop.f32.mrf.mxu1  ;;  %7639 = vmatpush1.bf16.msra.mxu0 %v11067_v37  ;;  %v12905_v18 = vadd.f32 %v5200_v61, %v12824_v6  ;;  %v11079_v37 = vld [vmem:[#allocation2 + $0x10b0] ss:$28 sps:$4 sm:$0xff]   ;;  %v11087_v61 = vld [vmem:[#allocation2 + $0x107c] ss:$28 sps:$4 sm:$0xff]  }
 0x33c   :  { %v12902_v7 = vadd.f32 %v9859_v2, %v12234_v15  ;;  %7720 = vmatpush1.bf16.msra.mxu1 %v11070_v38  ;;  %v12907_v54 = vpop.f32.mrf.mxu0  ;;  %7640 = vmatprep.subr.bf16.mxu0 %v11075_v16  ;;  %v11082_v38 = vld [vmem:[#allocation2 + $0x1430] ss:$28 sps:$4 sm:$0xff]  }
 0x33d   :  { %14268 = vst [vmem:[#allocation126_spill] sm:$0xff] %v12905_v18  ;;  %14269 = vst [vmem:[#allocation127_spill] sm:$0xff] %v12907_v54  ;;  %v9861_v49 = vpop.f32.mrf.mxu1  ;;  %7721 = vmatprep.subr.bf16.mxu1 %v11078_v52 }
 0x33e   :  { %v9862_v8 = vadd.f32 %v9861_v49, %v9860_v55  ;;  %7517 = vmatmul.mubr.bf16.gmra.mxu0 %v12620_v23  ;;  %v5206_v21 = vpop.f32.mrf.mxu0  ;;  %v11090_v55 = vld [vmem:[#allocation2 + $0x13fc] ss:$28 sps:$4 sm:$0xff]  }
 0x33f   :  { %v9863_v15 = vpop.f32.mrf.mxu1  ;;  %9713 = vmatmul.mubr.msk.bf16.gmra.mxu1 %vm2225_vm1, %v12761_v42  ;;  %7641 = vmatpush1.bf16.msra.mxu0 %v11073_v19  ;;  %v12916_v2 = vadd.f32 %v5206_v21, %v12831_v0  ;;  %v11093_v21 = vld [vmem:[#allocation2 + $0x1044] ss:$28 sps:$4 sm:$0xff]  }
 0x340   :  { %v12913_v6 = vadd.f32 %v9862_v8, %v12236_v36  ;;  %7722 = vmatpush1.bf16.msra.mxu1 %v11076_v35  ;;  %v5208_v16 = vpop.f32.mrf.mxu0  ;;  %7642 = vmatprep.subr.bf16.mxu0 %v11081_v56  ;;  %v11085_v56 = vld [vmem:[#allocation2 + $0x1078] ss:$28 sps:$4 sm:$0xff]  }
 0x341   :  { %14270 = vst [vmem:[#allocation128_spill] sm:$0xff] %v12916_v2  ;;  %v9864_v52 = vpop.f32.mrf.mxu1  ;;  %7723 = vmatprep.subr.bf16.mxu1 %v11084_v30  ;;  %v12919_v49 = vadd.f32 %v5208_v16, %v12835_v50  ;;  %7526 = vmatprep.mubr.bf16.mxu0 %v12643_v5  ;;  %v11088_v30 = vld [vmem:[#allocation2 + $0x13f8] ss:$28 sps:$4 sm:$0xff]  }
 0x342   :  { %v9865_v18 = vadd.f32 %v9864_v52, %v9863_v15  ;;  %7607 = vmatprep.mubr.bf16.mxu1 %v14060_v40  ;;  %v5210_v36 = vpop.f32.mrf.mxu0  ;;  %v11096_v15 = vld [vmem:[#allocation2 + $0x13c4] ss:$28 sps:$4 sm:$0xff]   ;;  %v11192_v2 = vld [vmem:[#allocation2 + $0x15f8] ss:$28 sps:$4 sm:$0xff]  }
 0x343   :  { %14271 = vst [vmem:[#allocation129_spill] sm:$0xff] %v12919_v49  ;;  %v9866_v19 = vpop.f32.mrf.mxu1  ;;  %7643 = vmatpush1.bf16.msra.mxu0 %v11079_v37  ;;  %v12927_v35 = vadd.f32 %v5210_v36, %v12842_v10  ;;  %v11091_v37 = vld [vmem:[#allocation2 + $0x1040] ss:$28 sps:$4 sm:$0xff]   ;;  %v11099_v36 = vld [vmem:[#allocation2 + $0x100c] ss:$28 sps:$4 sm:$0xff]  }
 0x344   :  { %v12924_v0 = vadd.f32 %v9865_v18, %v12241_v51  ;;  %7724 = vmatpush1.bf16.msra.mxu1 %v11082_v38  ;;  %v12929_v8 = vpop.f32.mrf.mxu0  ;;  %7644 = vmatprep.subr.bf16.mxu0 %v11087_v61  ;;  %v11094_v38 = vld [vmem:[#allocation2 + $0x13c0] ss:$28 sps:$4 sm:$0xff]  }
 0x345   :  { %14272 = vst [vmem:[#allocation130_spill] sm:$0xff] %v12927_v35  ;;  %14273 = vst [vmem:[#allocation131_spill] sm:$0xff] %v12929_v8  ;;  %v9867_v50 = vpop.f32.mrf.mxu1  ;;  %7725 = vmatprep.subr.bf16.mxu1 %v11090_v55 }
 0x346   :  { %v9868_v16 = vadd.f32 %v9867_v50, %v9866_v19  ;;  %7527 = vmatmul.mubr.bf16.gmra.mxu0 %v12680_v14  ;;  %v5216_v52 = vpop.f32.mrf.mxu0  ;;  %v11102_v19 = vld [vmem:[#allocation2 + $0x138c] ss:$28 sps:$4 sm:$0xff]  }
 0x347   :  { %v9869_v51 = vpop.f32.mrf.mxu1  ;;  %9714 = vmatmul.mubr.msk.bf16.gmra.mxu1 %vm2225_vm1, %v12775_v41  ;;  %7645 = vmatpush1.bf16.msra.mxu0 %v11085_v56  ;;  %v12938_v18 = vadd.f32 %v5216_v52, %v12847_v13  ;;  %v11108_v52 = vld [vmem:[#allocation2 + $0x1354] ss:$28 sps:$4 sm:$0xff]  }
 0x348   :  { %v12935_v10 = vadd.f32 %v9868_v16, %v12243_v39  ;;  %7726 = vmatpush1.bf16.msra.mxu1 %v11088_v30  ;;  %v5218_v61 = vpop.f32.mrf.mxu0  ;;  %7646 = vmatprep.subr.bf16.mxu0 %v11093_v21  ;;  %v11097_v30 = vld [vmem:[#allocation2 + $0x1008] ss:$28 sps:$4 sm:$0xff]  }
 0x349   :  { %14274 = vst [vmem:[#allocation132_spill] sm:$0xff] %v12938_v18  ;;  %v9870_v55 = vpop.f32.mrf.mxu1  ;;  %7727 = vmatprep.subr.bf16.mxu1 %v11096_v15  ;;  %v12941_v50 = vadd.f32 %v5218_v61, %v12850_v53  ;;  %7536 = vmatprep.mubr.bf16.mxu0 %v12704_v47  ;;  %v11100_v21 = vld [vmem:[#allocation2 + $0x1388] ss:$28 sps:$4 sm:$0xff]   ;;  %v11105_v53 = vld [vmem:[#allocation2 + $0xfd4] ss:$28 sps:$4 sm:$0xff]  }
 0x34a   :  { %v9871_v35 = vadd.f32 %v9870_v55, %v9869_v51  ;;  %7617 = vmatprep.mubr.bf16.mxu1 %v14060_v40  ;;  %v5220_v39 = vpop.f32.mrf.mxu0  ;;  %v11111_v55 = vld [vmem:[#allocation2 + $0x131c] ss:$28 sps:$4 sm:$0xff]  }
 0x34b   :  { %14275 = vst [vmem:[#allocation133_spill] sm:$0xff] %v12941_v50  ;;  %v9872_v56 = vpop.f32.mrf.mxu1  ;;  %7647 = vmatpush1.bf16.msra.mxu0 %v11091_v37 }
 0x34c   :  { %v12946_v13 = vadd.f32 %v9871_v35, %v12246_v11  ;;  %7728 = vmatpush1.bf16.msra.mxu1 %v11094_v38  ;;  %v5221_v15 = vpop.f32.mrf.mxu0  ;;  %7648 = vmatprep.subr.bf16.mxu0 %v11099_v36  ;;  %v11103_v11 = vld [vmem:[#allocation2 + $0xfd0] ss:$28 sps:$4 sm:$0xff]   ;;  %v11114_v36 = vld [vmem:[#allocation2 + $0x169c] ss:$28 sps:$4 sm:$0xff]  }
 0x34d   :  { %v9873_v16 = vpop.f32.mrf.mxu1  ;;  %7729 = vmatprep.subr.bf16.mxu1 %v11102_v19  ;;  %v11106_v35 = vld [vmem:[#allocation2 + $0x1350] ss:$28 sps:$4 sm:$0xff]  }
 0x34e   :  { %7537 = vmatmul.mubr.bf16.gmra.mxu0 %v12733_v34  ;;  %v9891_v51 = vpop.f32.mrf.mxu0 }
 0x34f   :  { %v5401_v61 = vpop.f32.mrf.mxu1  ;;  %9715 = vmatmul.mubr.msk.bf16.gmra.mxu1 %vm2225_vm1, %v12800_v63  ;;  %7649 = vmatpush1.bf16.msra.mxu0 %v11097_v30  ;;  %v11109_v30 = vld [vmem:[#allocation2 + $0x1318] ss:$28 sps:$4 sm:$0xff]  }
 0x350   :  { %7730 = vmatpush1.bf16.msra.mxu1 %v11100_v21  ;;  %v9892_v37 = vpop.f32.mrf.mxu0  ;;  %7650 = vmatprep.subr.bf16.mxu0 %v11105_v53  ;;  %v11112_v21 = vld [vmem:[#allocation2 + $0x1698] ss:$28 sps:$4 sm:$0xff]   ;;  %v11117_v53 = vld [vmem:[#allocation2 + $0x12e4] ss:$28 sps:$4 sm:$0xff]  }
 0x351   :  { %v10069_v38 = vpop.f32.mrf.mxu1  ;;  %7731 = vmatprep.subr.bf16.mxu1 %v11108_v52  ;;  %v9893_v19 = vadd.f32 %v9892_v37, %v9891_v51  ;;  %7546 = vmatprep.mubr.bf16.mxu0 %v12666_v31  ;;  %v11120_v52 = vld [vmem:[#allocation2 + $0x1664] ss:$28 sps:$4 sm:$0xff]  }
 0x352   :  { %7627 = vmatprep.mubr.bf16.mxu1 %v14060_v40  ;;  %v9894_v39 = vpop.f32.mrf.mxu0 }
 0x353   :  { %v5404_v56 = vpop.f32.mrf.mxu1  ;;  %v5330_v15 = vadd.f32 %v9893_v19, %v12861_v32  ;;  %7651 = vmatpush1.bf16.msra.mxu0 %v11103_v11 }
 0x354   :  { %7732 = vmatpush1.bf16.msra.mxu1 %v11106_v35  ;;  %v9895_v16 = vpop.f32.mrf.mxu0  ;;  %7652 = vmatprep.subr.bf16.mxu0 %v11111_v55  ;;  %v11115_v35 = vld [vmem:[#allocation2 + $0x12e0] ss:$28 sps:$4 sm:$0xff]  }
 0x355   :  { %v10070_v50 = vpop.f32.mrf.mxu1  ;;  %7733 = vmatprep.subr.bf16.mxu1 %v11114_v36  ;;  %v12954_v38 = vadd.f32 %v5401_v61, %v5330_v15  ;;  %v9896_v51 = vadd.f32 %v9895_v16, %v9894_v39  ;;  %v11123_v36 = vld [vmem:[#allocation2 + $0x12ac] ss:$28 sps:$4 sm:$0xff]  }
 0x356   :  { %7547 = vmatmul.mubr.bf16.gmra.mxu0 %v12712_v26  ;;  %v9897_v37 = vpop.f32.mrf.mxu0  ;;  %v11118_v50 = vld [vmem:[#allocation2 + $0x1660] ss:$28 sps:$4 sm:$0xff]   ;;  %v11126_v61 = vld [vmem:[#allocation2 + $0x162c] ss:$28 sps:$4 sm:$0xff]  }
 0x357   :  { %14276 = vst [vmem:[#allocation134_spill] sm:$0xff] %v12954_v38  ;;  %9716 = vmatmul.mubr.msk.bf16.gmra.mxu1 %vm2225_vm1, %v12789_v9  ;;  %v5409_v32 = vpop.f32.mrf.mxu1  ;;  %v5333_v11 = vadd.f32 %v9896_v51, %v12870_v22  ;;  %7653 = vmatpush2.bf16.msra.mxu0 %v11109_v30  ;;  %v11121_v30 = vld [vmem:[#allocation2 + $0x12a8] ss:$28 sps:$4 sm:$0xff]   ;;  %v11132_v51 = vld [vmem:[#allocation2 + $0x15f4] ss:$28 sps:$4 sm:$0xff]  }
 0x358   :  { %7734 = vmatpush2.bf16.msra.mxu1 %v11112_v21  ;;  %v9898_v55 = vpop.f32.mrf.mxu0  ;;  %7654 = vmatprep.subr.bf16.mxu0 %v11117_v53  ;;  %v11124_v21 = vld [vmem:[#allocation2 + $0x1628] ss:$28 sps:$4 sm:$0xff]  }
 0x359   :  { %7735 = vmatprep.subr.bf16.mxu1 %v11120_v52  ;;  %v10073_v19 = vpop.f32.mrf.mxu1  ;;  %v12960_v39 = vadd.f32 %v5404_v56, %v5333_v11  ;;  %v9899_v15 = vadd.f32 %v9898_v55, %v9897_v37  ;;  %7668 = vmatprep.mubr.bf16.mxu0 %v12483_v44  ;;  %v11129_v52 = vld [vmem:[#allocation2 + $0x1274] ss:$28 sps:$4 sm:$0xff]  }
 0x35a   :  { %7749 = vmatprep.mubr.bf16.mxu1 %v12488_v25  ;;  %v9900_v16 = vpop.f32.mrf.mxu0 }
 0x35b   :  { %14277 = vst [vmem:[#allocation135_spill] sm:$0xff] %v12960_v39  ;;  %v5412_v38 = vpop.f32.mrf.mxu1  ;;  %7655 = vmatpush2.bf16.msra.mxu0 %v11115_v35  ;;  %v5338_v22 = vadd.f32 %v9899_v15, %v12880_v3  ;;  %v11130_v39 = vld [vmem:[#allocation2 + $0x15f0] ss:$28 sps:$4 sm:$0xff]   ;;  %v11135_v15 = vld [vmem:[#allocation2 + $0x123c] ss:$28 sps:$4 sm:$0xff]  }
 0x35c   :  { %7736 = vmatpush2.bf16.msra.mxu1 %v11118_v50  ;;  %v9901_v53 = vpop.f32.mrf.mxu0  ;;  %7656 = vmatprep.subr.bf16.mxu0 %v11123_v36  ;;  %v11127_v50 = vld [vmem:[#allocation2 + $0x1270] ss:$28 sps:$4 sm:$0xff]   ;;  %v11138_v36 = vld [vmem:[#allocation2 + $0x15bc] ss:$28 sps:$4 sm:$0xff]  }
 0x35d   :  { %7737 = vmatprep.subr.bf16.mxu1 %v11126_v61  ;;  %v10074_v56 = vpop.f32.mrf.mxu1  ;;  %v9902_v11 = vadd.f32 %v9901_v53, %v9900_v16  ;;  %v12965_v37 = vadd.f32 %v5409_v32, %v5338_v22  ;;  %v11141_v53 = vld [vmem:[#allocation2 + $0x1204] ss:$28 sps:$4 sm:$0xff]  }
 0x35e   :  { %v9903_v55 = vpop.f32.mrf.mxu0 }
 0x35f   :  { %14278 = vst [vmem:[#allocation136_spill] sm:$0xff] %v12965_v37  ;;  %v5417_v19 = vpop.f32.mrf.mxu1  ;;  %7657 = vmatpush2.bf16.msra.mxu0 %v11121_v30  ;;  %v5341_v35 = vadd.f32 %v9902_v11, %v12891_v48  ;;  %v11133_v30 = vld [vmem:[#allocation2 + $0x1238] ss:$28 sps:$4 sm:$0xff]  }
 0x360   :  { %7738 = vmatpush2.bf16.msra.mxu1 %v11124_v21  ;;  %v9904_v3 = vpop.f32.mrf.mxu0  ;;  %7658 = vmatprep.subr.bf16.mxu0 %v11129_v52  ;;  %v11136_v21 = vld [vmem:[#allocation2 + $0x15b8] ss:$28 sps:$4 sm:$0xff]   ;;  %v11144_v52 = vld [vmem:[#allocation2 + $0x1584] ss:$28 sps:$4 sm:$0xff]  }
 0x361   :  { %7739 = vmatprep.subr.bf16.mxu1 %v11132_v51  ;;  %v10077_v61 = vpop.f32.mrf.mxu1  ;;  %v9905_v18 = vadd.f32 %v9904_v3, %v9903_v55  ;;  %v12968_v49 = vadd.f32 %v5412_v38, %v5341_v35  ;;  %v11150_v3 = vld [vmem:[#allocation2 + $0x154c] ss:$28 sps:$4 sm:$0xff]  }
 0x362   :  { %v9906_v16 = vpop.f32.mrf.mxu0 }
 0x363   :  { %14279 = vst [vmem:[#allocation137_spill] sm:$0xff] %v12968_v49  ;;  %v5420_v32 = vpop.f32.mrf.mxu1  ;;  %7659 = vmatpush2.bf16.msra.mxu0 %v11127_v50  ;;  %v5346_v22 = vadd.f32 %v9905_v18, %v12902_v7  ;;  %v11142_v50 = vld [vmem:[#allocation2 + $0x1580] ss:$28 sps:$4 sm:$0xff]   ;;  %v11147_v18 = vld [vmem:[#allocation2 + $0x11cc] ss:$28 sps:$4 sm:$0xff]  }
 0x364   :  { %7740 = vmatpush2.bf16.msra.mxu1 %v11130_v39  ;;  %v9907_v48 = vpop.f32.mrf.mxu0  ;;  %7660 = vmatprep.subr.bf16.mxu0 %v11135_v15  ;;  %v11139_v39 = vld [vmem:[#allocation2 + $0x1200] ss:$28 sps:$4 sm:$0xff]  }
 0x365   :  { %7741 = vmatprep.subr.bf16.mxu1 %v11138_v36  ;;  %v10078_v51 = vpop.f32.mrf.mxu1  ;;  %v9908_v56 = vadd.f32 %v9907_v48, %v9906_v16  ;;  %v12971_v11 = vadd.f32 %v5417_v19, %v5346_v22  ;;  %v11153_v48 = vld [vmem:[#allocation2 + $0x1194] ss:$28 sps:$4 sm:$0xff]  }
 0x366   :  { %v9909_v55 = vpop.f32.mrf.mxu0 }
 0x367   :  { %14280 = vst [vmem:[#allocation138_spill] sm:$0xff] %v12971_v11  ;;  %v5425_v38 = vpop.f32.mrf.mxu1  ;;  %7661 = vmatpush2.bf16.msra.mxu0 %v11133_v30  ;;  %v5349_v35 = vadd.f32 %v9908_v56, %v12913_v6  ;;  %v11145_v30 = vld [vmem:[#allocation2 + $0x11c8] ss:$28 sps:$4 sm:$0xff]  }
 0x368   :  { %7742 = vmatpush2.bf16.msra.mxu1 %v11136_v21  ;;  %v9910_v7 = vpop.f32.mrf.mxu0  ;;  %7662 = vmatprep.subr.bf16.mxu0 %v11141_v53  ;;  %v11148_v21 = vld [vmem:[#allocation2 + $0x1548] ss:$28 sps:$4 sm:$0xff]   ;;  %v11156_v53 = vld [vmem:[#allocation2 + $0x1514] ss:$28 sps:$4 sm:$0xff]  }
 0x369   :  { %7743 = vmatprep.subr.bf16.mxu1 %v11144_v52  ;;  %v10081_v15 = vpop.f32.mrf.mxu1  ;;  %v9911_v36 = vadd.f32 %v9910_v7, %v9909_v55  ;;  %v12974_v61 = vadd.f32 %v5420_v32, %v5349_v35  ;;  %v11159_v7 = vld [vmem:[#allocation2 + $0x177c] ss:$28 sps:$4 sm:$0xff]  }
 0x36a   :  { %v9912_v16 = vpop.f32.mrf.mxu0 }
 0x36b   :  { %14281 = vst [vmem:[#allocation139_spill] sm:$0xff] %v12974_v61  ;;  %v5428_v19 = vpop.f32.mrf.mxu1  ;;  %7663 = vmatpush2.bf16.msra.mxu0 %v11139_v39  ;;  %v5354_v22 = vadd.f32 %v9911_v36, %v12924_v0  ;;  %v11151_v39 = vld [vmem:[#allocation2 + $0x1190] ss:$28 sps:$4 sm:$0xff]   ;;  %v11194_v61 = vld [vmem:[#allocation2 + $0x1748] ss:$28 sps:$4 sm:$0xff]  }
 0x36c   :  { %7744 = vmatpush2.bf16.msra.mxu1 %v11142_v50  ;;  %v9913_v6 = vpop.f32.mrf.mxu0  ;;  %7664 = vmatprep.subr.bf16.mxu0 %v11147_v18  ;;  %v11154_v50 = vld [vmem:[#allocation2 + $0x1510] ss:$28 sps:$4 sm:$0xff]   ;;  %v11160_v18 = vld [vmem:[#allocation2 + $0x1320] ss:$28 sps:$4 sm:$0xff]  }
 0x36d   :  { %7745 = vmatprep.subr.bf16.mxu1 %v11150_v3  ;;  %v10082_v52 = vpop.f32.mrf.mxu1  ;;  %v9914_v51 = vadd.f32 %v9913_v6, %v9912_v16  ;;  %v12977_v56 = vadd.f32 %v5425_v38, %v5354_v22 }
 0x36e   :  { %v9915_v55 = vpop.f32.mrf.mxu0  ;;  %v11165_v52 = vld [vmem:[#allocation2 + $0x12e8] ss:$28 sps:$4 sm:$0xff]  }
 0x36f   :  { %14282 = vst [vmem:[#allocation140_spill] sm:$0xff] %v12977_v56  ;;  %v5433_v32 = vpop.f32.mrf.mxu1  ;;  %7665 = vmatpush2.bf16.msra.mxu0 %v11145_v30  ;;  %v5357_v35 = vadd.f32 %v9914_v51, %v12935_v10  ;;  %v11157_v30 = vld [vmem:[#allocation2 + $0x1778] ss:$28 sps:$4 sm:$0xff]   ;;  %v11161_v10 = vld [vmem:[#allocation2 + $0x1160] ss:$28 sps:$4 sm:$0xff]  }
 0x370   :  { %7746 = vmatpush2.bf16.msra.mxu1 %v11148_v21  ;;  %v9916_v0 = vpop.f32.mrf.mxu0  ;;  %7666 = vmatprep.subr.bf16.mxu0 %v11153_v48  ;;  %v11171_v51 = vld [vmem:[#allocation2 + $0x170c] ss:$28 sps:$4 sm:$0xff]  }
 0x371   :  { %7747 = vmatprep.subr.bf16.mxu1 %v11156_v53  ;;  %v10085_v3 = vpop.f32.mrf.mxu1  ;;  %v9917_v15 = vadd.f32 %v9916_v0, %v9915_v55  ;;  %v12980_v36 = vadd.f32 %v5428_v19, %v5357_v35  ;;  %v11164_v53 = vld [vmem:[#allocation2 + $0x1744] ss:$28 sps:$4 sm:$0xff]   ;;  %v11167_v55 = vld [vmem:[#allocation2 + $0x12b0] ss:$28 sps:$4 sm:$0xff]   ;;  %v11173_v0 = vld [vmem:[#allocation2 + $0x10b8] ss:$28 sps:$4 sm:$0xff]  }
 0x372   :  { %v9918_v16 = vpop.f32.mrf.mxu0  ;;  %v11162_v19 = vld [vmem:[#allocation2 + $0x1740] ss:$28 sps:$4 sm:$0xff]   ;;  %v11169_v35 = vld [vmem:[#allocation2 + $0x1708] ss:$28 sps:$4 sm:$0xff]   ;;  %v11190_v56 = vld [vmem:[#allocation2 + $0x1630] ss:$28 sps:$4 sm:$0xff]  }
 0x373   :  { %14283 = vst [vmem:[#allocation141_spill] sm:$0xff] %v12980_v36  ;;  %v5436_v38 = vpop.f32.mrf.mxu1  ;;  %7667 = vmatpush2.bf16.msra.mxu0 %v11151_v39  ;;  %v5362_v22 = vadd.f32 %v9917_v15, %v12946_v13  ;;  %v11166_v13 = vld [vmem:[#allocation2 + $0x1128] ss:$28 sps:$4 sm:$0xff]   ;;  %v11172_v39 = vld [vmem:[#allocation2 + $0x1278] ss:$28 sps:$4 sm:$0xff]  }
 0x374   :  { %7748 = vmatpush2.bf16.msra.mxu1 %v11154_v50  ;;  %7806 = vmatprep.subr.bf16.mxu0 %v11159_v7  ;;  %v9919_v21 = vpop.f32.mrf.mxu0  ;;  %v11179_v50 = vld [vmem:[#allocation2 + $0x16d4] ss:$28 sps:$4 sm:$0xff]   ;;  %v11185_v3 = vld [vmem:[#allocation2 + $0x16a0] ss:$28 sps:$4 sm:$0xff]   ;;  %v11176_v16 = vld [vmem:[#allocation2 + $0x1208] ss:$28 sps:$4 sm:$0xff]  }
 0x375   :  { %9930 = vmatprep.subr.bf16.mxu1 %v11160_v18  ;;  %v10086_v6 = vpop.f32.mrf.mxu1  ;;  %v12983_v48 = vadd.f32 %v5433_v32, %v5362_v22  ;;  %v11168_v32 = vld [vmem:[#allocation2 + $0x10f0] ss:$28 sps:$4 sm:$0xff]   ;;  %v11174_v18 = vld [vmem:[#allocation2 + $0x1240] ss:$28 sps:$4 sm:$0xff]   ;;  %v11180_v38 = vld [vmem:[#allocation2 + $0x1048] ss:$28 sps:$4 sm:$0xff]  }
 0x376   :  { %7669 = vmatmul.mubr.bf16.vlgmr.msra.gmra.mxu0 %v12550_v62  ;;  %v11177_v7 = vld [vmem:[#allocation2 + $0x16d0] ss:$28 sps:$4 sm:$0xff]   ;;  %v11175_v15 = vld [vmem:[#allocation2 + $0x1080] ss:$28 sps:$4 sm:$0xff]  }
 0x377   :  { %14284 = vst [vmem:[#allocation142_spill] sm:$0xff] %v12983_v48  ;;  %7750 = vmatmul.mubr.bf16.vlgmr.msra.gmra.mxu1 %v12559_v43  ;;  %7807 = vmatpush1.bf16.msra.mxu0 %v11157_v30  ;;  %v11181_v22 = vld [vmem:[#allocation2 + $0x11d0] ss:$28 sps:$4 sm:$0xff]   ;;  %v14302_v43 = vld [vmem:[#allocation26_spill] sm:$0xff] }
 0x378   :  { %7678 = vmatprep.mubr.bf16.mxu0 %v12575_v58  ;;  %7759 = vmatprep.mubr.bf16.mxu1 %v12584_v45  ;;  %v11182_v30 = vld [vmem:[#allocation2 + $0x1010] ss:$28 sps:$4 sm:$0xff]   ;;  %v14301_v45 = vld [vmem:[#allocation22_spill] sm:$0xff] }
 0x379   :  { %9931 = vmatpush3.bf16.msra.mxu1 %v11161_v10  ;;  %7808 = vmatprep.subr.bf16.mxu0 %v11164_v53  ;;  %v11183_v10 = vld [vmem:[#allocation2 + $0x1198] ss:$28 sps:$4 sm:$0xff]  }
 0x37a   :  { %9932 = vmatprep.subr.bf16.mxu1 %v11165_v52 }
 0x37b   :  { %7809 = vmatpush1.bf16.msra.mxu0 %v11162_v19  ;;  %v11184_v19 = vld [vmem:[#allocation2 + $0xfd8] ss:$28 sps:$4 sm:$0xff]  }
 0x37c   :  { %7810 = vmatprep.subr.bf16.mxu0 %v11171_v51 }
 0x37d   :  { %9933 = vmatpush3.bf16.msra.mxu1 %v11166_v13 }
 0x37e   :  { %9934 = vmatprep.subr.bf16.mxu1 %v11167_v55  ;;  %7679 = vmatmul.mubr.bf16.gmra.mxu0 %v12607_v57 }
 0x37f   :  { %7760 = vmatmul.mubr.bf16.gmra.mxu1 %v12620_v23  ;;  %7688 = vmatprep.mubr.bf16.mxu0 %v12634_v27 }
 0x380   :  { %7769 = vmatprep.mubr.bf16.mxu1 %v12643_v5  ;;  %7811 = vmatpush1.bf16.msra.mxu0 %v11169_v35  ;;  %v14285_v35 = vmov 0.0  }
 0x381   :  { %9935 = vmatpush3.bf16.msra.mxu1 %v11168_v32  ;;  %7812 = vmatprep.subr.bf16.mxu0 %v11179_v50 }
 0x382   :  { %9936 = vmatprep.subr.bf16.mxu1 %v11172_v39 }
 0x384   :  { %7813 = vmatpush1.bf16.msra.mxu0 %v11177_v7 }
 0x385   :  { %9937 = vmatpush3.bf16.msra.mxu1 %v11173_v0  ;;  %9976 = vmatprep.subr.bf16.mxu0 %v11185_v3 }
 0x386   :  { %9938 = vmatprep.subr.bf16.mxu1 %v11174_v18  ;;  %7689 = vmatmul.mubr.bf16.gmra.mxu0 %v12673_v12 }
 0x387   :  { %7770 = vmatmul.mubr.bf16.gmra.mxu1 %v12680_v14  ;;  %7698 = vmatprep.mubr.bf16.mxu0 %v12696_v4  ;;  %v14296_v14 = vld [vmem:[#allocation16_spill] sm:$0xff] }
 0x388   :  { %7779 = vmatprep.mubr.bf16.mxu1 %v12704_v47  ;;  %v14293_v47 = vld [vmem:[#allocation13_spill] sm:$0xff] }
 0x389   :  { %9939 = vmatpush3.bf16.msra.mxu1 %v11175_v15  ;;  %v11186_v15 = vld [vmem:[#allocation2 + $0x14e0] ss:$28 sps:$4 sm:$0xff]  }
 0x38a   :  { %9940 = vmatprep.subr.bf16.mxu1 %v11176_v16 }
 0x38d   :  { %9941 = vmatpush3.bf16.msra.mxu1 %v11180_v38 }
 0x38e   :  { %9942 = vmatprep.subr.bf16.mxu1 %v11181_v22  ;;  %7699 = vmatmul.mubr.bf16.gmra.mxu0 %v12727_v24  ;;  %v12999_v21 = vpop.f32.mrf.mxu0  ;;  %v11187_v22 = vld [vmem:[#allocation2 + $0x1668] ss:$28 sps:$4 sm:$0xff]  }
 0x38f   :  { %7780 = vmatmul.mubr.bf16.gmra.mxu1 %v12733_v34  ;;  %v13001_v6 = vpop.f32.mrf.mxu1  ;;  %7708 = vmatprep.mubr.bf16.mxu0 %v12655_v17  ;;  %v11200_v34 = vld [vmem:[#allocation2 + $0x1550] ss:$28 sps:$4 sm:$0xff]  }
 0x390   :  { %7789 = vmatprep.mubr.bf16.mxu1 %v12666_v31  ;;  %v13005_v53 = vpop.f32.mrf.mxu0 }
 0x391   :  { %v13007_v52 = vpop.f32.mrf.mxu1  ;;  %9943 = vmatpush3.bf16.msra.mxu1 %v11182_v30  ;;  %v11189_v30 = vld [vmem:[#allocation2 + $0x1780] ss:$28 sps:$4 sm:$0xff]  }
 0x392   :  { %9944 = vmatprep.subr.bf16.mxu1 %v11183_v10  ;;  %v13009_v13 = vpop.f32.mrf.mxu0 }
 0x393   :  { %v13011_v51 = vpop.f32.mrf.mxu1 }
 0x394   :  { %v13013_v55 = vpop.f32.mrf.mxu0 }
 0x395   :  { %v13015_v32 = vpop.f32.mrf.mxu1  ;;  %9945 = vmatpush3.bf16.msra.mxu1 %v11184_v19  ;;  %v11188_v19 = vld [vmem:[#allocation2 + $0x14a8] ss:$28 sps:$4 sm:$0xff]  }
 0x396   :  { %10087 = vmatprep.subr.bf16.mxu1 %v14285_v35  ;;  %7709 = vmatmul.mubr.bf16.gmra.mxu0 %v12710_v46  ;;  %v13020_v39 = vpop.f32.mrf.mxu0 }
 0x397   :  { %7790 = vmatmul.mubr.bf16.gmra.mxu1 %v12712_v26  ;;  %v13022_v50 = vpop.f32.mrf.mxu1  ;;  %7830 = vmatprep.mubr.bf16.mxu0 %v14060_v40 }
 0x398   :  { %7911 = vmatprep.mubr.bf16.mxu1 %v12483_v44  ;;  %v13026_v0 = vpop.f32.mrf.mxu0 }
 0x399   :  { %v13028_v7 = vpop.f32.mrf.mxu1 }
 0x39a   :  { %v13030_v18 = vpop.f32.mrf.mxu0 }
 0x39b   :  { %v13032_v3 = vpop.f32.mrf.mxu1 }
 0x39c   :  { %v13034_v16 = vpop.f32.mrf.mxu0 }
 0x39d   :  { %v13036_v38 = vpop.f32.mrf.mxu1 }
 0x39e   :  { %9717 = vmatmul.mubr.msk.bf16.vlgmr.msra.gmra.mxu0 %vm2225_vm1, %v12754_v60  ;;  %v13040_v10 = vpop.f32.mrf.mxu0 }
 0x39f   :  { %v13042_v44 = vpop.f32.mrf.mxu1  ;;  %7912 = vmatmul.mubr.bf16.vlgmr.msra.gmra.mxu1 %v12550_v62  ;;  %9977 = vmatpush3.bf16.msra.mxu0 %v11186_v15  ;;  %v11191_v62 = vld [vmem:[#allocation2 + $0x1470] ss:$28 sps:$4 sm:$0xff]  }
 0x3a0   :  { %7840 = vmatprep.mubr.bf16.mxu0 %v14060_v40  ;;  %v13046_v48 = vpop.f32.mrf.mxu0  ;;  %9978 = vmatprep.subr.bf16.mxu0 %v11187_v22  ;;  %v11199_v22 = vld [vmem:[#allocation2 + $0x1710] ss:$28 sps:$4 sm:$0xff]  }
 0x3a1   :  { %v13048_v36 = vpop.f32.mrf.mxu1  ;;  %10088 = vmatpush3.bf16.msra.mxu1 %v11189_v30  ;;  %7919 = vmatprep.mubr.bf16.mxu1 %v12575_v58 }
 0x3a2   :  { %10089 = vmatprep.subr.bf16.mxu1 %v14285_v35  ;;  %v13052_v11 = vpop.f32.mrf.mxu0 }
 0x3a3   :  { %v13054_v49 = vpop.f32.mrf.mxu1  ;;  %9979 = vmatpush3.bf16.msra.mxu0 %v11188_v19  ;;  %v11193_v19 = vld [vmem:[#allocation2 + $0x1438] ss:$28 sps:$4 sm:$0xff]  }
 0x3a4   :  { %v13056_v15 = vpop.f32.mrf.mxu0  ;;  %9980 = vmatprep.subr.bf16.mxu0 %v11190_v56 }
 0x3a5   :  { %v13058_v37 = vpop.f32.mrf.mxu1  ;;  %10090 = vmatpush3.bf16.msra.mxu1 %v11194_v61  ;;  %v11195_v61 = vld [vmem:[#allocation2 + $0x15c0] ss:$28 sps:$4 sm:$0xff]  }
 0x3a6   :  { %10091 = vmatprep.subr.bf16.mxu1 %v14285_v35  ;;  %9718 = vmatmul.mubr.msk.bf16.gmra.mxu0 %vm2225_vm1, %v12761_v42  ;;  %v13063_v58 = vpop.f32.mrf.mxu0  ;;  %v14298_v42 = vld [vmem:[#allocation18_spill] sm:$0xff] }
 0x3a7   :  { %v13065_v30 = vpop.f32.mrf.mxu1  ;;  %7920 = vmatmul.mubr.bf16.gmra.mxu1 %v12607_v57  ;;  %9981 = vmatpush3.bf16.msra.mxu0 %v11191_v62  ;;  %v11196_v57 = vld [vmem:[#allocation2 + $0x1400] ss:$28 sps:$4 sm:$0xff]   ;;  %v14031_v62 = vlaneseq }
 0x3a8   :  { %7850 = vmatprep.mubr.bf16.mxu0 %v14060_v40  ;;  %v13069_v29 = vpop.f32.mrf.mxu0  ;;  %9982 = vmatprep.subr.bf16.mxu0 %v11192_v2  ;;  %v11197_v2 = vld [vmem:[#allocation2 + $0x1588] ss:$28 sps:$4 sm:$0xff]  }
 0x3a9   :  { %v13071_v56 = vpop.f32.mrf.mxu1  ;;  %7927 = vmatprep.mubr.bf16.mxu1 %v12634_v27  ;;  %10092 = vmatpush3.bf16.msra.mxu1 %v11199_v22 }
 0x3aa   :  { %v13074_v28 = vpop.f32.mrf.mxu0  ;;  %10093 = vmatprep.subr.bf16.mxu1 %v14285_v35 }
 0x3ab   :  { %v13076_v8 = vpop.f32.mrf.mxu1  ;;  %9983 = vmatpush3.bf16.msra.mxu0 %v11193_v19  ;;  %v13092_v19 = vshrl.u32 %v14031_v62, 7  ;;  %v14297_v62 = vld [vmem:[#allocation17_spill] sm:$0xff] }
 0x3ac   :  { %v13079_v54 = vpop.f32.mrf.mxu0  ;;  %9984 = vmatprep.subr.bf16.mxu0 %v11195_v61  ;;  %v14290_v61 = vld [vmem:[#allocation12_spill] sm:$0xff]  ;;  %v2393_v23 = vadd.f32 %v14298_v42, %v14297_v62  ;;  %v11202_v42 = vld [vmem:[#allocation2 + $0x1518] ss:$28 sps:$4 sm:$0xff]   ;;  %v7266_v62 = vadd.f32 %v13001_v6, %v12999_v21 }
 0x3ad   :  { %v13081_v20 = vpop.f32.mrf.mxu1  ;;  %10094 = vmatpush3.bf16.msra.mxu1 %v11204_v1  ;;  %v2363_v26 = vadd.f32 %v14290_v61, %v14289_v33  ;;  %v11203_v6 = vld [vmem:[#allocation2 + $0x1358] ss:$28 sps:$4 sm:$0xff]  }
 0x3ae   :  { %14286 = vst [vmem:[#allocation143_spill] sm:$0xff] %v13081_v20  ;;  %9719 = vmatmul.mubr.msk.bf16.gmra.mxu0 %vm2225_vm1, %v12775_v41  ;;  %v13085_v27 = vpop.f32.mrf.mxu0  ;;  %v14295_v41 = vld [vmem:[#allocation15_spill] sm:$0xff] }
 0x3af   :  { %14287 = vst [vmem:[#allocation144_spill] sm:$0xff] %v13085_v27  ;;  %v13087_v22 = vpop.f32.mrf.mxu1  ;;  %7928 = vmatmul.mubr.bf16.gmra.mxu1 %v12673_v12  ;;  %9985 = vmatpush3.bf16.msra.mxu0 %v11196_v57  ;;  %v14294_v12 = vld [vmem:[#allocation14_spill] sm:$0xff]  ;;  %v2383_v5 = vadd.f32 %v14296_v14, %v14295_v41  ;;  %v13113_v41 = vld [vmem:[#allocation4] sm:$0xff] }
 0x3b0   :  { %14288 = vst [vmem:[#allocation145_spill] sm:$0xff] %v13087_v22  ;;  %7860 = vmatprep.mubr.bf16.mxu0 %v14060_v40  ;;  %v13096_v1 = vpop.f32.mrf.mxu0  ;;  %7935 = vmatprep.mubr.bf16.mxu1 %v12696_v4  ;;  %v2373_v57 = vadd.f32 %v14294_v12, %v14293_v47  ;;  %v14299_v22 = vld [vmem:[#allocation19_spill] sm:$0xff]  ;;  %v14300_v4 = vld [vmem:[#allocation20_spill] sm:$0xff]  ;;  %v2474_v47 = vadd.f32 %v14302_v43, %v2393_v23 }
 0x3b1   :  { %14291 = vst [vmem:[#allocation11_spill] sm:$0xff] %v13096_v1  ;;  %v13098_v31 = vpop.f32.mrf.mxu1  ;;  %9986 = vmatprep.subr.bf16.mxu0 %v11197_v2  ;;  %v2444_v27 = vadd.f32 %v14299_v22, %v2363_v26  ;;  %v8162_v1 = vsub.s32 0, %v13092_v19  ;;  %v2464_v60 = vadd.f32 %v14301_v45, %v2383_v5  ;;  %v14303_v12 = vld [vmem:[#allocation83_spill] sm:$0xff]  ;;  %v14304_v22 = vld [vmem:[#allocation85_spill] sm:$0xff]  ;;  %v14306_v45 = vld [vmem:[#allocation8_spill] sm:$0xff]  ;;  %v7268_v23 = vadd.f32 %v13007_v52, %v13005_v53 }
 0x3b2   :  { %14292 = vst [vmem:[#allocation12_spill] sm:$0xff] %v13098_v31  ;;  %v7228_v33 = vpop.f32.mrf.mxu0  ;;  %v11201_v31 = vld [vmem:[#allocation2 + $0x1390] ss:$28 sps:$4 sm:$0xff]   ;;  %v2454_v2 = vadd.f32 %v14300_v4, %v2373_v57  ;;  %v4565_v5 = vadd.f32 %v14306_v45, %v2474_v47 }
 0x3b3   :  { %v7309_v61 = vpop.f32.mrf.mxu1  ;;  %9987 = vmatpush3.bf16.msra.mxu0 %v11198_v59  ;;  %v4535_v20 = vadd.f32 %v14303_v12, %v2444_v27  ;;  %v8166_v59 = vsub.s32 1, %v13092_v19  ;;  %v14305_v57 = vld [vmem:[#allocation21_spill] sm:$0xff]  ;;  %v13127_v21 = vrot.slane %v13113_v41, %v8162_v1  ;;  %v14309_v1 = vld [vmem:[#allocation86_spill] sm:$0xff] }
 0x3b4   :  { %v7229_v14 = vpop.f32.mrf.mxu0  ;;  %9988 = vmatprep.subr.bf16.mxu0 %v11200_v34  ;;  %v4545_v33 = vadd.f32 %v14304_v22, %v2454_v2  ;;  %v4555_v61 = vadd.f32 %v14305_v57, %v2464_v60  ;;  %v14307_v60 = vld [vmem:[#allocation84_spill] sm:$0xff]  ;;  %v14314_v45 = vld [vmem:[#allocation89_spill] sm:$0xff] }
 0x3b5   :  { %v7310_v26 = vpop.f32.mrf.mxu1  ;;  %v4616_v27 = vadd.f32 %v14307_v60, %v4535_v20  ;;  %v14308_v2 = vld [vmem:[#allocation24_spill] sm:$0xff]  ;;  %v13136_v52 = vrot.slane %v13113_v41, %v8166_v59  ;;  %v14311_v14 = vld [vmem:[#allocation23_spill] sm:$0xff] }
 0x3b6   :  { %9720 = vmatmul.mubr.msk.bf16.gmra.mxu0 %vm2225_vm1, %v12800_v63  ;;  %v7346_v43 = vpop.f32.mrf.mxu0  ;;  %v4626_v12 = vadd.f32 %v14309_v1, %v4545_v33  ;;  %v4646_v26 = vadd.f32 %v14311_v14, %v4565_v5  ;;  %v14312_v20 = vld [vmem:[#allocation28_spill] sm:$0xff]  ;;  %v14316_v5 = vld [vmem:[#allocation37_spill] sm:$0xff] }
 0x3b7   :  { %7936 = vmatmul.mubr.bf16.gmra.mxu1 %v12727_v24  ;;  %v7347_v34 = vadd.f32 %v7346_v43, %v7266_v62  ;;  %7870 = vmatprep.mubr.bf16.mxu0 %v14060_v40  ;;  %v7270_v24 = vadd.f32 %v13011_v51, %v13009_v13  ;;  %v14310_v40 = vld [vmem:[#allocation87_spill] sm:$0xff]  ;;  %v4697_v62 = vadd.f32 %v14312_v20, %v4616_v27  ;;  %v14317_v27 = vld [vmem:[#allocation9_spill] sm:$0xff] }
 0x3b8   :  { %9989 = vmatpush3.bf16.msra.mxu0 %v11201_v31  ;;  %v7348_v4 = vpop.f32.mrf.mxu0  ;;  %7943 = vmatprep.mubr.bf16.mxu1 %v12655_v17  ;;  %v4636_v31 = vadd.f32 %v14310_v40, %v4555_v61  ;;  %v13142_v17 = vpop.permute.xlu0 %8402  ;;  %v7272_v13 = vadd.f32 %v13015_v32, %v13013_v55  ;;  %v13149_v33 = vadd.f32 %v14314_v45, %v4626_v12  ;;  %v14315_v61 = vld [vmem:[#allocation93_spill] sm:$0xff] }
 0x3b9   :  { %9990 = vmatprep.subr.bf16.mxu0 %v11202_v42  ;;  %v8095_v47 = vadd.f32 %v7347_v34, %v14308_v2  ;;  %v7349_v53 = vadd.f32 %v7348_v4, %v7268_v23  ;;  %v14313_v42 = vld [vmem:[#allocation25_spill] sm:$0xff]  ;;  %v13155_v23 = vadd.f32 %v14316_v5, %v4646_v26  ;;  %v7276_v34 = vadd.f32 %v13022_v50, %v13020_v39  ;;  %v13206_v40 = vpop.permute.xlu1 %8412 }
 0x3ba   :  { %v7350_v22 = vpop.f32.mrf.mxu0  ;;  %v13152_v43 = vadd.f32 %v14315_v61, %v4636_v31  ;;  %v7280_v2 = vadd.f32 %v13032_v3, %v13030_v18  ;;  %v7286_v50 = vadd.f32 %v13042_v44, %v13040_v10  ;;  %v7288_v3 = vadd.f32 %v13048_v36, %v13046_v48  ;;  %v14318_v1 = vld [vmem:[#allocation29_spill] sm:$0xff]  ;;  %v14319_v31 = vld [vmem:[#allocation143_spill] sm:$0xff] }
 0x3bb   :  { %v8195_v51 = vadd.f32 %v13127_v21, %v8095_v47  ;;  %v8096_v57 = vadd.f32 %v7349_v53, %v14313_v42  ;;  %v7351_v59 = vadd.f32 %v7350_v22, %v7270_v24  ;;  %v7282_v47 = vadd.f32 %v13036_v38, %v13034_v16  ;;  %v14321_v42 = vld [vmem:[#allocation88_spill] sm:$0xff]  ;;  %v14322_v5 = vld [vmem:[#allocation97_spill] sm:$0xff] }
 0x3bc   :  { %9991 = vmatpush3.bf16.msra.mxu0 %v11203_v6  ;;  %v7352_v60 = vpop.f32.mrf.mxu0  ;;  %v7278_v6 = vadd.f32 %v13028_v7, %v13026_v0  ;;  %v13186_v44 = vpop.permute.xlu0 %8407  ;;  %v13190_v53 = vadd.f32 %v13058_v37, %v13056_v15  ;;  %v13202_v36 = vadd.f32 %v13071_v56, %v13069_v29  ;;  %v13218_v14 = vadd.f32 %v14319_v31, %v13079_v54 }
 0x3bd   :  { %v8258_v55 = vmax.f32 %v8195_v51, 0.0  ;;  %v8196_v32 = vadd.f32 %v13136_v52, %v8096_v57  ;;  %v8102_v4 = vadd.f32 %v7351_v59, %v14317_v27  ;;  %v7353_v24 = vadd.f32 %v7352_v60, %v7272_v13  ;;  %v14323_v60 = vld [vmem:[#allocation121_spill] sm:$0xff] }
 0x3be   :  { %9721 = vmatmul.mubr.msk.bf16.gmra.mxu0 %vm2225_vm1, %v12789_v9  ;;  %v7356_v39 = vpop.f32.mrf.mxu0 }
 0x3bf   :  { %7944 = vmatmul.mubr.bf16.gmra.mxu1 %v12710_v46  ;;  %8321 = vst [vmem:[%s14007_s4] sm:$0xff] %v8258_v55  ;;  %v8259_v0 = vmax.f32 %v8196_v32, 0.0  ;;  %v8202_v7 = vadd.f32 %v13127_v21, %v8102_v4  ;;  %v8103_v18 = vadd.f32 %v7353_v24, %v4697_v62  ;;  %7983 = vmatprep.mubr.bf16.mxu0 %v12488_v25  ;;  %v14320_v62 = vld [vmem:[#allocation10_spill] sm:$0xff]  ;;  %v14324_v24 = vld [vmem:[#allocation101_spill] sm:$0xff] }
 0x3c0   :  { %10095 = vmatprep.mubr.msk.bf16.mxu1 %vm11266_vm2, %v14285_v35  ;;  %v13183_v46 = vadd.f32 %v13054_v49, %v13052_v11  ;;  %v8445_v16 = vmul.f32 %v13142_v17, %v8258_v55  ;;  %v7357_v38 = vadd.f32 %v7356_v39, %v7276_v34  ;;  %v7358_v10 = vpop.f32.mrf.mxu0  ;;  %v13194_v25 = vadd.f32 %v13065_v30, %v13063_v58 }
 0x3c1   :  { %8322 = vst [vmem:[%s14007_s4 + $0x8] sm:$0xff] %v8259_v0  ;;  %v8265_v49 = vmax.f32 %v8202_v7, 0.0  ;;  %v8203_v11 = vadd.f32 %v13136_v52, %v8103_v18  ;;  %v8446_v48 = vmul.f32 %v13142_v17, %v8259_v0  ;;  %v7359_v15 = vadd.f32 %v7358_v10, %v7278_v6  ;;  %v13238_v7 = vpop.permute.xlu1 %8417  ;;  %v14325_v18 = vld [vmem:[#allocation144_spill] sm:$0xff] }
 0x3c2   :  { %v8109_v37 = vadd.f32 %v7357_v38, %v14318_v1  ;;  %v7360_v12 = vpop.f32.mrf.mxu0  ;;  %v13210_v58 = vadd.f32 %v13076_v8, %v13074_v28  ;;  %v8675_v26 = vmul.f32 %v8445_v16, %v8445_v16 }
 0x3c3   :  { %8328 = vst [vmem:[%s14007_s4 + $0x38] sm:$0xff] %v8265_v49  ;;  %v8266_v30 = vmax.f32 %v8203_v11, 0.0  ;;  %v8452_v29 = vmul.f32 %v13186_v44, %v8265_v49  ;;  %v7361_v56 = vadd.f32 %v7360_v12, %v7280_v2  ;;  %v8110_v22 = vadd.f32 %v7359_v15, %v14320_v62  ;;  %v14327_v15 = vld [vmem:[#allocation90_spill] sm:$0xff] }
 0x3c4   :  { %v8209_v20 = vadd.f32 %v13127_v21, %v8109_v37  ;;  %v7362_v13 = vpop.f32.mrf.mxu0  ;;  %v8676_v59 = vmul.f32 %v8446_v48, %v8446_v48 }
 0x3c5   :  { %8329 = vst [vmem:[%s14007_s4 + $0x40] sm:$0xff] %v8266_v30  ;;  %v8453_v28 = vmul.f32 %v13186_v44, %v8266_v30  ;;  %v8508_v8 = vadd.f32 %v8452_v29, %v8445_v16  ;;  %v8682_v51 = vmul.f32 %v8452_v29, %v8452_v29  ;;  %v8116_v57 = vadd.f32 %v7361_v56, %v14321_v42  ;;  %v14326_v16 = vld [vmem:[#allocation145_spill] sm:$0xff]  ;;  %v14328_v30 = vld [vmem:[#allocation91_spill] sm:$0xff]  ;;  %v13260_v42 = vpop.permute.xlu0 %8422 }
 0x3c6   :  { %v8272_v45 = vmax.f32 %v8209_v20, 0.0  ;;  %v8210_v54 = vadd.f32 %v13136_v52, %v8110_v22  ;;  %v7363_v61 = vadd.f32 %v7362_v13, %v7282_v47  ;;  %7984 = vmatmul.mubr.bf16.vlgmr.msra.gmra.mxu0 %v14322_v5  ;;  %v7366_v34 = vpop.f32.mrf.mxu0  ;;  %v13244_v38 = vadd.f32 %v14326_v16, %v14325_v18  ;;  %v14333_v16 = vld [vmem:[#allocation94_spill] sm:$0xff] }
 0x3c7   :  { %10096 = vmatmul.mubr.msk.bf16.vlgmr.msra.gmra.mxu1 %vm2225_vm1, %v14323_v60  ;;  %v8524_v55 = vadd.f32 %v8453_v28, %v8446_v48  ;;  %v8683_v32 = vmul.f32 %v8453_v28, %v8453_v28  ;;  %v8738_v27 = vadd.f32 %v8682_v51, %v8675_v26  ;;  %v8216_v4 = vadd.f32 %v13127_v21, %v8116_v57 }
 0x3c8   :  { %7991 = vmatprep.mubr.bf16.mxu0 %v14324_v24  ;;  %8335 = vst [vmem:[%s14007_s4 + $0x70] sm:$0xff] %v8272_v45  ;;  %v8273_v6 = vmax.f32 %v8210_v54, 0.0  ;;  %v8117_v2 = vadd.f32 %v7363_v61, %v13149_v33  ;;  %v8459_v47 = vmul.f32 %v13206_v40, %v8272_v45  ;;  %v7367_v39 = vadd.f32 %v7366_v34, %v7286_v50  ;;  %v7368_v0 = vpop.f32.mrf.mxu0  ;;  %v14330_v61 = vld [vmem:[#allocation104_spill] sm:$0xff] }
 0x3c9   :  { %10099 = vmatprep.mubr.msk.bf16.mxu1 %vm11266_vm2, %v14285_v35  ;;  %v8753_v10 = vadd.f32 %v8683_v32, %v8676_v59  ;;  %v8279_v49 = vmax.f32 %v8216_v4, 0.0  ;;  %v7369_v11 = vadd.f32 %v7368_v0, %v7288_v3  ;;  %v14329_v59 = vld [vmem:[#allocation92_spill] sm:$0xff]  ;;  %v14331_v4 = vld [vmem:[#allocation122_spill] sm:$0xff] }
 0x3ca   :  { %8336 = vst [vmem:[%s14007_s4 + $0x78] sm:$0xff] %v8273_v6  ;;  %v8217_v33 = vadd.f32 %v13136_v52, %v8117_v2  ;;  %v8460_v50 = vmul.f32 %v13206_v40, %v8273_v6  ;;  %v8509_v48 = vadd.f32 %v8508_v8, %v8459_v47  ;;  %v8689_v1 = vmul.f32 %v8459_v47, %v8459_v47  ;;  %v7370_v37 = vpop.f32.mrf.mxu0  ;;  %v14332_v24 = vld [vmem:[#allocation108_spill] sm:$0xff] }
 0x3cb   :  { %8342 = vst [vmem:[%s14007_s4 + $0xa8] sm:$0xff] %v8279_v49  ;;  %v8123_v12 = vadd.f32 %v7367_v39, %v14327_v15  ;;  %v8124_v29 = vadd.f32 %v7369_v11, %v14328_v30  ;;  %v8466_v3 = vmul.f32 %v13238_v7, %v8279_v49  ;;  %v7371_v56 = vadd.f32 %v7370_v37, %v13183_v46  ;;  %v13291_v49 = vpop.permute.xlu1 %8427  ;;  %v14334_v11 = vld [vmem:[#allocation11_spill] sm:$0xff] }
 0x3cc   :  { %v8280_v31 = vmax.f32 %v8217_v33, 0.0  ;;  %v8525_v26 = vadd.f32 %v8524_v55, %v8460_v50  ;;  %v8690_v20 = vmul.f32 %v8460_v50, %v8460_v50  ;;  %v8739_v62 = vadd.f32 %v8738_v27, %v8689_v1  ;;  %v7372_v22 = vpop.f32.mrf.mxu0  ;;  %v14335_v33 = vld [vmem:[#allocation12_spill] sm:$0xff] }
 0x3cd   :  { %v8223_v13 = vadd.f32 %v13127_v21, %v8123_v12  ;;  %v8224_v28 = vadd.f32 %v13136_v52, %v8124_v29  ;;  %v8510_v8 = vadd.f32 %v8509_v48, %v8466_v3  ;;  %v8696_v51 = vmul.f32 %v8466_v3, %v8466_v3 }
 0x3ce   :  { %8343 = vst [vmem:[%s14007_s4 + $0xb0] sm:$0xff] %v8280_v31  ;;  %v8754_v57 = vadd.f32 %v8753_v10, %v8690_v20  ;;  %v8467_v46 = vmul.f32 %v13238_v7, %v8280_v31  ;;  %v8130_v45 = vadd.f32 %v7371_v56, %v14329_v59  ;;  %v7373_v54 = vadd.f32 %v7372_v22, %v13190_v53  ;;  %v7376_v5 = vpop.f32.mrf.mxu0 }
 0x3cf   :  { %7992 = vmatmul.mubr.bf16.gmra.mxu0 %v14330_v61  ;;  %v13269_v34 = vpop.f32.mrf.mxu1  ;;  %v8286_v60 = vmax.f32 %v8223_v13, 0.0  ;;  %v8287_v55 = vmax.f32 %v8224_v28, 0.0  ;;  %v8740_v32 = vadd.f32 %v8739_v62, %v8696_v51  ;;  %v7377_v27 = vadd.f32 %v7376_v5, %v13194_v25  ;;  %10100 = vmatmul.mubr.msk.bf16.gmra.mxu1 %vm2225_vm1, %v14331_v4  ;;  %v14338_v5 = vld [vmem:[#allocation111_spill] sm:$0xff] }
 0x3d0   :  { %7999 = vmatprep.mubr.bf16.mxu0 %v14332_v24  ;;  %v8526_v6 = vadd.f32 %v8525_v26, %v8467_v46  ;;  %v8697_v2 = vmul.f32 %v8467_v46, %v8467_v46  ;;  %v8230_v47 = vadd.f32 %v13127_v21, %v8130_v45  ;;  %v8131_v53 = vadd.f32 %v7373_v54, %v13152_v43  ;;  %v7378_v39 = vpop.f32.mrf.mxu0  ;;  %v14336_v26 = vld [vmem:[#allocation33_spill] sm:$0xff]  ;;  %v13308_v46 = vpop.permute.xlu0 %8432  ;;  %v14340_v24 = vld [vmem:[#allocation63_spill] sm:$0xff] }
 0x3d1   :  { %v13277_v0 = vpop.f32.mrf.mxu1  ;;  %10103 = vmatprep.mubr.msk.bf16.mxu1 %vm11266_vm2, %v14285_v35  ;;  %8349 = vst [vmem:[%s14007_s4 + $0xe0] sm:$0xff] %v8286_v60  ;;  %8350 = vst [vmem:[%s14007_s4 + $0xe8] sm:$0xff] %v8287_v55  ;;  %v8473_v25 = vmul.f32 %v13260_v42, %v8286_v60  ;;  %v8474_v18 = vmul.f32 %v13260_v42, %v8287_v55  ;;  %v8137_v43 = vadd.f32 %v7377_v27, %v14333_v16 }
 0x3d2   :  { %v7379_v10 = vadd.f32 %v7378_v39, %v13202_v36  ;;  %v7308_v50 = vadd.f32 %v14335_v33, %v14334_v11  ;;  %v8755_v48 = vadd.f32 %v8754_v57, %v8697_v2  ;;  %v8293_v1 = vmax.f32 %v8230_v47, 0.0  ;;  %v7380_v15 = vpop.f32.mrf.mxu0  ;;  %14337 = vst [vmem:[#allocation13_spill] sm:$0xff] %v13308_v46  ;;  %v13335_v11 = vpop.permute.xlu1 %8437 }
 0x3d3   :  { %v8231_v37 = vadd.f32 %v13136_v52, %v8131_v53  ;;  %v13296_v12 = vpop.f32.mrf.mxu1  ;;  %v8511_v30 = vadd.f32 %v8510_v8, %v8473_v25  ;;  %v8527_v29 = vadd.f32 %v8526_v6, %v8474_v18  ;;  %v8703_v3 = vmul.f32 %v8473_v25, %v8473_v25  ;;  %14343 = vst [vmem:[#allocation14_spill] sm:$0xff] %v13335_v11 }
 0x3d4   :  { %v8704_v56 = vmul.f32 %v8474_v18, %v8474_v18  ;;  %8356 = vst [vmem:[%s14007_s4 + $0x118] sm:$0xff] %v8293_v1  ;;  %v8237_v31 = vadd.f32 %v13127_v21, %v8137_v43  ;;  %v8138_v20 = vadd.f32 %v7379_v10, %v14336_v26  ;;  %v8480_v62 = vmul.f32 %v13291_v49, %v8293_v1  ;;  %v7382_v22 = vpop.f32.mrf.mxu0  ;;  %v14341_v18 = vld [vmem:[#allocation116_spill] sm:$0xff]  ;;  %v14344_v26 = vld [vmem:[#allocation38_spill] sm:$0xff] }
 0x3d5   :  { %v8294_v36 = vmax.f32 %v8231_v37, 0.0  ;;  %v13304_v13 = vpop.f32.mrf.mxu1  ;;  %v8741_v28 = vadd.f32 %v8740_v32, %v8703_v3  ;;  %v7381_v8 = vadd.f32 %v7380_v15, %v13210_v58  ;;  %v7383_v57 = vadd.f32 %v7382_v22, %v13218_v14  ;;  %v14339_v32 = vld [vmem:[#allocation34_spill] sm:$0xff]  ;;  %v14342_v43 = vld [vmem:[#allocation96_spill] sm:$0xff] }
 0x3d6   :  { %v8756_v51 = vadd.f32 %v8755_v48, %v8704_v56  ;;  %v8300_v59 = vmax.f32 %v8237_v31, 0.0  ;;  %v8238_v45 = vadd.f32 %v13136_v52, %v8138_v20  ;;  %v8512_v61 = vadd.f32 %v8511_v30, %v8480_v62  ;;  %v7386_v60 = vpop.f32.mrf.mxu0 }
 0x3d7   :  { %8357 = vst [vmem:[%s14007_s4 + $0x120] sm:$0xff] %v8294_v36  ;;  %v8481_v54 = vmul.f32 %v13291_v49, %v8294_v36  ;;  %8000 = vmatmul.mubr.bf16.gmra.mxu0 %v14338_v5  ;;  %v13316_v55 = vpop.f32.mrf.mxu1  ;;  %v8710_v58 = vmul.f32 %v8480_v62, %v8480_v62  ;;  %v8144_v14 = vadd.f32 %v7381_v8, %v14339_v32 }
 0x3d8   :  { %v8145_v27 = vadd.f32 %v7383_v57, %v13155_v23  ;;  %v7387_v4 = vadd.f32 %v7386_v60, %v13244_v38  ;;  %10104 = vmatmul.mubr.msk.bf16.gmra.mxu1 %vm2225_vm1, %v14340_v24  ;;  %8363 = vst [vmem:[%s14007_s4 + $0x150] sm:$0xff] %v8300_v59  ;;  %v8301_v6 = vmax.f32 %v8238_v45, 0.0  ;;  %v8487_v53 = vmul.f32 %v13308_v46, %v8300_v59  ;;  %v7388_v39 = vpop.f32.mrf.mxu0  ;;  %v13355_v57 = vpop.permute.xlu0 %8442 }
 0x3d9   :  { %v8528_v2 = vadd.f32 %v8527_v29, %v8481_v54  ;;  %v8711_v47 = vmul.f32 %v8481_v54, %v8481_v54  ;;  %v13327_v25 = vpop.f32.mrf.mxu1  ;;  %8007 = vmatprep.mubr.bf16.mxu0 %v14341_v18  ;;  %10107 = vmatprep.mubr.msk.bf16.mxu1 %vm11266_vm2, %v14285_v35  ;;  %v8742_v23 = vadd.f32 %v8741_v28, %v8710_v58  ;;  %v14346_v54 = vld [vmem:[#allocation120_spill] sm:$0xff] }
 0x3da   :  { %v8244_v38 = vadd.f32 %v13127_v21, %v8144_v14  ;;  %v8245_v16 = vadd.f32 %v13136_v52, %v8145_v27  ;;  %v8151_v10 = vadd.f32 %v7387_v4, %v14342_v43  ;;  %8364 = vst [vmem:[%s14007_s4 + $0x158] sm:$0xff] %v8301_v6  ;;  %v8488_v48 = vmul.f32 %v13308_v46, %v8301_v6  ;;  %v7390_v30 = vpop.f32.mrf.mxu0  ;;  %v14347_v4 = vld [vmem:[#allocation110_spill] sm:$0xff] }
 0x3db   :  { %v8757_v33 = vadd.f32 %v8756_v51, %v8711_v47  ;;  %v8717_v1 = vmul.f32 %v8487_v53, %v8487_v53  ;;  %v7389_v37 = vadd.f32 %v7388_v39, %v7308_v50  ;;  %v13341_v15 = vpop.f32.mrf.mxu1  ;;  %v8513_v36 = vadd.f32 %v8512_v61, %v8487_v53  ;;  %14345 = vst [vmem:[#allocation15_spill] sm:$0xff] %v13355_v57 }
 0x3dc   :  { %v8307_v29 = vmax.f32 %v8244_v38, 0.0  ;;  %v8308_v3 = vmax.f32 %v8245_v16, 0.0  ;;  %v8251_v56 = vadd.f32 %v13127_v21, %v8151_v10  ;;  %v8718_v31 = vmul.f32 %v8488_v48, %v8488_v48  ;;  %v7391_v51 = vpop.f32.mrf.mxu0 }
 0x3dd   :  { %v8152_v20 = vadd.f32 %v7389_v37, %v14344_v26  ;;  %v8529_v62 = vadd.f32 %v8528_v2, %v8488_v48  ;;  %v8743_v22 = vadd.f32 %v8742_v23, %v8717_v1  ;;  %v13345_v28 = vpop.f32.mrf.mxu1  ;;  %v14348_v48 = vld [vmem:[#allocation117_spill] sm:$0xff] }
 0x3de   :  { %8370 = vst [vmem:[%s14007_s4 + $0x188] sm:$0xff] %v8307_v29  ;;  %8371 = vst [vmem:[%s14007_s4 + $0x190] sm:$0xff] %v8308_v3  ;;  %v8314_v50 = vmax.f32 %v8251_v56, 0.0  ;;  %v8494_v21 = vmul.f32 %v13335_v11, %v8307_v29  ;;  %v8495_v8 = vmul.f32 %v13335_v11, %v8308_v3  ;;  %v8758_v45 = vadd.f32 %v8757_v33, %v8718_v31 }
 0x3df   :  { %v8252_v59 = vadd.f32 %v13136_v52, %v8152_v20  ;;  %8008 = vmatmul.mubr.bf16.gmra.mxu0 %v14346_v54  ;;  %v13359_v61 = vpop.f32.mrf.mxu1 }
 0x3e0   :  { %8377 = vst [vmem:[%s14007_s4 + $0x1c0] sm:$0x3f] %v8314_v50  ;;  %v8514_v5 = vadd.f32 %v8513_v36, %v8494_v21  ;;  %v8530_v60 = vadd.f32 %v8529_v62, %v8495_v8  ;;  %v8724_v58 = vmul.f32 %v8494_v21, %v8494_v21  ;;  %v8725_v32 = vmul.f32 %v8495_v8, %v8495_v8 }
 0x3e1   :  { %10108 = vmatmul.mubr.msk.bf16.gmra.mxu1 %vm2225_vm1, %v12800_v63  ;;  %v8315_v14 = vmax.f32 %v8252_v59, 0.0  ;;  %v8501_v52 = vmul.f32 %v13355_v57, %v8314_v50  ;;  %v13367_v27 = vpop.f32.mrf.mxu1  ;;  %8015 = vmatprep.mubr.bf16.mxu0 %v14347_v4 }
 0x3e2   :  { %10111 = vmatprep.mubr.msk.bf16.mxu1 %vm11266_vm2, %v14285_v35  ;;  %v8744_v24 = vadd.f32 %v8743_v22, %v8724_v58  ;;  %v8759_v6 = vadd.f32 %v8758_v45, %v8725_v32 }
 0x3e3   :  { %8378 = vst [vmem:[%s14007_s4 + $0x1c8] sm:$0x3f] %v8315_v14  ;;  %v8502_v2 = vmul.f32 %v13355_v57, %v8315_v14  ;;  %v8516_v63 = vsel %vm8515_vm4, %v8501_v52, 0.0  ;;  %v8731_v47 = vmul.f32 %v8501_v52, %v8501_v52  ;;  %v13377_v53 = vpop.f32.mrf.mxu1 }
 0x3e4   :  { %v8517_v39 = vadd.f32 %v8516_v63, %v8514_v5 }
 0x3e5   :  { %v8531_v18 = vsel %vm8515_vm4, %v8502_v2, 0.0  ;;  %v8732_v23 = vmul.f32 %v8502_v2, %v8502_v2  ;;  %v8745_v38 = vsel %vm8515_vm4, %v8731_v47, 0.0  ;;  %v13381_v35 = vpop.f32.mrf.mxu1  ;;  %v14350_v2 = vld [vmem:[#allocation35_spill] sm:$0xff] }
 0x3e6   :  { %v8518_v16 = vrot.slane %v8517_v39, 4  ;;  %v8532_v43 = vadd.f32 %v8531_v18, %v8530_v60  ;;  %v8746_v10 = vadd.f32 %v8745_v38, %v8744_v24 }
 0x3e7   :  { %v8760_v33 = vsel %vm8515_vm4, %v8732_v23, 0.0  ;;  %8016 = vmatmul.mubr.bf16.gmra.mxu0 %v14348_v48  ;;  %v13385_v1 = vpop.f32.mrf.mxu1  ;;  %v14352_v48 = vld [vmem:[#allocation30_spill] sm:$0xff] }
 0x3e8   :  { %v8519_v37 = vadd.f32 %v8518_v16, %v8517_v39  ;;  %v8533_v30 = vrot.slane %v8532_v43, 4  ;;  %v8747_v29 = vrot.slane %v8746_v10, 4  ;;  %v8761_v3 = vadd.f32 %v8760_v33, %v8759_v6  ;;  %v14349_v6 = vld [vmem:[#allocation27_spill] sm:$0xff] }
 0x3e9   :  { %10112 = vmatmul.mubr.msk.bf16.gmra.mxu1 %vm2225_vm1, %v12789_v9  ;;  %v13389_v56 = vpop.f32.mrf.mxu1  ;;  %v2606_v63 = vadd.f32 %v14350_v2, %v14349_v6  ;;  %v14360_v2 = vld [vmem:[#allocation46_spill] sm:$0xff] }
 0x3ea   :  { %v8520_v36 = vrot.slane %v8519_v37, 2  ;;  %v8534_v31 = vadd.f32 %v8533_v30, %v8532_v43  ;;  %v8748_v26 = vadd.f32 %v8747_v29, %v8746_v10  ;;  %v8762_v20 = vrot.slane %v8761_v3, 4  ;;  %v14351_v10 = vld [vmem:[#allocation36_spill] sm:$0xff]  ;;  %v14354_v29 = vld [vmem:[#allocation31_spill] sm:$0xff] }
 0x3eb   :  { %v13391_v62 = vpop.f32.mrf.mxu1  ;;  %v8170_v43 = vsub.s32 2, %v13092_v19  ;;  %v2687_v33 = vadd.f32 %v14351_v10, %v2606_v63 }
 0x3ec   :  { %v8521_v22 = vadd.f32 %v8520_v36, %v8519_v37  ;;  %v8535_v51 = vrot.slane %v8534_v31, 2  ;;  %v8749_v50 = vrot.slane %v8748_v26, 2  ;;  %v8763_v21 = vadd.f32 %v8762_v20, %v8761_v3  ;;  %v14353_v37 = vld [vmem:[#allocation40_spill] sm:$0xff]  ;;  %v14355_v3 = vld [vmem:[#allocation45_spill] sm:$0xff] }
 0x3ed   :  { %v13393_v8 = vpop.f32.mrf.mxu1  ;;  %v2616_v30 = vadd.f32 %v14353_v37, %v14352_v48  ;;  %v2626_v36 = vadd.f32 %v14355_v3, %v14354_v29  ;;  %v14362_v48 = vld [vmem:[#allocation44_spill] sm:$0xff] }
 0x3ee   :  { %v8522_v59 = vrot.slane %v8521_v22, 1  ;;  %v8536_v45 = vadd.f32 %v8535_v51, %v8534_v31  ;;  %v8750_v54 = vadd.f32 %v8749_v50, %v8748_v26  ;;  %v8764_v5 = vrot.slane %v8763_v21, 2  ;;  %v14356_v51 = vld [vmem:[#allocation32_spill] sm:$0xff]  ;;  %v14357_v50 = vld [vmem:[#allocation50_spill] sm:$0xff] }
 0x3ef   :  { %v13395_v60 = vpop.f32.mrf.mxu1  ;;  %v2707_v63 = vadd.f32 %v14360_v2, %v2626_v36 }
 0x3f0   :  { %v8537_v9 = vrot.slane %v8536_v45, 1  ;;  %v8751_v58 = vrot.slane %v8750_v54, 1  ;;  %v8765_v32 = vadd.f32 %v8764_v5, %v8763_v21  ;;  %v13399_v52 = vadd.f32 %v8522_v59, %v8521_v22  ;;  %v14358_v59 = vld [vmem:[#allocation95_spill] sm:$0xff] }
 0x3f1   :  { %v13397_v14 = vpop.f32.mrf.mxu1  ;;  %v8174_v22 = vsub.s32 3, %v13092_v19  ;;  %v2636_v21 = vadd.f32 %v14357_v50, %v14356_v51 }
 0x3f2   :  { %v13401_v4 = vadd.f32 %v8537_v9, %v8536_v45  ;;  %v8766_v24 = vrot.slane %v8765_v32, 1  ;;  %v13407_v18 = vadd.f32 %v8751_v58, %v8750_v54  ;;  %v4778_v45 = vadd.f32 %v14358_v59, %v2687_v33  ;;  %v14366_v59 = vld [vmem:[#allocation47_spill] sm:$0xff] }
 0x3f3   :  { %v7471_v47 = vpop.f32.mrf.mxu1  ;;  %v13425_v58 = vrot.slane %v13113_v41, %v8170_v43  ;;  %v13433_v33 = vrot.slane %v13113_v41, %v8174_v22  ;;  %v14363_v43 = vld [vmem:[#allocation51_spill] sm:$0xff]  ;;  %v14368_v22 = vld [vmem:[#allocation49_spill] sm:$0xff] }
 0x3f4   :  { %v8621_v39 = vcombine.low %v13399_v52, %v13401_v4  ;;  %v13409_v23 = vadd.f32 %v8766_v24, %v8765_v32  ;;  %v14359_v24 = vld [vmem:[#allocation41_spill] sm:$0xff] }
 0x3f5   :  { %v7472_v38 = vpop.f32.mrf.mxu1  ;;  %v2697_v6 = vadd.f32 %v14359_v24, %v2616_v30 }
 0x3f6   :  { %v8850_v16 = vcombine.low %v13407_v18, %v13409_v23  ;;  %v7508_v31 = vpop.f32.mrf.mxu0 }
 0x3f7   :  { %v7589_v26 = vpop.f32.mrf.mxu1  ;;  %v7509_v20 = vadd.f32 %v7508_v31, %v13269_v34  ;;  %v14361_v34 = vld [vmem:[#allocation48_spill] sm:$0xff]  ;;  %v2717_v31 = vadd.f32 %v14363_v43, %v2636_v21  ;;  %v14370_v21 = vld [vmem:[#allocation105_spill] sm:$0xff] }
 0x3f8   :  { %v7510_v54 = vpop.f32.mrf.mxu0  ;;  %v4859_v47 = vadd.f32 %v14361_v34, %v4778_v45 }
 0x3f9   :  { %v7591_v5 = vpop.f32.mrf.mxu1  ;;  %v7590_v9 = vadd.f32 %v7589_v26, %v7509_v20  ;;  %v7511_v32 = vadd.f32 %v7510_v54, %v13277_v0  ;;  %v14364_v26 = vld [vmem:[#allocation39_spill] sm:$0xff]  ;;  %v14365_v20 = vld [vmem:[#allocation42_spill] sm:$0xff] }
 0x3fa   :  { %v7512_v38 = vpop.f32.mrf.mxu0  ;;  %v4788_v0 = vadd.f32 %v14364_v26, %v2697_v6  ;;  %v4798_v30 = vadd.f32 %v14365_v20, %v2707_v63 }
 0x3fb   :  { %v7593_v10 = vpop.f32.mrf.mxu1  ;;  %v8097_v37 = vadd.f32 %v7590_v9, %v14362_v48  ;;  %v7592_v29 = vadd.f32 %v7591_v5, %v7511_v32  ;;  %v7513_v3 = vadd.f32 %v7512_v38, %v13296_v12  ;;  %v14367_v9 = vld [vmem:[#allocation43_spill] sm:$0xff]  ;;  %v4940_v32 = vadd.f32 %v14368_v22, %v4859_v47  ;;  %v14369_v12 = vld [vmem:[#allocation98_spill] sm:$0xff]  ;;  %v14371_v48 = vld [vmem:[#allocation52_spill] sm:$0xff] }
 0x3fc   :  { %v7514_v51 = vpop.f32.mrf.mxu0  ;;  %v4808_v41 = vadd.f32 %v14367_v9, %v2717_v31  ;;  %v4869_v24 = vadd.f32 %v14369_v12, %v4788_v0  ;;  %v4879_v2 = vadd.f32 %v14370_v21, %v4798_v30  ;;  %v14373_v30 = vld [vmem:[#allocation99_spill] sm:$0xff]  ;;  %v14375_v22 = vld [vmem:[#allocation114_spill] sm:$0xff]  ;;  %v14376_v12 = vld [vmem:[#allocation53_spill] sm:$0xff] }
 0x3fd   :  { %v7595_v36 = vpop.f32.mrf.mxu1  ;;  %v8197_v50 = vadd.f32 %v13425_v58, %v8097_v37  ;;  %v8098_v45 = vadd.f32 %v7592_v29, %v14366_v59  ;;  %v7594_v54 = vadd.f32 %v7593_v10, %v7513_v3  ;;  %v7515_v5 = vadd.f32 %v7514_v51, %v13304_v13  ;;  %v14372_v29 = vld [vmem:[#allocation113_spill] sm:$0xff] }
 0x3fe   :  { %v7518_v6 = vpop.f32.mrf.mxu0  ;;  %v4889_v10 = vadd.f32 %v14372_v29, %v4808_v41  ;;  %v4950_v51 = vadd.f32 %v14373_v30, %v4869_v24  ;;  %v14377_v29 = vld [vmem:[#allocation54_spill] sm:$0xff] }
 0x3ff   :  { %v7599_v34 = vpop.f32.mrf.mxu1  ;;  %v8260_v63 = vmax.f32 %v8197_v50, 0.0  ;;  %v8198_v38 = vadd.f32 %v13433_v33, %v8098_v45  ;;  %v8104_v37 = vadd.f32 %v7594_v54, %v14371_v48  ;;  %v7596_v43 = vadd.f32 %v7595_v36, %v7515_v5 }
 0x400   :  { %v7519_v13 = vadd.f32 %v7518_v6, %v13316_v55  ;;  %v7520_v3 = vpop.f32.mrf.mxu0  ;;  %v14374_v55 = vld [vmem:[#allocation106_spill] sm:$0xff] }
 0x401   :  { %v7601_v31 = vpop.f32.mrf.mxu1  ;;  %8323 = vst [vmem:[%s14007_s4 + $0x10] sm:$0xff] %v8260_v63  ;;  %v8447_v47 = vmul.f32 %v13142_v17, %v8260_v63  ;;  %v8261_v26 = vmax.f32 %v8198_v38, 0.0  ;;  %v8204_v0 = vadd.f32 %v13425_v58, %v8104_v37  ;;  %v8105_v20 = vadd.f32 %v7596_v43, %v4940_v32 }
 0x402   :  { %v7521_v36 = vadd.f32 %v7520_v3, %v13327_v25  ;;  %v7600_v50 = vadd.f32 %v7599_v34, %v7519_v13  ;;  %v7522_v59 = vpop.f32.mrf.mxu0  ;;  %v13458_v54 = vadd.f32 %v14374_v55, %v4879_v2  ;;  %v13466_v32 = vadd.f32 %v14375_v22, %v4889_v10 }
 0x403   :  { %v7603_v45 = vpop.f32.mrf.mxu1  ;;  %8324 = vst [vmem:[%s14007_s4 + $0x18] sm:$0xff] %v8261_v26  ;;  %v8448_v5 = vmul.f32 %v13142_v17, %v8261_v26  ;;  %v8267_v9 = vmax.f32 %v8204_v0, 0.0  ;;  %v8205_v41 = vadd.f32 %v13433_v33, %v8105_v20  ;;  %v7523_v24 = vadd.f32 %v7522_v59, %v13341_v15 }
 0x404   :  { %v8111_v25 = vadd.f32 %v7600_v50, %v14376_v12  ;;  %v7602_v21 = vadd.f32 %v7601_v31, %v7521_v36  ;;  %v7524_v6 = vpop.f32.mrf.mxu0  ;;  %v8677_v34 = vmul.f32 %v8447_v47, %v8447_v47  ;;  %v14378_v36 = vld [vmem:[#allocation100_spill] sm:$0xff] }
 0x405   :  { %v7605_v2 = vpop.f32.mrf.mxu1  ;;  %8330 = vst [vmem:[%s14007_s4 + $0x48] sm:$0xff] %v8267_v9  ;;  %v8454_v63 = vmul.f32 %v13186_v44, %v8267_v9  ;;  %v8268_v38 = vmax.f32 %v8205_v41, 0.0  ;;  %v7525_v48 = vadd.f32 %v7524_v6, %v13345_v28  ;;  %v8678_v37 = vmul.f32 %v8448_v5, %v8448_v5 }
 0x406   :  { %v8211_v43 = vadd.f32 %v13425_v58, %v8111_v25  ;;  %v8112_v10 = vadd.f32 %v7602_v21, %v14377_v29  ;;  %v7604_v13 = vadd.f32 %v7603_v45, %v7523_v24  ;;  %v7528_v15 = vpop.f32.mrf.mxu0 }
 0x407   :  { %v7609_v3 = vpop.f32.mrf.mxu1  ;;  %v8539_v31 = vadd.f32 %v8454_v63, %v8447_v47  ;;  %v8684_v26 = vmul.f32 %v8454_v63, %v8454_v63  ;;  %8331 = vst [vmem:[%s14007_s4 + $0x50] sm:$0xff] %v8268_v38  ;;  %v8455_v0 = vmul.f32 %v13186_v44, %v8268_v38  ;;  %v7529_v20 = vadd.f32 %v7528_v15, %v13359_v61 }
 0x408   :  { %v8274_v30 = vmax.f32 %v8211_v43, 0.0  ;;  %v8212_v28 = vadd.f32 %v13433_v33, %v8112_v10  ;;  %v8118_v50 = vadd.f32 %v7604_v13, %v14378_v36  ;;  %v7606_v59 = vadd.f32 %v7605_v2, %v7525_v48  ;;  %v7530_v55 = vpop.f32.mrf.mxu0  ;;  %v14379_v13 = vld [vmem:[#allocation102_spill] sm:$0xff] }
 0x409   :  { %v7611_v45 = vpop.f32.mrf.mxu1  ;;  %v8768_v9 = vadd.f32 %v8684_v26, %v8677_v34  ;;  %v8554_v41 = vadd.f32 %v8455_v0, %v8448_v5  ;;  %v8685_v47 = vmul.f32 %v8455_v0, %v8455_v0  ;;  %v7531_v22 = vadd.f32 %v7530_v55, %v13367_v27 }
 0x40a   :  { %8337 = vst [vmem:[%s14007_s4 + $0x80] sm:$0xff] %v8274_v30  ;;  %v8461_v12 = vmul.f32 %v13206_v40, %v8274_v30  ;;  %v8275_v61 = vmax.f32 %v8212_v28, 0.0  ;;  %v8218_v25 = vadd.f32 %v13425_v58, %v8118_v50  ;;  %v8119_v24 = vadd.f32 %v7606_v59, %v4950_v51  ;;  %v7532_v21 = vpop.f32.mrf.mxu0 }
 0x40b   :  { %v7613_v6 = vpop.f32.mrf.mxu1  ;;  %v8783_v2 = vadd.f32 %v8685_v47, %v8678_v37  ;;  %v7610_v63 = vadd.f32 %v7609_v3, %v7529_v20  ;;  %v7533_v34 = vadd.f32 %v7532_v21, %v13377_v53  ;;  %v7612_v5 = vadd.f32 %v7611_v45, %v7531_v22  ;;  %v14380_v37 = vld [vmem:[#allocation103_spill] sm:$0xff] }
 0x40c   :  { %v8540_v38 = vadd.f32 %v8539_v31, %v8461_v12  ;;  %v8691_v48 = vmul.f32 %v8461_v12, %v8461_v12  ;;  %8338 = vst [vmem:[%s14007_s4 + $0x88] sm:$0xff] %v8275_v61  ;;  %v8462_v27 = vmul.f32 %v13206_v40, %v8275_v61  ;;  %v8281_v43 = vmax.f32 %v8218_v25, 0.0  ;;  %v7534_v29 = vpop.f32.mrf.mxu0 }
 0x40d   :  { %v7615_v10 = vpop.f32.mrf.mxu1  ;;  %v8219_v51 = vadd.f32 %v13433_v33, %v8119_v24  ;;  %v8125_v15 = vadd.f32 %v7610_v63, %v14379_v13  ;;  %v8126_v3 = vadd.f32 %v7612_v5, %v14380_v37  ;;  %v7535_v53 = vadd.f32 %v7534_v29, %v13381_v35  ;;  %v14381_v24 = vld [vmem:[#allocation107_spill] sm:$0xff] }
 0x40e   :  { %v8769_v26 = vadd.f32 %v8768_v9, %v8691_v48  ;;  %v8555_v31 = vadd.f32 %v8554_v41, %v8462_v27  ;;  %v8692_v0 = vmul.f32 %v8462_v27, %v8462_v27  ;;  %8344 = vst [vmem:[%s14007_s4 + $0xb8] sm:$0xff] %v8281_v43  ;;  %v8468_v20 = vmul.f32 %v13238_v7, %v8281_v43  ;;  %v7538_v30 = vpop.f32.mrf.mxu0 }
 0x40f   :  { %v7619_v28 = vpop.f32.mrf.mxu1  ;;  %v8282_v36 = vmax.f32 %v8219_v51, 0.0  ;;  %v8225_v50 = vadd.f32 %v13425_v58, %v8125_v15  ;;  %v8226_v59 = vadd.f32 %v13433_v33, %v8126_v3  ;;  %v7614_v55 = vadd.f32 %v7613_v6, %v7533_v34 }
 0x410   :  { %v8784_v45 = vadd.f32 %v8783_v2, %v8692_v0  ;;  %v8541_v47 = vadd.f32 %v8540_v38, %v8468_v20  ;;  %v8698_v35 = vmul.f32 %v8468_v20, %v8468_v20  ;;  %v7539_v9 = vadd.f32 %v7538_v30, %v13385_v1  ;;  %v7540_v41 = vpop.f32.mrf.mxu0 }
 0x411   :  { %v7621_v22 = vpop.f32.mrf.mxu1  ;;  %8345 = vst [vmem:[%s14007_s4 + $0xc0] sm:$0xff] %v8282_v36  ;;  %v8469_v12 = vmul.f32 %v13238_v7, %v8282_v36  ;;  %v8288_v61 = vmax.f32 %v8225_v50, 0.0  ;;  %v8289_v25 = vmax.f32 %v8226_v59, 0.0  ;;  %v8132_v21 = vadd.f32 %v7614_v55, %v14381_v24  ;;  %v14384_v24 = vld [vmem:[#allocation115_spill] sm:$0xff] }
 0x412   :  { %v8770_v63 = vadd.f32 %v8769_v26, %v8698_v35  ;;  %v7616_v5 = vadd.f32 %v7615_v10, %v7535_v53  ;;  %v7541_v6 = vadd.f32 %v7540_v41, %v13389_v56  ;;  %v7620_v2 = vadd.f32 %v7619_v28, %v7539_v9  ;;  %v7542_v34 = vpop.f32.mrf.mxu0  ;;  %v14382_v10 = vld [vmem:[#allocation109_spill] sm:$0xff] }
 0x413   :  { %v7623_v38 = vpop.f32.mrf.mxu1  ;;  %v8556_v1 = vadd.f32 %v8555_v31, %v8469_v12  ;;  %v8699_v48 = vmul.f32 %v8469_v12, %v8469_v12  ;;  %8351 = vst [vmem:[%s14007_s4 + $0xf0] sm:$0xff] %v8288_v61  ;;  %v8475_v27 = vmul.f32 %v13260_v42, %v8288_v61  ;;  %8352 = vst [vmem:[%s14007_s4 + $0xf8] sm:$0xff] %v8289_v25  ;;  %v14383_v61 = vld [vmem:[#allocation112_spill] sm:$0xff] }
 0x414   :  { %v8476_v43 = vmul.f32 %v13260_v42, %v8289_v25  ;;  %v8232_v29 = vadd.f32 %v13425_v58, %v8132_v21  ;;  %v8133_v56 = vadd.f32 %v7616_v5, %v13458_v54  ;;  %v8139_v51 = vadd.f32 %v7620_v2, %v14382_v10  ;;  %v7544_v15 = vpop.f32.mrf.mxu0 }
 0x415   :  { %v7543_v13 = vadd.f32 %v7542_v34, %v13391_v62  ;;  %v7625_v37 = vpop.f32.mrf.mxu1  ;;  %v8785_v3 = vadd.f32 %v8784_v45, %v8699_v48  ;;  %v8542_v53 = vadd.f32 %v8541_v47, %v8475_v27  ;;  %v8705_v26 = vmul.f32 %v8475_v27, %v8475_v27 }
 0x416   :  { %v8557_v31 = vadd.f32 %v8556_v1, %v8476_v43  ;;  %v8706_v0 = vmul.f32 %v8476_v43, %v8476_v43  ;;  %v8295_v20 = vmax.f32 %v8232_v29, 0.0  ;;  %v8233_v30 = vadd.f32 %v13433_v33, %v8133_v56  ;;  %v7548_v36 = vpop.f32.mrf.mxu0 }
 0x417   :  { %v8239_v28 = vadd.f32 %v13425_v58, %v8139_v51  ;;  %v7629_v50 = vpop.f32.mrf.mxu1  ;;  %v8771_v59 = vadd.f32 %v8770_v63, %v8705_v26  ;;  %v7622_v54 = vadd.f32 %v7621_v22, %v7541_v6  ;;  %v7545_v55 = vadd.f32 %v7544_v15, %v13393_v8 }
 0x418   :  { %v7624_v35 = vadd.f32 %v7623_v38, %v7543_v13  ;;  %v8786_v62 = vadd.f32 %v8785_v3, %v8706_v0  ;;  %8358 = vst [vmem:[%s14007_s4 + $0x128] sm:$0xff] %v8295_v20  ;;  %v8482_v45 = vmul.f32 %v13291_v49, %v8295_v20  ;;  %v8296_v47 = vmax.f32 %v8233_v30, 0.0  ;;  %v7550_v41 = vpop.f32.mrf.mxu0 }
 0x419   :  { %v8302_v9 = vmax.f32 %v8239_v28, 0.0  ;;  %v7631_v12 = vpop.f32.mrf.mxu1  ;;  %v8140_v25 = vadd.f32 %v7622_v54, %v14383_v61  ;;  %v7549_v22 = vadd.f32 %v7548_v36, %v13395_v60  ;;  %v7626_v63 = vadd.f32 %v7625_v37, %v7545_v55  ;;  %v14385_v28 = vld [vmem:[#allocation118_spill] sm:$0xff] }
 0x41a   :  { %v8146_v21 = vadd.f32 %v7624_v35, %v14384_v24  ;;  %v8543_v8 = vadd.f32 %v8542_v53, %v8482_v45  ;;  %v8712_v5 = vmul.f32 %v8482_v45, %v8482_v45  ;;  %8359 = vst [vmem:[%s14007_s4 + $0x130] sm:$0xff] %v8296_v47  ;;  %v8483_v6 = vmul.f32 %v13291_v49, %v8296_v47  ;;  %v7552_v34 = vpop.f32.mrf.mxu0 }
 0x41b   :  { %8365 = vst [vmem:[%s14007_s4 + $0x160] sm:$0xff] %v8302_v9  ;;  %v8489_v2 = vmul.f32 %v13308_v46, %v8302_v9  ;;  %v7633_v38 = vpop.f32.mrf.mxu1  ;;  %v8240_v1 = vadd.f32 %v13433_v33, %v8140_v25  ;;  %v8147_v48 = vadd.f32 %v7626_v63, %v13466_v32  ;;  %v7551_v27 = vadd.f32 %v7550_v41, %v13397_v14 }
 0x41c   :  { %v8246_v60 = vadd.f32 %v13425_v58, %v8146_v21  ;;  %v8772_v43 = vadd.f32 %v8771_v59, %v8712_v5  ;;  %v8558_v29 = vadd.f32 %v8557_v31, %v8483_v6  ;;  %v8713_v56 = vmul.f32 %v8483_v6, %v8483_v6  ;;  %v7553_v51 = vpop.f32.mrf.mxu0  ;;  %v14386_v59 = vld [vmem:[#allocation119_spill] sm:$0xff] }
 0x41d   :  { %v8544_v10 = vadd.f32 %v8543_v8, %v8489_v2  ;;  %v7634_v13 = vpop.f32.mrf.mxu1  ;;  %v8719_v15 = vmul.f32 %v8489_v2, %v8489_v2  ;;  %v8303_v37 = vmax.f32 %v8240_v1, 0.0  ;;  %v8247_v53 = vadd.f32 %v13433_v33, %v8147_v48 }
 0x41e   :  { %v8309_v3 = vmax.f32 %v8246_v60, 0.0  ;;  %v8787_v26 = vadd.f32 %v8786_v62, %v8713_v56  ;;  %v7630_v0 = vadd.f32 %v7629_v50, %v7549_v22  ;;  %v7632_v20 = vadd.f32 %v7631_v12, %v7551_v27 }
 0x41f   :  { %v8773_v30 = vadd.f32 %v8772_v43, %v8719_v15  ;;  %8366 = vst [vmem:[%s14007_s4 + $0x168] sm:$0xff] %v8303_v37  ;;  %v8490_v14 = vmul.f32 %v13308_v46, %v8303_v37  ;;  %v8310_v31 = vmax.f32 %v8247_v53, 0.0 }
 0x420   :  { %8372 = vst [vmem:[%s14007_s4 + $0x198] sm:$0xff] %v8309_v3  ;;  %v8496_v32 = vmul.f32 %v13335_v11, %v8309_v3  ;;  %v8153_v36 = vadd.f32 %v7630_v0, %v14385_v28  ;;  %v8154_v54 = vadd.f32 %v7632_v20, %v14386_v59 }
 0x421   :  { %v8559_v50 = vadd.f32 %v8558_v29, %v8490_v14  ;;  %v8720_v55 = vmul.f32 %v8490_v14, %v8490_v14  ;;  %8373 = vst [vmem:[%s14007_s4 + $0x1a0] sm:$0xff] %v8310_v31  ;;  %v8497_v45 = vmul.f32 %v13335_v11, %v8310_v31  ;;  %v11267_v29 = vmov 1966171168  }
 0x422   :  { %v8545_v35 = vadd.f32 %v8544_v10, %v8496_v32  ;;  %v8726_v62 = vmul.f32 %v8496_v32, %v8496_v32  ;;  %v8253_v47 = vadd.f32 %v13425_v58, %v8153_v36  ;;  %v8254_v9 = vadd.f32 %v13433_v33, %v8154_v54 }
 0x423   :  { %v8788_v41 = vadd.f32 %v8787_v26, %v8720_v55  ;;  %v8560_v61 = vadd.f32 %v8559_v50, %v8497_v45  ;;  %v8727_v25 = vmul.f32 %v8497_v45, %v8497_v45  ;;  %v8625_v56 = vunpack.c.l.s4 %v11267_v29 }
 0x424   :  { %v8774_v12 = vadd.f32 %v8773_v30, %v8726_v62  ;;  %v8316_v24 = vmax.f32 %v8253_v47, 0.0  ;;  %v8317_v21 = vmax.f32 %v8254_v9, 0.0 }
 0x425   :  { %v8789_v22 = vadd.f32 %v8788_v41, %v8727_v25  ;;  %v8626_v0 = vunpack.c.0.s8 %v8625_v56 }
 0x426   :  { %8379 = vst [vmem:[%s14007_s4 + $0x1d0] sm:$0x3f] %v8316_v24  ;;  %v8503_v63 = vmul.f32 %v13355_v57, %v8316_v24  ;;  %8380 = vst [vmem:[%s14007_s4 + $0x1d8] sm:$0x3f] %v8317_v21  ;;  %v8504_v58 = vmul.f32 %v13355_v57, %v8317_v21 }
 0x427   :  { %v13576_v54 = vsub.s32 %v8626_v0, %v13092_v19 }
 0x428   :  { %v8546_v33 = vsel %vm8515_vm4, %v8503_v63, 0.0  ;;  %v8733_v8 = vmul.f32 %v8503_v63, %v8503_v63  ;;  %v8561_v5 = vsel %vm8515_vm4, %v8504_v58, 0.0  ;;  %v8734_v6 = vmul.f32 %v8504_v58, %v8504_v58 }
 0x429   :  { %v8547_v2 = vadd.f32 %v8546_v33, %v8545_v35  ;;  %v8562_v34 = vadd.f32 %v8561_v5, %v8560_v61  ;;  %14387 = vst [vmem:[#allocation16_spill] sm:$0xff] %v13576_v54  ;;  %v13582_v24 = vrot.slane %v8621_v39, %v13576_v54  ;;  %v14401_v33 = vld [vmem:[#allocation61_spill] sm:$0xff] }
 0x42a   :  { %v8775_v38 = vsel %vm8515_vm4, %v8733_v8, 0.0  ;;  %v8790_v1 = vsel %vm8515_vm4, %v8734_v6, 0.0  ;;  %v13595_v8 = vrot.slane %v8850_v16, %v13576_v54 }
 0x42b   :  { %v8548_v60 = vrot.slane %v8547_v2, 4  ;;  %v8776_v48 = vadd.f32 %v8775_v38, %v8774_v12  ;;  %v8563_v27 = vrot.slane %v8562_v34, 4  ;;  %v8791_v43 = vadd.f32 %v8790_v1, %v8789_v22  ;;  %14388 = vst [vmem:[#allocation17_spill] sm:$0xff] %v13582_v24 }
 0x42c   :  { %14390 = vst [vmem:[#allocation19_spill] sm:$0xff] %v13595_v8 }
 0x42d   :  { %v8549_v10 = vadd.f32 %v8548_v60, %v8547_v2  ;;  %v8777_v51 = vrot.slane %v8776_v48, 4  ;;  %v8564_v13 = vadd.f32 %v8563_v27, %v8562_v34  ;;  %v8792_v15 = vrot.slane %v8791_v43, 4 }
 0x42f   :  { %v8550_v37 = vrot.slane %v8549_v10, 2  ;;  %v8778_v3 = vadd.f32 %v8777_v51, %v8776_v48  ;;  %v8565_v53 = vrot.slane %v8564_v13, 2  ;;  %v8793_v26 = vadd.f32 %v8792_v15, %v8791_v43 }
 0x431   :  { %v8551_v20 = vadd.f32 %v8550_v37, %v8549_v10  ;;  %v8779_v30 = vrot.slane %v8778_v3, 2  ;;  %v8566_v14 = vadd.f32 %v8565_v53, %v8564_v13  ;;  %v8794_v32 = vrot.slane %v8793_v26, 2 }
 0x433   :  { %v8552_v31 = vrot.slane %v8551_v20, 1  ;;  %v8780_v28 = vadd.f32 %v8779_v30, %v8778_v3  ;;  %v8567_v36 = vrot.slane %v8566_v14, 1  ;;  %v8795_v59 = vadd.f32 %v8794_v32, %v8793_v26 }
 0x435   :  { %v8553_v50 = vadd.f32 %v8552_v31, %v8551_v20  ;;  %v8781_v55 = vrot.slane %v8780_v28, 1  ;;  %v8568_v35 = vadd.f32 %v8567_v36, %v8566_v14  ;;  %v8796_v62 = vrot.slane %v8795_v59, 1  ;;  %v14396_v36 = vld [vmem:[#allocation56_spill] sm:$0xff] }
 0x436   :  { %v7670_v45 = vpop.f32.mrf.mxu0 }
 0x437   :  { %v7751_v47 = vpop.f32.mrf.mxu1  ;;  %v8782_v9 = vadd.f32 %v8781_v55, %v8780_v28  ;;  %v8622_v41 = vcombine.low %v8553_v50, %v8568_v35  ;;  %v8797_v12 = vadd.f32 %v8796_v62, %v8795_v59  ;;  %v14395_v28 = vld [vmem:[#allocation55_spill] sm:$0xff]  ;;  %v8178_v35 = vsub.s32 4, %v13092_v19  ;;  %v14397_v62 = vld [vmem:[#allocation57_spill] sm:$0xff] }
 0x438   :  { %v7672_v61 = vpop.f32.mrf.mxu0  ;;  %v2849_v59 = vadd.f32 %v14396_v36, %v14395_v28  ;;  %v7752_v11 = vadd.f32 %v7751_v47, %v7670_v45  ;;  %v8182_v28 = vsub.s32 5, %v13092_v19  ;;  %v14404_v36 = vld [vmem:[#allocation70_spill] sm:$0xff]  ;;  %v14410_v47 = vld [vmem:[#allocation69_spill] sm:$0xff] }
 0x439   :  { %v7753_v25 = vpop.f32.mrf.mxu1  ;;  %v13585_v21 = vrot.slane %v8622_v41, %v13576_v54  ;;  %v8851_v22 = vcombine.low %v8782_v9, %v8797_v12  ;;  %v14398_v9 = vld [vmem:[#allocation58_spill] sm:$0xff]  ;;  %v14399_v12 = vld [vmem:[#allocation59_spill] sm:$0xff] }
 0x43a   :  { %v13587_v63 = vpop.f32.mrf.mxu0  ;;  %v2859_v41 = vadd.f32 %v14398_v9, %v14397_v62  ;;  %v14407_v62 = vld [vmem:[#allocation64_spill] sm:$0xff] }
 0x43b   :  { %14389 = vst [vmem:[#allocation18_spill] sm:$0xff] %v13585_v21  ;;  %v7755_v58 = vpop.f32.mrf.mxu1  ;;  %v13598_v52 = vrot.slane %v8851_v22, %v13576_v54  ;;  %v14400_v22 = vld [vmem:[#allocation60_spill] sm:$0xff]  ;;  %v14403_v21 = vld [vmem:[#allocation66_spill] sm:$0xff] }
 0x43c   :  { %v13600_v4 = vpop.f32.mrf.mxu0  ;;  %v2869_v5 = vadd.f32 %v14400_v22, %v14399_v12  ;;  %v2930_v24 = vadd.f32 %v14403_v21, %v2849_v59  ;;  %v7754_v22 = vadd.f32 %v7753_v25, %v7672_v61  ;;  %v14411_v59 = vld [vmem:[#allocation72_spill] sm:$0xff]  ;;  %v14413_v25 = vld [vmem:[#allocation65_spill] sm:$0xff] }
 0x43d   :  { %14391 = vst [vmem:[#allocation20_spill] sm:$0xff] %v13598_v52  ;;  %v13602_v39 = vpop.f32.mrf.mxu1  ;;  %v14402_v52 = vld [vmem:[#allocation62_spill] sm:$0xff] }
 0x43e   :  { %v13606_v6 = vpop.f32.mrf.mxu0  ;;  %v2879_v8 = vadd.f32 %v14402_v52, %v14401_v33  ;;  %v5021_v9 = vadd.f32 %v14407_v62, %v2930_v24  ;;  %v13679_v52 = vld [vmem:[#allocation4] sm:$0xff]  ;;  %v7756_v24 = vadd.f32 %v7755_v58, %v13587_v63  ;;  %v14416_v63 = vld [vmem:[#allocation68_spill] sm:$0xff] }
 0x43f   :  { %v13608_v2 = vpop.f32.mrf.mxu1  ;;  %14408 = vst [vmem:[#allocation85_spill] sm:$0xff] %v13679_v52 }
 0x440   :  { %v13610_v34 = vpop.f32.mrf.mxu0 }
 0x441   :  { %v13612_v38 = vpop.f32.mrf.mxu1 }
 0x442   :  { %v13614_v18 = vpop.f32.mrf.mxu0 }
 0x443   :  { %v13616_v23 = vpop.f32.mrf.mxu1 }
 0x444   :  { %v13618_v16 = vpop.f32.mrf.mxu0 }
 0x445   :  { %v13620_v1 = vpop.f32.mrf.mxu1 }
 0x446   :  { %v13622_v60 = vpop.f32.mrf.mxu0 }
 0x447   :  { %v13624_v48 = vpop.f32.mrf.mxu1 }
 0x448   :  { %v13626_v27 = vpop.f32.mrf.mxu0 }
 0x449   :  { %v13628_v43 = vpop.f32.mrf.mxu1 }
 0x44a   :  { %v13630_v29 = vpop.f32.mrf.mxu0 }
 0x44b   :  { %v13632_v56 = vpop.f32.mrf.mxu1 }
 0x44c   :  { %v13634_v10 = vpop.f32.mrf.mxu0 }
 0x44d   :  { %v13636_v51 = vpop.f32.mrf.mxu1 }
 0x44e   :  { %v13638_v13 = vpop.f32.mrf.mxu0 }
 0x44f   :  { %v13640_v15 = vpop.f32.mrf.mxu1 }
 0x450   :  { %v13642_v37 = vpop.f32.mrf.mxu0 }
 0x451   :  { %v13644_v3 = vpop.f32.mrf.mxu1 }
 0x452   :  { %v13646_v53 = vpop.f32.mrf.mxu0 }
 0x453   :  { %v13648_v26 = vpop.f32.mrf.mxu1 }
 0x454   :  { %v13650_v0 = vpop.f32.mrf.mxu0 }
 0x455   :  { %v13652_v20 = vpop.f32.mrf.mxu1 }
 0x456   :  { %v13654_v30 = vpop.f32.mrf.mxu0 }
 0x457   :  { %v13656_v14 = vpop.f32.mrf.mxu1 }
 0x458   :  { %14392 = vst [vmem:[#allocation22_spill] sm:$0xff] %v13656_v14  ;;  %v13658_v32 = vpop.f32.mrf.mxu0 }
 0x459   :  { %14393 = vst [vmem:[#allocation26_spill] sm:$0xff] %v13658_v32  ;;  %v13660_v31 = vpop.f32.mrf.mxu1 }
 0x45a   :  { %14394 = vst [vmem:[#allocation83_spill] sm:$0xff] %v13660_v31  ;;  %v7714_v50 = vpop.f32.mrf.mxu0  ;;  %v14406_v31 = vld [vmem:[#allocation78_spill] sm:$0xff] }
 0x45b   :  { %v7795_v55 = vpop.f32.mrf.mxu1  ;;  %v2940_v50 = vadd.f32 %v14404_v36, %v2859_v41  ;;  %v2960_v32 = vadd.f32 %v14406_v31, %v2879_v8  ;;  %v14412_v31 = vld [vmem:[#allocation75_spill] sm:$0xff] }
 0x45c   :  { %v7715_v54 = vpop.f32.mrf.mxu0  ;;  %v14405_v55 = vld [vmem:[#allocation74_spill] sm:$0xff] }
 0x45d   :  { %v7796_v57 = vpop.f32.mrf.mxu1  ;;  %v2950_v46 = vadd.f32 %v14405_v55, %v2869_v5  ;;  %v14409_v54 = vld [vmem:[#allocation67_spill] sm:$0xff]  ;;  %v5051_v5 = vadd.f32 %v14411_v59, %v2960_v32 }
 0x45e   :  { %v7832_v14 = vpop.f32.mrf.mxu0  ;;  %v13682_v57 = vrot.slane %v13679_v52, %v8178_v35  ;;  %v5031_v45 = vadd.f32 %v14409_v54, %v2940_v50  ;;  %v14415_v50 = vld [vmem:[#allocation76_spill] sm:$0xff]  ;;  %v14419_v59 = vld [vmem:[#allocation79_spill] sm:$0xff] }
 0x45f   :  { %v13677_v12 = vpop.f32.mrf.mxu1  ;;  %v7833_v33 = vadd.f32 %v7832_v14, %v7752_v11  ;;  %v5041_v21 = vadd.f32 %v14410_v47, %v2950_v46  ;;  %v13692_v11 = vrot.slane %v13679_v52, %v8182_v28  ;;  %v5102_v14 = vadd.f32 %v14413_v25, %v5021_v9  ;;  %v14418_v47 = vld [vmem:[#allocation73_spill] sm:$0xff] }
 0x460   :  { %v7834_v41 = vpop.f32.mrf.mxu0  ;;  %v7758_v46 = vadd.f32 %v13602_v39, %v13600_v4  ;;  %v5112_v58 = vadd.f32 %v14416_v63, %v5031_v45  ;;  %v5132_v28 = vadd.f32 %v14418_v47, %v5051_v5  ;;  %v14420_v4 = vld [vmem:[#allocation77_spill] sm:$0xff]  ;;  %v14423_v45 = vld [vmem:[#allocation131_spill] sm:$0xff]  ;;  %v7762_v5 = vadd.f32 %v13608_v2, %v13606_v6 }
 0x461   :  { %v13687_v8 = vpop.f32.mrf.mxu1  ;;  %v8099_v36 = vadd.f32 %v7833_v33, %v14412_v31  ;;  %v7835_v61 = vadd.f32 %v7834_v41, %v7754_v22  ;;  %v14417_v33 = vld [vmem:[#allocation71_spill] sm:$0xff]  ;;  %v5183_v41 = vadd.f32 %v14419_v59, %v5102_v14  ;;  %v7768_v6 = vadd.f32 %v13620_v1, %v13618_v16  ;;  %v14425_v59 = vld [vmem:[#allocation81_spill] sm:$0xff] }
 0x462   :  { %v7836_v35 = vpop.f32.mrf.mxu0  ;;  %v5122_v22 = vadd.f32 %v14417_v33, %v5041_v21  ;;  %v13714_v21 = vadd.f32 %v14423_v45, %v5132_v28  ;;  %v7776_v16 = vadd.f32 %v13632_v56, %v13630_v29  ;;  %v13745_v1 = vadd.f32 %v13636_v51, %v13634_v10 }
 0x463   :  { %v13695_v55 = vpop.f32.mrf.mxu1  ;;  %v8199_v32 = vadd.f32 %v13682_v57, %v8099_v36  ;;  %v8100_v62 = vadd.f32 %v7835_v61, %v14415_v50  ;;  %v7837_v54 = vadd.f32 %v7836_v35, %v7756_v24  ;;  %v14422_v24 = vld [vmem:[#allocation127_spill] sm:$0xff]  ;;  %v13757_v56 = vadd.f32 %v13640_v15, %v13638_v13 }
 0x464   :  { %14414 = vst [vmem:[#allocation21_spill] sm:$0xff] %v13695_v55  ;;  %v7838_v9 = vpop.f32.mrf.mxu0  ;;  %v14421_v55 = vld [vmem:[#allocation123_spill] sm:$0xff]  ;;  %v13711_v35 = vadd.f32 %v14422_v24, %v5122_v22  ;;  %v14426_v24 = vld [vmem:[#allocation82_spill] sm:$0xff]  ;;  %v13770_v13 = vadd.f32 %v13644_v3, %v13642_v37 }
 0x465   :  { %v13705_v31 = vpop.f32.mrf.mxu1  ;;  %v8262_v25 = vmax.f32 %v8199_v32, 0.0  ;;  %v8200_v52 = vadd.f32 %v13692_v11, %v8100_v62  ;;  %v8106_v39 = vadd.f32 %v7837_v54, %v14420_v4  ;;  %v7839_v36 = vadd.f32 %v7838_v9, %v7758_v46 }
 0x466   :  { %v5193_v61 = vadd.f32 %v14421_v55, %v5112_v58  ;;  %v7842_v14 = vpop.f32.mrf.mxu0  ;;  %v7764_v32 = vadd.f32 %v13612_v38, %v13610_v34  ;;  %v7766_v54 = vadd.f32 %v13616_v23, %v13614_v18  ;;  %v7772_v34 = vadd.f32 %v13624_v48, %v13622_v60 }
 0x467   :  { %v13718_v50 = vpop.f32.mrf.mxu1  ;;  %8325 = vst [vmem:[%s14007_s4 + $0x20] sm:$0xff] %v8262_v25  ;;  %v8263_v55 = vmax.f32 %v8200_v52, 0.0  ;;  %v8206_v46 = vadd.f32 %v13682_v57, %v8106_v39  ;;  %v8107_v62 = vadd.f32 %v7839_v36, %v5183_v41  ;;  %v8449_v2 = vmul.f32 %v13142_v17, %v8262_v25  ;;  %v14424_v52 = vld [vmem:[#allocation80_spill] sm:$0xff] }
 0x468   :  { %v7843_v63 = vadd.f32 %v7842_v14, %v7762_v5  ;;  %v7844_v58 = vpop.f32.mrf.mxu0  ;;  %v7774_v38 = vadd.f32 %v13628_v43, %v13626_v27 }
 0x469   :  { %v13731_v33 = vpop.f32.mrf.mxu1  ;;  %8326 = vst [vmem:[%s14007_s4 + $0x28] sm:$0xff] %v8263_v55  ;;  %v8269_v18 = vmax.f32 %v8206_v46, 0.0  ;;  %v8207_v23 = vadd.f32 %v13692_v11, %v8107_v62  ;;  %v7845_v60 = vadd.f32 %v7844_v58, %v7764_v32  ;;  %v8450_v27 = vmul.f32 %v13142_v17, %v8263_v55 }
 0x46a   :  { %v8113_v22 = vadd.f32 %v7843_v63, %v14424_v52  ;;  %v7846_v48 = vpop.f32.mrf.mxu0  ;;  %v8679_v10 = vmul.f32 %v8449_v2, %v8449_v2 }
 0x46b   :  { %v13748_v47 = vpop.f32.mrf.mxu1  ;;  %8332 = vst [vmem:[%s14007_s4 + $0x58] sm:$0xff] %v8269_v18  ;;  %v8456_v43 = vmul.f32 %v13186_v44, %v8269_v18  ;;  %v8270_v28 = vmax.f32 %v8207_v23, 0.0  ;;  %v7847_v29 = vadd.f32 %v7846_v48, %v7766_v54  ;;  %v8114_v41 = vadd.f32 %v7845_v60, %v14425_v59 }
 0x46c   :  { %v8213_v51 = vadd.f32 %v13682_v57, %v8113_v22  ;;  %v7848_v9 = vpop.f32.mrf.mxu0  ;;  %v8680_v46 = vmul.f32 %v8450_v27, %v8450_v27 }
 0x46d   :  { %v13761_v25 = vpop.f32.mrf.mxu1  ;;  %v8569_v4 = vadd.f32 %v8456_v43, %v8449_v2  ;;  %v8686_v39 = vmul.f32 %v8456_v43, %v8456_v43  ;;  %8333 = vst [vmem:[%s14007_s4 + $0x60] sm:$0xff] %v8270_v28  ;;  %v8457_v36 = vmul.f32 %v13186_v44, %v8270_v28  ;;  %v8120_v45 = vadd.f32 %v7847_v29, %v14426_v24 }
 0x46e   :  { %v8276_v15 = vmax.f32 %v8213_v51, 0.0  ;;  %v8214_v5 = vadd.f32 %v13692_v11, %v8114_v41  ;;  %v7849_v14 = vadd.f32 %v7848_v9, %v7768_v6  ;;  %v7852_v32 = vpop.f32.mrf.mxu0  ;;  %v14428_v51 = vld [vmem:[#allocation125_spill] sm:$0xff] }
 0x46f   :  { %v13773_v55 = vpop.f32.mrf.mxu1  ;;  %v8798_v62 = vadd.f32 %v8686_v39, %v8679_v10  ;;  %v8687_v54 = vmul.f32 %v8457_v36, %v8457_v36  ;;  %v8220_v2 = vadd.f32 %v13682_v57, %v8120_v45  ;;  %v7853_v58 = vadd.f32 %v7852_v32, %v7772_v34 }
 0x470   :  { %8339 = vst [vmem:[%s14007_s4 + $0x90] sm:$0xff] %v8276_v15  ;;  %v8463_v63 = vmul.f32 %v13206_v40, %v8276_v15  ;;  %v8277_v37 = vmax.f32 %v8214_v5, 0.0  ;;  %v8121_v3 = vadd.f32 %v7849_v14, %v5193_v61  ;;  %v7854_v18 = vpop.f32.mrf.mxu0  ;;  %v8584_v6 = vadd.f32 %v8457_v36, %v8450_v27 }
 0x471   :  { %v13780_v23 = vpop.f32.mrf.mxu1  ;;  %v8813_v52 = vadd.f32 %v8687_v54, %v8680_v46  ;;  %v8283_v22 = vmax.f32 %v8220_v2, 0.0  ;;  %v7855_v60 = vadd.f32 %v7854_v18, %v7774_v38  ;;  %v14427_v38 = vld [vmem:[#allocation124_spill] sm:$0xff] }
 0x472   :  { %v8570_v48 = vadd.f32 %v8569_v4, %v8463_v63  ;;  %v8693_v43 = vmul.f32 %v8463_v63, %v8463_v63  ;;  %8340 = vst [vmem:[%s14007_s4 + $0x98] sm:$0xff] %v8277_v37  ;;  %v8464_v28 = vmul.f32 %v13206_v40, %v8277_v37  ;;  %v8221_v29 = vadd.f32 %v13692_v11, %v8121_v3  ;;  %v7856_v10 = vpop.f32.mrf.mxu0 }
 0x473   :  { %v13787_v61 = vpop.f32.mrf.mxu1  ;;  %8346 = vst [vmem:[%s14007_s4 + $0xc8] sm:$0xff] %v8283_v22  ;;  %v8470_v34 = vmul.f32 %v13238_v7, %v8283_v22  ;;  %v8127_v27 = vadd.f32 %v7853_v58, %v14427_v38  ;;  %v8128_v59 = vadd.f32 %v7855_v60, %v14428_v51  ;;  %v7857_v41 = vadd.f32 %v7856_v10, %v7776_v16 }
 0x474   :  { %v8799_v9 = vadd.f32 %v8798_v62, %v8693_v43  ;;  %v8585_v4 = vadd.f32 %v8584_v6, %v8464_v28  ;;  %v8694_v39 = vmul.f32 %v8464_v28, %v8464_v28  ;;  %v8284_v36 = vmax.f32 %v8221_v29, 0.0  ;;  %v7858_v24 = vpop.f32.mrf.mxu0  ;;  %v14429_v62 = vld [vmem:[#allocation126_spill] sm:$0xff] }
 0x475   :  { %v13795_v45 = vpop.f32.mrf.mxu1  ;;  %v8571_v15 = vadd.f32 %v8570_v48, %v8470_v34  ;;  %v8700_v5 = vmul.f32 %v8470_v34, %v8470_v34  ;;  %v8227_v14 = vadd.f32 %v13682_v57, %v8127_v27  ;;  %v8228_v32 = vadd.f32 %v13692_v11, %v8128_v59 }
 0x476   :  { %v8814_v46 = vadd.f32 %v8813_v52, %v8694_v39  ;;  %8347 = vst [vmem:[%s14007_s4 + $0xd0] sm:$0xff] %v8284_v36  ;;  %v8471_v16 = vmul.f32 %v13238_v7, %v8284_v36  ;;  %v8134_v54 = vadd.f32 %v7857_v41, %v14429_v62  ;;  %v7859_v2 = vadd.f32 %v7858_v24, %v13745_v1  ;;  %v7862_v63 = vpop.f32.mrf.mxu0  ;;  %v14430_v39 = vld [vmem:[#allocation128_spill] sm:$0xff] }
 0x477   :  { %v13805_v37 = vpop.f32.mrf.mxu1  ;;  %v7786_v3 = vadd.f32 %v13648_v26, %v13646_v53  ;;  %v8800_v58 = vadd.f32 %v8799_v9, %v8700_v5  ;;  %v8290_v18 = vmax.f32 %v8227_v14, 0.0  ;;  %v8291_v6 = vmax.f32 %v8228_v32, 0.0 }
 0x478   :  { %v8586_v52 = vadd.f32 %v8585_v4, %v8471_v16  ;;  %v8701_v22 = vmul.f32 %v8471_v16, %v8471_v16  ;;  %v8234_v60 = vadd.f32 %v13682_v57, %v8134_v54  ;;  %v8135_v48 = vadd.f32 %v7859_v2, %v13711_v35  ;;  %v7864_v43 = vpop.f32.mrf.mxu0 }
 0x479   :  { %v13811_v28 = vpop.f32.mrf.mxu1  ;;  %8353 = vst [vmem:[%s14007_s4 + $0x100] sm:$0xff] %v8290_v18  ;;  %v8477_v1 = vmul.f32 %v13260_v42, %v8290_v18  ;;  %8354 = vst [vmem:[%s14007_s4 + $0x108] sm:$0xff] %v8291_v6  ;;  %v8478_v53 = vmul.f32 %v13260_v42, %v8291_v6  ;;  %v7863_v26 = vadd.f32 %v7862_v63, %v13757_v56  ;;  %v14432_v6 = vld [vmem:[#allocation22_spill] sm:$0xff] }
 0x47a   :  { %v7865_v29 = vadd.f32 %v7864_v43, %v13770_v13  ;;  %v7788_v35 = vadd.f32 %v13652_v20, %v13650_v0  ;;  %v8815_v10 = vadd.f32 %v8814_v46, %v8701_v22  ;;  %v8297_v34 = vmax.f32 %v8234_v60, 0.0  ;;  %v7866_v27 = vpop.f32.mrf.mxu0  ;;  %v14431_v20 = vld [vmem:[#allocation129_spill] sm:$0xff]  ;;  %v14435_v43 = vld [vmem:[#allocation83_spill] sm:$0xff] }
 0x47b   :  { %v8235_v38 = vadd.f32 %v13692_v11, %v8135_v48  ;;  %v13826_v51 = vpop.f32.mrf.mxu1  ;;  %v8572_v59 = vadd.f32 %v8571_v15, %v8477_v1  ;;  %v8707_v41 = vmul.f32 %v8477_v1, %v8477_v1  ;;  %v8587_v9 = vadd.f32 %v8586_v52, %v8478_v53  ;;  %v14434_v48 = vld [vmem:[#allocation26_spill] sm:$0xff] }
 0x47c   :  { %v8708_v4 = vmul.f32 %v8478_v53, %v8478_v53  ;;  %8360 = vst [vmem:[%s14007_s4 + $0x138] sm:$0xff] %v8297_v34  ;;  %v8484_v56 = vmul.f32 %v13291_v49, %v8297_v34  ;;  %v8141_v0 = vadd.f32 %v7863_v26, %v14430_v39  ;;  %v8142_v36 = vadd.f32 %v7865_v29, %v14431_v20  ;;  %v7868_v24 = vpop.f32.mrf.mxu0 }
 0x47d   :  { %v8298_v13 = vmax.f32 %v8235_v38, 0.0  ;;  %v13834_v5 = vpop.f32.mrf.mxu1  ;;  %v8801_v14 = vadd.f32 %v8800_v58, %v8707_v41  ;;  %v7867_v15 = vadd.f32 %v7866_v27, %v7786_v3  ;;  %v7869_v46 = vadd.f32 %v7868_v24, %v7788_v35  ;;  %v14433_v3 = vld [vmem:[#allocation130_spill] sm:$0xff] }
 0x47e   :  { %v8816_v32 = vadd.f32 %v8815_v10, %v8708_v4  ;;  %v8573_v16 = vadd.f32 %v8572_v59, %v8484_v56  ;;  %v8714_v62 = vmul.f32 %v8484_v56, %v8484_v56  ;;  %v8241_v2 = vadd.f32 %v13682_v57, %v8141_v0  ;;  %v7872_v63 = vpop.f32.mrf.mxu0 }
 0x47f   :  { %8361 = vst [vmem:[%s14007_s4 + $0x140] sm:$0xff] %v8298_v13  ;;  %v8485_v54 = vmul.f32 %v13291_v49, %v8298_v13  ;;  %v13841_v18 = vpop.f32.mrf.mxu1  ;;  %v7792_v52 = vadd.f32 %v14432_v6, %v13654_v30  ;;  %v8242_v58 = vadd.f32 %v13692_v11, %v8142_v36  ;;  %v8148_v22 = vadd.f32 %v7867_v15, %v14433_v3  ;;  %v14437_v36 = vld [vmem:[#allocation132_spill] sm:$0xff] }
 0x480   :  { %v8149_v60 = vadd.f32 %v7869_v46, %v13714_v21  ;;  %v7794_v1 = vadd.f32 %v14435_v43, %v14434_v48  ;;  %v8802_v53 = vadd.f32 %v8801_v14, %v8714_v62  ;;  %v8304_v29 = vmax.f32 %v8241_v2, 0.0  ;;  %v7874_v35 = vpop.f32.mrf.mxu0  ;;  %v14436_v21 = vld [vmem:[#allocation13_spill] sm:$0xff] }
 0x481   :  { %v8715_v26 = vmul.f32 %v8485_v54, %v8485_v54  ;;  %v13850_v10 = vpop.f32.mrf.mxu1  ;;  %v8305_v34 = vmax.f32 %v8242_v58, 0.0  ;;  %v8248_v38 = vadd.f32 %v13682_v57, %v8148_v22  ;;  %v7873_v27 = vadd.f32 %v7872_v63, %v7792_v52  ;;  %v14438_v46 = vld [vmem:[#allocation133_spill] sm:$0xff]  ;;  %v14439_v52 = vld [vmem:[#allocation14_spill] sm:$0xff] }
 0x482   :  { %v8249_v30 = vadd.f32 %v13692_v11, %v8149_v60  ;;  %v8588_v59 = vadd.f32 %v8587_v9, %v8485_v54  ;;  %8367 = vst [vmem:[%s14007_s4 + $0x170] sm:$0xff] %v8304_v29  ;;  %v8491_v41 = vmul.f32 %v14436_v21, %v8304_v29  ;;  %v7875_v4 = vadd.f32 %v7874_v35, %v7794_v1  ;;  %v7876_v56 = vpop.f32.mrf.mxu0 }
 0x483   :  { %v9973_v13 = vpop.f32.mrf.mxu1  ;;  %8368 = vst [vmem:[%s14007_s4 + $0x178] sm:$0xff] %v8305_v34  ;;  %v8492_v39 = vmul.f32 %v14436_v21, %v8305_v34  ;;  %v8311_v0 = vmax.f32 %v8248_v38, 0.0  ;;  %v8155_v24 = vadd.f32 %v7873_v27, %v14437_v36  ;;  %v8817_v9 = vadd.f32 %v8816_v32, %v8715_v26 }
 0x484   :  { %v8312_v20 = vmax.f32 %v8249_v30, 0.0  ;;  %v8574_v14 = vadd.f32 %v8573_v16, %v8491_v41  ;;  %v8721_v15 = vmul.f32 %v8491_v41, %v8491_v41  ;;  %v8156_v62 = vadd.f32 %v7875_v4, %v14438_v46  ;;  %v7877_v54 = vpop.f32.mrf.mxu0 }
 0x485   :  { %v9974_v2 = vpop.f32.mrf.mxu1  ;;  %v8589_v63 = vadd.f32 %v8588_v59, %v8492_v39  ;;  %v8722_v6 = vmul.f32 %v8492_v39, %v8492_v39  ;;  %8374 = vst [vmem:[%s14007_s4 + $0x1a8] sm:$0xff] %v8311_v0  ;;  %v8498_v58 = vmul.f32 %v14439_v52, %v8311_v0  ;;  %v8255_v3 = vadd.f32 %v13682_v57, %v8155_v24  ;;  %v14440_v57 = vld [vmem:[#allocation15_spill] sm:$0xff] }
 0x486   :  { %8375 = vst [vmem:[%s14007_s4 + $0x1b0] sm:$0xff] %v8312_v20  ;;  %v8499_v32 = vmul.f32 %v14439_v52, %v8312_v20  ;;  %v8803_v16 = vadd.f32 %v8802_v53, %v8721_v15  ;;  %v8256_v22 = vadd.f32 %v13692_v11, %v8156_v62  ;;  %v9992_v60 = vpop.f32.mrf.mxu0  ;;  %v9948_v27 = vadd.f32 %v13687_v8, %v13677_v12  ;;  %v14441_v2 = vld [vmem:[#allocation21_spill] sm:$0xff] }
 0x487   :  { %v8057_v48 = vpop.f32.mrf.mxu1  ;;  %v8818_v43 = vadd.f32 %v8817_v9, %v8722_v6  ;;  %v8575_v1 = vadd.f32 %v8574_v14, %v8498_v58  ;;  %v8728_v26 = vmul.f32 %v8498_v58, %v8498_v58  ;;  %v8318_v35 = vmax.f32 %v8255_v3, 0.0  ;;  %v14442_v58 = vld [vmem:[#allocation85_spill] sm:$0xff] }
 0x488   :  { %v8729_v29 = vmul.f32 %v8499_v32, %v8499_v32  ;;  %v8319_v34 = vmax.f32 %v8256_v22, 0.0  ;;  %v9993_v38 = vpop.f32.mrf.mxu0  ;;  %v8186_v4 = vsub.s32 6, %v13092_v19  ;;  %v8590_v39 = vadd.f32 %v8589_v63, %v8499_v32 }
 0x489   :  { %v10097_v30 = vpop.f32.mrf.mxu1  ;;  %v8804_v59 = vadd.f32 %v8803_v16, %v8728_v26  ;;  %v9994_v41 = vadd.f32 %v9993_v38, %v9992_v60  ;;  %8381 = vst [vmem:[%s14007_s4 + $0x1e0] sm:$0x3f] %v8318_v35  ;;  %v8505_v11 = vmul.f32 %v14440_v57, %v8318_v35  ;;  %v9951_v19 = vadd.f32 %v13705_v31, %v14441_v2 }
 0x48a   :  { %8382 = vst [vmem:[%s14007_s4 + $0x1e8] sm:$0x3f] %v8319_v34  ;;  %v8506_v53 = vmul.f32 %v14440_v57, %v8319_v34  ;;  %v9995_v56 = vpop.f32.mrf.mxu0  ;;  %v8819_v12 = vadd.f32 %v8818_v43, %v8729_v29  ;;  %v13892_v32 = vrot.slane %v14442_v58, %v8186_v4 }
 0x48b   :  { %v8060_v13 = vpop.f32.mrf.mxu1  ;;  %v7986_v8 = vadd.f32 %v9994_v41, %v9948_v27  ;;  %v8576_v0 = vsel %vm8515_vm4, %v8505_v11, 0.0  ;;  %v8735_v20 = vmul.f32 %v8505_v11, %v8505_v11  ;;  %v9954_v41 = vadd.f32 %v13731_v33, %v13718_v50 }
 0x48c   :  { %v8591_v36 = vsel %vm8515_vm4, %v8506_v53, 0.0  ;;  %v8736_v24 = vmul.f32 %v8506_v53, %v8506_v53  ;;  %v9996_v9 = vpop.f32.mrf.mxu0  ;;  %v8577_v15 = vadd.f32 %v8576_v0, %v8575_v1  ;;  %v14443_v1 = vld [vmem:[#allocation134_spill] sm:$0xff] }
 0x48d   :  { %v10098_v14 = vpop.f32.mrf.mxu1  ;;  %v8592_v46 = vadd.f32 %v8591_v36, %v8590_v39  ;;  %v8058_v62 = vadd.f32 %v8057_v48, %v7986_v8  ;;  %v9997_v54 = vadd.f32 %v9996_v9, %v9995_v56  ;;  %v8805_v6 = vsel %vm8515_vm4, %v8735_v20, 0.0 }
 0x48e   :  { %v8820_v63 = vsel %vm8515_vm4, %v8736_v24, 0.0  ;;  %v8578_v3 = vrot.slane %v8577_v15, 4  ;;  %v8806_v22 = vadd.f32 %v8805_v6, %v8804_v59  ;;  %v9957_v20 = vadd.f32 %v13761_v25, %v13748_v47  ;;  %v14444_v24 = vld [vmem:[#allocation135_spill] sm:$0xff] }
 0x48f   :  { %v9998_v16 = vpop.f32.mrf.mxu0  ;;  %v8593_v60 = vrot.slane %v8592_v46, 4  ;;  %v8821_v43 = vadd.f32 %v8820_v63, %v8819_v12  ;;  %v8065_v26 = vpop.f32.mrf.mxu1  ;;  %v8101_v29 = vadd.f32 %v8058_v62, %v14443_v1  ;;  %v7989_v48 = vadd.f32 %v9997_v54, %v9951_v19 }
 0x490   :  { %v8579_v34 = vadd.f32 %v8578_v3, %v8577_v15  ;;  %v8807_v38 = vrot.slane %v8806_v22, 4 }
 0x491   :  { %v9999_v35 = vpop.f32.mrf.mxu0  ;;  %v8594_v31 = vadd.f32 %v8593_v60, %v8592_v46  ;;  %v8822_v30 = vrot.slane %v8821_v43, 4  ;;  %v10101_v27 = vpop.f32.mrf.mxu1  ;;  %v8201_v11 = vadd.f32 %v13892_v32, %v8101_v29  ;;  %v8061_v53 = vadd.f32 %v8060_v13, %v7989_v48 }
 0x492   :  { %v10000_v4 = vadd.f32 %v9999_v35, %v9998_v16  ;;  %v8580_v56 = vrot.slane %v8579_v34, 2  ;;  %v8808_v39 = vadd.f32 %v8807_v38, %v8806_v22  ;;  %v9960_v22 = vadd.f32 %v13780_v23, %v13773_v55 }
 0x493   :  { %v10001_v59 = vpop.f32.mrf.mxu0  ;;  %v8595_v12 = vrot.slane %v8594_v31, 2  ;;  %v8823_v8 = vadd.f32 %v8822_v30, %v8821_v43  ;;  %v8068_v0 = vpop.f32.mrf.mxu1  ;;  %v8264_v36 = vmax.f32 %v8201_v11, 0.0  ;;  %v8108_v9 = vadd.f32 %v8061_v53, %v14444_v24  ;;  %v14445_v43 = vld [vmem:[#allocation136_spill] sm:$0xff] }
 0x494   :  { %v7994_v14 = vadd.f32 %v10000_v4, %v9954_v41  ;;  %v8581_v46 = vadd.f32 %v8580_v56, %v8579_v34  ;;  %v8809_v50 = vrot.slane %v8808_v39, 2 }
 0x495   :  { %v10002_v15 = vpop.f32.mrf.mxu0  ;;  %v8596_v33 = vadd.f32 %v8595_v12, %v8594_v31  ;;  %v8824_v62 = vrot.slane %v8823_v8, 2  ;;  %v10102_v13 = vpop.f32.mrf.mxu1  ;;  %8327 = vst [vmem:[%s14007_s4 + $0x30] sm:$0xff] %v8264_v36  ;;  %v8451_v54 = vmul.f32 %v13142_v17, %v8264_v36  ;;  %v8208_v2 = vadd.f32 %v13892_v32, %v8108_v9 }
 0x496   :  { %v8066_v19 = vadd.f32 %v8065_v26, %v7994_v14  ;;  %v10003_v47 = vadd.f32 %v10002_v15, %v10001_v59  ;;  %v8582_v6 = vrot.slane %v8581_v46, 1  ;;  %v8810_v63 = vadd.f32 %v8809_v50, %v8808_v39 }
 0x497   :  { %v10004_v25 = vpop.f32.mrf.mxu0  ;;  %v8597_v58 = vrot.slane %v8596_v33, 1  ;;  %v8825_v16 = vadd.f32 %v8824_v62, %v8823_v8  ;;  %v8271_v60 = vmax.f32 %v8208_v2, 0.0  ;;  %v8681_v4 = vmul.f32 %v8451_v54, %v8451_v54  ;;  %v14446_v8 = vld [vmem:[#allocation137_spill] sm:$0xff] }
 0x498   :  { %v8073_v3 = vpop.f32.mrf.mxu1  ;;  %v8115_v1 = vadd.f32 %v8066_v19, %v14445_v43  ;;  %v7997_v29 = vadd.f32 %v10003_v47, %v9957_v20  ;;  %v13909_v35 = vadd.f32 %v8582_v6, %v8581_v46  ;;  %v8811_v17 = vrot.slane %v8810_v63, 1  ;;  %v14448_v43 = vld [vmem:[#allocation139_spill] sm:$0xff] }
 0x499   :  { %v10005_v48 = vpop.f32.mrf.mxu0  ;;  %v13911_v34 = vadd.f32 %v8597_v58, %v8596_v33  ;;  %v8826_v26 = vrot.slane %v8825_v16, 1  ;;  %8334 = vst [vmem:[%s14007_s4 + $0x68] sm:$0xff] %v8271_v60  ;;  %v8458_v31 = vmul.f32 %v13186_v44, %v8271_v60  ;;  %v9966_v47 = vadd.f32 %v13811_v28, %v13805_v37 }
 0x49a   :  { %v10105_v38 = vpop.f32.mrf.mxu1  ;;  %v8215_v55 = vadd.f32 %v13892_v32, %v8115_v1  ;;  %v8069_v23 = vadd.f32 %v8068_v0, %v7997_v29  ;;  %v10006_v30 = vadd.f32 %v10005_v48, %v10004_v25  ;;  %v13918_v41 = vadd.f32 %v8811_v17, %v8810_v63  ;;  %v14447_v25 = vld [vmem:[#allocation138_spill] sm:$0xff] }
 0x49b   :  { %v10007_v27 = vpop.f32.mrf.mxu0  ;;  %v8623_v11 = vcombine.low %v13909_v35, %v13911_v34  ;;  %v13922_v53 = vadd.f32 %v8826_v26, %v8825_v16  ;;  %v8599_v56 = vadd.f32 %v8458_v31, %v8451_v54  ;;  %v8688_v39 = vmul.f32 %v8458_v31, %v8458_v31 }
 0x49c   :  { %v8076_v59 = vpop.f32.mrf.mxu1  ;;  %v8278_v12 = vmax.f32 %v8215_v55, 0.0  ;;  %v8122_v20 = vadd.f32 %v8069_v23, %v14446_v8  ;;  %v9963_v0 = vadd.f32 %v13795_v45, %v13787_v61  ;;  %v8002_v24 = vadd.f32 %v10006_v30, %v9960_v22 }
 0x49d   :  { %v10008_v44 = vpop.f32.mrf.mxu0  ;;  %v8852_v36 = vcombine.low %v13918_v41, %v13922_v53  ;;  %v8828_v15 = vadd.f32 %v8688_v39, %v8681_v4  ;;  %v9969_v37 = vadd.f32 %v13834_v5, %v13826_v51  ;;  %v14456_v34 = vlaneseq }
 0x49e   :  { %v10009_v9 = vadd.f32 %v10008_v44, %v10007_v27  ;;  %v10106_v14 = vpop.f32.mrf.mxu1  ;;  %8341 = vst [vmem:[%s14007_s4 + $0xa0] sm:$0xff] %v8278_v12  ;;  %v8465_v46 = vmul.f32 %v13206_v40, %v8278_v12  ;;  %v8222_v50 = vadd.f32 %v13892_v32, %v8122_v20  ;;  %v8074_v62 = vadd.f32 %v8073_v3, %v8002_v24 }
 0x49f   :  { %v10010_v33 = vpop.f32.mrf.mxu0  ;;  %vm8672_vm5 = vcmp.lt.s32.totalorder %v14456_v34, 896 }
 0x4a0   :  { %v8005_v13 = vadd.f32 %v10009_v9, %v9963_v0  ;;  %v8600_v61 = vadd.f32 %v8599_v56, %v8465_v46  ;;  %v8695_v45 = vmul.f32 %v8465_v46, %v8465_v46  ;;  %v8285_v2 = vmax.f32 %v8222_v50, 0.0  ;;  %v14449_v56 = vld [vmem:[#allocation140_spill] sm:$0xff] }
 0x4a1   :  { %v8081_v54 = vpop.f32.mrf.mxu1  ;;  %v10011_v19 = vpop.f32.mrf.mxu0  ;;  %v8129_v6 = vadd.f32 %v8074_v62, %v14447_v25 }
 0x4a2   :  { %v8077_v63 = vadd.f32 %v8076_v59, %v8005_v13  ;;  %v10012_v58 = vadd.f32 %v10011_v19, %v10010_v33  ;;  %v8829_v22 = vadd.f32 %v8828_v15, %v8695_v45  ;;  %8348 = vst [vmem:[%s14007_s4 + $0xd8] sm:$0xff] %v8285_v2  ;;  %v8472_v40 = vmul.f32 %v13238_v7, %v8285_v2 }
 0x4a3   :  { %v10109_v16 = vpop.f32.mrf.mxu1  ;;  %v10013_v3 = vpop.f32.mrf.mxu0  ;;  %v8229_v60 = vadd.f32 %v13892_v32, %v8129_v6 }
 0x4a4   :  { %v8136_v1 = vadd.f32 %v8077_v63, %v14448_v43  ;;  %v8010_v29 = vadd.f32 %v10012_v58, %v9966_v47  ;;  %v8601_v28 = vadd.f32 %v8600_v61, %v8472_v40  ;;  %v8702_v17 = vmul.f32 %v8472_v40, %v8472_v40  ;;  %v14451_v58 = vld [vmem:[#allocation142_spill] sm:$0xff] }
 0x4a5   :  { %v8084_v48 = vpop.f32.mrf.mxu1  ;;  %v10014_v26 = vpop.f32.mrf.mxu0  ;;  %v8292_v38 = vmax.f32 %v8229_v60, 0.0 }
 0x4a6   :  { %v8236_v31 = vadd.f32 %v13892_v32, %v8136_v1  ;;  %v8082_v55 = vadd.f32 %v8081_v54, %v8010_v29  ;;  %v10015_v23 = vadd.f32 %v10014_v26, %v10013_v3  ;;  %v8830_v7 = vadd.f32 %v8829_v22, %v8702_v17  ;;  %v14450_v54 = vld [vmem:[#allocation141_spill] sm:$0xff] }
 0x4a7   :  { %v10110_v30 = vpop.f32.mrf.mxu1  ;;  %v10016_v27 = vpop.f32.mrf.mxu0  ;;  %8355 = vst [vmem:[%s14007_s4 + $0x110] sm:$0xff] %v8292_v38  ;;  %v8479_v4 = vmul.f32 %v13260_v42, %v8292_v38  ;;  %v9972_v42 = vadd.f32 %v13850_v10, %v13841_v18 }
 0x4a8   :  { %v8299_v59 = vmax.f32 %v8236_v31, 0.0  ;;  %v8143_v51 = vadd.f32 %v8082_v55, %v14449_v56  ;;  %v8013_v5 = vadd.f32 %v10015_v23, %v9969_v37  ;;  %v14452_v56 = vld [vmem:[#allocation16_spill] sm:$0xff] }
 0x4a9   :  { %v8089_v39 = vpop.f32.mrf.mxu1  ;;  %v10017_v12 = vpop.f32.mrf.mxu0  ;;  %v8602_v8 = vadd.f32 %v8601_v28, %v8479_v4  ;;  %v8709_v20 = vmul.f32 %v8479_v4, %v8479_v4 }
 0x4aa   :  { %8362 = vst [vmem:[%s14007_s4 + $0x148] sm:$0xff] %v8299_v59  ;;  %v8486_v44 = vmul.f32 %v13291_v49, %v8299_v59  ;;  %v8243_v0 = vadd.f32 %v13892_v32, %v8143_v51  ;;  %v8085_v9 = vadd.f32 %v8084_v48, %v8013_v5  ;;  %v10018_v14 = vadd.f32 %v10017_v12, %v10016_v27 }
 0x4ab   :  { %v10113_v24 = vpop.f32.mrf.mxu1  ;;  %v10019_v15 = vpop.f32.mrf.mxu0  ;;  %v8831_v46 = vadd.f32 %v8830_v7, %v8709_v20  ;;  %v14453_v20 = vld [vmem:[#allocation17_spill] sm:$0xff] }
 0x4ac   :  { %v8603_v50 = vadd.f32 %v8602_v8, %v8486_v44  ;;  %v8716_v33 = vmul.f32 %v8486_v44, %v8486_v44  ;;  %v8306_v62 = vmax.f32 %v8243_v0, 0.0  ;;  %v8150_v61 = vadd.f32 %v8085_v9, %v14450_v54  ;;  %v14454_v44 = vld [vmem:[#allocation18_spill] sm:$0xff]  ;;  %v14458_v9 = vld [vmem:[#allocation20_spill] sm:$0xff] }
 0x4ad   :  { %v8092_v13 = vpop.f32.mrf.mxu1  ;;  %v8018_v45 = vadd.f32 %v10018_v14, %v9972_v42  ;;  %v10020_v2 = vpop.f32.mrf.mxu0  ;;  %v14455_v0 = vcombine.low %v14453_v20, %v14454_v44 }
 0x4ae   :  { %v8832_v19 = vadd.f32 %v8831_v46, %v8716_v33  ;;  %8369 = vst [vmem:[%s14007_s4 + $0x180] sm:$0xff] %v8306_v62  ;;  %v8493_v49 = vmul.f32 %v14436_v21, %v8306_v62  ;;  %v8250_v10 = vadd.f32 %v13892_v32, %v8150_v61 }
 0x4af   :  { %v10114_v18 = vpop.f32.mrf.mxu1  ;;  %v8090_v47 = vadd.f32 %v8089_v39, %v8018_v45  ;;  %v8873_v39 = vrot.slane %v8852_v36, %v14452_v56  ;;  %v8660_v24 = vrot.slane %v14455_v0, %v14452_v56 }
 0x4b0   :  { %v8604_v25 = vadd.f32 %v8603_v50, %v8493_v49  ;;  %v8723_v6 = vmul.f32 %v8493_v49, %v8493_v49  ;;  %v8313_v63 = vmax.f32 %v8250_v10, 0.0 }
 0x4b1   :  { %v8157_v16 = vadd.f32 %v8090_v47, %v14451_v58 }
 0x4b2   :  { %v8833_v22 = vadd.f32 %v8832_v19, %v8723_v6  ;;  %8376 = vst [vmem:[%s14007_s4 + $0x1b8] sm:$0xff] %v8313_v63  ;;  %v8500_v40 = vmul.f32 %v14439_v52, %v8313_v63 }
 0x4b3   :  { %v8257_v3 = vadd.f32 %v13892_v32, %v8157_v16 }
 0x4b4   :  { %v8605_v60 = vadd.f32 %v8604_v25, %v8500_v40  ;;  %v8730_v21 = vmul.f32 %v8500_v40, %v8500_v40 }
 0x4b5   :  { %v8320_v43 = vmax.f32 %v8257_v3, 0.0 }
 0x4b6   :  { %v8834_v1 = vadd.f32 %v8833_v22, %v8730_v21 }
 0x4b7   :  { %8383 = vst [vmem:[%s14007_s4 + $0x1f0] sm:$0x3f] %v8320_v43  ;;  %v8507_v29 = vmul.f32 %v14440_v57, %v8320_v43  ;;  %v8644_v57 = vrot.slane %v8623_v11, %v14452_v56  ;;  %v14457_v11 = vld [vmem:[#allocation19_spill] sm:$0xff] }
 0x4b8   :  { %v14459_v14 = vcombine.low %v14457_v11, %v14458_v9 }
 0x4b9   :  { %v8606_v48 = vsel %vm8515_vm4, %v8507_v29, 0.0  ;;  %v8737_v37 = vmul.f32 %v8507_v29, %v8507_v29 }
 0x4ba   :  { %v8607_v28 = vadd.f32 %v8606_v48, %v8605_v60  ;;  %v8889_v15 = vrot.slane %v14459_v14, %v14452_v56 }
 0x4bb   :  { %v8835_v17 = vsel %vm8515_vm4, %v8737_v37, 0.0 }
 0x4bc   :  { %v8608_v26 = vrot.slane %v8607_v28, 4  ;;  %v8836_v52 = vadd.f32 %v8835_v17, %v8834_v1 }
 0x4be   :  { %v8609_v38 = vadd.f32 %v8608_v26, %v8607_v28  ;;  %v8837_v32 = vrot.slane %v8836_v52, 4 }
 0x4c0   :  { %v8610_v31 = vrot.slane %v8609_v38, 2  ;;  %v8838_v55 = vadd.f32 %v8837_v32, %v8836_v52 }
 0x4c2   :  { %v8611_v23 = vadd.f32 %v8610_v31, %v8609_v38  ;;  %v8839_v30 = vrot.slane %v8838_v55, 2 }
 0x4c4   :  { %v8612_v7 = vrot.slane %v8611_v23, 1  ;;  %v8840_v27 = vadd.f32 %v8839_v30, %v8838_v55 }
 0x4c6   :  { %v8613_v4 = vadd.f32 %v8612_v7, %v8611_v23  ;;  %v8841_v59 = vrot.slane %v8840_v27, 1 }
 0x4c8   :  { %v8651_v51 = vrot.slane %v8613_v4, %v14452_v56  ;;  %v8842_v5 = vadd.f32 %v8841_v59, %v8840_v27 }
 0x4ca   :  { %v8653_v12 = vcombine.low %v8644_v57, %v8651_v51  ;;  %v8880_v8 = vrot.slane %v8842_v5, %v14452_v56 }
 0x4cc   :  { %v8667_v42 = vrot.slane %v8653_v12, %v14452_v56  ;;  %v8882_v35 = vcombine.low %v8873_v39, %v8880_v8 }
 0x4ce   :  { %v8668_v41 = vcombine.low %v8660_v24, %v8667_v42  ;;  %v8896_v53 = vrot.slane %v8882_v35, %v14452_v56 }
 0x4d0   :  { %8674 = vst.msk [vmem:[%s14008_s5] ss:$2 sm:$0x7f] %vm8672_vm5, %v8668_v41  ;;  %v8897_v36 = vcombine.low %v8889_v15, %v8896_v53 }
 0x4d2   :  { %9727 = vst.msk [vmem:[%s14008_s5 + $0x1] ss:$2 sm:$0x7f] %vm8672_vm5, %v8897_v36 }
 0x4d3   :  { %8909 = vsyncpa [#allocation3], 1 }
 0x4d4   :  { %8910 = vsyncpa [#allocation5], 1 }

</bundles_post_ra>
